<compile_context>
chip_gen: v6e
topology: v6e:2x2x1
jax: 0.10.0
libtpu: 0.0.40
codegen_flags: <defaults>
</compile_context>

<pallas_src>
import functools

import jax
import jax.numpy as jnp
from jax import lax
from jax.experimental import pallas as pl
from jax.experimental.pallas import tpu as pltpu


def _elu_plus_one(x):
    # elu(x) + 1 == exp(x) for x <= 0, x + 1 for x > 0  (f32 elementwise).
    x = x.astype(jnp.float32)
    return jnp.where(x > 0, x + 1.0, jnp.exp(x))


def _causal_linear_kernel(q_ref, k_ref, v_ref, o_ref, s_kv_ref, s_k_ref, *,
                          eps, H, E, D):
    # q_ref/k_ref: (TL, H*E), v_ref/o_ref: (TL, H*D)
    # s_kv_ref: (H, E, D) f32  -- per-head running  sum_s phi(K)[s]^T V[s]
    # s_k_ref : (1, H*E) f32   -- running           sum_s phi(K)[s]
    l_idx = pl.program_id(1)

    @pl.when(l_idx == 0)
    def _():
        s_kv_ref[...] = jnp.zeros_like(s_kv_ref)
        s_k_ref[...] = jnp.zeros_like(s_k_ref)

    # phi() in f32 over the whole (TL, H*E) block (hoisted out of head loop).
    q_all = _elu_plus_one(q_ref[...])                        # (TL, H*E) f32
    k_all = _elu_plus_one(k_ref[...])                        # (TL, H*E) f32
    v_all = v_ref[...]                                       # (TL, H*D)

    TL = q_all.shape[0]
    row = lax.broadcasted_iota(jnp.int32, (TL, TL), 0)
    col = lax.broadcasted_iota(jnp.int32, (TL, TL), 1)
    causal = col <= row                                      # (TL, TL) bool

    # bf16 operands for every MXU matmul (f32 accumulation everywhere).
    q_bf = q_all.astype(jnp.bfloat16)
    k_bf = k_all.astype(jnp.bfloat16)
    v_bf = v_all.astype(jnp.bfloat16)
    sk_prev = s_k_ref[...]                                   # (1, H*E) f32

    outs = []
    for h in range(H):                                       # static unroll
        qh = q_bf[:, h * E:(h + 1) * E]                      # (TL, E) bf16
        kh = k_bf[:, h * E:(h + 1) * E]                      # (TL, E) bf16
        vh = v_bf[:, h * D:(h + 1) * D]                      # (TL, D) bf16
        qh_f32 = q_all[:, h * E:(h + 1) * E]                 # (TL, E) f32
        skh = sk_prev[:, h * E:(h + 1) * E]                  # (1, E)  f32
        skv_prev = s_kv_ref[h]                               # (E, D)  f32

        # intra-block causal scores (contract feature axis, no explicit .T).
        scores = lax.dot_general(qh, kh, (((1,), (1,)), ((), ())),
                                 preferred_element_type=jnp.float32)  # (TL,TL)
        scores = jnp.where(causal, scores, 0.0)

        # denominator: row-sum of masked scores (intra) + q . ksum_prev (inter)
        den = jnp.sum(scores, axis=-1, keepdims=True)                 # (TL, 1)
        den = den + jnp.sum(qh_f32 * skh, axis=-1, keepdims=True)     # (TL, 1)

        # numerator: masked scores @ V (intra) + q @ [K^T V]_prev (inter)
        p = scores.astype(jnp.bfloat16)
        num = jnp.dot(p, vh, preferred_element_type=jnp.float32)      # (TL, D)
        num = num + jnp.dot(qh, skv_prev.astype(jnp.bfloat16),
                            preferred_element_type=jnp.float32)       # (TL, D)

        outs.append(num * pl.reciprocal(den + eps, approx=True))

        # carry per-head K^T V state to the next sequence block (f32 acc).
        s_kv_ref[h] = skv_prev + lax.dot_general(
            kh, vh, (((0,), (0,)), ((), ())),
            preferred_element_type=jnp.float32)

    # single lane-dense store of all heads.
    o_ref[...] = jnp.concatenate(outs, axis=-1).astype(o_ref.dtype)   # (TL,H*D)
    # carry phi(K) column-sum state (f32, sublane reduce on the XLU).
    s_k_ref[...] = sk_prev + jnp.sum(k_all, axis=0, keepdims=True)


def causal_linear_attention(queries, keys, values, key_mask=None, *,
                            eps=1e-6, seq_block=256):
    """queries/keys: (N, L, H, E); values: (N, L, H, D).

    key_mask is accepted but unused (mirrors the PyTorch forward, which
    ignores it for the causal path)."""
    del key_mask
    N, L, H, E = queries.shape
    D = values.shape[-1]
    TL = min(seq_block, L)
    assert L % TL == 0, "L must be divisible by the sequence block"
    # TODO(synk): masked last block (pl.BoundedSlice) for L % TL != 0.

    # Free, contiguous reshapes only (no HBM transpose passes): heads are
    # folded into the lane axis and split back inside the kernel.
    q = queries.reshape(N, L, H * E)
    k = keys.reshape(N, L, H * E)
    v = values.reshape(N, L, H * D)

    kernel = functools.partial(_causal_linear_kernel, eps=eps, H=H, E=E, D=D)

    out = pl.pallas_call(
        kernel,
        out_shape=jax.ShapeDtypeStruct((N, L, H * D), values.dtype),
        grid_spec=pltpu.PrefetchScalarGridSpec(
            num_scalar_prefetch=0,
            grid=(N, L // TL),
            in_specs=[
                pl.BlockSpec((None, TL, H * E), lambda b, l: (b, l, 0)),
                pl.BlockSpec((None, TL, H * E), lambda b, l: (b, l, 0)),
                pl.BlockSpec((None, TL, H * D), lambda b, l: (b, l, 0)),
            ],
            out_specs=pl.BlockSpec((None, TL, H * D), lambda b, l: (b, l, 0)),
            scratch_shapes=[
                pltpu.VMEM((H, E, D), jnp.float32),   # per-head K^T V state
                pltpu.VMEM((1, H * E), jnp.float32),  # phi(K) running sum
            ],
        ),
        compiler_params=pltpu.CompilerParams(
            dimension_semantics=("parallel", "arbitrary"),
            vmem_limit_bytes=32 * 1024 * 1024),
    )(q, k, v)

    # free reshape back to (N, L, H, D)
    return out.reshape(N, L, H, D)


def _reference(queries, keys, values, eps=1e-6):
    Q = _elu_plus_one(queries)
    K = _elu_plus_one(keys)
    V = values.astype(jnp.float32)
    Kcum = jnp.cumsum(K, axis=1)
    Z = 1.0 / (jnp.einsum('nlhi,nlhi->nlh', Q, Kcum) + eps)
    # causal_dot_product: out[n,l,h,:] = sum_{s<=l} (Q[l].K[s]) V[s]
    scores = jnp.einsum('nlhi,nshi->nhls', Q, K)
    L = Q.shape[1]
    mask = jnp.tril(jnp.ones((L, L), dtype=bool))
    scores = jnp.where(mask[None, None], scores, 0.0)
    out = jnp.einsum('nhls,nshd->nlhd', scores, V)
    return out * Z[..., None]


if __name__ == "__main__":
    key = jax.random.PRNGKey(0)
    # 2 sequence blocks of TL=256 exercise the carried state; N=2 keeps the
    # parallel grid axis even for v7x's two TensorCores; H*E = H*D = 128
    # gives lane-dense input and output blocks.
    N, L, H, E, D = 2, 512, 4, 32, 32
    kq, kk, kv = jax.random.split(key, 3)
    queries = jax.random.normal(kq, (N, L, H, E), dtype=jnp.float32)
    keys = jax.random.normal(kk, (N, L, H, E), dtype=jnp.float32)
    values = jax.random.normal(kv, (N, L, H, D), dtype=jnp.float32)
    key_mask = jnp.ones((N, L), dtype=jnp.float32)  # ignored, as in PyTorch

    out = causal_linear_attention(queries, keys, values, key_mask)
    out = jax.block_until_ready(out)

    ref = _reference(queries, keys, values)
    assert out.shape == (N, L, H, D)
    # bf16 matmul operands with f32 accumulation + approx reciprocal
    # -> relaxed tolerance.
    assert jnp.allclose(out, ref, atol=2e-2, rtol=2e-2), (
        float(jnp.max(jnp.abs(out - ref))))
    print("KERNEL_OK")
</pallas_src>

<mosaic_0001>
module attributes {stable_mosaic.version = 11 : i64} {
  func.func @_causal_linear_kernel(%arg0: i32, %arg1: i32, %arg2: memref<1x256x128xf32, #tpu.memory_space<vmem>>, %arg3: memref<1x256x128xf32, #tpu.memory_space<vmem>>, %arg4: memref<1x256x128xf32, #tpu.memory_space<vmem>>, %arg5: memref<1x256x128xf32, #tpu.memory_space<vmem>>, %arg6: memref<4x32x32xf32, #tpu.memory_space<vmem>>, %arg7: memref<1x128xf32, #tpu.memory_space<vmem>>) attributes {dimension_semantics = [#tpu.dimension_semantics<parallel>, #tpu.dimension_semantics<arbitrary>], iteration_bounds = array<i64: 2, 2>, scalar_prefetch = 0 : i64, scratch_operands = 2 : i64, tpu.core_type = #tpu.core_type<tc>, window_params = [{transform_indices = @transform_0, window_bounds = array<i64: 1, 256, 128>}, {transform_indices = @transform_1, window_bounds = array<i64: 1, 256, 128>}, {transform_indices = @transform_2, window_bounds = array<i64: 1, 256, 128>}, {transform_indices = @transform_3, window_bounds = array<i64: 1, 256, 128>}]} {
    %c0_i32 = arith.constant 0 : i32
    %0 = arith.cmpi eq, %arg1, %c0_i32 : i32
    %1 = arith.extui %0 : i1 to i32
    %c0_i32_0 = arith.constant 0 : i32
    %2 = arith.cmpi ne, %1, %c0_i32_0 : i32
    scf.if %2 {
      %cst_73 = arith.constant 0.000000e+00 : f32
      %164 = vector.broadcast %cst_73 : f32 to vector<4x32x32xf32>
      %c0_74 = arith.constant 0 : index
      %c0_75 = arith.constant 0 : index
      %c0_76 = arith.constant 0 : index
      %165 = vector.load %arg6[%c0_74, %c0_75, %c0_76] : memref<4x32x32xf32, #tpu.memory_space<vmem>>, vector<4x32x32xf32>
      tpu.vector_store %arg6[%c0_74, %c0_75, %c0_76], %164 {strides = array<i32>} : memref<4x32x32xf32, #tpu.memory_space<vmem>>, vector<4x32x32xf32>,
      %cst_77 = arith.constant 0.000000e+00 : f32
      %166 = vector.broadcast %cst_77 : f32 to vector<1x128xf32>
      %c0_78 = arith.constant 0 : index
      %c0_79 = arith.constant 0 : index
      %167 = vector.load %arg7[%c0_78, %c0_79] : memref<1x128xf32, #tpu.memory_space<vmem>>, vector<1x128xf32>
      tpu.vector_store %arg7[%c0_78, %c0_79], %166 {strides = array<i32>} : memref<1x128xf32, #tpu.memory_space<vmem>>, vector<1x128xf32>,
    } else {
    }
    %c0 = arith.constant 0 : index
    %c0_1 = arith.constant 0 : index
    %c0_2 = arith.constant 0 : index
    %3 = vector.load %arg2[%c0, %c0_1, %c0_2] : memref<1x256x128xf32, #tpu.memory_space<vmem>>, vector<1x256x128xf32>
    %4 = vector.shape_cast %3 : vector<1x256x128xf32> to vector<256x128xf32>
    %cst = arith.constant 0.000000e+00 : f32
    %5 = vector.broadcast %cst : f32 to vector<256x128xf32>
    %6 = arith.cmpf ogt, %4, %5 : vector<256x128xf32>
    %cst_3 = arith.constant 1.000000e+00 : f32
    %7 = vector.broadcast %cst_3 : f32 to vector<256x128xf32>
    %8 = arith.addf %4, %7 : vector<256x128xf32>
    %9 = math.exp %4 : vector<256x128xf32>
    %10 = arith.select %6, %8, %9 : vector<256x128xi1>, vector<256x128xf32>
    %c0_4 = arith.constant 0 : index
    %c0_5 = arith.constant 0 : index
    %c0_6 = arith.constant 0 : index
    %11 = vector.load %arg3[%c0_4, %c0_5, %c0_6] : memref<1x256x128xf32, #tpu.memory_space<vmem>>, vector<1x256x128xf32>
    %12 = vector.shape_cast %11 : vector<1x256x128xf32> to vector<256x128xf32>
    %cst_7 = arith.constant 0.000000e+00 : f32
    %13 = vector.broadcast %cst_7 : f32 to vector<256x128xf32>
    %14 = arith.cmpf ogt, %12, %13 : vector<256x128xf32>
    %cst_8 = arith.constant 1.000000e+00 : f32
    %15 = vector.broadcast %cst_8 : f32 to vector<256x128xf32>
    %16 = arith.addf %12, %15 : vector<256x128xf32>
    %17 = math.exp %12 : vector<256x128xf32>
    %18 = arith.select %14, %16, %17 : vector<256x128xi1>, vector<256x128xf32>
    %c0_9 = arith.constant 0 : index
    %c0_10 = arith.constant 0 : index
    %c0_11 = arith.constant 0 : index
    %19 = vector.load %arg4[%c0_9, %c0_10, %c0_11] : memref<1x256x128xf32, #tpu.memory_space<vmem>>, vector<1x256x128xf32>
    %20 = vector.shape_cast %19 : vector<1x256x128xf32> to vector<256x128xf32>
    %21 = tpu.iota {dimensions = array<i32: 0>} : vector<256x256xi32>
    %22 = tpu.iota {dimensions = array<i32: 1>} : vector<256x256xi32>
    %23 = arith.cmpi sle, %22, %21 : vector<256x256xi32>
    %24 = arith.truncf %10 : vector<256x128xf32> to vector<256x128xbf16>
    %25 = arith.truncf %18 : vector<256x128xf32> to vector<256x128xbf16>
    %26 = arith.truncf %20 : vector<256x128xf32> to vector<256x128xbf16>
    %c0_12 = arith.constant 0 : index
    %c0_13 = arith.constant 0 : index
    %27 = vector.load %arg7[%c0_12, %c0_13] : memref<1x128xf32, #tpu.memory_space<vmem>>, vector<1x128xf32>
    %28 = vector.extract_strided_slice %24 {offsets = [0, 0], sizes = [256, 32], strides = [1, 1]} : vector<256x128xbf16> to vector<256x32xbf16>
    %29 = vector.extract_strided_slice %25 {offsets = [0, 0], sizes = [256, 32], strides = [1, 1]} : vector<256x128xbf16> to vector<256x32xbf16>
    %30 = vector.extract_strided_slice %26 {offsets = [0, 0], sizes = [256, 32], strides = [1, 1]} : vector<256x128xbf16> to vector<256x32xbf16>
    %31 = vector.extract_strided_slice %10 {offsets = [0, 0], sizes = [256, 32], strides = [1, 1]} : vector<256x128xf32> to vector<256x32xf32>
    %32 = vector.extract_strided_slice %27 {offsets = [0, 0], sizes = [1, 32], strides = [1, 1]} : vector<1x128xf32> to vector<1x32xf32>
    %c0_14 = arith.constant 0 : index
    %c0_15 = arith.constant 0 : index
    %c0_16 = arith.constant 0 : index
    %33 = vector.load %arg6[%c0_14, %c0_15, %c0_16] : memref<4x32x32xf32, #tpu.memory_space<vmem>>, vector<1x32x32xf32>
    %34 = vector.shape_cast %33 : vector<1x32x32xf32> to vector<32x32xf32>
    %cst_17 = arith.constant dense<0.000000e+00> : vector<256x256xf32>
    %35 = tpu.matmul %28, %29, %cst_17 {dimension_numbers = #tpu.dot_dimension_numbers<[1], [1], [0], [0], [0, 0, 1, 0], [], []>} : vector<256x32xbf16>, vector<256x32xbf16>, vector<256x256xf32> -> vector<256x256xf32>
    %cst_18 = arith.constant 0.000000e+00 : f32
    %36 = vector.broadcast %cst_18 : f32 to vector<256x256xf32>
    %37 = arith.select %23, %35, %36 : vector<256x256xi1>, vector<256x256xf32>
    %cst_19 = arith.constant dense<0.000000e+00> : vector<256xf32>
    %38 = vector.multi_reduction <add>, %37, %cst_19 [1] : vector<256x256xf32> to vector<256xf32>
    %39 = vector.shape_cast %38 : vector<256xf32> to vector<256x1xf32>
    %40 = vector.broadcast %32 : vector<1x32xf32> to vector<256x32xf32>
    %41 = arith.mulf %31, %40 : vector<256x32xf32>
    %cst_20 = arith.constant dense<0.000000e+00> : vector<256xf32>
    %42 = vector.multi_reduction <add>, %41, %cst_20 [1] : vector<256x32xf32> to vector<256xf32>
    %43 = vector.shape_cast %42 : vector<256xf32> to vector<256x1xf32>
    %44 = arith.addf %39, %43 : vector<256x1xf32>
    %45 = arith.truncf %37 : vector<256x256xf32> to vector<256x256xbf16>
    %cst_21 = arith.constant dense<0.000000e+00> : vector<256x32xf32>
    %46 = tpu.matmul %45, %30, %cst_21 {dimension_numbers = #tpu.dot_dimension_numbers<[1], [0], [0], [1], [0, 0, 1, 1], [], []>} : vector<256x256xbf16>, vector<256x32xbf16>, vector<256x32xf32> -> vector<256x32xf32>
    %47 = arith.truncf %34 : vector<32x32xf32> to vector<32x32xbf16>
    %cst_22 = arith.constant dense<0.000000e+00> : vector<256x32xf32>
    %48 = tpu.matmul %28, %47, %cst_22 {dimension_numbers = #tpu.dot_dimension_numbers<[1], [0], [0], [1], [0, 0, 1, 1], [], []>} : vector<256x32xbf16>, vector<32x32xbf16>, vector<256x32xf32> -> vector<256x32xf32>
    %49 = arith.addf %46, %48 : vector<256x32xf32>
    %cst_23 = arith.constant 9.99999997E-7 : f32
    %50 = vector.broadcast %cst_23 : f32 to vector<256x1xf32>
    %51 = arith.addf %44, %50 : vector<256x1xf32>
    %52 = tpu.reciprocal %51 {approx = true} : vector<256x1xf32> -> vector<256x1xf32>
    %53 = vector.broadcast %52 : vector<256x1xf32> to vector<256x32xf32>
    %54 = arith.mulf %49, %53 : vector<256x32xf32>
    %cst_24 = arith.constant dense<0.000000e+00> : vector<32x32xf32>
    %55 = tpu.matmul %29, %30, %cst_24 {dimension_numbers = #tpu.dot_dimension_numbers<[0], [0], [1], [1], [0, 1, 1, 1], [], []>} : vector<256x32xbf16>, vector<256x32xbf16>, vector<32x32xf32> -> vector<32x32xf32>
    %56 = arith.addf %34, %55 : vector<32x32xf32>
    %c0_25 = arith.constant 0 : index
    %c0_26 = arith.constant 0 : index
    %c0_27 = arith.constant 0 : index
    %57 = vector.load %arg6[%c0_25, %c0_26, %c0_27] : memref<4x32x32xf32, #tpu.memory_space<vmem>>, vector<1x32x32xf32>
    %58 = vector.shape_cast %57 : vector<1x32x32xf32> to vector<32x32xf32>
    %59 = vector.shape_cast %56 : vector<32x32xf32> to vector<1x32x32xf32>
    tpu.vector_store %arg6[%c0_25, %c0_26, %c0_27], %59 {strides = array<i32>} : memref<4x32x32xf32, #tpu.memory_space<vmem>>, vector<1x32x32xf32>,
    %60 = vector.extract_strided_slice %24 {offsets = [0, 32], sizes = [256, 32], strides = [1, 1]} : vector<256x128xbf16> to vector<256x32xbf16>
    %61 = vector.extract_strided_slice %25 {offsets = [0, 32], sizes = [256, 32], strides = [1, 1]} : vector<256x128xbf16> to vector<256x32xbf16>
    %62 = vector.extract_strided_slice %26 {offsets = [0, 32], sizes = [256, 32], strides = [1, 1]} : vector<256x128xbf16> to vector<256x32xbf16>
    %63 = vector.extract_strided_slice %10 {offsets = [0, 32], sizes = [256, 32], strides = [1, 1]} : vector<256x128xf32> to vector<256x32xf32>
    %64 = vector.extract_strided_slice %27 {offsets = [0, 32], sizes = [1, 32], strides = [1, 1]} : vector<1x128xf32> to vector<1x32xf32>
    %c1 = arith.constant 1 : index
    %c0_28 = arith.constant 0 : index
    %c0_29 = arith.constant 0 : index
    %65 = vector.load %arg6[%c1, %c0_28, %c0_29] : memref<4x32x32xf32, #tpu.memory_space<vmem>>, vector<1x32x32xf32>
    %66 = vector.shape_cast %65 : vector<1x32x32xf32> to vector<32x32xf32>
    %cst_30 = arith.constant dense<0.000000e+00> : vector<256x256xf32>
    %67 = tpu.matmul %60, %61, %cst_30 {dimension_numbers = #tpu.dot_dimension_numbers<[1], [1], [0], [0], [0, 0, 1, 0], [], []>} : vector<256x32xbf16>, vector<256x32xbf16>, vector<256x256xf32> -> vector<256x256xf32>
    %cst_31 = arith.constant 0.000000e+00 : f32
    %68 = vector.broadcast %cst_31 : f32 to vector<256x256xf32>
    %69 = arith.select %23, %67, %68 : vector<256x256xi1>, vector<256x256xf32>
    %cst_32 = arith.constant dense<0.000000e+00> : vector<256xf32>
    %70 = vector.multi_reduction <add>, %69, %cst_32 [1] : vector<256x256xf32> to vector<256xf32>
    %71 = vector.shape_cast %70 : vector<256xf32> to vector<256x1xf32>
    %72 = vector.broadcast %64 : vector<1x32xf32> to vector<256x32xf32>
    %73 = arith.mulf %63, %72 : vector<256x32xf32>
    %cst_33 = arith.constant dense<0.000000e+00> : vector<256xf32>
    %74 = vector.multi_reduction <add>, %73, %cst_33 [1] : vector<256x32xf32> to vector<256xf32>
    %75 = vector.shape_cast %74 : vector<256xf32> to vector<256x1xf32>
    %76 = arith.addf %71, %75 : vector<256x1xf32>
    %77 = arith.truncf %69 : vector<256x256xf32> to vector<256x256xbf16>
    %cst_34 = arith.constant dense<0.000000e+00> : vector<256x32xf32>
    %78 = tpu.matmul %77, %62, %cst_34 {dimension_numbers = #tpu.dot_dimension_numbers<[1], [0], [0], [1], [0, 0, 1, 1], [], []>} : vector<256x256xbf16>, vector<256x32xbf16>, vector<256x32xf32> -> vector<256x32xf32>
    %79 = arith.truncf %66 : vector<32x32xf32> to vector<32x32xbf16>
    %cst_35 = arith.constant dense<0.000000e+00> : vector<256x32xf32>
    %80 = tpu.matmul %60, %79, %cst_35 {dimension_numbers = #tpu.dot_dimension_numbers<[1], [0], [0], [1], [0, 0, 1, 1], [], []>} : vector<256x32xbf16>, vector<32x32xbf16>, vector<256x32xf32> -> vector<256x32xf32>
    %81 = arith.addf %78, %80 : vector<256x32xf32>
    %cst_36 = arith.constant 9.99999997E-7 : f32
    %82 = vector.broadcast %cst_36 : f32 to vector<256x1xf32>
    %83 = arith.addf %76, %82 : vector<256x1xf32>
    %84 = tpu.reciprocal %83 {approx = true} : vector<256x1xf32> -> vector<256x1xf32>
    %85 = vector.broadcast %84 : vector<256x1xf32> to vector<256x32xf32>
    %86 = arith.mulf %81, %85 : vector<256x32xf32>
    %cst_37 = arith.constant dense<0.000000e+00> : vector<32x32xf32>
    %87 = tpu.matmul %61, %62, %cst_37 {dimension_numbers = #tpu.dot_dimension_numbers<[0], [0], [1], [1], [0, 1, 1, 1], [], []>} : vector<256x32xbf16>, vector<256x32xbf16>, vector<32x32xf32> -> vector<32x32xf32>
    %88 = arith.addf %66, %87 : vector<32x32xf32>
    %c1_38 = arith.constant 1 : index
    %c0_39 = arith.constant 0 : index
    %c0_40 = arith.constant 0 : index
    %89 = vector.load %arg6[%c1_38, %c0_39, %c0_40] : memref<4x32x32xf32, #tpu.memory_space<vmem>>, vector<1x32x32xf32>
    %90 = vector.shape_cast %89 : vector<1x32x32xf32> to vector<32x32xf32>
    %91 = vector.shape_cast %88 : vector<32x32xf32> to vector<1x32x32xf32>
    tpu.vector_store %arg6[%c1_38, %c0_39, %c0_40], %91 {strides = array<i32>} : memref<4x32x32xf32, #tpu.memory_space<vmem>>, vector<1x32x32xf32>,
    %92 = vector.extract_strided_slice %24 {offsets = [0, 64], sizes = [256, 32], strides = [1, 1]} : vector<256x128xbf16> to vector<256x32xbf16>
    %93 = vector.extract_strided_slice %25 {offsets = [0, 64], sizes = [256, 32], strides = [1, 1]} : vector<256x128xbf16> to vector<256x32xbf16>
    %94 = vector.extract_strided_slice %26 {offsets = [0, 64], sizes = [256, 32], strides = [1, 1]} : vector<256x128xbf16> to vector<256x32xbf16>
    %95 = vector.extract_strided_slice %10 {offsets = [0, 64], sizes = [256, 32], strides = [1, 1]} : vector<256x128xf32> to vector<256x32xf32>
    %96 = vector.extract_strided_slice %27 {offsets = [0, 64], sizes = [1, 32], strides = [1, 1]} : vector<1x128xf32> to vector<1x32xf32>
    %c2 = arith.constant 2 : index
    %c0_41 = arith.constant 0 : index
    %c0_42 = arith.constant 0 : index
    %97 = vector.load %arg6[%c2, %c0_41, %c0_42] : memref<4x32x32xf32, #tpu.memory_space<vmem>>, vector<1x32x32xf32>
    %98 = vector.shape_cast %97 : vector<1x32x32xf32> to vector<32x32xf32>
    %cst_43 = arith.constant dense<0.000000e+00> : vector<256x256xf32>
    %99 = tpu.matmul %92, %93, %cst_43 {dimension_numbers = #tpu.dot_dimension_numbers<[1], [1], [0], [0], [0, 0, 1, 0], [], []>} : vector<256x32xbf16>, vector<256x32xbf16>, vector<256x256xf32> -> vector<256x256xf32>
    %cst_44 = arith.constant 0.000000e+00 : f32
    %100 = vector.broadcast %cst_44 : f32 to vector<256x256xf32>
    %101 = arith.select %23, %99, %100 : vector<256x256xi1>, vector<256x256xf32>
    %cst_45 = arith.constant dense<0.000000e+00> : vector<256xf32>
    %102 = vector.multi_reduction <add>, %101, %cst_45 [1] : vector<256x256xf32> to vector<256xf32>
    %103 = vector.shape_cast %102 : vector<256xf32> to vector<256x1xf32>
    %104 = vector.broadcast %96 : vector<1x32xf32> to vector<256x32xf32>
    %105 = arith.mulf %95, %104 : vector<256x32xf32>
    %cst_46 = arith.constant dense<0.000000e+00> : vector<256xf32>
    %106 = vector.multi_reduction <add>, %105, %cst_46 [1] : vector<256x32xf32> to vector<256xf32>
    %107 = vector.shape_cast %106 : vector<256xf32> to vector<256x1xf32>
    %108 = arith.addf %103, %107 : vector<256x1xf32>
    %109 = arith.truncf %101 : vector<256x256xf32> to vector<256x256xbf16>
    %cst_47 = arith.constant dense<0.000000e+00> : vector<256x32xf32>
    %110 = tpu.matmul %109, %94, %cst_47 {dimension_numbers = #tpu.dot_dimension_numbers<[1], [0], [0], [1], [0, 0, 1, 1], [], []>} : vector<256x256xbf16>, vector<256x32xbf16>, vector<256x32xf32> -> vector<256x32xf32>
    %111 = arith.truncf %98 : vector<32x32xf32> to vector<32x32xbf16>
    %cst_48 = arith.constant dense<0.000000e+00> : vector<256x32xf32>
    %112 = tpu.matmul %92, %111, %cst_48 {dimension_numbers = #tpu.dot_dimension_numbers<[1], [0], [0], [1], [0, 0, 1, 1], [], []>} : vector<256x32xbf16>, vector<32x32xbf16>, vector<256x32xf32> -> vector<256x32xf32>
    %113 = arith.addf %110, %112 : vector<256x32xf32>
    %cst_49 = arith.constant 9.99999997E-7 : f32
    %114 = vector.broadcast %cst_49 : f32 to vector<256x1xf32>
    %115 = arith.addf %108, %114 : vector<256x1xf32>
    %116 = tpu.reciprocal %115 {approx = true} : vector<256x1xf32> -> vector<256x1xf32>
    %117 = vector.broadcast %116 : vector<256x1xf32> to vector<256x32xf32>
    %118 = arith.mulf %113, %117 : vector<256x32xf32>
    %cst_50 = arith.constant dense<0.000000e+00> : vector<32x32xf32>
    %119 = tpu.matmul %93, %94, %cst_50 {dimension_numbers = #tpu.dot_dimension_numbers<[0], [0], [1], [1], [0, 1, 1, 1], [], []>} : vector<256x32xbf16>, vector<256x32xbf16>, vector<32x32xf32> -> vector<32x32xf32>
    %120 = arith.addf %98, %119 : vector<32x32xf32>
    %c2_51 = arith.constant 2 : index
    %c0_52 = arith.constant 0 : index
    %c0_53 = arith.constant 0 : index
    %121 = vector.load %arg6[%c2_51, %c0_52, %c0_53] : memref<4x32x32xf32, #tpu.memory_space<vmem>>, vector<1x32x32xf32>
    %122 = vector.shape_cast %121 : vector<1x32x32xf32> to vector<32x32xf32>
    %123 = vector.shape_cast %120 : vector<32x32xf32> to vector<1x32x32xf32>
    tpu.vector_store %arg6[%c2_51, %c0_52, %c0_53], %123 {strides = array<i32>} : memref<4x32x32xf32, #tpu.memory_space<vmem>>, vector<1x32x32xf32>,
    %124 = vector.extract_strided_slice %24 {offsets = [0, 96], sizes = [256, 32], strides = [1, 1]} : vector<256x128xbf16> to vector<256x32xbf16>
    %125 = vector.extract_strided_slice %25 {offsets = [0, 96], sizes = [256, 32], strides = [1, 1]} : vector<256x128xbf16> to vector<256x32xbf16>
    %126 = vector.extract_strided_slice %26 {offsets = [0, 96], sizes = [256, 32], strides = [1, 1]} : vector<256x128xbf16> to vector<256x32xbf16>
    %127 = vector.extract_strided_slice %10 {offsets = [0, 96], sizes = [256, 32], strides = [1, 1]} : vector<256x128xf32> to vector<256x32xf32>
    %128 = vector.extract_strided_slice %27 {offsets = [0, 96], sizes = [1, 32], strides = [1, 1]} : vector<1x128xf32> to vector<1x32xf32>
    %c3 = arith.constant 3 : index
    %c0_54 = arith.constant 0 : index
    %c0_55 = arith.constant 0 : index
    %129 = vector.load %arg6[%c3, %c0_54, %c0_55] : memref<4x32x32xf32, #tpu.memory_space<vmem>>, vector<1x32x32xf32>
    %130 = vector.shape_cast %129 : vector<1x32x32xf32> to vector<32x32xf32>
    %cst_56 = arith.constant dense<0.000000e+00> : vector<256x256xf32>
    %131 = tpu.matmul %124, %125, %cst_56 {dimension_numbers = #tpu.dot_dimension_numbers<[1], [1], [0], [0], [0, 0, 1, 0], [], []>} : vector<256x32xbf16>, vector<256x32xbf16>, vector<256x256xf32> -> vector<256x256xf32>
    %cst_57 = arith.constant 0.000000e+00 : f32
    %132 = vector.broadcast %cst_57 : f32 to vector<256x256xf32>
    %133 = arith.select %23, %131, %132 : vector<256x256xi1>, vector<256x256xf32>
    %cst_58 = arith.constant dense<0.000000e+00> : vector<256xf32>
    %134 = vector.multi_reduction <add>, %133, %cst_58 [1] : vector<256x256xf32> to vector<256xf32>
    %135 = vector.shape_cast %134 : vector<256xf32> to vector<256x1xf32>
    %136 = vector.broadcast %128 : vector<1x32xf32> to vector<256x32xf32>
    %137 = arith.mulf %127, %136 : vector<256x32xf32>
    %cst_59 = arith.constant dense<0.000000e+00> : vector<256xf32>
    %138 = vector.multi_reduction <add>, %137, %cst_59 [1] : vector<256x32xf32> to vector<256xf32>
    %139 = vector.shape_cast %138 : vector<256xf32> to vector<256x1xf32>
    %140 = arith.addf %135, %139 : vector<256x1xf32>
    %141 = arith.truncf %133 : vector<256x256xf32> to vector<256x256xbf16>
    %cst_60 = arith.constant dense<0.000000e+00> : vector<256x32xf32>
    %142 = tpu.matmul %141, %126, %cst_60 {dimension_numbers = #tpu.dot_dimension_numbers<[1], [0], [0], [1], [0, 0, 1, 1], [], []>} : vector<256x256xbf16>, vector<256x32xbf16>, vector<256x32xf32> -> vector<256x32xf32>
    %143 = arith.truncf %130 : vector<32x32xf32> to vector<32x32xbf16>
    %cst_61 = arith.constant dense<0.000000e+00> : vector<256x32xf32>
    %144 = tpu.matmul %124, %143, %cst_61 {dimension_numbers = #tpu.dot_dimension_numbers<[1], [0], [0], [1], [0, 0, 1, 1], [], []>} : vector<256x32xbf16>, vector<32x32xbf16>, vector<256x32xf32> -> vector<256x32xf32>
    %145 = arith.addf %142, %144 : vector<256x32xf32>
    %cst_62 = arith.constant 9.99999997E-7 : f32
    %146 = vector.broadcast %cst_62 : f32 to vector<256x1xf32>
    %147 = arith.addf %140, %146 : vector<256x1xf32>
    %148 = tpu.reciprocal %147 {approx = true} : vector<256x1xf32> -> vector<256x1xf32>
    %149 = vector.broadcast %148 : vector<256x1xf32> to vector<256x32xf32>
    %150 = arith.mulf %145, %149 : vector<256x32xf32>
    %cst_63 = arith.constant dense<0.000000e+00> : vector<32x32xf32>
    %151 = tpu.matmul %125, %126, %cst_63 {dimension_numbers = #tpu.dot_dimension_numbers<[0], [0], [1], [1], [0, 1, 1, 1], [], []>} : vector<256x32xbf16>, vector<256x32xbf16>, vector<32x32xf32> -> vector<32x32xf32>
    %152 = arith.addf %130, %151 : vector<32x32xf32>
    %c3_64 = arith.constant 3 : index
    %c0_65 = arith.constant 0 : index
    %c0_66 = arith.constant 0 : index
    %153 = vector.load %arg6[%c3_64, %c0_65, %c0_66] : memref<4x32x32xf32, #tpu.memory_space<vmem>>, vector<1x32x32xf32>
    %154 = vector.shape_cast %153 : vector<1x32x32xf32> to vector<32x32xf32>
    %155 = vector.shape_cast %152 : vector<32x32xf32> to vector<1x32x32xf32>
    tpu.vector_store %arg6[%c3_64, %c0_65, %c0_66], %155 {strides = array<i32>} : memref<4x32x32xf32, #tpu.memory_space<vmem>>, vector<1x32x32xf32>,
    %156 = tpu.concatenate %54, %86, %118, %150 in 1 : vector<256x32xf32>, vector<256x32xf32>, vector<256x32xf32>, vector<256x32xf32> -> vector<256x128xf32>
    %c0_67 = arith.constant 0 : index
    %c0_68 = arith.constant 0 : index
    %c0_69 = arith.constant 0 : index
    %157 = vector.load %arg5[%c0_67, %c0_68, %c0_69] : memref<1x256x128xf32, #tpu.memory_space<vmem>>, vector<1x256x128xf32>
    %158 = vector.shape_cast %157 : vector<1x256x128xf32> to vector<256x128xf32>
    %159 = vector.shape_cast %156 : vector<256x128xf32> to vector<1x256x128xf32>
    tpu.vector_store %arg5[%c0_67, %c0_68, %c0_69], %159 {strides = array<i32>} : memref<1x256x128xf32, #tpu.memory_space<vmem>>, vector<1x256x128xf32>,
    %cst_70 = arith.constant dense<0.000000e+00> : vector<128xf32>
    %160 = vector.multi_reduction <add>, %18, %cst_70 [0] : vector<256x128xf32> to vector<128xf32>
    %161 = vector.shape_cast %160 : vector<128xf32> to vector<1x128xf32>
    %162 = arith.addf %27, %161 : vector<1x128xf32>
    %c0_71 = arith.constant 0 : index
    %c0_72 = arith.constant 0 : index
    %163 = vector.load %arg7[%c0_71, %c0_72] : memref<1x128xf32, #tpu.memory_space<vmem>>, vector<1x128xf32>
    tpu.vector_store %arg7[%c0_71, %c0_72], %162 {strides = array<i32>} : memref<1x128xf32, #tpu.memory_space<vmem>>, vector<1x128xf32>,
    return
  }
  func.func @transform_0(%arg0: i32, %arg1: i32) -> (i32, i32, i32) {
    %c0_i32 = arith.constant 0 : i32
    %c0_i32_0 = arith.constant 0 : i32
    return %arg0, %arg1, %c0_i32 : i32, i32, i32
  }
  func.func @transform_1(%arg0: i32, %arg1: i32) -> (i32, i32, i32) {
    %c0_i32 = arith.constant 0 : i32
    %c0_i32_0 = arith.constant 0 : i32
    return %arg0, %arg1, %c0_i32 : i32, i32, i32
  }
  func.func @transform_2(%arg0: i32, %arg1: i32) -> (i32, i32, i32) {
    %c0_i32 = arith.constant 0 : i32
    %c0_i32_0 = arith.constant 0 : i32
    return %arg0, %arg1, %c0_i32 : i32, i32, i32
  }
  func.func @transform_3(%arg0: i32, %arg1: i32) -> (i32, i32, i32) {
    %c0_i32 = arith.constant 0 : i32
    %c0_i32_0 = arith.constant 0 : i32
    return %arg0, %arg1, %c0_i32 : i32, i32, i32
  }
}

</mosaic_0001>

<bundles_post_ra>
// kernel: tpu_custom_call.1
= control target key start
LH: loop header
LB: loop body
LE: loop exit
PB: predicated region body
PF: predicated region fallthrough
CT: control target
= control target key end

     0   :  { %s15107_s0 = inlined_call_operand.hbm [shape: f32[2,512,128], index: 0, kind: input, shape index: {}]   ;;  %s15108_s1 = inlined_call_operand.hbm [shape: f32[2,512,128], index: 1, kind: input, shape index: {}]   ;;  %s15109_s2 = inlined_call_operand.hbm [shape: f32[2,512,128], index: 2, kind: input, shape index: {}]   ;;  %s15110_s3 = inlined_call_operand.hbm [shape: f32[2,512,128], index: 3, kind: output, shape index: {}]  }
   0x1   :  { %15527 = sst [smem:[#allocation483_spill]] %s15107_s0 }
   0x2   :  { %15528 = sst [smem:[#allocation484_spill]] %s15108_s1 }
   0x3   :  { %8 = vsyncpa [#allocation5], 0 }
   0x4   :  { %10 = vsyncpa [#allocation5 + $0x1], 0 }
   0x5   :  { %11 = vsyncpa [#allocation8], 0 }
   0x6   :  { %13 = vsyncpa [#allocation8 + $0x1], 0 }
   0x7   :  { %14 = vsyncpa [#allocation6], 0 }
   0x8   :  { %16 = vsyncpa [#allocation6 + $0x1], 0  ;;  %s8942_s12 = smov 0   ;;  %s8944_s13 = smov 0  }
   0x9   :  { %s8946_s14 = smov 0   ;;  %s8948_s15 = smov 0  }
   0xa   :  { %s8950_s16 = smov 0   ;;  %s8952_s17 = smov 0  }
   0xb   :  { %s8954_s18 = smov 0   ;;  %s8956_s19 = smov 0  }
   0xc LB: > { %15529 = sst [smem:[#allocation14_spill]] %s8899_s17  ;;  %s8983_s20 = sadd.s32 4294967295, %s8907_s19   ;;  %s8907_s19 = sphi %s8956_s19, %s22_s19   ;;  %s8903_s18 = sphi %s8954_s18, %s17619_s18   ;;  %s8899_s17 = sphi %s8952_s17, %s17618_s17   ;;  %s8895_s16 = sphi %s8950_s16, %s17617_s16   ;;  %s8891_s15 = sphi %s8948_s15, %s17616_s15   ;;  %s8887_s14 = sphi %s8946_s14, %s17622_s14   ;;  %s8883_s13 = sphi %s8944_s13, %s17621_s13   ;;  %s8879_s12 = sphi %s8942_s12, %s17620_s12  }
   0xd   : > { %15530 = sst [smem:[#allocation15_spill]] %s8903_s18  ;;  %s6875_s21 = sadd.s32 4294967294, %s8907_s19  }
   0xe   : > { %s31_s22 = sadd.s32 1, %s8899_s17  ;;  %s34_s23 = sadd.s32 1, %s8903_s18 }
   0xf   : > { %p32_p0 = scmp.ge.s32.totalorder %s31_s22, 2  ;;  %s43_s24 = sadd.s32 1, %s8887_s14 }
  0x10   : > { %p50_p1 = scmp.ne.s32.totalorder %s8887_s14, %s8883_s13  ;;  %p51_p2 = scmp.eq.s32.totalorder %s8907_s19, 0 }
  0x11   : > { %s17624_s22 = smov (%p32_p0, %s31_s22), 0  ;;  %s17626_s23 = smov (!%p32_p0, %s34_s23), %s8903_s18 }
  0x12   : > { %15531 = sst [smem:[#allocation16_spill]] %s17624_s22  ;;  %s39_s25 = ssub.s32 %s8899_s17, %s17624_s22 }
  0x13   : > { %p8997_p3 = por %p51_p2, %p50_p1  ;;  %p36_p4 = scmp.ge.s32.totalorder %s17626_s23, 2 }
  0x14   : > { %p56_p5 = scmp.ne.s32.totalorder %s8883_s13, %s8879_s12  ;;  %p57_p6 = scmp.eq.s32.totalorder %s8983_s20, 0 }
  0x15   : > { %p138_p7 = scmp.eq.s32.totalorder %s8983_s20, 3  ;;  %s17628_s23 = smov (%p36_p4, %s17626_s23), 0 }
  0x16   : > { %15533 = sst [smem:[#allocation17_spill]] %s17628_s23  ;;  %p9007_p8 = por %p57_p6, %p56_p5 }
  0x17   : > { %p9011_p9 = por %p138_p7, %p50_p1  ;;  %s38_s29 = ssub.s32 %s8903_s18, %s17628_s23 }
  0x18   : > { %p144_p10 = scmp.eq.s32.totalorder %s6875_s21, 3  ;;  %s40_s30 = sor.u32 %s39_s25, %s38_s29 }
  0x19   : > { %p41_p11 = scmp.eq.s32.totalorder %s40_s30, 0  ;;  %p8248_p13 = scmp.lt.s32.totalorder %s8907_s19, 4 }
  0x1a   : > { %p9017_p12 = por %p144_p10, %p56_p5  ;;  %s15111_s5 = sand.u32 1, %s8887_s14  }
  0x1b   : > { %s9024_s6 = scalar_select %p41_p11, %s8887_s14, %s43_s24  }
  0x1c   : > { %s9028_s7 = sshll.u32 %s15111_s5, 8  ;;  %s6879_s8 = sshll.u32 %s8899_s17, 5 }
  0x1d   : > { %15537 = sst [smem:[#allocation18_spill]] %s9024_s6  ;;  %s6880_s9 = sshll.u32 %s8903_s18, 6 }
  0x1e   : > { %p9034_p0 = pnand %p8248_p13, %p8997_p3  ;;  %s174_s11 = sadd.s32 %s6880_s9, %s6879_s8 }
  0x1f   : > { %s9038_s21 = sshll.u32 %s174_s11, 7  ;;  %s187_s25 = sand.u32 1, %s8907_s19  }
  0x20   : > { %s15539_s1 = sld [smem:[#allocation484_spill]]  ;;  %s191_s5 = scalar_lea.vmem [#allocation7], %s9028_s7 }
  0x21   : > { %s200_s23 = sshll.u32 %s191_s5, 4  ;;  %p6890_p1 = scmp.ge.s32.totalorder %s8907_s19, 1  ;;  %s201_s23 = int_to_ptr.vmem [resolvable:$true] %s200_s23 }
  0x22   : > { %s9047_s26 = scalar_lea.sflag [#allocation8], %s187_s25  ;;  %p8725_p2 = pneg %p9034_p0 }
  0x23   : > { %s8736_s22 = scalar_lea.vmem %s201_s23, 4096  ;;  %s8909_s8 = smov [#allocation7]  }
  0x24   : > { %p8737_p3 = scmp.ne.s32.totalorder %s201_s23, %s8736_s22  ;;  %s8741_s9 = sshll.u32 %s8909_s8, 4  ;;  %s8742_s9 = int_to_ptr.vmem [resolvable:$false] %s8741_s9 }
  0x25   : > { %s8743_s11 = scalar_lea.vmem %s8742_s9, 8192  ;;  %p8744_p6 = scmp.lt.s32.totalorder %s201_s23, %s8742_s9 }
  0x26   : > { %s199_s30 = scalar_lea.hbm %s15539_s1, %s9038_s21  ;;  %p8739_p4 = pnand %p8737_p3, %p8725_p2 }
  0x27   : > { %p8745_p7 = scmp.lt.s32.totalorder %s8743_s11, %s8736_s22 }
  0x28   : > { %p8740_p5 = pneg %p8739_p4 }
  0x29   : > { %p8746_p10 = por %p8745_p7, %p8744_p6 }
  0x2b   : > { %p8747_p11 = pnand %p8746_p10, %p8740_p5 }
  0x2d   : > { %8750 = shalt.err (!%p8747_p11)
}
  0x2e   : > { %s15116_s5 = smov 128   ;;  %s8911_s25 = smov 8  }
  0x2f   : > { %8240 = dma.hbm_to_vmem [thread:$0]  (!%p9034_p0), %s199_s30, 4096, %s201_s23, %s9047_s26, %s15116_s5, %s15116_s5, %s8911_s25  }
  0x30   : > { %p231_p13 = scmp.lt.s32.totalorder %s8907_s19, 5  ;;  %s15541_s0 = sld [smem:[#allocation483_spill]] }
  0x31   : > { %s168_s9 = scalar_lea.vmem [#allocation4], %s9028_s7  ;;  %s15542_s1 = sand.u32 1, %s8887_s14  }
  0x32   : > { %p9063_p3 = pnand %p6890_p1, %p231_p13  ;;  %s177_s11 = sshll.u32 %s168_s9, 4  ;;  %s178_s11 = int_to_ptr.vmem [resolvable:$true] %s177_s11 }
  0x33   : > { %s165_s18 = scalar_lea.sflag [#allocation5], %s15542_s1  ;;  %s8764_s17 = scalar_lea.vmem %s178_s11, 4096 }
  0x34   : > { %p8765_p4 = scmp.ne.s32.totalorder %s178_s11, %s8764_s17  ;;  %s8912_s23 = smov [#allocation4]  }
  0x35   : > { %s8769_s30 = sshll.u32 %s8912_s23, 4  ;;  %s8770_s30 = int_to_ptr.vmem [resolvable:$false] %s8769_s30 }
  0x36   : > { %s176_s8 = scalar_lea.hbm %s15541_s0, %s9038_s21  ;;  %p8767_p5 = pnand %p8765_p4, %p8725_p2 }
  0x37   : > { %s8771_s5 = scalar_lea.vmem %s8770_s30, 8192  ;;  %p8772_p1 = scmp.lt.s32.totalorder %s178_s11, %s8770_s30 }
  0x38   : > { %p8768_p6 = pneg %p8767_p5  ;;  %p8773_p7 = scmp.lt.s32.totalorder %s8771_s5, %s8764_s17 }
  0x3a   : > { %p8774_p10 = por %p8773_p7, %p8772_p1 }
  0x3c   : > { %p8775_p11 = pnand %p8774_p10, %p8768_p6 }
  0x3e   : > { %8778 = shalt.err (!%p8775_p11)
}
  0x3f   : > { %s15543_s24 = smov 128   ;;  %s222_s9 = scalar_lea.hbm %s15109_s2, %s9038_s21 }
  0x40   : > { %8237 = dma.hbm_to_vmem [thread:$0]  (!%p9034_p0), %s176_s8, 4096, %s178_s11, %s165_s18, %s15543_s24, %s15543_s24, %s8911_s25  }
  0x41   : > { %s214_s23 = scalar_lea.vmem [#allocation9], %s9028_s7  ;;  %s8913_s5 = smov [#allocation9]  }
  0x42   : > { %s223_s0 = sshll.u32 %s214_s23, 4  ;;  %s8797_s30 = sshll.u32 %s8913_s5, 4  ;;  %s224_s0 = int_to_ptr.vmem [resolvable:$true] %s223_s0  ;;  %s8798_s30 = int_to_ptr.vmem [resolvable:$false] %s8797_s30 }
  0x43   : > { %s8792_s17 = scalar_lea.vmem %s224_s0, 4096  ;;  %s8799_s6 = scalar_lea.vmem %s8798_s30, 8192 }
  0x44   : > { %p8793_p13 = scmp.ne.s32.totalorder %s224_s0, %s8792_s17  ;;  %p8800_p6 = scmp.lt.s32.totalorder %s224_s0, %s8798_s30 }
  0x45   : > { %p8801_p1 = scmp.lt.s32.totalorder %s8799_s6, %s8792_s17 }
  0x46   : > { %p8795_p4 = pnand %p8793_p13, %p8725_p2 }
  0x47   : > { %p8802_p7 = por %p8801_p1, %p8800_p6 }
  0x48   : > { %p8796_p5 = pneg %p8795_p4 }
  0x4a   : > { %p8803_p10 = pnand %p8802_p7, %p8796_p5 }
  0x4c   : > { %8806 = shalt.err (!%p8803_p10)
}
  0x4d   : > { %8243 = dma.hbm_to_vmem [thread:$0]  (!%p9034_p0), %s222_s9, 4096, %s224_s0, %s9047_s26, %s15543_s24, %s15543_s24, %s8911_s25  }
  0x4e   : > { %235 = sbr.rel (%p9063_p3) target bundleno = 3633 (0xe31), region = 32 }
  0x53   : > { %s9099_s18 = sand.u32 1, %s8883_s13  }
  0x54   : > { %s6891_s6 = sshll.u32 %s9099_s18, 8  ;;  %s238_s7 = scalar_lea.sflag [#allocation5], %s9099_s18 }
  0x55   : > { %s9103_s21 = scalar_lea.vmem [#allocation4], %s6891_s6 }
  0x56   : > { %8866 = dma.done.wait (%p9007_p8), %s238_s7, 4096  }
  0x57   : > { %8868 = vsyncadd (%p9007_p8), %s238_s7, 4294963200  ;;  %s246_s0 = sand.u32 1, %s8983_s20   ;;  %s9110_s26 = scalar_lea.vmem [#allocation7], %s6891_s6 }
  0x58   : > { %s247_s10 = scalar_lea.sflag [#allocation8], %s246_s0 }
  0x59   : > { %8870 = dma.done.wait (%p9007_p8), %s247_s10, 8192  }
  0x5a   : > { %8872 = vsyncadd (%p9007_p8), %s247_s10, 4294959104  ;;  %s9116_s25 = scalar_lea.vmem [#allocation9], %s6891_s6  ;;  %s9118_s22 = scalar_lea.vmem [#allocation10], %s6891_s6 }
  0x5b   : > { %p6895_p0 = scmp.ne.s32.totalorder %s8891_s15, 0 }
  0x5d   : > { %300 = sbr.rel (%p6895_p0) target bundleno = 108 (0x6c), region = 48 }
  0x62   : > { %vm301_vm0 = vcmask 261120   ;;  %v8914_v0 = vmov 0.0  }
  0x63   : > { %302 = vst.msk [vmem:[#allocation2] sm:$0xff] %vm301_vm0, %v8914_v0  ;;  %303 = vst.msk [vmem:[#allocation2 + $0x8] sm:$0xff] %vm301_vm0, %v8914_v0 }
  0x64   : > { %304 = vst.msk [vmem:[#allocation2 + $0x10] sm:$0xff] %vm301_vm0, %v8914_v0  ;;  %305 = vst.msk [vmem:[#allocation2 + $0x18] sm:$0xff] %vm301_vm0, %v8914_v0 }
  0x65   : > { %306 = vst.msk [vmem:[#allocation2 + $0x20] sm:$0xff] %vm301_vm0, %v8914_v0  ;;  %307 = vst.msk [vmem:[#allocation2 + $0x28] sm:$0xff] %vm301_vm0, %v8914_v0 }
  0x66   : > { %308 = vst.msk [vmem:[#allocation2 + $0x30] sm:$0xff] %vm301_vm0, %v8914_v0  ;;  %309 = vst.msk [vmem:[#allocation2 + $0x38] sm:$0xff] %vm301_vm0, %v8914_v0 }
  0x67   : > { %310 = vst.msk [vmem:[#allocation2 + $0x40] sm:$0xff] %vm301_vm0, %v8914_v0  ;;  %311 = vst.msk [vmem:[#allocation2 + $0x48] sm:$0xff] %vm301_vm0, %v8914_v0 }
  0x68   : > { %312 = vst.msk [vmem:[#allocation2 + $0x50] sm:$0xff] %vm301_vm0, %v8914_v0  ;;  %313 = vst.msk [vmem:[#allocation2 + $0x58] sm:$0xff] %vm301_vm0, %v8914_v0 }
  0x69   : > { %314 = vst.msk [vmem:[#allocation2 + $0x60] sm:$0xff] %vm301_vm0, %v8914_v0  ;;  %315 = vst.msk [vmem:[#allocation2 + $0x68] sm:$0xff] %vm301_vm0, %v8914_v0 }
  0x6a   : > { %316 = vst.msk [vmem:[#allocation2 + $0x70] sm:$0xff] %vm301_vm0, %v8914_v0  ;;  %317 = vst.msk [vmem:[#allocation2 + $0x78] sm:$0xff] %vm301_vm0, %v8914_v0 }
  0x6b   : > { %318 = vst [vmem:[#allocation3] sm:$0x1] %v8914_v0 }
  0x6c PF: > { %v541_v1 = vld [vmem:[%s9110_s26 + $0xf0] sm:$0xff]  ;;  %v542_v2 = vld [vmem:[%s9110_s26 + $0xf8] sm:$0xff]  ;;  %v9140_v5 = vld [vmem:[%s9110_s26] sm:$0xff]  ;;  %vm15261_vm3 = vcmask 261120   ;;  %v15118_v48 = vlaneseq  ;;  %s8915_s20 = smov 96   ;;  %s8917_s27 = smov 64  }
  0x6d   : > { %v667_v3 = vmul.f32 1.442695, %v541_v1  ;;  %v669_v4 = vmul.f32 1.442695, %v542_v2  ;;  %v9143_v6 = vld [vmem:[%s9110_s26 + $0x8] sm:$0xff]  ;;  %v9146_v7 = vld [vmem:[%s9110_s26 + $0x10] sm:$0xff] }
  0x6e   : > { %v9149_v8 = vld [vmem:[%s9110_s26 + $0x18] sm:$0xff]  ;;  %v607_v9 = vmul.f32 1.442695, %v9140_v5  ;;  %v9153_v10 = vld [vmem:[%s9110_s26 + $0x20] sm:$0xff]  ;;  %v609_v11 = vmul.f32 1.442695, %v9143_v6 }
  0x6f   : > { %8323 = vpow2.f32 %v667_v3  ;;  %v605_v12 = vadd.f32 1.0, %v541_v1  ;;  %v9157_v13 = vld [vmem:[%s9110_s26 + $0x28] sm:$0xff]  ;;  %v611_v14 = vmul.f32 1.442695, %v9146_v7  ;;  %vm573_vm1 = vcmp.gt.f32.partialorder %v541_v1, 0.0  ;;  %v9161_v16 = vld [vmem:[%s9110_s26 + $0x30] sm:$0xff] }
  0x70   : > { %8325 = vpow2.f32 %v669_v4  ;;  %v606_v15 = vadd.f32 1.0, %v542_v2  ;;  %v613_v17 = vmul.f32 1.442695, %v9149_v8  ;;  %vm574_vm2 = vcmp.gt.f32.partialorder %v542_v2, 0.0  ;;  %v9165_v18 = vld [vmem:[%s9110_s26 + $0x38] sm:$0xff]  ;;  %v9169_v21 = vld [vmem:[%s9110_s26 + $0x40] sm:$0xff] }
  0x71   : > { %8327 = vpow2.f32 %v607_v9  ;;  %v615_v19 = vmul.f32 1.442695, %v9153_v10  ;;  %v617_v22 = vmul.f32 1.442695, %v9157_v13  ;;  %v9175_v25 = vld [vmem:[%s9110_s26 + $0x60] sm:$0xff]  ;;  %v9181_v28 = vld [vmem:[%s9110_s26 + $0x68] sm:$0xff] }
  0x72   : > { %8329 = vpow2.f32 %v609_v11  ;;  %v619_v26 = vmul.f32 1.442695, %v9161_v16  ;;  %v621_v29 = vmul.f32 1.442695, %v9165_v18  ;;  %v9189_v31 = vld [vmem:[%s9110_s26 + $0x70] sm:$0xff]  ;;  %v9193_v33 = vld [vmem:[%s9110_s26 + $0x78] sm:$0xff] }
  0x73   : > { %8331 = vpow2.f32 %v611_v14  ;;  %v623_v32 = vmul.f32 1.442695, %v9169_v21  ;;  %v631_v34 = vmul.f32 1.442695, %v9175_v25  ;;  %v633_v35 = vmul.f32 1.442695, %v9181_v28 }
  0x74   : > { %8333 = vpow2.f32 %v613_v17  ;;  %v9200_v36 = vld [vmem:[%s9103_s21 + $0x8] sm:$0xff]  ;;  %v635_v37 = vmul.f32 1.442695, %v9189_v31  ;;  %v9204_v38 = vld [vmem:[%s9103_s21] sm:$0xff]  ;;  %v9207_v39 = vld [vmem:[%s9110_s26 + $0x50] sm:$0xff]  ;;  %vm543_vm4 = vcmp.gt.f32.partialorder %v9140_v5, 0.0 }
  0x75   : > { %8335 = vpow2.f32 %v615_v19  ;;  %v637_v40 = vmul.f32 1.442695, %v9193_v33  ;;  %v417_v41 = vmul.f32 1.442695, %v9200_v36  ;;  %v9212_v42 = vld [vmem:[%s9103_s21 + $0x18] sm:$0xff]  ;;  %v9216_v44 = vld [vmem:[%s9110_s26 + $0xe0] sm:$0xff] }
  0x76   : > { %8337 = vpow2.f32 %v617_v22  ;;  %v415_v43 = vmul.f32 1.442695, %v9204_v38  ;;  %v627_v45 = vmul.f32 1.442695, %v9207_v39  ;;  %v9220_v46 = vld [vmem:[%s9110_s26 + $0xe8] sm:$0xff]  ;;  %v9223_v47 = vld [vmem:[%s9110_s26 + $0x58] sm:$0xff] }
  0x77   : > { %8339 = vpow2.f32 %v619_v26  ;;  %v421_v49 = vmul.f32 1.442695, %v9212_v42  ;;  %vm544_vm5 = vcmp.gt.f32.partialorder %v9143_v6, 0.0  ;;  %v663_v51 = vmul.f32 1.442695, %v9216_v44  ;;  %v9230_v52 = vld [vmem:[%s9103_s21 + $0x28] sm:$0xff] }
  0x78   : > { %8341 = vpow2.f32 %v621_v29  ;;  %v9233_v54 = vld [vmem:[%s9110_s26 + $0x48] sm:$0xff]  ;;  %vm545_vm6 = vcmp.gt.f32.partialorder %v9146_v7, 0.0  ;;  %vm557_vm7 = vcmp.gt.f32.partialorder %v9189_v31, 0.0  ;;  %v575_v55 = vadd.f32 1.0, %v9140_v5  ;;  %v9246_v61 = vld [vmem:[%s9103_s21 + $0x38] sm:$0xff]  ;;  %v9260_v2 = vld [vmem:[%s9110_s26 + $0xd0] sm:$0xff] }
  0x79   : > { %8343 = vpow2.f32 %v623_v32  ;;  %v665_v56 = vmul.f32 1.442695, %v9220_v46  ;;  %vm558_vm8 = vcmp.gt.f32.partialorder %v9193_v33, 0.0  ;;  %v576_v58 = vadd.f32 1.0, %v9143_v6  ;;  %s8918_s8 = smov 32   ;;  %s7217_s11 = sshll.u32 %s8891_s15, 5 }
  0x7a   : > { %8345 = vpow2.f32 %v631_v34  ;;  %v577_v59 = vadd.f32 1.0, %v9146_v7  ;;  %v629_v60 = vmul.f32 1.442695, %v9223_v47  ;;  %vm555_vm9 = vcmp.gt.f32.partialorder %v9175_v25, 0.0  ;;  %s7218_s24 = sshll.u32 %s8895_s16, 6  ;;  %s6735_s15 = sshll.u32 %s9118_s22, 4  ;;  %s15049_s15 = int_to_ptr.vmem [resolvable:$true] %s6735_s15 }
  0x7b   : > { %8347 = vpow2.f32 %v633_v35  ;;  %vm556_vm10 = vcmp.gt.f32.partialorder %v9181_v28, 0.0  ;;  %v9253_v63 = vadd.f32 1.0, %v9149_v8  ;;  %v9256_v0 = vshrl.u32 %v15118_v48, 7  ;;  %s6732_s1 = sadd.s32 %s7218_s24, %s7217_s11  ;;  %s6720_s17 = scalar_lea.sflag [#allocation6], %s9099_s18 }
  0x7c   : > { %v8324_v20 = vpop.eup %8323  ;;  %8349 = vpow2.f32 %v635_v37  ;;  %v425_v1 = vmul.f32 1.442695, %v9230_v52  ;;  %v9265_v4 = vadd.f32 1.0, %v9153_v10  ;;  %v9268_v9 = vadd.f32 1.0, %v9157_v13  ;;  %s7219_s29 = sshll.u32 %s6732_s1, 7  ;;  %s8807_s5 = scalar_lea.vmem %s15049_s15, 4096 }
  0x7d   : > { %v8326_v23 = vpop.eup %8325  ;;  %v9172_v24 = vsel %vm573_vm1, %v605_v12, %v8324_v20  ;;  %8351 = vpow2.f32 %v637_v40  ;;  %15545 = vst [vmem:[#allocation20_spill] sm:$0xff] %v9256_v0  ;;  %v625_v11 = vmul.f32 1.442695, %v9233_v54  ;;  %v9272_v12 = vld [vmem:[%s9110_s26 + $0xd8] sm:$0xff]  ;;  %v9280_v17 = vadd.f32 1.0, %v9223_v47  ;;  %s15047_s23 = scalar_lea.hbm %s15110_s3, %s7219_s29  ;;  %p8808_p8 = scmp.ne.s32.totalorder %s15049_s15, %s8807_s5 }
  0x7e   : > { %v9178_v27 = vsel %vm574_vm2, %v606_v15, %v8326_v23  ;;  %v8328_v50 = vpop.eup %8327  ;;  %8353 = vpow2.f32 %v417_v41  ;;  %v9277_v15 = vadd.f32 1.0, %v9207_v39  ;;  %v429_v19 = vmul.f32 1.442695, %v9246_v61  ;;  %s8919_s30 = smov [#allocation10]  }
  0x7f   : > { %v9186_v30 = vpack.c.bf16 %v9178_v27, %v9172_v24  ;;  %v8330_v53 = vpop.eup %8329  ;;  %8355 = vpow2.f32 %v415_v43  ;;  %vm546_vm11 = vcmp.gt.f32.partialorder %v9149_v8, 0.0  ;;  %v587_v22 = vadd.f32 1.0, %v9175_v25  ;;  %p8809_p2 = pnand %p8808_p8, %p9011_p9  ;;  %s8811_s6 = sshll.u32 %s8919_s30, 4  ;;  %s8812_s6 = int_to_ptr.vmem [resolvable:$false] %s8811_s6 }
  0x80   : > { %v9239_v57 = vpop.eup %8331  ;;  %8357 = vpow2.f32 %v627_v45  ;;  %v588_v23 = vadd.f32 1.0, %v9181_v28  ;;  %v659_v26 = vmul.f32 1.442695, %v9260_v2  ;;  %v589_v32 = vadd.f32 1.0, %v9189_v31  ;;  %v9305_v45 = vld [vmem:[#allocation3] sm:$0x1]  ;;  %p8814_p11 = scmp.lt.s32.totalorder %s15049_s15, %s8812_s6 }
  0x81   : > { %15544 = vst [vmem:[#allocation19_spill] sm:$0xff] %v9186_v30  ;;  %8194 = vmatprep.subr.msk.bf16.mxu0 %vm15261_vm3, %v9186_v30  ;;  %v9248_v62 = vpop.eup %8333  ;;  %8359 = vpow2.f32 %v421_v49  ;;  %v1341_v34 = vsub.s32 0, %v9256_v0  ;;  %v661_v35 = vmul.f32 1.442695, %v9272_v12  ;;  %v590_v40 = vadd.f32 1.0, %v9193_v33  ;;  %v9308_v49 = vld [vmem:[%s9103_s21 + $0x48] sm:$0xff]  ;;  %p8810_p3 = pneg %p8809_p2 }
  0x82   : > { %v9262_v3 = vpop.eup %8335  ;;  %8361 = vpow2.f32 %v663_v51  ;;  %v9299_v41 = vsel %vm543_vm4, %v575_v55, %v8328_v50  ;;  %v9303_v43 = vsel %vm544_vm5, %v576_v58, %v8330_v53  ;;  %vm547_vm12 = vcmp.gt.f32.partialorder %v9153_v10, 0.0  ;;  %s8813_s7 = scalar_lea.vmem %s8812_s6, 8192 }
  0x83   : > { %v9274_v14 = vpop.eup %8337  ;;  %8363 = vpow2.f32 %v665_v56  ;;  %v6680_v56 = vadd.f32 %v9303_v43, %v9299_v41  ;;  %vm352_vm13 = vcmp.gt.f32.partialorder %v9200_v36, 0.0  ;;  %v384_v5 = vadd.f32 1.0, %v9200_v36  ;;  %p8815_p13 = scmp.lt.s32.totalorder %s8813_s7, %s8807_s5 }
  0x84   : > { %v9283_v20 = vpop.eup %8339  ;;  %8365 = vpow2.f32 %v629_v60  ;;  %vm351_vm14 = vcmp.gt.f32.partialorder %v9204_v38, 0.0  ;;  %v383_v6 = vadd.f32 1.0, %v9204_v38  ;;  %vm354_vm15 = vcmp.gt.f32.partialorder %v9212_v42, 0.0 }
  0x85   : > { %v9289_v29 = vpop.eup %8341  ;;  %8367 = vpow2.f32 %v425_v1  ;;  %v9319_v55 = vrot.slane %v9305_v45, %v1341_v34  ;;  %v386_v58 = vadd.f32 1.0, %v9212_v42  ;;  %v433_v60 = vmul.f32 1.442695, %v9308_v49  ;;  %v9403_v42 = vld [vmem:[%s9110_s26 + $0xc0] sm:$0xff]  ;;  %p8816_p4 = por %p8815_p13, %p8814_p11 }
  0x86   : > { %v9294_v37 = vpop.eup %8343  ;;  %8369 = vpow2.f32 %v625_v11  ;;  %vm553_vm0 = vcmp.gt.f32.partialorder %v9207_v39, 0.0  ;;  %vm554_vm1 = vcmp.gt.f32.partialorder %v9223_v47, 0.0  ;;  %v9328_v11 = vsel %vm545_vm6, %v577_v59, %v9239_v57 }
  0x87   : > { %v8346_v51 = vpop.eup %8345  ;;  %8371 = vpow2.f32 %v429_v19  ;;  %vm571_vm2 = vcmp.gt.f32.partialorder %v9216_v44, 0.0  ;;  %vm572_vm4 = vcmp.gt.f32.partialorder %v9220_v46, 0.0  ;;  %v6681_v48 = vadd.f32 %v6680_v56, %v9328_v11  ;;  %p8817_p5 = pnand %p8816_p4, %p8810_p3 }
  0x88   : > { %v8348_v50 = vpop.eup %8347  ;;  %8373 = vpow2.f32 %v659_v26  ;;  %v9337_v26 = vld [vmem:[%s9103_s21 + $0x58] sm:$0xff]  ;;  %v603_v7 = vadd.f32 1.0, %v9216_v44  ;;  %v604_v57 = vadd.f32 1.0, %v9220_v46  ;;  %v9348_v59 = vsel %vm555_vm9, %v587_v22, %v8346_v51 }
  0x89   : > { %v8350_v53 = vpop.eup %8349  ;;  %8375 = vpow2.f32 %v661_v35  ;;  %vm548_vm5 = vcmp.gt.f32.partialorder %v9157_v13, 0.0  ;;  %v437_v28 = vmul.f32 1.442695, %v9337_v26  ;;  %vm356_vm6 = vcmp.gt.f32.partialorder %v9230_v52, 0.0 }
  0x8a   : > { %v8352_v1 = vpop.eup %8351  ;;  %v9332_v19 = vsel %vm557_vm7, %v589_v32, %v8350_v53  ;;  %v9352_v32 = vsel %vm556_vm10, %v588_v23, %v8348_v50  ;;  %8377 = vpow2.f32 %v433_v60  ;;  %v388_v51 = vadd.f32 1.0, %v9230_v52 }
  0x8b   : > { %v8354_v34 = vpop.eup %8353  ;;  %v9341_v35 = vsel %vm558_vm8, %v590_v40, %v8352_v1  ;;  %v9380_v38 = vsel %vm546_vm11, %v9253_v63, %v9248_v62  ;;  %vm358_vm7 = vcmp.gt.f32.partialorder %v9246_v61, 0.0  ;;  %v9400_v62 = vpack.c.bf16 %v9352_v32, %v9348_v59  ;;  %v9406_v63 = vld [vmem:[%s9110_s26 + $0xc8] sm:$0xff] }
  0x8c   : > { %v8356_v31 = vpop.eup %8355  ;;  %v9356_v33 = vpack.c.bf16 %v9341_v35, %v9332_v19  ;;  %v480_v40 = vsel %vm352_vm13, %v384_v5, %v8354_v34  ;;  %v6682_v1 = vadd.f32 %v6681_v48, %v9380_v38  ;;  %vm569_vm8 = vcmp.gt.f32.partialorder %v9260_v2, 0.0 }
  0x8d   : > { %v8358_v56 = vpop.eup %8357  ;;  %v9362_v53 = vmul.f32 %v9319_v55, %v480_v40  ;;  %v9366_v25 = vsel %vm351_vm14, %v383_v6, %v8356_v31  ;;  %15550 = vst [vmem:[#allocation25_spill] sm:$0xff] %v9400_v62  ;;  %v390_v31 = vadd.f32 1.0, %v9246_v61  ;;  %8379 = vpow2.f32 %v437_v28 }
  0x8e   : > { %15546 = vst [vmem:[#allocation21_spill] sm:$0xff] %v9356_v33  ;;  %v8360_v22 = vpop.eup %8359  ;;  %v959_v23 = vsel %vm15261_vm3, %v9356_v33, 0  ;;  %v9372_v36 = vpack.c.bf16 %v480_v40, %v9366_v25  ;;  %v601_v40 = vadd.f32 1.0, %v9260_v2  ;;  %v655_v10 = vmul.f32 1.442695, %v9403_v42 }
  0x8f   : > { %15547 = vst [vmem:[#allocation22_spill] sm:$0xff] %v9362_v53  ;;  %v8362_v5 = vpop.eup %8361  ;;  %7223 = vmatpush3.bf16.xpose.msra.mxu0 %v959_v23  ;;  %v1379_v50 = vsel %vm15261_vm3, %v9362_v53, 0.0  ;;  %v9386_v6 = vsel %vm354_vm15, %v386_v58, %v8360_v22  ;;  %v602_v23 = vadd.f32 1.0, %v9272_v12  ;;  %vm570_vm9 = vcmp.gt.f32.partialorder %v9272_v12, 0.0 }
  0x90   : > { %15548 = vst [vmem:[#allocation23_spill] sm:$0xff] %v9372_v36  ;;  %v8364_v60 = vpop.eup %8363  ;;  %1380 = vadd.xlane.f32.xlu1 %v1379_v50  ;;  %v9392_v34 = vmul.f32 %v9319_v55, %v9386_v6  ;;  %v9396_v8 = vsel %vm571_vm2, %v603_v7, %v8362_v5  ;;  %7238 = vmatprep.mubr.msk.bf16.mxu0 %vm15261_vm3, %v9372_v36  ;;  %v956_v50 = vsel %vm15261_vm3, %v9400_v62, 0  ;;  %8381 = vpow2.f32 %v655_v10  ;;  %v9506_v10 = vld [vmem:[%s9103_s21 + $0x78] sm:$0xff] }
  0x91   : > { %v8366_v58 = vpop.eup %8365  ;;  %v9410_v48 = vsel %vm572_vm4, %v604_v57, %v8364_v60  ;;  %8050 = vmatprep.mubr.msk.bf16.mxu1 %vm15261_vm3, %v9372_v36  ;;  %v9422_v7 = vsel %vm547_vm12, %v9265_v4, %v9262_v3  ;;  %v657_v3 = vmul.f32 1.442695, %v9406_v63  ;;  %v9451_v60 = vsel %vm553_vm0, %v9277_v15, %v8358_v56  ;;  %v9478_v56 = vld [vmem:[%s9103_s21 + $0x68] sm:$0xff] }
  0x92   : > { %15549 = vst [vmem:[#allocation24_spill] sm:$0xff] %v9392_v34  ;;  %v8368_v44 = vpop.eup %8367  ;;  %v1385_v46 = vsel %vm15261_vm3, %v9392_v34, 0.0  ;;  %v9428_v57 = vpack.c.bf16 %v9410_v48, %v9396_v8  ;;  %v6683_v5 = vadd.f32 %v6682_v1, %v9422_v7  ;;  %v9456_v1 = vsel %vm554_vm1, %v9280_v17, %v8366_v58  ;;  %v9694_v34 = vld [vmem:[%s9103_s21 + $0x10] sm:$0xff] }
  0x93   : > { %v8370_v28 = vpop.eup %8369  ;;  %v9433_v22 = vsel %vm356_vm6, %v388_v51, %v8368_v44  ;;  %vm549_vm10 = vcmp.gt.f32.partialorder %v9161_v16, 0.0  ;;  %v581_v12 = vadd.f32 1.0, %v9161_v16  ;;  %v392_v17 = vadd.f32 1.0, %v9308_v49  ;;  %v9528_v16 = vld [vmem:[%s9110_s26 + $0xb8] sm:$0xff] }
  0x94   : > { %15551 = vst [vmem:[#allocation26_spill] sm:$0xff] %v9428_v57  ;;  %v8372_v4 = vpop.eup %8371  ;;  %1386 = vadd.xlane.f32.xlu1 %v1385_v46  ;;  %8195 = vmatprep.subr.msk.bf16.mxu0 %vm15261_vm3, %v9428_v57  ;;  %v9445_v52 = vmul.f32 %v9319_v55, %v9433_v22  ;;  %8383 = vpow2.f32 %v657_v3  ;;  %v9484_v58 = vsel %vm548_vm5, %v9268_v9, %v9274_v14  ;;  %vm360_vm11 = vcmp.gt.f32.partialorder %v9308_v49, 0.0 }
  0x95   : > { %v8374_v51 = vpop.eup %8373  ;;  %v9460_v44 = vsel %vm358_vm7, %v390_v31, %v8372_v4  ;;  %v9492_v31 = vpack.c.bf16 %v9456_v1, %v9451_v60  ;;  %vm551_vm12 = vcmp.gt.f32.partialorder %v9169_v21, 0.0  ;;  %vm552_vm13 = vcmp.gt.f32.partialorder %v9233_v54, 0.0 }
  0x96   : > { %15552 = vst [vmem:[#allocation27_spill] sm:$0xff] %v9445_v52  ;;  %v8376_v46 = vpop.eup %8375  ;;  %v1391_v39 = vsel %vm15261_vm3, %v9445_v52, 0.0  ;;  %v9468_v15 = vmul.f32 %v9319_v55, %v9460_v44  ;;  %v9472_v47 = vsel %vm569_vm8, %v601_v40, %v8374_v51  ;;  %v6684_v40 = vadd.f32 %v6683_v5, %v9484_v58 }
  0x97   : > { %7225 = vmatpush3.bf16.xpose.msra.mxu0 %v956_v50  ;;  %v9474_v61 = vsel %vm570_vm9, %v602_v23, %v8376_v46  ;;  %15555 = vst [vmem:[#allocation30_spill] sm:$0xff] %v9492_v31  ;;  %v8378_v9 = vpop.eup %8377  ;;  %v583_v14 = vadd.f32 1.0, %v9169_v21  ;;  %v584_v23 = vadd.f32 1.0, %v9233_v54  ;;  %v441_v49 = vmul.f32 1.442695, %v9478_v56 }
  0x98   : > { %15553 = vst [vmem:[#allocation28_spill] sm:$0xff] %v9468_v15  ;;  %1392 = vadd.xlane.f32.xlu1 %v1391_v39  ;;  %v9488_v2 = vpack.c.bf16 %v9474_v61, %v9472_v47  ;;  %v1397_v13 = vsel %vm15261_vm3, %v9468_v15, 0.0  ;;  %v582_v3 = vadd.f32 1.0, %v9165_v18  ;;  %v9512_v4 = vsel %vm549_vm10, %v581_v12, %v9283_v20  ;;  %v9525_v39 = vld [vmem:[%s9110_s26 + $0xb0] sm:$0xff] }
  0x99   : > { %v9514_v5 = vsel %vm360_vm11, %v392_v17, %v8378_v9  ;;  %v394_v50 = vadd.f32 1.0, %v9337_v26  ;;  %v953_v51 = vsel %vm15261_vm3, %v9492_v31, 0  ;;  %vm362_vm14 = vcmp.gt.f32.partialorder %v9337_v26, 0.0 }
  0x9a   : > { %15554 = vst [vmem:[#allocation29_spill] sm:$0xff] %v9488_v2  ;;  %8196 = vmatprep.subr.msk.bf16.mxu0 %vm15261_vm3, %v9488_v2  ;;  %v9521_v46 = vmul.f32 %v9319_v55, %v9514_v5  ;;  %8385 = vpow2.f32 %v441_v49  ;;  %vm550_vm15 = vcmp.gt.f32.partialorder %v9165_v18, 0.0  ;;  %v6685_v20 = vadd.f32 %v6684_v40, %v9512_v4  ;;  %v8380_v17 = vpop.eup %8379 }
  0x9b   : > { %v445_v12 = vmul.f32 1.442695, %v9506_v10  ;;  %v680_v26 = vsel %vm552_vm13, %v584_v23, %v8370_v28  ;;  %v599_v49 = vadd.f32 1.0, %v9403_v42  ;;  %v9541_v18 = vsel %vm362_vm14, %v394_v50, %v8380_v17  ;;  %v9570_v17 = vld [vmem:[%s9110_s26 + $0xa8] sm:$0xff] }
  0x9c   : > { %1398 = vadd.xlane.f32.xlu1 %v1397_v13  ;;  %15556 = vst [vmem:[#allocation31_spill] sm:$0xff] %v9521_v46  ;;  %v679_v13 = vsel %vm551_vm12, %v583_v14, %v9294_v37  ;;  %v1403_v9 = vsel %vm15261_vm3, %v9521_v46, 0.0  ;;  %v651_v40 = vmul.f32 1.442695, %v9525_v39  ;;  %v653_v57 = vmul.f32 1.442695, %v9528_v16 }
  0x9d   : > { %8387 = vpow2.f32 %v445_v12  ;;  %v678_v21 = vsel %vm550_vm15, %v582_v3, %v9289_v29  ;;  %v9548_v54 = vmul.f32 %v9319_v55, %v9541_v18  ;;  %vm567_vm0 = vcmp.gt.f32.partialorder %v9403_v42, 0.0  ;;  %v9552_v37 = vld [vmem:[%s9103_s21 + $0x88] sm:$0xff]  ;;  %v8382_v23 = vpop.eup %8381  ;;  %v9561_v3 = vld [vmem:[%s9103_s21 + $0x98] sm:$0xff]  ;;  %v9567_v12 = vld [vmem:[%s9110_s26 + $0xa0] sm:$0xff] }
  0x9e   : > { %v6686_v28 = vadd.f32 %v6685_v20, %v678_v21  ;;  %v600_v14 = vadd.f32 1.0, %v9406_v63  ;;  %8389 = vpow2.f32 %v651_v40  ;;  %vm568_vm1 = vcmp.gt.f32.partialorder %v9406_v63, 0.0 }
  0x9f   : > { %7227 = vmatpush3.bf16.xpose.msra.mxu0 %v953_v51  ;;  %15557 = vst [vmem:[#allocation32_spill] sm:$0xff] %v9548_v54  ;;  %v1409_v50 = vsel %vm15261_vm3, %v9548_v54, 0.0  ;;  %v9558_v29 = vpack.c.bf16 %v680_v26, %v679_v13  ;;  %8391 = vpow2.f32 %v653_v57  ;;  %v9563_v51 = vsel %vm567_vm0, %v599_v49, %v8382_v23 }
  0xa0   : > { %1404 = vadd.xlane.f32.xlu1 %v1403_v9  ;;  %v449_v42 = vmul.f32 1.442695, %v9552_v37  ;;  %v453_v63 = vmul.f32 1.442695, %v9561_v3  ;;  %v6687_v40 = vadd.f32 %v6686_v28, %v679_v13  ;;  %v396_v23 = vadd.f32 1.0, %v9478_v56 }
  0xa1   : > { %15558 = vst [vmem:[#allocation33_spill] sm:$0xff] %v9558_v29  ;;  %v8384_v20 = vpop.eup %8383  ;;  %v950_v49 = vsel %vm15261_vm3, %v9558_v29, 0  ;;  %vm364_vm2 = vcmp.gt.f32.partialorder %v9478_v56, 0.0  ;;  %v398_v28 = vadd.f32 1.0, %v9506_v10  ;;  %vm366_vm4 = vcmp.gt.f32.partialorder %v9506_v10, 0.0 }
  0xa2   : > { %v9572_v9 = vsel %vm568_vm1, %v600_v14, %v8384_v20  ;;  %8393 = vpow2.f32 %v449_v42  ;;  %v647_v14 = vmul.f32 1.442695, %v9567_v12  ;;  %v9586_v42 = vld [vmem:[%s9103_s21 + $0xa8] sm:$0xff]  ;;  %vm565_vm5 = vcmp.gt.f32.partialorder %v9525_v39, 0.0 }
  0xa3   : > { %v9577_v57 = vpack.c.bf16 %v9572_v9, %v9563_v51  ;;  %8395 = vpow2.f32 %v453_v63  ;;  %v457_v56 = vmul.f32 1.442695, %v9586_v42  ;;  %v6688_v63 = vadd.f32 %v6687_v40, %v680_v26 }
  0xa4   : > { %1410 = vadd.xlane.f32.xlu1 %v1409_v50  ;;  %v649_v50 = vmul.f32 1.442695, %v9570_v17  ;;  %8397 = vpow2.f32 %v647_v14  ;;  %v9606_v10 = vpack.c.bf16 %v678_v21, %v9512_v4  ;;  %vm566_vm6 = vcmp.gt.f32.partialorder %v9528_v16, 0.0  ;;  %v9622_v4 = vld [vmem:[%s9110_s26 + $0x98] sm:$0xff] }
  0xa5   : > { %15559 = vst [vmem:[#allocation34_spill] sm:$0xff] %v9577_v57  ;;  %8197 = vmatprep.subr.msk.bf16.mxu0 %vm15261_vm3, %v9577_v57  ;;  %v597_v57 = vadd.f32 1.0, %v9525_v39  ;;  %vm368_vm7 = vcmp.gt.f32.partialorder %v9552_v37, 0.0  ;;  %vm370_vm8 = vcmp.gt.f32.partialorder %v9561_v3, 0.0  ;;  %vm563_vm9 = vcmp.gt.f32.partialorder %v9567_v12, 0.0 }
  0xa6   : > { %8399 = vpow2.f32 %v649_v50  ;;  %15561 = vst [vmem:[#allocation36_spill] sm:$0xff] %v9606_v10  ;;  %v947_v46 = vsel %vm15261_vm3, %v9606_v10, 0  ;;  %vm564_vm10 = vcmp.gt.f32.partialorder %v9570_v17, 0.0  ;;  %vm372_vm11 = vcmp.gt.f32.partialorder %v9586_v42, 0.0 }
  0xa7   : > { %v8386_v13 = vpop.eup %8385  ;;  %7229 = vmatpush3.bf16.xpose.msra.mxu0 %v950_v49  ;;  %v9601_v49 = vld [vmem:[%s9103_s21 + $0xb8] sm:$0xff]  ;;  %8401 = vpow2.f32 %v457_v56  ;;  %v6689_v56 = vadd.f32 %v6688_v63, %v9451_v60  ;;  %vm562_vm14 = vcmp.gt.f32.partialorder %v9622_v4, 0.0 }
  0xa8   : > { %v9591_v20 = vsel %vm364_vm2, %v396_v23, %v8386_v13  ;;  %v598_v23 = vadd.f32 1.0, %v9528_v16  ;;  %v461_v39 = vmul.f32 1.442695, %v9601_v49  ;;  %v9619_v13 = vld [vmem:[%s9110_s26 + $0x90] sm:$0xff]  ;;  %v400_v16 = vadd.f32 1.0, %v9552_v37 }
  0xa9   : > { %v9597_v0 = vmul.f32 %v9319_v55, %v9591_v20  ;;  %v643_v63 = vmul.f32 1.442695, %v9619_v13  ;;  %vm374_vm12 = vcmp.gt.f32.partialorder %v9601_v49, 0.0  ;;  %vm561_vm13 = vcmp.gt.f32.partialorder %v9619_v13, 0.0 }
  0xaa   : > { %v8388_v54 = vpop.eup %8387  ;;  %8403 = vpow2.f32 %v461_v39 }
  0xab   : > { %15560 = vst [vmem:[#allocation35_spill] sm:$0xff] %v9597_v0  ;;  %v1415_v26 = vsel %vm15261_vm3, %v9597_v0, 0.0  ;;  %v9610_v40 = vsel %vm366_vm4, %v398_v28, %v8388_v54  ;;  %v8390_v14 = vpop.eup %8389  ;;  %v9630_v54 = vld [vmem:[%s9103_s21 + $0xc8] sm:$0xff]  ;;  %8405 = vpow2.f32 %v643_v63 }
  0xac   : > { %1416 = vadd.xlane.f32.xlu1 %v1415_v26  ;;  %v9615_v50 = vmul.f32 %v9319_v55, %v9610_v40  ;;  %v8392_v21 = vpop.eup %8391  ;;  %v9625_v0 = vsel %vm565_vm5, %v597_v57, %v8390_v14  ;;  %v402_v57 = vadd.f32 1.0, %v9561_v3  ;;  %v645_v14 = vmul.f32 1.442695, %v9622_v4  ;;  %v9662_v3 = vld [vmem:[%s9103_s21 + $0xd8] sm:$0xff] }
  0xad   : > { %v9634_v26 = vsel %vm566_vm6, %v598_v23, %v8392_v21  ;;  %v465_v23 = vmul.f32 1.442695, %v9630_v54  ;;  %v6690_v21 = vadd.f32 %v6689_v56, %v9456_v1  ;;  %v596_v1 = vadd.f32 1.0, %v9570_v17 }
  0xae   : > { %15562 = vst [vmem:[#allocation37_spill] sm:$0xff] %v9615_v50  ;;  %v1421_v28 = vsel %vm15261_vm3, %v9615_v50, 0.0  ;;  %v9640_v60 = vpack.c.bf16 %v9634_v26, %v9625_v0  ;;  %v595_v50 = vadd.f32 1.0, %v9567_v12  ;;  %8407 = vpow2.f32 %v645_v14 }
  0xaf   : > { %v8394_v15 = vpop.eup %8393  ;;  %8409 = vpow2.f32 %v465_v23  ;;  %vm376_vm15 = vcmp.gt.f32.partialorder %v9630_v54, 0.0  ;;  %vm378_vm0 = vcmp.gt.f32.partialorder %v9662_v3, 0.0  ;;  %vm353_vm5 = vcmp.gt.f32.partialorder %v9694_v34, 0.0 }
  0xb0   : > { %1422 = vadd.xlane.f32.xlu1 %v1421_v28  ;;  %8198 = vmatprep.subr.msk.bf16.mxu0 %vm15261_vm3, %v9640_v60  ;;  %v9652_v39 = vsel %vm368_vm7, %v400_v16, %v8394_v15  ;;  %v8396_v52 = vpop.eup %8395  ;;  %v404_v16 = vadd.f32 1.0, %v9586_v42 }
  0xb1   : > { %7231 = vmatpush3.bf16.xpose.msra.mxu0 %v947_v46  ;;  %v9657_v28 = vmul.f32 %v9319_v55, %v9652_v39  ;;  %v9664_v15 = vsel %vm370_vm8, %v402_v57, %v8396_v52  ;;  %v9669_v46 = vpack.c.bf16 %v9484_v58, %v9422_v7  ;;  %v8398_v37 = vpop.eup %8397  ;;  %v469_v7 = vmul.f32 1.442695, %v9662_v3  ;;  %v9683_v58 = vld [vmem:[%s9110_s26 + $0x80] sm:$0xff]  ;;  %v9686_v57 = vld [vmem:[%s9110_s26 + $0x88] sm:$0xff] }
  0xb2   : > { %v9675_v56 = vmul.f32 %v9319_v55, %v9664_v15  ;;  %v9678_v17 = vsel %vm563_vm9, %v595_v50, %v8398_v37  ;;  %v406_v37 = vadd.f32 1.0, %v9601_v49  ;;  %v9728_v49 = vld [vmem:[%s9103_s21 + $0xf8] sm:$0xff]  ;;  %vm559_vm1 = vcmp.gt.f32.partialorder %v9683_v58, 0.0 }
  0xb3   : > { %15563 = vst [vmem:[#allocation38_spill] sm:$0xff] %v9657_v28  ;;  %15564 = vst [vmem:[#allocation39_spill] sm:$0xff] %v9669_v46  ;;  %v1427_v12 = vsel %vm15261_vm3, %v9657_v28, 0.0  ;;  %v8400_v52 = vpop.eup %8399  ;;  %v6691_v28 = vadd.f32 %v6690_v21, %v9348_v59  ;;  %v944_v42 = vsel %vm15261_vm3, %v9669_v46, 0  ;;  %8411 = vpow2.f32 %v469_v7 }
  0xb4   : > { %15565 = vst [vmem:[#allocation40_spill] sm:$0xff] %v9675_v56  ;;  %1428 = vadd.xlane.f32.xlu1 %v1427_v12  ;;  %v1433_v63 = vsel %vm15261_vm3, %v9675_v56, 0.0  ;;  %v9690_v14 = vsel %vm564_vm10, %v596_v1, %v8400_v52  ;;  %v8402_v23 = vpop.eup %8401  ;;  %v9704_v12 = vld [vmem:[%s9103_s21 + $0xe8] sm:$0xff]  ;;  %v639_v1 = vmul.f32 1.442695, %v9683_v58  ;;  %v593_v56 = vadd.f32 1.0, %v9619_v13 }
  0xb5   : > { %v9698_v50 = vpack.c.bf16 %v9690_v14, %v9678_v17  ;;  %v9706_v53 = vsel %vm372_vm11, %v404_v16, %v8402_v23  ;;  %v641_v59 = vmul.f32 1.442695, %v9686_v57  ;;  %v9719_v16 = vpack.c.bf16 %v9303_v43, %v9299_v41 }
  0xb6   : > { %v9714_v21 = vmul.f32 %v9319_v55, %v9706_v53  ;;  %v419_v52 = vmul.f32 1.442695, %v9694_v34  ;;  %8413 = vpow2.f32 %v639_v1  ;;  %v473_v7 = vmul.f32 1.442695, %v9704_v12 }
  0xb7   : > { %15566 = vst [vmem:[#allocation41_spill] sm:$0xff] %v9698_v50  ;;  %8199 = vmatprep.subr.msk.bf16.mxu0 %vm15261_vm3, %v9698_v50  ;;  %15568 = vst [vmem:[#allocation43_spill] sm:$0xff] %v9719_v16  ;;  %v6692_v23 = vadd.f32 %v6691_v28, %v9352_v32  ;;  %8415 = vpow2.f32 %v641_v59  ;;  %1956 = vxpose.xlu0.c.b16.start [1/8] (narrow) %v9719_v16, 32  ;;  %v594_v43 = vadd.f32 1.0, %v9622_v4  ;;  %v477_v13 = vmul.f32 1.442695, %v9728_v49 }
  0xb8   : > { %1434 = vadd.xlane.f32.xlu1 %v1433_v63  ;;  %15567 = vst [vmem:[#allocation42_spill] sm:$0xff] %v9714_v21  ;;  %v8404_v63 = vpop.eup %8403  ;;  %v1439_v50 = vsel %vm15261_vm3, %v9714_v21, 0.0  ;;  %8417 = vpow2.f32 %v473_v7  ;;  %v9742_v28 = vpack.c.bf16 %v9380_v38, %v9328_v11  ;;  %vm560_vm2 = vcmp.gt.f32.partialorder %v9686_v57, 0.0 }
  0xb9   : > { %7233 = vmatpush3.bf16.xpose.msra.mxu0 %v944_v42  ;;  %v9731_v41 = vsel %vm374_vm12, %v406_v37, %v8404_v63  ;;  %v408_v42 = vadd.f32 1.0, %v9630_v54  ;;  %v8406_v37 = vpop.eup %8405  ;;  %8419 = vpow2.f32 %v419_v52  ;;  %v6693_v38 = vadd.f32 %v6692_v23, %v9332_v19 }
  0xba   : > { %v9737_v32 = vmul.f32 %v9319_v55, %v9731_v41  ;;  %15570 = vst [vmem:[#allocation45_spill] sm:$0xff] %v9742_v28  ;;  %v689_v7 = vsel %vm561_vm13, %v593_v56, %v8406_v37  ;;  %8421 = vpow2.f32 %v477_v13  ;;  %v941_v54 = vsel %vm15261_vm3, %v9742_v28, 0 }
  0xbb   : > { %v8408_v1 = vpop.eup %8407  ;;  %1957 = vxpose.xlu0.c.b16.cont [2/8] (narrow) %v9742_v28, 32  ;;  %v591_v23 = vadd.f32 1.0, %v9683_v58  ;;  %v6694_v37 = vadd.f32 %v6693_v38, %v9341_v35  ;;  %v592_v13 = vadd.f32 1.0, %v9686_v57  ;;  %vm380_vm4 = vcmp.gt.f32.partialorder %v9704_v12, 0.0 }
  0xbc   : > { %1440 = vadd.xlane.f32.xlu1 %v1439_v50  ;;  %15569 = vst [vmem:[#allocation44_spill] sm:$0xff] %v9737_v32  ;;  %v9748_v50 = vld [vmem:[%s9103_s21 + $0x20] sm:$0xff]  ;;  %v1445_v59 = vsel %vm15261_vm3, %v9737_v32, 0.0  ;;  %v8410_v4 = vpop.eup %8409  ;;  %v690_v11 = vsel %vm562_vm14, %v594_v43, %v8408_v1  ;;  %v410_v43 = vadd.f32 1.0, %v9662_v3  ;;  %v9777_v1 = vld [vmem:[%s9103_s21 + $0x30] sm:$0xff]  ;;  %v385_v58 = vadd.f32 1.0, %v9694_v34 }
  0xbd   : > { %v9754_v52 = vpack.c.bf16 %v690_v11, %v689_v7  ;;  %v9758_v63 = vsel %vm376_vm15, %v408_v42, %v8410_v4  ;;  %v423_v21 = vmul.f32 1.442695, %v9748_v50  ;;  %vm382_vm6 = vcmp.gt.f32.partialorder %v9728_v49, 0.0 }
  0xbe   : > { %v9763_v56 = vmul.f32 %v9319_v55, %v9758_v63  ;;  %vm355_vm7 = vcmp.gt.f32.partialorder %v9748_v50, 0.0  ;;  %vm357_vm8 = vcmp.gt.f32.partialorder %v9777_v1, 0.0 }
  0xbf   : > { %8200 = vmatprep.subr.msk.bf16.mxu0 %vm15261_vm3, %v9754_v52  ;;  %1958 = vxpose.xlu0.c.b16.cont [3/8] (narrow) %v9669_v46, 32  ;;  %8423 = vpow2.f32 %v423_v21 }
  0xc0   : > { %1446 = vadd.xlane.f32.xlu1 %v1445_v59  ;;  %15571 = vst [vmem:[#allocation46_spill] sm:$0xff] %v9763_v56  ;;  %v1451_v19 = vsel %vm15261_vm3, %v9763_v56, 0.0  ;;  %v8412_v42 = vpop.eup %8411  ;;  %v412_v59 = vadd.f32 1.0, %v9704_v12  ;;  %v938_v12 = vsel %vm15261_vm3, %v9719_v16, 0 }
  0xc1   : > { %7235 = vmatpush3.bf16.xpose.msra.mxu0 %v941_v54  ;;  %v9779_v3 = vsel %vm378_vm0, %v410_v43, %v8412_v42  ;;  %v427_v43 = vmul.f32 1.442695, %v9777_v1 }
  0xc2   : > { %v9785_v54 = vmul.f32 %v9319_v55, %v9779_v3 }
  0xc3   : > { %v8414_v4 = vpop.eup %8413  ;;  %1959 = vxpose.xlu0.c.b16.cont [4/8] (narrow) %v9606_v10, 32  ;;  %8425 = vpow2.f32 %v427_v43  ;;  %v886_v43 = vld [vmem:[#allocation2 + $0x10] sm:$0xff] }
  0xc4   : > { %1452 = vadd.xlane.f32.xlu1 %v1451_v19  ;;  %15572 = vst [vmem:[#allocation47_spill] sm:$0xff] %v9785_v54  ;;  %v8416_v35 = vpop.eup %8415  ;;  %v687_v21 = vsel %vm559_vm1, %v591_v23, %v8414_v4  ;;  %v9792_v19 = vld [vmem:[%s9103_s21 + $0x40] sm:$0xff]  ;;  %v1457_v57 = vsel %vm15261_vm3, %v9785_v54, 0.0  ;;  %v414_v23 = vadd.f32 1.0, %v9728_v49 }
  0xc5   : > { %v8418_v38 = vpop.eup %8417  ;;  %v688_v42 = vsel %vm560_vm2, %v592_v13, %v8416_v35  ;;  %v6695_v56 = vadd.f32 %v6694_v37, %v687_v21  ;;  %v431_v37 = vmul.f32 1.442695, %v9792_v19  ;;  %vm359_vm9 = vcmp.gt.f32.partialorder %v9792_v19, 0.0 }
  0xc6   : > { %v9796_v32 = vpack.c.bf16 %v688_v42, %v687_v21  ;;  %v9800_v46 = vsel %vm380_vm4, %v412_v59, %v8418_v38  ;;  %v8420_v4 = vpop.eup %8419  ;;  %v9825_v38 = vld [vmem:[%s9103_s21 + $0x50] sm:$0xff] }
  0xc7   : > { %v6696_v30 = vadd.f32 %v6695_v56, %v688_v42  ;;  %v9806_v2 = vmul.f32 %v9319_v55, %v9800_v46  ;;  %1960 = vxpose.xlu0.c.b16.cont [5/8] (narrow) %v9558_v29, 32  ;;  %v8422_v13 = vpop.eup %8421  ;;  %v9815_v56 = vsel %vm353_vm5, %v385_v58, %v8420_v4  ;;  %8427 = vpow2.f32 %v431_v37  ;;  %v9846_v37 = vld [vmem:[%s9103_s21 + $0x70] sm:$0xff] }
  0xc8   : > { %1458 = vadd.xlane.f32.xlu1 %v1457_v57  ;;  %8201 = vmatprep.subr.msk.bf16.mxu0 %vm15261_vm3, %v9796_v32  ;;  %v9817_v49 = vsel %vm382_vm6, %v414_v23, %v8422_v13  ;;  %v887_v57 = vld [vmem:[#allocation2 + $0x18] sm:$0xff]  ;;  %v387_v42 = vadd.f32 1.0, %v9748_v50  ;;  %v884_v50 = vld [vmem:[#allocation2] sm:$0xff]  ;;  %vm361_vm10 = vcmp.gt.f32.partialorder %v9825_v38, 0.0  ;;  %vm365_vm12 = vcmp.gt.f32.partialorder %v9846_v37, 0.0 }
  0xc9   : > { %15573 = vst [vmem:[#allocation48_spill] sm:$0xff] %v9806_v2  ;;  %v6697_v59 = vadd.f32 %v6696_v30, %v689_v7  ;;  %7237 = vmatpush3.bf16.xpose.msra.mxu0 %v938_v12  ;;  %v1463_v34 = vsel %vm15261_vm3, %v9806_v2, 0.0  ;;  %v9821_v21 = vmul.f32 %v9319_v55, %v9817_v49  ;;  %v9829_v30 = vpack.c.bf16 %v9386_v6, %v9815_v56  ;;  %v9832_v7 = vld [vmem:[%s9103_s21 + $0x60] sm:$0xff] }
  0xca   : > { %v1537_v12 = vpack.c.bf16 %v887_v57, %v886_v43  ;;  %v435_v6 = vmul.f32 1.442695, %v9825_v38  ;;  %v9859_v43 = vld [vmem:[%s9103_s21 + $0x90] sm:$0xff]  ;;  %vm363_vm11 = vcmp.gt.f32.partialorder %v9832_v7, 0.0 }
  0xcb   : > { %v6698_v35 = vadd.f32 %v6697_v59, %v690_v11  ;;  %15574 = vst [vmem:[#allocation49_spill] sm:$0xff] %v9821_v21  ;;  %1961 = vxpose.xlu0.c.b16.cont [6/8] (narrow) %v9492_v31, 32  ;;  %15575 = vst [vmem:[#allocation50_spill] sm:$0xff] %v9829_v30  ;;  %v1469_v11 = vsel %vm15261_vm3, %v9821_v21, 0.0  ;;  %v885_v59 = vld [vmem:[#allocation2 + $0x8] sm:$0xff]  ;;  %vm369_vm13 = vcmp.gt.f32.partialorder %v9859_v43, 0.0 }
  0xcc   : > { %1464 = vadd.xlane.f32.xlu1 %v1463_v34  ;;  %v8424_v23 = vpop.eup %8423  ;;  %8046 = vmatprep.subr.bf16.mxu1 %v1537_v12  ;;  %v1536_v34 = vpack.c.bf16 %v885_v59, %v884_v50  ;;  %8429 = vpow2.f32 %v435_v6 }
  0xcd   : > { %v6699_v58 = vadd.f32 %v6698_v35, %v9678_v17  ;;  %v439_v17 = vmul.f32 1.442695, %v9832_v7  ;;  %8047 = vmatpush3.bf16.msra.mxu1 %v1537_v12 }
  0xce   : > { %8048 = vmatprep.subr.bf16.mxu1 %v1536_v34 }
  0xcf   : > { %v6700_v4 = vadd.f32 %v6699_v58, %v9690_v14  ;;  %1962 = vxpose.xlu0.c.b16.cont [7/8] (narrow) %v9400_v62, 32  ;;  %v483_v14 = vsel %vm355_vm7, %v387_v42, %v8424_v23  ;;  %8431 = vpow2.f32 %v439_v17  ;;  %v443_v58 = vmul.f32 1.442695, %v9846_v37 }
  0xd0   : > { %1470 = vadd.xlane.f32.xlu1 %v1469_v11  ;;  %7239 = vmatmul.mubr.msk.bf16.vlgmr.msra.gmra.mxu0 %vm15261_vm3, %v9372_v36  ;;  %v389_v11 = vadd.f32 1.0, %v9777_v1  ;;  %v8426_v42 = vpop.eup %8425  ;;  %v451_v23 = vmul.f32 1.442695, %v9859_v43  ;;  %v9883_v17 = vmul.f32 %v9319_v55, %v9366_v25 }
  0xd1   : > { %v6701_v13 = vadd.f32 %v6700_v4, %v9625_v0  ;;  %7240 = vmatprep.mubr.msk.bf16.mxu0 %vm15261_vm3, %v9829_v30  ;;  %v9855_v0 = vpack.c.bf16 %v9433_v22, %v483_v14  ;;  %8049 = vmatpush3.bf16.msra.mxu1 %v1536_v34  ;;  %v391_v22 = vadd.f32 1.0, %v9792_v19  ;;  %8433 = vpow2.f32 %v443_v58  ;;  %v9895_v34 = vld [vmem:[%s9103_s21 + $0xd0] sm:$0xff] }
  0xd2   : > { %v485_v1 = vsel %vm357_vm8, %v389_v11, %v8426_v42  ;;  %15577 = vst [vmem:[#allocation52_spill] sm:$0xff] %v9883_v17  ;;  %8435 = vpow2.f32 %v451_v23  ;;  %v393_v19 = vadd.f32 1.0, %v9825_v38  ;;  %v9930_v23 = vmul.f32 %v9319_v55, %v483_v14 }
  0xd3   : > { %v6702_v35 = vadd.f32 %v6701_v13, %v9634_v26  ;;  %1963 = vxpose.xlu0.c.b16.end [8/8] (narrow) %v9356_v33, 32  ;;  %15576 = vst [vmem:[#allocation51_spill] sm:$0xff] %v9855_v0  ;;  %v9864_v26 = vld [vmem:[%s9103_s21 + $0x80] sm:$0xff]  ;;  %v9889_v50 = vpack.c.bf16 %v9460_v44, %v485_v1  ;;  %vm377_vm0 = vcmp.gt.f32.partialorder %v9895_v34, 0.0 }
  0xd4   : > { %8051 = vmatmul.mubr.msk.bf16.vlgmr.msra.gmra.mxu1 %vm15261_vm3, %v9829_v30  ;;  %v447_v6 = vmul.f32 1.442695, %v9864_v26  ;;  %v9905_v44 = vld [vmem:[%s9103_s21 + $0xa0] sm:$0xff]  ;;  %15581 = vst [vmem:[#allocation56_spill] sm:$0xff] %v9930_v23  ;;  %vm367_vm14 = vcmp.gt.f32.partialorder %v9864_v26, 0.0 }
  0xd5   : > { %v6703_v57 = vadd.f32 %v6702_v35, %v9563_v51  ;;  %v8428_v51 = vpop.eup %8427  ;;  %8054 = vmatprep.mubr.msk.bf16.mxu1 %vm15261_vm3, %v9855_v0  ;;  %15578 = vst [vmem:[#allocation53_spill] sm:$0xff] %v9889_v50  ;;  %v1376_v35 = vsel %vm15261_vm3, %v9883_v17, 0.0  ;;  %vm371_vm1 = vcmp.gt.f32.partialorder %v9905_v44, 0.0 }
  0xd6   : > { %v487_v59 = vsel %vm359_vm9, %v391_v22, %v8428_v51  ;;  %8437 = vpow2.f32 %v447_v6  ;;  %v9923_v22 = vld [vmem:[%s9103_s21 + $0xf0] sm:$0xff] }
  0xd7   : > { %v6704_v12 = vadd.f32 %v6703_v57, %v9572_v9  ;;  %v9876_v9 = vld [vmem:[%s9103_s21 + $0xb0] sm:$0xff]  ;;  %v9914_v11 = vpack.c.bf16 %v9514_v5, %v487_v59  ;;  %v467_v57 = vmul.f32 1.442695, %v9895_v34  ;;  %vm381_vm2 = vcmp.gt.f32.partialorder %v9923_v22, 0.0 }
  0xd8   : > { %7241 = vmatmul.mubr.msk.bf16.gmra.mxu0 %vm15261_vm3, %v9829_v30  ;;  %vm373_vm15 = vcmp.gt.f32.partialorder %v9876_v9, 0.0 }
  0xd9   : > { %v6705_v4 = vadd.f32 %v6704_v12, %v9472_v47  ;;  %7242 = vmatprep.mubr.msk.bf16.mxu0 %vm15261_vm3, %v9855_v0  ;;  %v459_v47 = vmul.f32 1.442695, %v9876_v9  ;;  %15580 = vst [vmem:[#allocation55_spill] sm:$0xff] %v9914_v11 }
  0xdb   : > { %v6706_v13 = vadd.f32 %v6705_v4, %v9474_v61  ;;  %v9902_v61 = vmul.f32 %v9319_v55, %v9815_v56  ;;  %v395_v56 = vadd.f32 1.0, %v9832_v7  ;;  %8439 = vpow2.f32 %v459_v47 }
  0xdc   : > { %8055 = vmatmul.mubr.msk.bf16.gmra.mxu1 %vm15261_vm3, %v9889_v50  ;;  %8441 = vpow2.f32 %v467_v57  ;;  %v475_v4 = vmul.f32 1.442695, %v9923_v22  ;;  %v399_v7 = vadd.f32 1.0, %v9864_v26 }
  0xdd   : > { %v6707_v25 = vadd.f32 %v6706_v13, %v9396_v8  ;;  %15579 = vst [vmem:[#allocation54_spill] sm:$0xff] %v9902_v61  ;;  %v8430_v8 = vpop.eup %8429  ;;  %v1382_v5 = vsel %vm15261_vm3, %v9902_v61, 0.0  ;;  %8058 = vmatprep.mubr.msk.bf16.mxu1 %vm15261_vm3, %v9914_v11 }
  0xde   : > { %v8432_v42 = vpop.eup %8431  ;;  %v489_v6 = vsel %vm361_vm10, %v393_v19, %v8430_v8  ;;  %v401_v8 = vadd.f32 1.0, %v9859_v43 }
  0xdf   : > { %v6708_v58 = vadd.f32 %v6707_v25, %v9410_v48  ;;  %v455_v48 = vmul.f32 1.442695, %v9905_v44  ;;  %v491_v14 = vsel %vm363_vm11, %v395_v56, %v8432_v42  ;;  %v8434_v13 = vpop.eup %8433  ;;  %v9949_v25 = vmul.f32 %v9319_v55, %v485_v1 }
  0xe0   : > { %7243 = vmatmul.mubr.msk.bf16.gmra.mxu0 %vm15261_vm3, %v9855_v0  ;;  %1377 = vadd.xlane.f32.xlu0 %v1376_v35  ;;  %v9952_v38 = vpack.c.bf16 %v9541_v18, %v489_v6  ;;  %v9958_v19 = vpack.c.bf16 %v9591_v20, %v491_v14  ;;  %v9966_v18 = vld [vmem:[%s9103_s21 + $0xc0] sm:$0xff]  ;;  %v8436_v1 = vpop.eup %8435 }
  0xe1   : > { %2068 = vrot.lane.b32.xlu1 %v9829_v30, %s8915_s20  ;;  %v6709_v12 = vadd.f32 %v6708_v58, %v9172_v24  ;;  %7244 = vmatprep.mubr.msk.bf16.mxu0 %vm15261_vm3, %v9889_v50  ;;  %v397_v24 = vadd.f32 1.0, %v9846_v37  ;;  %8443 = vpow2.f32 %v455_v48  ;;  %15582 = vst [vmem:[#allocation57_spill] sm:$0xff] %v9949_v25  ;;  %v1394_v20 = vsel %vm15261_vm3, %v9949_v25, 0.0 }
  0xe2   : > { %15583 = vst [vmem:[#allocation58_spill] sm:$0xff] %v9952_v38  ;;  %15584 = vst [vmem:[#allocation59_spill] sm:$0xff] %v9958_v19  ;;  %8445 = vpow2.f32 %v475_v4  ;;  %v9974_v37 = vmul.f32 %v9319_v55, %v487_v59  ;;  %v463_v48 = vmul.f32 1.442695, %v9966_v18  ;;  %v9987_v59 = vsel %vm369_vm13, %v401_v8, %v8436_v1 }
  0xe3   : > { %v6710_v51 = vadd.f32 %v6709_v12, %v9178_v27  ;;  %v1388_v27 = vsel %vm15261_vm3, %v9930_v23, 0.0  ;;  %v493_v58 = vsel %vm365_vm12, %v397_v24, %v8434_v13  ;;  %v8438_v57 = vpop.eup %8437  ;;  %v405_v12 = vadd.f32 1.0, %v9876_v9 }
  0xe4   : > { %1383 = vadd.xlane.f32.xlu0 %v1382_v5  ;;  %15585 = vst [vmem:[#allocation60_spill] sm:$0xff] %v9974_v37  ;;  %8059 = vmatmul.mubr.msk.bf16.gmra.mxu1 %vm15261_vm3, %v9952_v38  ;;  %v9982_v43 = vpack.c.bf16 %v9610_v40, %v493_v58  ;;  %v495_v5 = vsel %vm367_vm14, %v399_v7, %v8438_v57  ;;  %v1400_v40 = vsel %vm15261_vm3, %v9974_v37, 0.0  ;;  %8447 = vpow2.f32 %v463_v48  ;;  %v734_v48 = vld [vmem:[%s9116_s25 + $0xf8] sm:$0xff] }
  0xe5   : > { %2070 = vrot.lane.b32.xlu1 %v9855_v0, %s8915_s20  ;;  %v6711_v47 = vrot.slane %v6710_v51, 4  ;;  %8062 = vmatprep.mubr.msk.bf16.mxu1 %vm15261_vm3, %v9958_v19  ;;  %v9998_v4 = vpack.c.bf16 %v9664_v15, %v9987_v59  ;;  %v10003_v9 = vpack.c.bf16 %v9652_v39, %v495_v5  ;;  %v409_v7 = vadd.f32 1.0, %v9895_v34  ;;  %v10012_v15 = vld [vmem:[%s9103_s21 + $0xe0] sm:$0xff] }
  0xe6   : > { %15586 = vst [vmem:[#allocation61_spill] sm:$0xff] %v9982_v43  ;;  %v10021_v8 = vmul.f32 %v9319_v55, %v491_v14  ;;  %v471_v34 = vmul.f32 1.442695, %v10012_v15  ;;  %v10042_v57 = vmul.f32 %v9319_v55, %v493_v58  ;;  %vm375_vm4 = vcmp.gt.f32.partialorder %v9966_v18, 0.0 }
  0xe7   : > { %v6712_v35 = vadd.f32 %v6711_v47, %v6710_v51  ;;  %v9994_v51 = vmul.f32 %v9319_v55, %v489_v6  ;;  %15588 = vst [vmem:[#allocation63_spill] sm:$0xff] %v9998_v4  ;;  %15589 = vst [vmem:[#allocation64_spill] sm:$0xff] %v10003_v9  ;;  %v403_v47 = vadd.f32 1.0, %v9905_v44  ;;  %vm379_vm5 = vcmp.gt.f32.partialorder %v10012_v15, 0.0 }
  0xe8   : > { %7245 = vmatmul.mubr.msk.bf16.gmra.mxu0 %vm15261_vm3, %v9889_v50  ;;  %1389 = vadd.xlane.f32.xlu0 %v1388_v27  ;;  %v8440_v26 = vpop.eup %8439  ;;  %15590 = vst [vmem:[#allocation65_spill] sm:$0xff] %v10021_v8  ;;  %15592 = vst [vmem:[#allocation67_spill] sm:$0xff] %v10042_v57  ;;  %8449 = vpow2.f32 %v471_v34 }
  0xe9   : > { %2072 = vrot.lane.b32.xlu1 %v9889_v50, %s8915_s20  ;;  %v6713_v56 = vrot.slane %v6712_v35, 2  ;;  %7246 = vmatprep.mubr.msk.bf16.mxu0 %vm15261_vm3, %v9914_v11  ;;  %15587 = vst [vmem:[#allocation62_spill] sm:$0xff] %v9994_v51  ;;  %v10006_v27 = vsel %vm373_vm15, %v405_v12, %v8440_v26  ;;  %v8442_v6 = vpop.eup %8441  ;;  %v1406_v39 = vsel %vm15261_vm3, %v9994_v51, 0.0  ;;  %v717_v26 = vld [vmem:[%s9116_s25 + $0x70] sm:$0xff] }
  0xea   : > { %v10035_v14 = vsel %vm377_vm0, %v409_v7, %v8442_v6  ;;  %v732_v7 = vld [vmem:[%s9116_s25 + $0xe8] sm:$0xff] }
  0xeb   : > { %v6714_v42 = vadd.f32 %v6713_v56, %v6712_v35  ;;  %v413_v56 = vadd.f32 1.0, %v9923_v22 }
  0xec   : > { %1395 = vadd.xlane.f32.xlu0 %v1394_v20  ;;  %8063 = vmatmul.mubr.msk.bf16.gmra.mxu1 %vm15261_vm3, %v9982_v43 }
  0xed   : > { %2076 = vrot.lane.b32.xlu1 %v9952_v38, %s8915_s20  ;;  %v6715_v24 = vrot.slane %v6714_v42, 1  ;;  %8066 = vmatprep.mubr.msk.bf16.mxu1 %vm15261_vm3, %v10003_v9 }
  0xee   : > { %v8444_v1 = vpop.eup %8443 }
  0xef   : > { %v6716_v13 = vadd.f32 %v6715_v24, %v6714_v42  ;;  %v8446_v44 = vpop.eup %8445  ;;  %v499_v20 = vsel %vm371_vm1, %v403_v47, %v8444_v1  ;;  %v733_v42 = vld [vmem:[%s9116_s25 + $0xf0] sm:$0xff]  ;;  %v718_v24 = vld [vmem:[%s9116_s25 + $0x78] sm:$0xff]  ;;  %v10070_v47 = vmul.f32 %v9319_v55, %v495_v5  ;;  %v407_v1 = vadd.f32 1.0, %v9966_v18 }
  0xf0   : > { %7247 = vmatmul.mubr.msk.bf16.gmra.mxu0 %vm15261_vm3, %v9914_v11  ;;  %1401 = vadd.xlane.f32.xlu0 %v1400_v40  ;;  %v10046_v12 = vpack.c.bf16 %v734_v48, %v733_v42  ;;  %v10052_v40 = vpack.c.bf16 %v9779_v3, %v10035_v14  ;;  %v10056_v22 = vpack.c.bf16 %v718_v24, %v717_v26  ;;  %v1418_v3 = vsel %vm15261_vm3, %v10042_v57, 0.0  ;;  %v730_v42 = vld [vmem:[%s9116_s25 + $0xd8] sm:$0xff]  ;;  %v713_v26 = vld [vmem:[%s9116_s25 + $0x50] sm:$0xff] }
  0xf1   : > { %2080 = vrot.lane.b32.xlu1 %v9982_v43, %s8915_s20  ;;  %v6717_v35 = vadd.f32 %v6716_v13, %v9305_v45  ;;  %7248 = vmatprep.mubr.msk.bf16.mxu0 %vm15261_vm3, %v9952_v38  ;;  %v10030_v45 = vpack.c.bf16 %v9731_v41, %v10006_v27  ;;  %v1412_v41 = vsel %vm15261_vm3, %v10021_v8, 0.0  ;;  %v10059_v58 = vpack.c.bf16 %v9706_v53, %v499_v20  ;;  %v731_v53 = vld [vmem:[%s9116_s25 + $0xe0] sm:$0xff]  ;;  %v714_v24 = vld [vmem:[%s9116_s25 + $0x58] sm:$0xff] }
  0xf2   : > { %15593 = vst [vmem:[#allocation68_spill] sm:$0xff] %v10046_v12  ;;  %15594 = vst [vmem:[#allocation69_spill] sm:$0xff] %v10052_v40  ;;  %v10061_v13 = vsel %vm381_vm2, %v413_v56, %v8446_v44  ;;  %7288 = vmatprep.subr.bf16.mxu1 %v10046_v12  ;;  %v10077_v6 = vpack.c.bf16 %v732_v7, %v731_v53  ;;  %v8448_v56 = vpop.eup %8447  ;;  %v10099_v44 = vmul.f32 %v9319_v55, %v9987_v59 }
  0xf3   : > { %15591 = vst [vmem:[#allocation66_spill] sm:$0xff] %v10030_v45  ;;  %6718 = vst [vmem:[#allocation3] sm:$0x1] %v6717_v35  ;;  %v715_v35 = vld [vmem:[%s9116_s25 + $0x60] sm:$0xff]  ;;  %v10085_v5 = vpack.c.bf16 %v9817_v49, %v10061_v13  ;;  %7289 = vmatpush3.bf16.msra.mxu1 %v10056_v22  ;;  %v1424_v49 = vsel %vm15261_vm3, %v10070_v47, 0.0  ;;  %7400 = vmatprep.subr.bf16.mxu0 %v10046_v12  ;;  %v503_v18 = vsel %vm375_vm4, %v407_v1, %v8448_v56  ;;  %v712_v56 = vld [vmem:[%s9116_s25 + $0x48] sm:$0xff] }
  0xf4   : > { %1407 = vadd.xlane.f32.xlu0 %v1406_v39  ;;  %15595 = vst [vmem:[#allocation70_spill] sm:$0xff] %v10056_v22  ;;  %15596 = vst [vmem:[#allocation71_spill] sm:$0xff] %v10059_v58  ;;  %8067 = vmatmul.mubr.msk.bf16.gmra.mxu1 %vm15261_vm3, %v9998_v4  ;;  %v716_v39 = vld [vmem:[%s9116_s25 + $0x68] sm:$0xff]  ;;  %v10112_v59 = vpack.c.bf16 %v714_v24, %v713_v26  ;;  %v1430_v53 = vsel %vm15261_vm3, %v10099_v44, 0.0  ;;  %v10124_v7 = vmul.f32 %v9319_v55, %v499_v20  ;;  %v711_v1 = vld [vmem:[%s9116_s25 + $0x40] sm:$0xff] }
  0xf5   : > { %2084 = vrot.lane.b32.xlu1 %v9998_v4, %s8915_s20  ;;  %15597 = vst [vmem:[#allocation72_spill] sm:$0xff] %v10070_v47  ;;  %15598 = vst [vmem:[#allocation73_spill] sm:$0xff] %v10077_v6  ;;  %8070 = vmatprep.mubr.msk.bf16.mxu1 %vm15261_vm3, %v10059_v58  ;;  %v10091_v34 = vpack.c.bf16 %v716_v39, %v715_v35  ;;  %v727_v35 = vld [vmem:[%s9116_s25 + $0xc0] sm:$0xff]  ;;  %v728_v39 = vld [vmem:[%s9116_s25 + $0xc8] sm:$0xff]  ;;  %v411_v20 = vadd.f32 1.0, %v10012_v15  ;;  %v10149_v26 = vmul.f32 %v9319_v55, %v10006_v27 }
  0xf6   : > { %15599 = vst [vmem:[#allocation74_spill] sm:$0xff] %v10085_v5  ;;  %7290 = vmatprep.subr.bf16.mxu1 %v10077_v6  ;;  %15601 = vst [vmem:[#allocation76_spill] sm:$0xff] %v10099_v44  ;;  %7401 = vmatpush3.bf16.msra.mxu0 %v10056_v22  ;;  %v725_v24 = vld [vmem:[%s9116_s25 + $0xb0] sm:$0xff] }
  0xf7   : > { %15600 = vst [vmem:[#allocation75_spill] sm:$0xff] %v10091_v34  ;;  %7291 = vmatpush3.bf16.msra.mxu1 %v10091_v34  ;;  %15603 = vst [vmem:[#allocation78_spill] sm:$0xff] %v10112_v59  ;;  %7402 = vmatprep.subr.bf16.mxu0 %v10077_v6 }
  0xf8   : > { %7249 = vmatmul.mubr.msk.bf16.gmra.mxu0 %vm15261_vm3, %v9952_v38  ;;  %1413 = vadd.xlane.f32.xlu0 %v1412_v41  ;;  %v729_v41 = vld [vmem:[%s9116_s25 + $0xd0] sm:$0xff]  ;;  %15605 = vst [vmem:[#allocation80_spill] sm:$0xff] %v10124_v7  ;;  %15608 = vst [vmem:[#allocation83_spill] sm:$0xff] %v10149_v26 }
  0xf9   : > { %2088 = vrot.lane.b32.xlu1 %v10030_v45, %s8915_s20  ;;  %7250 = vmatprep.mubr.msk.bf16.mxu0 %vm15261_vm3, %v9958_v19  ;;  %v10104_v48 = vpack.c.bf16 %v730_v42, %v729_v41  ;;  %v8450_v41 = vpop.eup %8449  ;;  %v1436_v42 = vsel %vm15261_vm3, %v10124_v7, 0.0 }
  0xfa   : > { %7403 = vmatpush3.bf16.msra.mxu0 %v10091_v34  ;;  %v507_v15 = vsel %vm379_vm5, %v411_v20, %v8450_v41  ;;  %v723_v20 = vld [vmem:[%s9116_s25 + $0xa0] sm:$0xff]  ;;  %v724_v41 = vld [vmem:[%s9116_s25 + $0xa8] sm:$0xff]  ;;  %v15684_v34 = vmov 0 }
  0xfb   : > { %15602 = vst [vmem:[#allocation77_spill] sm:$0xff] %v10104_v48  ;;  %7292 = vmatprep.subr.bf16.mxu1 %v10104_v48  ;;  %7404 = vmatprep.subr.bf16.mxu0 %v10104_v48 }
  0xfc   : > { %1419 = vadd.xlane.f32.xlu0 %v1418_v3  ;;  %v10117_v3 = vpack.c.bf16 %v9758_v63, %v503_v18  ;;  %8071 = vmatmul.mubr.msk.bf16.gmra.mxu1 %vm15261_vm3, %v10030_v45  ;;  %v10131_v63 = vpack.c.bf16 %v728_v39, %v727_v35  ;;  %v726_v35 = vld [vmem:[%s9116_s25 + $0xb8] sm:$0xff] }
  0xfd   : > { %2092 = vrot.lane.b32.xlu1 %v10052_v40, %s8915_s20  ;;  %7293 = vmatpush3.bf16.msra.mxu1 %v10112_v59  ;;  %v10154_v39 = vpack.c.bf16 %v726_v35, %v725_v24  ;;  %v1442_v24 = vsel %vm15261_vm3, %v10149_v26, 0.0  ;;  %v10174_v35 = vmul.f32 %v9319_v55, %v503_v18 }
  0xfe   : > { %15604 = vst [vmem:[#allocation79_spill] sm:$0xff] %v10117_v3  ;;  %15606 = vst [vmem:[#allocation81_spill] sm:$0xff] %v10131_v63  ;;  %8074 = vmatprep.mubr.msk.bf16.mxu1 %vm15261_vm3, %v10117_v3  ;;  %7294 = vmatprep.subr.bf16.mxu1 %v10131_v63 }
  0xff   : > { %15609 = vst [vmem:[#allocation84_spill] sm:$0xff] %v10154_v39  ;;  %15612 = vst [vmem:[#allocation87_spill] sm:$0xff] %v10174_v35  ;;  %7405 = vmatpush3.bf16.msra.mxu0 %v10112_v59 }
 0x100   : > { %7251 = vmatmul.mubr.msk.bf16.gmra.mxu0 %vm15261_vm3, %v9958_v19  ;;  %1425 = vadd.xlane.f32.xlu0 %v1424_v49  ;;  %v10141_v49 = vpack.c.bf16 %v712_v56, %v711_v1  ;;  %v710_v1 = vld [vmem:[%s9116_s25 + $0x38] sm:$0xff]  ;;  %v10167_v56 = vpack.c.bf16 %v9800_v46, %v507_v15  ;;  %v10181_v46 = vpack.c.bf16 %v724_v41, %v723_v20  ;;  %v721_v41 = vld [vmem:[%s9116_s25 + $0x90] sm:$0xff] }
 0x101   : > { %2096 = vrot.lane.b32.xlu1 %v10085_v5, %s8915_s20  ;;  %7252 = vmatprep.mubr.msk.bf16.mxu0 %vm15261_vm3, %v9982_v43  ;;  %v10197_v20 = vmul.f32 %v9319_v55, %v10035_v14 }
 0x102   : > { %15607 = vst [vmem:[#allocation82_spill] sm:$0xff] %v10141_v49  ;;  %7295 = vmatpush3.bf16.msra.mxu1 %v10141_v49  ;;  %15611 = vst [vmem:[#allocation86_spill] sm:$0xff] %v10167_v56  ;;  %7406 = vmatprep.subr.bf16.mxu0 %v10131_v63 }
 0x103   : > { %7296 = vmatprep.subr.bf16.mxu1 %v10154_v39  ;;  %15613 = vst [vmem:[#allocation88_spill] sm:$0xff] %v10181_v46  ;;  %15615 = vst [vmem:[#allocation90_spill] sm:$0xff] %v10197_v20  ;;  %7407 = vmatpush3.bf16.msra.mxu0 %v10141_v49 }
 0x104   : > { %1431 = vadd.xlane.f32.xlu0 %v1430_v53  ;;  %v709_v53 = vld [vmem:[%s9116_s25 + $0x30] sm:$0xff]  ;;  %8075 = vmatmul.mubr.msk.bf16.gmra.mxu1 %vm15261_vm3, %v10052_v40 }
 0x105   : > { %2116 = vrot.lane.b32.xlu1 %v9742_v28, %s8915_s20  ;;  %v10162_v27 = vpack.c.bf16 %v710_v1, %v709_v53  ;;  %v708_v53 = vld [vmem:[%s9116_s25 + $0x28] sm:$0xff]  ;;  %8078 = vmatprep.mubr.msk.bf16.mxu1 %vm15261_vm3, %v10167_v56  ;;  %v1448_v1 = vsel %vm15261_vm3, %v10174_v35, 0.0 }
 0x106   : > { %7408 = vmatprep.subr.bf16.mxu0 %v10154_v39 }
 0x107   : > { %15610 = vst [vmem:[#allocation85_spill] sm:$0xff] %v10162_v27  ;;  %7297 = vmatpush3.bf16.msra.mxu1 %v10162_v27  ;;  %7409 = vmatpush3.bf16.msra.mxu0 %v10162_v27 }
 0x108   : > { %7253 = vmatmul.mubr.msk.bf16.gmra.mxu0 %vm15261_vm3, %v9982_v43  ;;  %1437 = vadd.xlane.f32.xlu0 %v1436_v42  ;;  %v707_v42 = vld [vmem:[%s9116_s25 + $0x20] sm:$0xff] }
 0x109   : > { %2120 = vrot.lane.b32.xlu1 %v9606_v10, %s8915_s20  ;;  %7254 = vmatprep.mubr.msk.bf16.mxu0 %vm15261_vm3, %v10003_v9  ;;  %v10190_v18 = vpack.c.bf16 %v708_v53, %v707_v42  ;;  %v722_v10 = vld [vmem:[%s9116_s25 + $0x98] sm:$0xff]  ;;  %v705_v42 = vld [vmem:[%s9116_s25 + $0x10] sm:$0xff]  ;;  %v10219_v53 = vmul.f32 %v9319_v55, %v507_v15 }
 0x10a   : > { %7298 = vmatprep.subr.bf16.mxu1 %v10181_v46  ;;  %7410 = vmatprep.subr.bf16.mxu0 %v10181_v46 }
 0x10b   : > { %15614 = vst [vmem:[#allocation89_spill] sm:$0xff] %v10190_v18  ;;  %7299 = vmatpush3.bf16.msra.mxu1 %v10190_v18  ;;  %15618 = vst [vmem:[#allocation93_spill] sm:$0xff] %v10219_v53  ;;  %7411 = vmatpush3.bf16.msra.mxu0 %v10190_v18 }
 0x10c   : > { %1443 = vadd.xlane.f32.xlu0 %v1442_v24  ;;  %v706_v24 = vld [vmem:[%s9116_s25 + $0x18] sm:$0xff]  ;;  %8079 = vmatmul.mubr.msk.bf16.gmra.mxu1 %vm15261_vm3, %v10085_v5 }
 0x10d   : > { %2124 = vrot.lane.b32.xlu1 %v9492_v31, %s8915_s20  ;;  %v10202_v31 = vpack.c.bf16 %v722_v10, %v721_v41  ;;  %v10210_v14 = vpack.c.bf16 %v706_v24, %v705_v42  ;;  %v1454_v10 = vsel %vm15261_vm3, %v10197_v20, 0.0  ;;  %v719_v41 = vld [vmem:[%s9116_s25 + $0x80] sm:$0xff] }
 0x10e   : > { %v703_v24 = vld [vmem:[%s9116_s25] sm:$0xff] }
 0x10f   : > { %15616 = vst [vmem:[#allocation91_spill] sm:$0xff] %v10202_v31  ;;  %15617 = vst [vmem:[#allocation92_spill] sm:$0xff] %v10210_v14  ;;  %7300 = vmatprep.subr.bf16.mxu1 %v10202_v31  ;;  %7412 = vmatprep.subr.bf16.mxu0 %v10202_v31  ;;  %v15704_v31 = vmov 0 }
 0x110   : > { %7255 = vmatmul.mubr.msk.bf16.gmra.mxu0 %vm15261_vm3, %v10003_v9  ;;  %1449 = vadd.xlane.f32.xlu0 %v1448_v1  ;;  %v704_v1 = vld [vmem:[%s9116_s25 + $0x8] sm:$0xff] }
 0x111   : > { %2128 = vrot.lane.b32.xlu1 %v9356_v33, %s8915_s20  ;;  %7256 = vmatprep.mubr.msk.bf16.mxu0 %vm15261_vm3, %v9998_v4  ;;  %v720_v33 = vld [vmem:[%s9116_s25 + $0x88] sm:$0xff]  ;;  %v10236_v15 = vpack.c.bf16 %v704_v1, %v703_v24  ;;  %v15625_v24 = vld [vmem:[#allocation29_spill] sm:$0xff] }
 0x112   : > { %v10226_v42 = vpack.c.bf16 %v720_v33, %v719_v41  ;;  %7301 = vmatpush3.bf16.msra.mxu1 %v10210_v14  ;;  %v1460_v33 = vsel %vm15261_vm3, %v10219_v53, 0.0  ;;  %v10243_v41 = vmul.f32 %v9319_v55, %v10061_v13  ;;  %v15167_v13 = vmov 0.0|0.0   ;;  %7413 = vmatpush3.bf16.msra.mxu0 %v10210_v14 }
 0x113   : > { %15621 = vst [vmem:[#allocation96_spill] sm:$0xff] %v10236_v15  ;;  %1731 = vmatprep.mubr.bf16.mxu1 %v15167_v13  ;;  %v15628_v13 = vld [vmem:[#allocation22_spill] sm:$0xff] }
 0x114   : > { %15619 = vst [vmem:[#allocation94_spill] sm:$0xff] %v10226_v42  ;;  %1455 = vadd.xlane.f32.xlu0 %v1454_v10  ;;  %7302 = vmatprep.subr.bf16.mxu1 %v10226_v42  ;;  %15622 = vst [vmem:[#allocation97_spill] sm:$0xff] %v10243_v41  ;;  %v1466_v55 = vsel %vm15261_vm3, %v10243_v41, 0.0 }
 0x115   : > { %2132 = vrot.lane.b32.xlu1 %v9754_v52, %s8915_s20  ;;  %7414 = vmatprep.subr.bf16.mxu0 %v10226_v42  ;;  %v15673_v42 = vmov 0.0|0.0  }
 0x116   : > { %7303 = vmatpush3.bf16.msra.mxu1 %v10236_v15  ;;  %7415 = vmatpush3.bf16.msra.mxu0 %v10236_v15 }
 0x118   : > { %7257 = vmatmul.mubr.msk.bf16.gmra.mxu0 %vm15261_vm3, %v9998_v4  ;;  %1461 = vadd.xlane.f32.xlu0 %v1460_v33  ;;  %v15627_v33 = vld [vmem:[#allocation19_spill] sm:$0xff] }
 0x119   : > { %v10231_v28 = vpop.xlane.xlu1 %1380  ;;  %2136 = vrot.lane.b32.xlu1 %v9640_v60, %s8915_s20  ;;  %7258 = vmatprep.mubr.msk.bf16.mxu0 %vm15261_vm3, %v10059_v58  ;;  %v10491_v38 = vpop.trf.xlu0 }
 0x11a   : > { %15620 = vst [vmem:[#allocation95_spill] sm:$0xff] %v10231_v28 }
 0x11c   : > { %1467 = vadd.xlane.f32.xlu0 %v1466_v55 }
 0x11d   : > { %v10247_v28 = vpop.xlane.xlu1 %1386  ;;  %2140 = vrot.lane.b32.xlu1 %v15625_v24, %s8915_s20 }
 0x11e   : > { %15623 = vst [vmem:[#allocation98_spill] sm:$0xff] %v10247_v28  ;;  %v15632_v28 = vld [vmem:[#allocation27_spill] sm:$0xff] }
 0x120   : > { %7259 = vmatmul.mubr.msk.bf16.gmra.mxu0 %vm15261_vm3, %v10059_v58 }
 0x121   : > { %v10260_v10 = vpop.xlane.xlu1 %1392  ;;  %2144 = vrot.lane.b32.xlu1 %v15627_v33, %s8915_s20  ;;  %7260 = vmatprep.mubr.msk.bf16.mxu0 %vm15261_vm3, %v10030_v45 }
 0x122   : > { %15624 = vst [vmem:[#allocation99_spill] sm:$0xff] %v10260_v10  ;;  %v15631_v10 = vld [vmem:[#allocation24_spill] sm:$0xff] }
 0x125   : > { %v10266_v1 = vpop.xlane.xlu1 %1398  ;;  %2629 = vrot.lane.b32.xlu1 %v15628_v13, %s8915_s20  ;;  %v15647_v13 = vld [vmem:[#allocation42_spill] sm:$0xff] }
 0x126   : > { %15626 = vst [vmem:[#allocation29_spill] sm:$0xff] %v10266_v1 }
 0x128   : > { %7261 = vmatmul.mubr.msk.bf16.gmra.mxu0 %vm15261_vm3, %v10030_v45 }
 0x129   : > { %v10279_v55 = vpop.xlane.xlu1 %1404  ;;  %2631 = vrot.lane.b32.xlu1 %v9902_v61, %s8915_s20  ;;  %7262 = vmatprep.mubr.msk.bf16.mxu0 %vm15261_vm3, %v10117_v3  ;;  %v15634_v61 = vld [vmem:[#allocation28_spill] sm:$0xff] }
 0x12a   : > { %15629 = vst [vmem:[#allocation19_spill] sm:$0xff] %v10279_v55 }
 0x12d   : > { %v10288_v1 = vpop.xlane.xlu1 %1410  ;;  %2633 = vrot.lane.b32.xlu1 %v15631_v10, %s8915_s20 }
 0x12e   : > { %15630 = vst [vmem:[#allocation100_spill] sm:$0xff] %v10288_v1 }
 0x130   : > { %7263 = vmatmul.mubr.msk.bf16.gmra.mxu0 %vm15261_vm3, %v10117_v3 }
 0x131   : > { %2637 = vrot.lane.b32.xlu1 %v15632_v28, %s8915_s20  ;;  %7264 = vmatprep.mubr.msk.bf16.mxu0 %vm15261_vm3, %v10052_v40  ;;  %v15636_v28 = vld [vmem:[#allocation31_spill] sm:$0xff] }
 0x132   : > { %2066 = vrot.lane.b32.xlu0 %v9372_v36, %s8915_s20  ;;  %v15669_v36 = vmov 0 }
 0x135   : > { %v10296_v55 = vpop.xlane.xlu1 %1416  ;;  %2641 = vrot.lane.b32.xlu1 %v15634_v61, %s8915_s20  ;;  %v15638_v61 = vld [vmem:[#allocation32_spill] sm:$0xff] }
 0x136   : > { %15633 = vst [vmem:[#allocation101_spill] sm:$0xff] %v10296_v55  ;;  %2074 = vrot.lane.b32.xlu0 %v9914_v11, %s8915_s20 }
 0x138   : > { %7265 = vmatmul.mubr.msk.bf16.gmra.mxu0 %vm15261_vm3, %v10052_v40  ;;  %v15659_v40 = vlaneseq }
 0x139   : > { %v10304_v1 = vpop.xlane.xlu1 %1422  ;;  %2645 = vrot.lane.b32.xlu1 %v15636_v28, %s8915_s20  ;;  %7266 = vmatprep.mubr.msk.bf16.mxu0 %vm15261_vm3, %v10167_v56  ;;  %v15640_v28 = vld [vmem:[#allocation35_spill] sm:$0xff] }
 0x13a   : > { %15635 = vst [vmem:[#allocation102_spill] sm:$0xff] %v10304_v1  ;;  %2078 = vrot.lane.b32.xlu0 %v9958_v19, %s8915_s20 }
 0x13d   : > { %v10314_v55 = vpop.xlane.xlu1 %1428  ;;  %2649 = vrot.lane.b32.xlu1 %v15638_v61, %s8915_s20  ;;  %v15642_v61 = vld [vmem:[#allocation37_spill] sm:$0xff] }
 0x13e   : > { %15637 = vst [vmem:[#allocation103_spill] sm:$0xff] %v10314_v55  ;;  %2082 = vrot.lane.b32.xlu0 %v10003_v9, %s8915_s20 }
 0x140   : > { %7267 = vmatmul.mubr.msk.bf16.gmra.mxu0 %vm15261_vm3, %v10167_v56 }
 0x141   : > { %v10320_v1 = vpop.xlane.xlu1 %1434  ;;  %2653 = vrot.lane.b32.xlu1 %v15640_v28, %s8915_s20  ;;  %7268 = vmatprep.mubr.msk.bf16.mxu0 %vm15261_vm3, %v10085_v5  ;;  %v15643_v28 = vld [vmem:[#allocation38_spill] sm:$0xff] }
 0x142   : > { %15639 = vst [vmem:[#allocation104_spill] sm:$0xff] %v10320_v1  ;;  %2086 = vrot.lane.b32.xlu0 %v10059_v58, %s8915_s20  ;;  %v15660_v58 = vld [vmem:[#allocation20_spill] sm:$0xff] }
 0x143   : > { %v737_v9 = vadd.s32 8, %v15660_v58  ;;  %v739_v63 = vadd.s32 24, %v15660_v58  ;;  %v742_v43 = vadd.s32 48, %v15660_v58  ;;  %v744_v12 = vadd.s32 64, %v15660_v58 }
 0x145   : > { %v10330_v55 = vpop.xlane.xlu1 %1440  ;;  %2657 = vrot.lane.b32.xlu1 %v15642_v61, %s8915_s20 }
 0x146   : > { %15641 = vst [vmem:[#allocation105_spill] sm:$0xff] %v10330_v55  ;;  %2090 = vrot.lane.b32.xlu0 %v10117_v3, %s8915_s20  ;;  %v15645_v55 = vld [vmem:[#allocation40_spill] sm:$0xff] }
 0x148   : > { %7269 = vmatmul.mubr.msk.bf16.gmra.mxu0 %vm15261_vm3, %v10085_v5 }
 0x149   : > { %v10336_v1 = vpop.xlane.xlu1 %1446  ;;  %2661 = vrot.lane.b32.xlu1 %v15643_v28, %s8915_s20  ;;  %v15648_v28 = vld [vmem:[#allocation39_spill] sm:$0xff] }
 0x14a   : > { %2094 = vrot.lane.b32.xlu0 %v10167_v56, %s8915_s20 }
 0x14d   : > { %v10344_v10 = vpop.xlane.xlu1 %1452  ;;  %2665 = vrot.lane.b32.xlu1 %v15645_v55, %s8915_s20 }
 0x14e   : > { %15644 = vst [vmem:[#allocation106_spill] sm:$0xff] %v10344_v10  ;;  %2114 = vrot.lane.b32.xlu0 %v9719_v16, %s8915_s20  ;;  %v15650_v10 = vld [vmem:[#allocation44_spill] sm:$0xff]  ;;  %v15652_v16 = vld [vmem:[#allocation46_spill] sm:$0xff] }
 0x151   : > { %v10352_v61 = vpop.xlane.xlu1 %1458  ;;  %2669 = vrot.lane.b32.xlu1 %v15647_v13, %s8915_s20 }
 0x152   : > { %15646 = vst [vmem:[#allocation107_spill] sm:$0xff] %v10352_v61  ;;  %2118 = vrot.lane.b32.xlu0 %v15648_v28, %s8915_s20 }
 0x155   : > { %v10358_v5 = vpop.xlane.xlu1 %1464  ;;  %2673 = vrot.lane.b32.xlu1 %v15650_v10, %s8915_s20 }
 0x156   : > { %15649 = vst [vmem:[#allocation108_spill] sm:$0xff] %v10358_v5  ;;  %2122 = vrot.lane.b32.xlu0 %v9558_v29, %s8915_s20 }
 0x159   : > { %v10364_v55 = vpop.xlane.xlu1 %1470  ;;  %2677 = vrot.lane.b32.xlu1 %v15652_v16, %s8915_s20 }
 0x15a   : > { %15651 = vst [vmem:[#allocation109_spill] sm:$0xff] %v10364_v55  ;;  %2126 = vrot.lane.b32.xlu0 %v9400_v62, %s8915_s20 }
 0x15d   : > { %v10370_v61 = vpop.permute.xlu1 %2068  ;;  %2681 = vrot.lane.b32.xlu1 %v9785_v54, %s8915_s20 }
 0x161   : > { %v10374_v5 = vpop.permute.xlu1 %2070  ;;  %2685 = vrot.lane.b32.xlu1 %v9806_v2, %s8915_s20 }
 0x165   : > { %v10378_v10 = vpop.permute.xlu1 %2072  ;;  %2689 = vrot.lane.b32.xlu1 %v9821_v21, %s8915_s20  ;;  %v10401_v21 = vand.u32 127, %v15659_v40  ;;  %v15665_v40 = vmov 0 }
 0x167   : > { %vm10408_vm6 = vcmp.le.s32.totalorder %v10401_v21, %v15660_v58  ;;  %vm10417_vm7 = vcmp.le.s32.totalorder %v10401_v21, %v737_v9  ;;  %vm10443_vm9 = vcmp.le.s32.totalorder %v10401_v21, %v739_v63  ;;  %v15681_v63 = vmov 0 }
 0x168   : > { %v15666_v40 = vsel %vm10417_vm7, 4294967295, %v15665_v40  ;;  %vm10427_vm8 = vmpackc.low %vm10417_vm7, %vm10408_vm6  ;;  %vm10504_vm15 = vcmp.le.s32.totalorder %v10401_v21, %v742_v43  ;;  %vm10537_vm2 = vcmp.le.s32.totalorder %v10401_v21, %v744_v12  ;;  %v15708_v12 = vmov 0 }
 0x169   : > { %v10382_v55 = vpop.permute.xlu1 %2076  ;;  %15667 = vst [vmem:[#allocation117_spill] sm:$0xff] %v15666_v40  ;;  %v15670_v36 = vsel %vm10427_vm8, 4294967295, %v15669_v36  ;;  %v15705_v31 = vsel %vm10537_vm2, 4294967295, %v15704_v31 }
 0x16a   : > { %15653 = vst [vmem:[#allocation110_spill] sm:$0xff] %v10382_v55  ;;  %15671 = vst [vmem:[#allocation119_spill] sm:$0xff] %v15670_v36  ;;  %v15678_v36 = vmov 0 }
 0x16b   : > { %15706 = vst [vmem:[#allocation133_spill] sm:$0xff] %v15705_v31 }
 0x16d   : > { %v10384_v16 = vpop.permute.xlu1 %2080 }
 0x16e   : > { %15654 = vst [vmem:[#allocation111_spill] sm:$0xff] %v10384_v16 }
 0x171   : > { %v10386_v13 = vpop.permute.xlu1 %2084 }
 0x172   : > { %15655 = vst [vmem:[#allocation112_spill] sm:$0xff] %v10386_v13 }
 0x175   : > { %v10388_v62 = vpop.permute.xlu1 %2088 }
 0x176   : > { %15656 = vst [vmem:[#allocation113_spill] sm:$0xff] %v10388_v62  ;;  %v15661_v62 = vmov 0 }
 0x177   : > { %v15662_v62 = vsel %vm10408_vm6, 4294967295, %v15661_v62 }
 0x178   : > { %15663 = vst [vmem:[#allocation20_spill] sm:$0xff] %v15662_v62  ;;  %v738_v62 = vadd.s32 16, %v15660_v58 }
 0x179   : > { %v10390_v29 = vpop.permute.xlu1 %2092 }
 0x17a   : > { %15657 = vst [vmem:[#allocation114_spill] sm:$0xff] %v10390_v29  ;;  %vm10451_vm10 = vcmp.le.s32.totalorder %v10401_v21, %v738_v62  ;;  %v741_v62 = vadd.s32 40, %v15660_v58 }
 0x17b   : > { %v15679_v36 = vsel %vm10451_vm10, 4294967295, %v15678_v36  ;;  %vm10461_vm11 = vmpackc.low %vm10443_vm9, %vm10451_vm10 }
 0x17c   : > { %15680 = vst [vmem:[#allocation123_spill] sm:$0xff] %v15679_v36  ;;  %v15682_v63 = vsel %vm10461_vm11, 4294967295, %v15681_v63  ;;  %vm10482_vm13 = vcmp.le.s32.totalorder %v10401_v21, %v741_v62 }
 0x17d   : > { %v10392_v54 = vpop.permute.xlu1 %2096  ;;  %15683 = vst [vmem:[#allocation124_spill] sm:$0xff] %v15682_v63 }
 0x17e   : > { %15658 = vst [vmem:[#allocation115_spill] sm:$0xff] %v10392_v54 }
 0x181   : > { %v10394_v28 = vpop.permute.xlu1 %2116 }
 0x185   : > { %v10396_v2 = vpop.permute.xlu1 %2120 }
 0x189   : > { %v10398_v56 = vpop.permute.xlu1 %2124 }
 0x18d   : > { %v10403_v3 = vpop.permute.xlu1 %2128 }
 0x190   : > { %v1019_v29 = vpop.f32.mrf.mxu0 }
 0x191   : > { %v10412_v54 = vpop.permute.xlu1 %2132  ;;  %v1178_v19 = vsel %vm10408_vm6, %v1019_v29, 0.0 }
 0x192   : > { %15664 = vst [vmem:[#allocation116_spill] sm:$0xff] %v10412_v54  ;;  %1243 = vadd.xlane.f32.xlu0 %v1178_v19  ;;  %v1021_v11 = vpop.f32.mrf.mxu0 }
 0x194   : > { %v1023_v13 = vpop.f32.mrf.mxu0 }
 0x195   : > { %v10421_v0 = vpop.permute.xlu1 %2136  ;;  %v6929_v6 = vpack.c.bf16 %v1023_v13, %v1019_v29  ;;  %v1180_v9 = vsel %vm10417_vm7, %v1023_v13, 0.0  ;;  %v15674_v29 = vmov 0 }
 0x196   : > { %15668 = vst [vmem:[#allocation118_spill] sm:$0xff] %v10421_v0  ;;  %1246 = vadd.xlane.f32.xlu0 %v1180_v9  ;;  %v1025_v19 = vpop.f32.mrf.mxu0  ;;  %v15675_v29 = vsel %vm10443_vm9, 4294967295, %v15674_v29  ;;  %v740_v9 = vadd.s32 32, %v15660_v58 }
 0x197   : > { %6930 = vmatmul.mubr.msk.bf16.vlgmr.msra.gmra.mxu1 %vm10427_vm8, %v6929_v6  ;;  %15676 = vst [vmem:[#allocation121_spill] sm:$0xff] %v15675_v29  ;;  %v10709_v29 = vpop.f32.mrf.mxu1 }
 0x198   : > { %v10439_v46 = vpop.f32.mrf.mxu0  ;;  %1739 = vmatprep.mubr.bf16.mxu1 %v15673_v42  ;;  %vm10471_vm12 = vcmp.le.s32.totalorder %v10401_v21, %v740_v9  ;;  %15759 = vst [vmem:[#allocation155_spill] sm:$0xff] %v10709_v29 }
 0x199   : > { %v10434_v11 = vpop.permute.xlu1 %2140  ;;  %v15685_v34 = vsel %vm10471_vm12, 4294967295, %v15684_v34  ;;  %vm10497_vm14 = vmpackc.low %vm10482_vm13, %vm10471_vm12 }
 0x19a   : > { %15672 = vst [vmem:[#allocation120_spill] sm:$0xff] %v10434_v11  ;;  %v1031_v13 = vpop.f32.mrf.mxu0  ;;  %15686 = vst [vmem:[#allocation125_spill] sm:$0xff] %v15685_v34 }
 0x19c   : > { %v10455_v6 = vpop.f32.mrf.mxu0 }
 0x19d   : > { %v10448_v19 = vpop.permute.xlu1 %2144  ;;  %v6932_v13 = vpack.c.bf16 %v10455_v6, %v10439_v46 }
 0x19e   : > { %15677 = vst [vmem:[#allocation122_spill] sm:$0xff] %v10448_v19  ;;  %8202 = vmatprep.subr.msk.bf16.mxu1 %vm15261_vm3, %v10448_v19  ;;  %v1035_v40 = vpop.f32.mrf.mxu0 }
 0x19f   : > { %6933 = vmatmul.mubr.msk.bf16.gmra.mxu1 %vm10461_vm11, %v6932_v13  ;;  %v15687_v40 = vmov 0 }
 0x1a0   : > { %v1039_v15 = vpop.f32.mrf.mxu0  ;;  %1747 = vmatprep.mubr.bf16.mxu1 %v15673_v42  ;;  %v15688_v40 = vsel %vm10482_vm13, 4294967295, %v15687_v40 }
 0x1a1   : > { %v2630_v49 = vpop.permute.xlu1 %2629  ;;  %v1186_v4 = vsel %vm10471_vm12, %v1039_v15, 0.0  ;;  %15689 = vst [vmem:[#allocation126_spill] sm:$0xff] %v15688_v40 }
 0x1a2   : > { %v2726_v45 = vsel %vm15261_vm3, %v2630_v49, 0.0  ;;  %1255 = vadd.xlane.f32.xlu0 %v1186_v4  ;;  %v1041_v9 = vpop.f32.mrf.mxu0  ;;  %v15691_v49 = vmov 0  ;;  %v743_v4 = vadd.s32 56, %v15660_v58 }
 0x1a3   : > { %2727 = vadd.xlane.f32.xlu1 %v2726_v45  ;;  %v15692_v49 = vsel %vm10497_vm14, 4294967295, %v15691_v49  ;;  %v15694_v9 = vmov 0 }
 0x1a4   : > { %v10489_v13 = vpop.f32.mrf.mxu0  ;;  %15693 = vst [vmem:[#allocation128_spill] sm:$0xff] %v15692_v49  ;;  %v15695_v9 = vsel %vm10504_vm15, 4294967295, %v15694_v9  ;;  %vm10516_vm0 = vcmp.le.s32.totalorder %v10401_v21, %v743_v4  ;;  %v15701_v4 = vmov 0 }
 0x1a5   : > { %v10487_v63 = vpop.permute.xlu1 %2631  ;;  %v6935_v45 = vpack.c.bf16 %v10489_v13, %v1039_v15  ;;  %15696 = vst [vmem:[#allocation129_spill] sm:$0xff] %v15695_v9  ;;  %v15698_v15 = vmov 0  ;;  %vm10530_vm1 = vmpackc.low %vm10516_vm0, %vm10504_vm15 }
 0x1a6   : > { %15690 = vst [vmem:[#allocation127_spill] sm:$0xff] %v10487_v63  ;;  %v1045_v62 = vpop.f32.mrf.mxu0  ;;  %v15699_v15 = vsel %vm10516_vm0, 4294967295, %v15698_v15  ;;  %v15702_v4 = vsel %vm10530_vm1, 4294967295, %v15701_v4 }
 0x1a7   : > { %6936 = vmatmul.mubr.msk.bf16.gmra.mxu1 %vm10497_vm14, %v6935_v45  ;;  %15700 = vst [vmem:[#allocation131_spill] sm:$0xff] %v15699_v15  ;;  %v10520_v62 = vpop.trf.xlu0  ;;  %15703 = vst [vmem:[#allocation132_spill] sm:$0xff] %v15702_v4 }
 0x1a8   : > { %v1049_v34 = vpop.f32.mrf.mxu0  ;;  %1755 = vmatprep.mubr.bf16.mxu1 %v15673_v42 }
 0x1a9   : > { %v10508_v50 = vpop.permute.xlu1 %2633  ;;  %v1190_v30 = vsel %vm10504_vm15, %v1049_v34, 0.0 }
 0x1aa   : > { %15697 = vst [vmem:[#allocation130_spill] sm:$0xff] %v10508_v50  ;;  %1261 = vadd.xlane.f32.xlu0 %v1190_v30  ;;  %v1051_v43 = vpop.f32.mrf.mxu0 }
 0x1ab   : > { %v745_v43 = vadd.s32 72, %v15660_v58  ;;  %v10543_v9 = vpop.xlane.xlu0 %1377 }
 0x1ac   : > { %v10524_v49 = vpop.f32.mrf.mxu0  ;;  %15707 = vst [vmem:[#allocation134_spill] sm:$0xff] %v10543_v9 }
 0x1ad   : > { %v2638_v48 = vpop.permute.xlu1 %2637  ;;  %v6938_v30 = vpack.c.bf16 %v10524_v49, %v1049_v34  ;;  %vm10550_vm4 = vcmp.le.s32.totalorder %v10401_v21, %v745_v43 }
 0x1ae   : > { %v2738_v45 = vsel %vm15261_vm3, %v2638_v48, 0.0  ;;  %v1055_v39 = vpop.f32.mrf.mxu0  ;;  %v15709_v12 = vsel %vm10550_vm4, 4294967295, %v15708_v12  ;;  %vm10562_vm5 = vmpackc.low %vm10550_vm4, %vm10537_vm2 }
 0x1af   : > { %2739 = vadd.xlane.f32.xlu1 %v2738_v45  ;;  %6939 = vmatmul.mubr.msk.bf16.gmra.mxu1 %vm10530_vm1, %v6938_v30  ;;  %15710 = vst [vmem:[#allocation135_spill] sm:$0xff] %v15709_v12  ;;  %v746_v45 = vadd.s32 80, %v15660_v58 }
 0x1b0   : > { %v1059_v59 = vpop.f32.mrf.mxu0  ;;  %1763 = vmatprep.mubr.bf16.mxu1 %v15673_v42 }
 0x1b1   : > { %v2642_v48 = vpop.permute.xlu1 %2641  ;;  %v1194_v34 = vsel %vm10537_vm2, %v1059_v59, 0.0  ;;  %vm15718_vm2 = vcmask 261120  }
 0x1b2   : > { %v2744_v22 = vsel %vm15261_vm3, %v2642_v48, 0.0  ;;  %1267 = vadd.xlane.f32.xlu0 %v1194_v34  ;;  %v1061_v39 = vpop.f32.mrf.mxu0  ;;  %v747_v34 = vadd.s32 88, %v15660_v58 }
 0x1b3   : > { %2745 = vadd.xlane.f32.xlu1 %v2744_v22  ;;  %v15711_v22 = vmov 0  ;;  %v10568_v39 = vpop.xlane.xlu0 %1383 }
 0x1b4   : > { %v10556_v48 = vpop.f32.mrf.mxu0  ;;  %v15712_v22 = vsel %vm10562_vm5, 4294967295, %v15711_v22  ;;  %15714 = vst [vmem:[#allocation137_spill] sm:$0xff] %v10568_v39  ;;  %vm10582_vm15 = vcmp.le.s32.totalorder %v10401_v21, %v747_v34 }
 0x1b5   : > { %v2646_v30 = vpop.permute.xlu1 %2645  ;;  %15713 = vst [vmem:[#allocation136_spill] sm:$0xff] %v15712_v22  ;;  %v6941_v43 = vpack.c.bf16 %v10556_v48, %v1059_v59 }
 0x1b6   : > { %v2750_v9 = vsel %vm15261_vm3, %v2646_v30, 0.0  ;;  %v1065_v4 = vpop.f32.mrf.mxu0  ;;  %vm10571_vm3 = vcmp.le.s32.totalorder %v10401_v21, %v746_v45  ;;  %v15715_v30 = vmov 0  ;;  %v748_v45 = vadd.s32 96, %v15660_v58 }
 0x1b7   : > { %2751 = vadd.xlane.f32.xlu1 %v2750_v9  ;;  %v15716_v30 = vsel %vm10571_vm3, 4294967295, %v15715_v30  ;;  %6942 = vmatmul.mubr.msk.bf16.gmra.mxu1 %vm10562_vm5, %v6941_v43  ;;  %v15719_v9 = vmov 0  ;;  %v10587_v43 = vpop.xlane.xlu0 %1389  ;;  %vm10596_vm12 = vmpackc.low %vm10582_vm15, %vm10571_vm3 }
 0x1b8   : > { %15717 = vst [vmem:[#allocation138_spill] sm:$0xff] %v15716_v30  ;;  %v1069_v18 = vpop.f32.mrf.mxu0  ;;  %1771 = vmatprep.mubr.bf16.mxu1 %v15673_v42  ;;  %v15720_v9 = vsel %vm10582_vm15, 4294967295, %v15719_v9  ;;  %15722 = vst [vmem:[#allocation140_spill] sm:$0xff] %v10587_v43  ;;  %vm10603_vm5 = vcmp.le.s32.totalorder %v10401_v21, %v748_v45  ;;  %v15726_v43 = vmov 0 }
 0x1b9   : > { %v2650_v31 = vpop.permute.xlu1 %2649  ;;  %v1198_v59 = vsel %vm10571_vm3, %v1069_v18, 0.0  ;;  %15721 = vst [vmem:[#allocation139_spill] sm:$0xff] %v15720_v9  ;;  %v15727_v43 = vsel %vm10603_vm5, 4294967295, %v15726_v43 }
 0x1ba   : > { %v2756_v27 = vsel %vm15718_vm2, %v2650_v31, 0.0  ;;  %1273 = vadd.xlane.f32.xlu0 %v1198_v59  ;;  %v1071_v4 = vpop.f32.mrf.mxu0  ;;  %v749_v59 = vadd.s32 104, %v15660_v58  ;;  %15728 = vst [vmem:[#allocation142_spill] sm:$0xff] %v15727_v43 }
 0x1bb   : > { %2757 = vadd.xlane.f32.xlu1 %v2756_v27  ;;  %v15723_v27 = vmov 0  ;;  %v10618_v45 = vpop.xlane.xlu0 %1395 }
 0x1bc   : > { %v10590_v22 = vpop.f32.mrf.mxu0  ;;  %v15724_v27 = vsel %vm10596_vm12, 4294967295, %v15723_v27  ;;  %vm10614_vm3 = vcmp.le.s32.totalorder %v10401_v21, %v749_v59  ;;  %15732 = vst [vmem:[#allocation144_spill] sm:$0xff] %v10618_v45  ;;  %v15736_v45 = vmov 0 }
 0x1bd   : > { %v2654_v39 = vpop.permute.xlu1 %2653  ;;  %15725 = vst [vmem:[#allocation141_spill] sm:$0xff] %v15724_v27  ;;  %v6944_v34 = vpack.c.bf16 %v10590_v22, %v1069_v18 }
 0x1be   : > { %v2762_v31 = vsel %vm15718_vm2, %v2654_v39, 0.0  ;;  %v1075_v4 = vpop.f32.mrf.mxu0 }
 0x1bf   : > { %2763 = vadd.xlane.f32.xlu1 %v2762_v31  ;;  %6945 = vmatmul.mubr.msk.bf16.gmra.mxu1 %vm10596_vm12, %v6944_v34  ;;  %v15729_v31 = vmov 0  ;;  %v750_v34 = vadd.s32 112, %v15660_v58  ;;  %vm10628_vm12 = vmpackc.low %vm10614_vm3, %vm10603_vm5  ;;  %v10641_v43 = vpop.xlane.xlu0 %1401 }
 0x1c0   : > { %v1079_v14 = vpop.f32.mrf.mxu0  ;;  %1779 = vmatprep.mubr.bf16.mxu1 %v15673_v42  ;;  %v15730_v31 = vsel %vm10614_vm3, 4294967295, %v15729_v31  ;;  %15739 = vst [vmem:[#allocation147_spill] sm:$0xff] %v10641_v43 }
 0x1c1   : > { %v2658_v39 = vpop.permute.xlu1 %2657  ;;  %v1202_v18 = vsel %vm10603_vm5, %v1079_v14, 0.0  ;;  %15731 = vst [vmem:[#allocation143_spill] sm:$0xff] %v15730_v31  ;;  %vm10635_vm1 = vcmp.le.s32.totalorder %v10401_v21, %v750_v34  ;;  %v15740_v34 = vmov 0 }
 0x1c2   : > { %v2768_v30 = vsel %vm15718_vm2, %v2658_v39, 0.0  ;;  %1279 = vadd.xlane.f32.xlu0 %v1202_v18  ;;  %v1081_v4 = vpop.f32.mrf.mxu0  ;;  %v751_v18 = vadd.s32 120, %v15660_v58  ;;  %v15737_v45 = vsel %vm10635_vm1, 4294967295, %v15736_v45 }
 0x1c3   : > { %2769 = vadd.xlane.f32.xlu1 %v2768_v30  ;;  %v15733_v30 = vmov 0  ;;  %15738 = vst [vmem:[#allocation146_spill] sm:$0xff] %v15737_v45  ;;  %v753_v45 = vadd.s32 136, %v15660_v58 }
 0x1c4   : > { %v10622_v19 = vpop.f32.mrf.mxu0  ;;  %v15734_v30 = vsel %vm10628_vm12, 4294967295, %v15733_v30  ;;  %vm10648_vm5 = vcmp.le.s32.totalorder %v10401_v21, %v751_v18  ;;  %v752_v18 = vadd.s32 128, %v15660_v58 }
 0x1c5   : > { %v2662_v27 = vpop.permute.xlu1 %2661  ;;  %15735 = vst [vmem:[#allocation145_spill] sm:$0xff] %v15734_v30  ;;  %v6947_v59 = vpack.c.bf16 %v10622_v19, %v1079_v14  ;;  %v15741_v34 = vsel %vm10648_vm5, 4294967295, %v15740_v34  ;;  %v1182_v30 = vsel %vm10451_vm10, %v10439_v46, 0.0  ;;  %v1184_v46 = vsel %vm10443_vm9, %v10455_v6, 0.0 }
 0x1c6   : > { %v2774_v39 = vsel %vm15718_vm2, %v2662_v27, 0.0  ;;  %v1085_v4 = vpop.f32.mrf.mxu0  ;;  %15742 = vst [vmem:[#allocation148_spill] sm:$0xff] %v15741_v34 }
 0x1c7   : > { %2775 = vadd.xlane.f32.xlu1 %v2774_v39  ;;  %6948 = vmatmul.mubr.msk.bf16.gmra.mxu1 %vm10628_vm12, %v6947_v59  ;;  %vm15743_vm12 = vmmov %vm15718_vm2 }
 0x1c8   : > { %v1089_v63 = vpop.f32.mrf.mxu0  ;;  %1787 = vmatprep.mubr.bf16.mxu1 %v15673_v42  ;;  %v10730_v42 = vpop.f32.mrf.mxu1 }
 0x1c9   : > { %v2666_v27 = vpop.permute.xlu1 %2665  ;;  %v1206_v14 = vsel %vm10635_vm1, %v1089_v63, 0.0  ;;  %15767 = vst [vmem:[#allocation159_spill] sm:$0xff] %v10730_v42 }
 0x1ca   : > { %v2780_v50 = vsel %vm15718_vm2, %v2666_v27, 0.0  ;;  %1285 = vadd.xlane.f32.xlu0 %v1206_v14  ;;  %v1091_v39 = vpop.f32.mrf.mxu0  ;;  %vm10659_vm2 = vmpackc.low %vm10648_vm5, %vm10635_vm1  ;;  %v10665_v27 = vadd.s32 128, %v10401_v21  ;;  %v15748_v21 = vmov 0  ;;  %v10751_v42 = vpop.f32.mrf.mxu1 }
 0x1cb   : > { %2781 = vadd.xlane.f32.xlu1 %v2780_v50  ;;  %v15744_v50 = vmov 0  ;;  %v10668_v39 = vpop.xlane.xlu0 %1407  ;;  %15771 = vst [vmem:[#allocation161_spill] sm:$0xff] %v10751_v42 }
 0x1cc   : > { %v10653_v43 = vpop.f32.mrf.mxu0  ;;  %v15745_v50 = vsel %vm10659_vm2, 4294967295, %v15744_v50  ;;  %15747 = vst [vmem:[#allocation150_spill] sm:$0xff] %v10668_v39  ;;  %vm10684_vm1 = vcmp.le.s32.totalorder %v10665_v27, %v753_v45 }
 0x1cd   : > { %v2670_v4 = vpop.permute.xlu1 %2669  ;;  %15746 = vst [vmem:[#allocation149_spill] sm:$0xff] %v15745_v50  ;;  %v6950_v14 = vpack.c.bf16 %v10653_v43, %v1089_v63 }
 0x1ce   : > { %v2786_v59 = vsel %vm15743_vm12, %v2670_v4, 0.0  ;;  %v1095_v4 = vpop.f32.mrf.mxu0  ;;  %vm10677_vm12 = vcmp.le.s32.totalorder %v10665_v27, %v752_v18 }
 0x1cf   : > { %2787 = vadd.xlane.f32.xlu1 %v2786_v59  ;;  %6951 = vmatmul.mubr.msk.bf16.gmra.mxu1 %vm10659_vm2, %v6950_v14  ;;  %v15749_v21 = vsel %vm10677_vm12, 4294967295, %v15748_v21  ;;  %v15751_v14 = vmov 0  ;;  %v10688_v39 = vpop.xlane.xlu0 %1413  ;;  %vm15755_vm2 = vcmask 261120   ;;  %vm10703_vm10 = vmpackc.low %vm10684_vm1, %vm10677_vm12 }
 0x1d0   : > { %v1099_v11 = vpop.f32.mrf.mxu0  ;;  %15750 = vst [vmem:[#allocation151_spill] sm:$0xff] %v15749_v21  ;;  %v15752_v14 = vsel %vm10684_vm1, 4294967295, %v15751_v14  ;;  %15754 = vst [vmem:[#allocation153_spill] sm:$0xff] %v10688_v39  ;;  %v15756_v39 = vmov 0  ;;  %v2216_v21 = vsel %vm15755_vm2, %v10403_v3, 0 }
 0x1d1   : > { %v2674_v4 = vpop.permute.xlu1 %2673  ;;  %15753 = vst [vmem:[#allocation152_spill] sm:$0xff] %v15752_v14  ;;  %v15757_v39 = vsel %vm10703_vm10, 4294967295, %v15756_v39  ;;  %7429 = vmatpush3.bf16.xpose.msra.mxu1 %v2216_v21  ;;  %v15768_v21 = vmov 0  ;;  %v766_v14 = vadd.s32 240, %v15660_v58 }
 0x1d2   : > { %v1101_v63 = vpop.f32.mrf.mxu0  ;;  %v2792_v45 = vsel %vm15755_vm2, %v2674_v4, 0.0  ;;  %15758 = vst [vmem:[#allocation154_spill] sm:$0xff] %v15757_v39  ;;  %v15760_v4 = vmov 0 }
 0x1d3   : > { %1249 = vadd.xlane.f32.xlu1 %v1182_v30  ;;  %v1211_v59 = vsel %vm10677_vm12, %v1101_v63, 0.0  ;;  %v754_v30 = vadd.s32 144, %v15660_v58 }
 0x1d4   : > { %v10693_v18 = vpop.f32.mrf.mxu0  ;;  %v1290_v50 = vadd.f32 %v1211_v59, %v1099_v11  ;;  %v755_v59 = vadd.s32 152, %v15660_v58 }
 0x1d5   : > { %vm10713_vm9 = vcmp.le.s32.totalorder %v10665_v27, %v754_v30  ;;  %v2678_v29 = vpop.permute.xlu1 %2677  ;;  %v15764_v30 = vmov 0 }
 0x1d6   : > { %1291 = vadd.xlane.f32.xlu0 %v1290_v50  ;;  %v10696_v36 = vpop.f32.mrf.mxu0  ;;  %v1520_v50 = vpack.c.bf16 %v10693_v18, %v1099_v11  ;;  %v15761_v4 = vsel %vm10713_vm9, 4294967295, %v15760_v4  ;;  %vm10726_vm12 = vcmp.le.s32.totalorder %v10665_v27, %v755_v59  ;;  %v2798_v59 = vsel %vm15755_vm2, %v2678_v29, 0.0 }
 0x1d7   : > { %1252 = vadd.xlane.f32.xlu1 %v1184_v46  ;;  %v6953_v6 = vpack.c.bf16 %v10696_v36, %v1101_v63  ;;  %15762 = vst [vmem:[#allocation156_spill] sm:$0xff] %v15761_v4  ;;  %v10721_v63 = vpop.xlane.xlu0 %1419  ;;  %v15765_v30 = vsel %vm10726_vm12, 4294967295, %v15764_v30  ;;  %v15773_v29 = vmov 0 }
 0x1d8   : > { %v1109_v46 = vpop.f32.mrf.mxu0  ;;  %15763 = vst [vmem:[#allocation157_spill] sm:$0xff] %v10721_v63  ;;  %15766 = vst [vmem:[#allocation158_spill] sm:$0xff] %v15765_v30  ;;  %v15837_v30 = vmov 0 }
 0x1d9   : > { %6954 = vmatprep.mubr.msk.bf16.mxu1 %vm10703_vm10, %v6953_v6  ;;  %vm10745_vm10 = vmpackc.low %vm10726_vm12, %vm10713_vm9  ;;  %v2682_v42 = vpop.permute.xlu1 %2681 }
 0x1da   : > { %v1111_v0 = vpop.f32.mrf.mxu0  ;;  %1796 = vmatmul.mubr.bf16.gmra.mxu1 %v1520_v50  ;;  %v756_v50 = vadd.s32 160, %v15660_v58  ;;  %v15769_v21 = vsel %vm10745_vm10, 4294967295, %v15768_v21 }
 0x1db   : > { %2793 = vadd.xlane.f32.xlu1 %v2792_v45  ;;  %v1215_v11 = vsel %vm10713_vm9, %v1111_v0, 0.0  ;;  %v1188_v45 = vsel %vm10482_vm13, %v10489_v13, 0.0  ;;  %15770 = vst [vmem:[#allocation160_spill] sm:$0xff] %v15769_v21 }
 0x1dc   : > { %v10735_v6 = vpop.f32.mrf.mxu0  ;;  %v1296_v63 = vadd.f32 %v1215_v11, %v1109_v46  ;;  %v757_v11 = vadd.s32 168, %v15660_v58  ;;  %vm10757_vm2 = vcmp.le.s32.totalorder %v10665_v27, %v756_v50  ;;  %v1192_v50 = vsel %vm10516_vm0, %v10524_v49, 0.0 }
 0x1dd   : > { %v15774_v29 = vsel %vm10757_vm2, 4294967295, %v15773_v29 }
 0x1de   : > { %1297 = vadd.xlane.f32.xlu0 %v1296_v63  ;;  %v10738_v39 = vpop.f32.mrf.mxu0  ;;  %v1522_v63 = vpack.c.bf16 %v10735_v6, %v1109_v46  ;;  %15775 = vst [vmem:[#allocation163_spill] sm:$0xff] %v15774_v29  ;;  %vm10766_vm9 = vcmp.le.s32.totalorder %v10665_v27, %v757_v11  ;;  %v10770_v46 = vpop.f32.mrf.mxu1 }
 0x1df   : > { %1258 = vadd.xlane.f32.xlu1 %v1188_v45  ;;  %v6956_v13 = vpack.c.bf16 %v10738_v39, %v1111_v0  ;;  %v10753_v45 = vpop.xlane.xlu0 %1425  ;;  %15779 = vst [vmem:[#allocation165_spill] sm:$0xff] %v10770_v46  ;;  %vm10787_vm13 = vmpackc.low %vm10766_vm9, %vm10757_vm2  ;;  %v15782_v46 = vmov 0  ;;  %v2686_v29 = vpop.permute.xlu1 %2685 }
 0x1e0   : > { %15772 = vst [vmem:[#allocation162_spill] sm:$0xff] %v10753_v45  ;;  %v1119_v40 = vpop.f32.mrf.mxu0  ;;  %v15776_v45 = vmov 0  ;;  %v15783_v46 = vsel %vm10787_vm13, 4294967295, %v15782_v46 }
 0x1e1   : > { %6957 = vmatprep.mubr.msk.bf16.mxu1 %vm10745_vm10, %v6956_v13  ;;  %v15777_v45 = vsel %vm10766_vm9, 4294967295, %v15776_v45  ;;  %vm15781_vm10 = vcmask 261120   ;;  %15784 = vst [vmem:[#allocation167_spill] sm:$0xff] %v15783_v46  ;;  %v760_v46 = vadd.s32 192, %v15660_v58 }
 0x1e2   : > { %v1121_v4 = vpop.f32.mrf.mxu0  ;;  %1804 = vmatmul.mubr.bf16.gmra.mxu1 %v1522_v63  ;;  %15778 = vst [vmem:[#allocation164_spill] sm:$0xff] %v15777_v45  ;;  %v758_v63 = vadd.s32 176, %v15660_v58  ;;  %v2804_v11 = vsel %vm15781_vm10, %v2682_v42, 0.0  ;;  %v15786_v42 = vmov 0 }
 0x1e3   : > { %2799 = vadd.xlane.f32.xlu1 %v2798_v59  ;;  %v1219_v0 = vsel %vm10757_vm2, %v1121_v4, 0.0  ;;  %v10778_v21 = vpop.xlane.xlu0 %1431 }
 0x1e4   : > { %v10775_v59 = vpop.f32.mrf.mxu0  ;;  %v1302_v13 = vadd.f32 %v1219_v0, %v1119_v40  ;;  %15780 = vst [vmem:[#allocation166_spill] sm:$0xff] %v10778_v21  ;;  %v759_v0 = vadd.s32 184, %v15660_v58  ;;  %vm10797_vm0 = vcmp.le.s32.totalorder %v10665_v27, %v758_v63 }
 0x1e5   : > { %v15787_v42 = vsel %vm10797_vm0, 4294967295, %v15786_v42 }
 0x1e6   : > { %1303 = vadd.xlane.f32.xlu0 %v1302_v13  ;;  %v10780_v16 = vpop.f32.mrf.mxu0  ;;  %v1524_v13 = vpack.c.bf16 %v10775_v59, %v1119_v40  ;;  %15788 = vst [vmem:[#allocation169_spill] sm:$0xff] %v15787_v42  ;;  %vm10806_vm10 = vcmp.le.s32.totalorder %v10665_v27, %v759_v0 }
 0x1e7   : > { %1264 = vadd.xlane.f32.xlu1 %v1192_v50  ;;  %v6959_v49 = vpack.c.bf16 %v10780_v16, %v1121_v4  ;;  %v10793_v50 = vpop.f32.mrf.mxu1  ;;  %v10812_v63 = vpop.xlane.xlu0 %1437  ;;  %vm10827_vm2 = vmpackc.low %vm10806_vm10, %vm10797_vm0 }
 0x1e8   : > { %15785 = vst [vmem:[#allocation168_spill] sm:$0xff] %v10793_v50  ;;  %v1129_v21 = vpop.f32.mrf.mxu0  ;;  %v15789_v50 = vmov 0  ;;  %15793 = vst [vmem:[#allocation172_spill] sm:$0xff] %v10812_v63  ;;  %v15795_v63 = vmov 0 }
 0x1e9   : > { %6960 = vmatprep.mubr.msk.bf16.mxu1 %vm10787_vm13, %v6959_v49  ;;  %v15790_v50 = vsel %vm10806_vm10, 4294967295, %v15789_v50  ;;  %v10810_v40 = vpop.f32.mrf.mxu1  ;;  %vm15794_vm13 = vcmask 261120   ;;  %v15796_v63 = vsel %vm10827_vm2, 4294967295, %v15795_v63 }
 0x1ea   : > { %v1131_v15 = vpop.f32.mrf.mxu0  ;;  %1812 = vmatmul.mubr.bf16.gmra.mxu1 %v1524_v13  ;;  %15791 = vst [vmem:[#allocation170_spill] sm:$0xff] %v15790_v50  ;;  %15792 = vst [vmem:[#allocation171_spill] sm:$0xff] %v10810_v40  ;;  %v2810_v0 = vsel %vm15794_vm13, %v2686_v29, 0.0  ;;  %v15799_v29 = vmov 0 }
 0x1eb   : > { %2805 = vadd.xlane.f32.xlu1 %v2804_v11  ;;  %v1223_v4 = vsel %vm10797_vm0, %v1131_v15, 0.0  ;;  %v1196_v11 = vsel %vm10550_vm4, %v10556_v48, 0.0  ;;  %15797 = vst [vmem:[#allocation173_spill] sm:$0xff] %v15796_v63  ;;  %v10833_v40 = vpop.f32.mrf.mxu1  ;;  %vm10837_vm4 = vcmp.le.s32.totalorder %v10665_v27, %v760_v46  ;;  %v10843_v12 = vpop.xlane.xlu0 %1443 }
 0x1ec   : > { %v10817_v49 = vpop.f32.mrf.mxu0  ;;  %v1308_v13 = vadd.f32 %v1223_v4, %v1129_v21  ;;  %v761_v4 = vadd.s32 200, %v15660_v58  ;;  %15798 = vst [vmem:[#allocation174_spill] sm:$0xff] %v10833_v40  ;;  %v15800_v29 = vsel %vm10837_vm4, 4294967295, %v15799_v29  ;;  %15802 = vst [vmem:[#allocation176_spill] sm:$0xff] %v10843_v12  ;;  %v2690_v40 = vpop.permute.xlu1 %2689 }
 0x1ed   : > { %15801 = vst [vmem:[#allocation175_spill] sm:$0xff] %v15800_v29  ;;  %v10852_v46 = vpop.f32.mrf.mxu1 }
 0x1ee   : > { %1309 = vadd.xlane.f32.xlu0 %v1308_v13  ;;  %v10820_v54 = vpop.f32.mrf.mxu0  ;;  %vm10848_vm13 = vcmp.le.s32.totalorder %v10665_v27, %v761_v4  ;;  %15806 = vst [vmem:[#allocation178_spill] sm:$0xff] %v10852_v46  ;;  %v15808_v46 = vmov 0 }
 0x1ef   : > { %1270 = vadd.xlane.f32.xlu1 %v1196_v11  ;;  %v6962_v48 = vpack.c.bf16 %v10820_v54, %v1131_v15  ;;  %v1526_v11 = vpack.c.bf16 %v10817_v49, %v1129_v21  ;;  %v15803_v21 = vmov 0  ;;  %vm10867_vm0 = vmpackc.low %vm10848_vm13, %vm10837_vm4  ;;  %v10873_v9 = vpop.f32.mrf.mxu1 }
 0x1f0   : > { %v1139_v13 = vpop.f32.mrf.mxu0  ;;  %v15804_v21 = vsel %vm10848_vm13, 4294967295, %v15803_v21  ;;  %v15809_v46 = vsel %vm10867_vm0, 4294967295, %v15808_v46  ;;  %15811 = vst [vmem:[#allocation180_spill] sm:$0xff] %v10873_v9  ;;  %v15816_v9 = vmov 0 }
 0x1f1   : > { %6963 = vmatprep.mubr.msk.bf16.mxu1 %vm10827_vm2, %v6962_v48  ;;  %15805 = vst [vmem:[#allocation177_spill] sm:$0xff] %v15804_v21  ;;  %vm15807_vm2 = vcmask 261120   ;;  %15810 = vst [vmem:[#allocation179_spill] sm:$0xff] %v15809_v46 }
 0x1f2   : > { %v1141_v42 = vpop.f32.mrf.mxu0  ;;  %1820 = vmatmul.mubr.bf16.gmra.mxu1 %v1526_v11  ;;  %v762_v11 = vadd.s32 208, %v15660_v58  ;;  %v2816_v4 = vsel %vm15807_vm2, %v2690_v40, 0.0  ;;  %v15813_v40 = vmov 0 }
 0x1f3   : > { %2811 = vadd.xlane.f32.xlu1 %v2810_v0  ;;  %v1227_v15 = vsel %vm10837_vm4, %v1141_v42, 0.0  ;;  %v1200_v0 = vsel %vm10582_vm15, %v10590_v22, 0.0 }
 0x1f4   : > { %v10857_v48 = vpop.f32.mrf.mxu0  ;;  %v1314_v12 = vadd.f32 %v1227_v15, %v1139_v13  ;;  %v763_v15 = vadd.s32 216, %v15660_v58  ;;  %vm10879_vm2 = vcmp.le.s32.totalorder %v10665_v27, %v762_v11  ;;  %v1204_v11 = vsel %vm10614_vm3, %v10622_v19, 0.0 }
 0x1f5   : > { %v15814_v40 = vsel %vm10879_vm2, 4294967295, %v15813_v40 }
 0x1f6   : > { %1315 = vadd.xlane.f32.xlu0 %v1314_v12  ;;  %v10860_v63 = vpop.f32.mrf.mxu0  ;;  %v1528_v12 = vpack.c.bf16 %v10857_v48, %v1139_v13  ;;  %15815 = vst [vmem:[#allocation182_spill] sm:$0xff] %v15814_v40  ;;  %vm10888_vm15 = vcmp.le.s32.totalorder %v10665_v27, %v763_v15  ;;  %v10892_v13 = vpop.f32.mrf.mxu1  ;;  %v15821_v15 = vmov 0  ;;  %v15825_v40 = vmov 0 }
 0x1f7   : > { %1276 = vadd.xlane.f32.xlu1 %v1200_v0  ;;  %v6965_v22 = vpack.c.bf16 %v10860_v63, %v1141_v42  ;;  %v10875_v0 = vpop.xlane.xlu0 %1449  ;;  %v15817_v9 = vsel %vm10888_vm15, 4294967295, %v15816_v9  ;;  %15819 = vst [vmem:[#allocation184_spill] sm:$0xff] %v10892_v13 }
 0x1f8   : > { %15812 = vst [vmem:[#allocation181_spill] sm:$0xff] %v10875_v0  ;;  %v1149_v55 = vpop.f32.mrf.mxu0  ;;  %15818 = vst [vmem:[#allocation183_spill] sm:$0xff] %v15817_v9  ;;  %v10914_v13 = vpop.f32.mrf.mxu1 }
 0x1f9   : > { %6966 = vmatprep.mubr.msk.bf16.mxu1 %vm10867_vm0, %v6965_v22  ;;  %v764_v22 = vadd.s32 224, %v15660_v58  ;;  %vm10908_vm0 = vmpackc.low %vm10888_vm15, %vm10879_vm2  ;;  %15824 = vst [vmem:[#allocation187_spill] sm:$0xff] %v10914_v13 }
 0x1fa   : > { %v1151_v29 = vpop.f32.mrf.mxu0  ;;  %1828 = vmatmul.mubr.bf16.gmra.mxu1 %v1528_v12  ;;  %v15822_v15 = vsel %vm10908_vm0, 4294967295, %v15821_v15 }
 0x1fb   : > { %2817 = vadd.xlane.f32.xlu1 %v2816_v4  ;;  %v1231_v42 = vsel %vm10879_vm2, %v1151_v29, 0.0  ;;  %v10900_v12 = vpop.xlane.xlu0 %1455  ;;  %15823 = vst [vmem:[#allocation186_spill] sm:$0xff] %v15822_v15  ;;  %vm10924_vm3 = vcmp.le.s32.totalorder %v10665_v27, %v764_v22  ;;  %v10938_v22 = vpop.f32.mrf.mxu1 }
 0x1fc   : > { %v10897_v4 = vpop.f32.mrf.mxu0  ;;  %v1320_v0 = vadd.f32 %v1231_v42, %v1149_v55  ;;  %15820 = vst [vmem:[#allocation185_spill] sm:$0xff] %v10900_v12  ;;  %v765_v42 = vadd.s32 232, %v15660_v58  ;;  %v1208_v12 = vsel %vm10648_vm5, %v10653_v43, 0.0  ;;  %v15826_v40 = vsel %vm10924_vm3, 4294967295, %v15825_v40  ;;  %15831 = vst [vmem:[#allocation190_spill] sm:$0xff] %v10938_v22 }
 0x1fd   : > { %15827 = vst [vmem:[#allocation188_spill] sm:$0xff] %v15826_v40  ;;  %v15828_v43 = vmov 0  ;;  %v10956_v22 = vpop.f32.mrf.mxu1 }
 0x1fe   : > { %1321 = vadd.xlane.f32.xlu0 %v1320_v0  ;;  %v10902_v46 = vpop.f32.mrf.mxu0  ;;  %v1213_v0 = vsel %vm10684_vm1, %v10696_v36, 0.0  ;;  %vm10934_vm1 = vcmp.le.s32.totalorder %v10665_v27, %v765_v42  ;;  %v15833_v42 = vmov 0  ;;  %15836 = vst [vmem:[#allocation193_spill] sm:$0xff] %v10956_v22 }
 0x1ff   : > { %1282 = vadd.xlane.f32.xlu1 %v1204_v11  ;;  %v6968_v19 = vpack.c.bf16 %v10902_v46, %v1151_v29  ;;  %v1530_v11 = vpack.c.bf16 %v10897_v4, %v1149_v55  ;;  %v1293_v55 = vadd.f32 %v1213_v0, %v10693_v18  ;;  %v15829_v43 = vsel %vm10934_vm1, 4294967295, %v15828_v43  ;;  %v10943_v13 = vpop.xlane.xlu0 %1461  ;;  %vm10950_vm5 = vmpackc.low %vm10934_vm1, %vm10924_vm3 }
 0x200   : > { %v1159_v31 = vpop.f32.mrf.mxu0  ;;  %15830 = vst [vmem:[#allocation189_spill] sm:$0xff] %v15829_v43  ;;  %15832 = vst [vmem:[#allocation191_spill] sm:$0xff] %v10943_v13  ;;  %v15834_v42 = vsel %vm10950_vm5, 4294967295, %v15833_v42  ;;  %v767_v13 = vadd.s32 248, %v15660_v58 }
 0x201   : > { %6969 = vmatprep.mubr.msk.bf16.mxu1 %vm10908_vm0, %v6968_v19  ;;  %15835 = vst [vmem:[#allocation192_spill] sm:$0xff] %v15834_v42 }
 0x202   : > { %v1161_v29 = vpop.f32.mrf.mxu0  ;;  %1836 = vmatmul.mubr.bf16.gmra.mxu1 %v1530_v11 }
 0x203   : > { %1288 = vadd.xlane.f32.xlu1 %v1208_v12  ;;  %v1235_v36 = vsel %vm10924_vm3, %v1161_v29, 0.0  ;;  %v1217_v12 = vsel %vm10726_vm12, %v10738_v39, 0.0  ;;  %vm10962_vm12 = vcmp.le.s32.totalorder %v10665_v27, %v766_v14  ;;  %v10978_v14 = vpop.f32.mrf.mxu1 }
 0x204   : > { %v1163_v19 = vpop.f32.mrf.mxu0  ;;  %v1326_v11 = vadd.f32 %v1235_v36, %v1159_v31  ;;  %v1299_v39 = vadd.f32 %v1217_v12, %v10735_v6  ;;  %v1221_v36 = vsel %vm10766_vm9, %v10780_v16, 0.0  ;;  %v15838_v30 = vsel %vm10962_vm12, 4294967295, %v15837_v30  ;;  %v10968_v6 = vpop.xlane.xlu0 %1467  ;;  %15844 = vst [vmem:[#allocation197_spill] sm:$0xff] %v10978_v14 }
 0x205   : > { %15839 = vst [vmem:[#allocation194_spill] sm:$0xff] %v15838_v30  ;;  %15840 = vst [vmem:[#allocation195_spill] sm:$0xff] %v10968_v6  ;;  %v1305_v16 = vadd.f32 %v1221_v36, %v10775_v59  ;;  %vm10974_vm9 = vcmp.le.s32.totalorder %v10665_v27, %v767_v13  ;;  %v1225_v12 = vsel %vm10806_vm10, %v10820_v54, 0.0  ;;  %v15845_v27 = vmov 0  ;;  %v10992_v36 = vpop.f32.mrf.mxu1 }
 0x206   : > { %1327 = vadd.xlane.f32.xlu0 %v1326_v11  ;;  %v1165_v18 = vpop.f32.mrf.mxu0  ;;  %v1311_v13 = vadd.f32 %v1225_v12, %v10817_v49  ;;  %15848 = vst [vmem:[#allocation199_spill] sm:$0xff] %v10992_v36  ;;  %v1229_v54 = vsel %vm10848_vm13, %v10860_v63, 0.0  ;;  %vm15849_vm10 = vcmask 261120  }
 0x207   : > { %1294 = vadd.xlane.f32.xlu1 %v1293_v55  ;;  %v6971_v0 = vpack.c.bf16 %v1165_v18, %v1161_v29  ;;  %v1532_v55 = vpack.c.bf16 %v1163_v19, %v1159_v31  ;;  %v15841_v31 = vmov 0  ;;  %v11004_v49 = vpop.f32.mrf.mxu1 }
 0x208   : > { %v1169_v11 = vpop.f32.mrf.mxu0  ;;  %v15842_v31 = vsel %vm10974_vm9, 4294967295, %v15841_v31  ;;  %v10994_v6 = vpop.permute.xlu0 %2066  ;;  %15850 = vst [vmem:[#allocation200_spill] sm:$0xff] %v11004_v49 }
 0x209   : > { %6972 = vmatprep.mubr.msk.bf16.mxu1 %vm10950_vm5, %v6971_v0  ;;  %15843 = vst [vmem:[#allocation196_spill] sm:$0xff] %v15842_v31  ;;  %vm10987_vm5 = vmpackc.low %vm10974_vm9, %vm10962_vm12 }
 0x20a   : > { %v1171_v58 = vpop.f32.mrf.mxu0  ;;  %1844 = vmatmul.mubr.bf16.gmra.mxu1 %v1532_v55  ;;  %v15846_v27 = vsel %vm10987_vm5, 4294967295, %v15845_v27 }
 0x20b   : > { %1300 = vadd.xlane.f32.xlu1 %v1299_v39  ;;  %v1239_v29 = vsel %vm10962_vm12, %v1171_v58, 0.0  ;;  %15847 = vst [vmem:[#allocation198_spill] sm:$0xff] %v15846_v27 }
 0x20c   : > { %v1173_v0 = vpop.f32.mrf.mxu0  ;;  %v1332_v39 = vadd.f32 %v1239_v29, %v1169_v11  ;;  %v11009_v12 = vpop.permute.xlu0 %2074 }
 0x20d   : > { %v1534_v29 = vpack.c.bf16 %v1173_v0, %v1169_v11  ;;  %v11012_v11 = vpop.f32.mrf.mxu1 }
 0x20e   : > { %1333 = vadd.xlane.f32.xlu0 %v1332_v39  ;;  %v1175_v55 = vpop.f32.mrf.mxu0  ;;  %15851 = vst [vmem:[#allocation201_spill] sm:$0xff] %v11012_v11  ;;  %v1237_v39 = vsel %vm10934_vm1, %v1165_v18, 0.0  ;;  %v2048_v11 = vld [vmem:[#allocation2 + $0x30] sm:$0xff] }
 0x20f   : > { %1306 = vadd.xlane.f32.xlu1 %v1305_v16  ;;  %v6974_v59 = vpack.c.bf16 %v1175_v55, %v1171_v58  ;;  %v1317_v58 = vadd.f32 %v1229_v54, %v10857_v48  ;;  %v1233_v16 = vsel %vm10888_vm15, %v10902_v46, 0.0  ;;  %v1241_v54 = vsel %vm10974_vm9, %v1175_v55, 0.0  ;;  %vm15953_vm9 = vmmov %vm15849_vm10 }
 0x210   : > { %v1323_v63 = vadd.f32 %v1233_v16, %v10897_v4  ;;  %v11018_v48 = vpop.permute.xlu0 %2078  ;;  %v1335_v46 = vadd.f32 %v1241_v54, %v1173_v0  ;;  %vm15958_vm1 = vmmov %vm15953_vm9 }
 0x211   : > { %6975 = vmatprep.mubr.msk.bf16.mxu1 %vm10987_vm5, %v6974_v59  ;;  %v1329_v59 = vadd.f32 %v1237_v39, %v1163_v19  ;;  %vm15959_vm15 = vmmov %vm15958_vm1 }
 0x212   : > { %1852 = vmatmul.mubr.bf16.gmra.mxu1 %v1534_v29  ;;  %vm15974_vm13 = vmmov %vm15958_vm1 }
 0x213   : > { %1312 = vadd.xlane.f32.xlu1 %v1311_v13  ;;  %7444 = vmatprep.mubr.msk.bf16.mxu1 %vm15849_vm10, %v10994_v6  ;;  %v11016_v13 = vpop.f32.mrf.mxu1 }
 0x214   : > { %15852 = vst [vmem:[#allocation202_spill] sm:$0xff] %v11016_v13  ;;  %v11024_v4 = vpop.permute.xlu0 %2082 }
 0x215   : > { %v11022_v29 = vpop.f32.mrf.mxu1 }
 0x216   : > { %15853 = vst [vmem:[#allocation203_spill] sm:$0xff] %v11022_v29 }
 0x217   : > { %1318 = vadd.xlane.f32.xlu1 %v1317_v58  ;;  %v11026_v58 = vpop.f32.mrf.mxu1 }
 0x218   : > { %15854 = vst [vmem:[#allocation204_spill] sm:$0xff] %v11026_v58  ;;  %v11030_v18 = vpop.permute.xlu0 %2086 }
 0x219   : > { %v11028_v16 = vpop.f32.mrf.mxu1 }
 0x21a   : > { %15855 = vst [vmem:[#allocation205_spill] sm:$0xff] %v11028_v16  ;;  %v2049_v16 = vld [vmem:[#allocation2 + $0x38] sm:$0xff] }
 0x21b   : > { %1324 = vadd.xlane.f32.xlu1 %v1323_v63  ;;  %v11032_v19 = vpop.f32.mrf.mxu1  ;;  %v11048_v29 = vpack.c.bf16 %v2049_v16, %v2048_v11 }
 0x21c   : > { %15856 = vst [vmem:[#allocation206_spill] sm:$0xff] %v11032_v19  ;;  %v11034_v63 = vpop.permute.xlu0 %2090 }
 0x21d   : > { %v11036_v39 = vpop.f32.mrf.mxu1  ;;  %8082 = vmatprep.subr.bf16.mxu0 %v11048_v29 }
 0x21f   : > { %1330 = vadd.xlane.f32.xlu1 %v1329_v59  ;;  %v11040_v0 = vpop.f32.mrf.mxu1 }
 0x220   : > { %15858 = vst [vmem:[#allocation208_spill] sm:$0xff] %v11040_v0  ;;  %v11042_v59 = vpop.permute.xlu0 %2094 }
 0x223   : > { %1336 = vadd.xlane.f32.xlu1 %v1335_v46  ;;  %v11046_v46 = vpop.f32.mrf.mxu1 }
 0x224   : > { %15860 = vst [vmem:[#allocation210_spill] sm:$0xff] %v11046_v46  ;;  %v11050_v58 = vpop.permute.xlu0 %2114 }
 0x225   : > { %v11056_v13 = vpop.f32.mrf.mxu1 }
 0x226   : > { %15862 = vst [vmem:[#allocation212_spill] sm:$0xff] %v11056_v13 }
 0x227   : > { %v11061_v36 = vpop.f32.mrf.mxu1 }
 0x228   : > { %15864 = vst [vmem:[#allocation214_spill] sm:$0xff] %v11061_v36  ;;  %v11063_v46 = vpop.permute.xlu0 %2118 }
 0x229   : > { %v11068_v16 = vpop.f32.mrf.mxu1 }
 0x22a   : > { %15866 = vst [vmem:[#allocation216_spill] sm:$0xff] %v11068_v16 }
 0x22b   : > { %v11073_v49 = vpop.f32.mrf.mxu1 }
 0x22c   : > { %v11038_v55 = vpop.xlane.xlu1 %2727  ;;  %15868 = vst [vmem:[#allocation218_spill] sm:$0xff] %v11073_v49  ;;  %v11075_v13 = vpop.permute.xlu0 %2122 }
 0x22d   : > { %15857 = vst [vmem:[#allocation207_spill] sm:$0xff] %v11038_v55  ;;  %v11080_v36 = vpop.f32.mrf.mxu1 }
 0x22e   : > { %15870 = vst [vmem:[#allocation220_spill] sm:$0xff] %v11080_v36  ;;  %v15876_v36 = vld [vmem:[#allocation41_spill] sm:$0xff] }
 0x22f   : > { %v11086_v16 = vpop.f32.mrf.mxu1 }
 0x230   : > { %15872 = vst [vmem:[#allocation222_spill] sm:$0xff] %v11086_v16 }
 0x231   : > { %v11094_v49 = vpop.f32.mrf.mxu1 }
 0x232   : > { %15874 = vst [vmem:[#allocation224_spill] sm:$0xff] %v11094_v49  ;;  %v15882_v49 = vld [vmem:[#allocation34_spill] sm:$0xff] }
 0x238   : > { %v11044_v54 = vpop.xlane.xlu1 %2739 }
 0x239   : > { %15859 = vst [vmem:[#allocation209_spill] sm:$0xff] %v11044_v54 }
 0x23b   : > { %3383 = vxpose.xlu0.c.b16.start [1/8] (narrow) %v11050_v58, 32 }
 0x23c   : > { %v11052_v19 = vpop.xlane.xlu1 %2745 }
 0x23d   : > { %15861 = vst [vmem:[#allocation211_spill] sm:$0xff] %v11052_v19 }
 0x23f   : > { %3384 = vxpose.xlu0.c.b16.cont [2/8] (narrow) %v10394_v28, 32 }
 0x240   : > { %v11058_v0 = vpop.xlane.xlu1 %2751 }
 0x241   : > { %15863 = vst [vmem:[#allocation213_spill] sm:$0xff] %v11058_v0 }
 0x243   : > { %3385 = vxpose.xlu0.c.b16.cont [3/8] (narrow) %v11063_v46, 32 }
 0x244   : > { %v11065_v11 = vpop.xlane.xlu1 %2757 }
 0x245   : > { %15865 = vst [vmem:[#allocation215_spill] sm:$0xff] %v11065_v11 }
 0x247   : > { %3386 = vxpose.xlu0.c.b16.cont [4/8] (narrow) %v10396_v2, 32 }
 0x248   : > { %v11070_v22 = vpop.xlane.xlu1 %2763 }
 0x249   : > { %15867 = vst [vmem:[#allocation217_spill] sm:$0xff] %v11070_v22  ;;  %v11088_v22 = vpop.permute.xlu0 %2126 }
 0x24b   : > { %3387 = vxpose.xlu0.c.b16.cont [5/8] (narrow) %v11075_v13, 32 }
 0x24c   : > { %v11077_v14 = vpop.xlane.xlu1 %2769 }
 0x24d   : > { %15869 = vst [vmem:[#allocation219_spill] sm:$0xff] %v11077_v14 }
 0x24f   : > { %3388 = vxpose.xlu0.c.b16.cont [6/8] (narrow) %v10398_v56, 32 }
 0x250   : > { %v11082_v0 = vpop.xlane.xlu1 %2775  ;;  %1972 = vxpose.xlu1.c.b16.start [1/8] (narrow) %v9796_v32, 32 }
 0x251   : > { %15871 = vst [vmem:[#allocation221_spill] sm:$0xff] %v11082_v0 }
 0x253   : > { %3389 = vxpose.xlu0.c.b16.cont [7/8] (narrow) %v11088_v22, 32 }
 0x254   : > { %v11090_v11 = vpop.xlane.xlu1 %2781  ;;  %1973 = vxpose.xlu1.c.b16.cont [2/8] (narrow) %v9754_v52, 32 }
 0x255   : > { %15873 = vst [vmem:[#allocation223_spill] sm:$0xff] %v11090_v11 }
 0x257   : > { %v7304_v0 = vpop.f32.mrf.mxu1  ;;  %3390 = vxpose.xlu0.c.b16.end [8/8] (narrow) %v10403_v3, 32 }
 0x258   : > { %v11096_v14 = vpop.xlane.xlu1 %2787  ;;  %1974 = vxpose.xlu1.c.b16.cont [3/8] (narrow) %v15876_v36, 32 }
 0x259   : > { %15875 = vst [vmem:[#allocation225_spill] sm:$0xff] %v11096_v14  ;;  %v7305_v19 = vpop.f32.mrf.mxu1 }
 0x25a   : > { %v11100_v54 = vadd.f32 %v7305_v19, %v7304_v0 }
 0x25b   : > { %v11105_v11 = vpop.f32.mrf.mxu1 }
 0x25c   : > { %15877 = vst [vmem:[#allocation41_spill] sm:$0xff] %v11100_v54  ;;  %v11102_v16 = vpop.xlane.xlu1 %1249  ;;  %1975 = vxpose.xlu1.c.b16.cont [4/8] (narrow) %v9640_v60, 32  ;;  %15879 = vst [vmem:[#allocation227_spill] sm:$0xff] %v11105_v11  ;;  %v15888_v54 = vld [vmem:[#allocation26_spill] sm:$0xff] }
 0x25d   : > { %15878 = vst [vmem:[#allocation226_spill] sm:$0xff] %v11102_v16  ;;  %v11107_v55 = vpop.f32.mrf.mxu1 }
 0x25e   : > { %15880 = vst [vmem:[#allocation228_spill] sm:$0xff] %v11107_v55 }
 0x25f   : > { %v7310_v14 = vpop.f32.mrf.mxu1 }
 0x260   : > { %v11109_v31 = vpop.xlane.xlu1 %1252  ;;  %1976 = vxpose.xlu1.c.b16.cont [5/8] (narrow) %v15882_v49, 32  ;;  %2130 = vrot.lane.b32.xlu0 %v9796_v32, %s8915_s20 }
 0x261   : > { %15881 = vst [vmem:[#allocation229_spill] sm:$0xff] %v11109_v31  ;;  %v7311_v3 = vpop.f32.mrf.mxu1 }
 0x262   : > { %v11114_v43 = vadd.f32 %v7311_v3, %v7310_v14 }
 0x263   : > { %v11119_v0 = vpop.f32.mrf.mxu1 }
 0x264   : > { %15883 = vst [vmem:[#allocation34_spill] sm:$0xff] %v11114_v43  ;;  %v11116_v19 = vpop.xlane.xlu1 %2793  ;;  %1977 = vxpose.xlu1.c.b16.cont [6/8] (narrow) %v15625_v24, 32  ;;  %15885 = vst [vmem:[#allocation231_spill] sm:$0xff] %v11119_v0  ;;  %2134 = vrot.lane.b32.xlu0 %v15876_v36, %s8915_s20 }
 0x265   : > { %15884 = vst [vmem:[#allocation230_spill] sm:$0xff] %v11116_v19  ;;  %v11123_v55 = vpop.f32.mrf.mxu1 }
 0x266   : > { %15886 = vst [vmem:[#allocation232_spill] sm:$0xff] %v11123_v55 }
 0x267   : > { %v7316_v31 = vpop.f32.mrf.mxu1 }
 0x268   : > { %v11125_v11 = vpop.xlane.xlu1 %1258  ;;  %1978 = vxpose.xlu1.c.b16.cont [7/8] (narrow) %v15888_v54, 32  ;;  %2138 = vrot.lane.b32.xlu0 %v15882_v49, %s8915_s20 }
 0x269   : > { %15887 = vst [vmem:[#allocation233_spill] sm:$0xff] %v11125_v11  ;;  %v7317_v14 = vpop.f32.mrf.mxu1 }
 0x26a   : > { %v11130_v3 = vadd.f32 %v7317_v14, %v7316_v31 }
 0x26b   : > { %v11135_v0 = vpop.f32.mrf.mxu1 }
 0x26c   : > { %15889 = vst [vmem:[#allocation26_spill] sm:$0xff] %v11130_v3  ;;  %v11132_v43 = vpop.xlane.xlu1 %2799  ;;  %1979 = vxpose.xlu1.c.b16.end [8/8] (narrow) %v15627_v33, 32  ;;  %15891 = vst [vmem:[#allocation235_spill] sm:$0xff] %v11135_v0  ;;  %2142 = vrot.lane.b32.xlu0 %v15888_v54, %s8915_s20 }
 0x26d   : > { %15890 = vst [vmem:[#allocation234_spill] sm:$0xff] %v11132_v43  ;;  %v11139_v55 = vpop.f32.mrf.mxu1 }
 0x26e   : > { %15892 = vst [vmem:[#allocation236_spill] sm:$0xff] %v11139_v55 }
 0x26f   : > { %v7322_v16 = vpop.f32.mrf.mxu1 }
 0x270   : > { %v11141_v11 = vpop.xlane.xlu1 %1264  ;;  %2627 = vrot.lane.b32.xlu0 %v9883_v17, %s8915_s20 }
 0x271   : > { %15893 = vst [vmem:[#allocation237_spill] sm:$0xff] %v11141_v11  ;;  %v7323_v19 = vpop.f32.mrf.mxu1 }
 0x272   : > { %v11145_v31 = vadd.f32 %v7323_v19, %v7322_v16 }
 0x273   : > { %v11149_v3 = vpop.f32.mrf.mxu1 }
 0x274   : > { %15894 = vst [vmem:[#allocation238_spill] sm:$0xff] %v11145_v31  ;;  %v11147_v14 = vpop.xlane.xlu1 %2805  ;;  %15896 = vst [vmem:[#allocation240_spill] sm:$0xff] %v11149_v3  ;;  %2635 = vrot.lane.b32.xlu0 %v9930_v23, %s8915_s20 }
 0x275   : > { %15895 = vst [vmem:[#allocation239_spill] sm:$0xff] %v11147_v14  ;;  %v11153_v0 = vpop.f32.mrf.mxu1 }
 0x276   : > { %15897 = vst [vmem:[#allocation241_spill] sm:$0xff] %v11153_v0 }
 0x277   : > { %v7328_v55 = vpop.f32.mrf.mxu1 }
 0x278   : > { %v11155_v43 = vpop.xlane.xlu1 %1270  ;;  %2639 = vrot.lane.b32.xlu0 %v9949_v25, %s8915_s20 }
 0x279   : > { %15898 = vst [vmem:[#allocation242_spill] sm:$0xff] %v11155_v43  ;;  %v7329_v11 = vpop.f32.mrf.mxu1 }
 0x27a   : > { %v11159_v17 = vadd.f32 %v7329_v11, %v7328_v55  ;;  %v11177_v11 = vpop.xlane.xlu0 %1243 }
 0x27b   : > { %v11163_v19 = vpop.f32.mrf.mxu1  ;;  %15906 = vst [vmem:[#allocation250_spill] sm:$0xff] %v11177_v11 }
 0x27c   : > { %15899 = vst [vmem:[#allocation243_spill] sm:$0xff] %v11159_v17  ;;  %v11161_v16 = vpop.xlane.xlu1 %2811  ;;  %15901 = vst [vmem:[#allocation245_spill] sm:$0xff] %v11163_v19  ;;  %2643 = vrot.lane.b32.xlu0 %v9974_v37, %s8915_s20 }
 0x27d   : > { %15900 = vst [vmem:[#allocation244_spill] sm:$0xff] %v11161_v16  ;;  %v11167_v3 = vpop.f32.mrf.mxu1 }
 0x27e   : > { %15902 = vst [vmem:[#allocation246_spill] sm:$0xff] %v11167_v3  ;;  %v11189_v16 = vpop.xlane.xlu0 %1246 }
 0x27f   : > { %v7334_v0 = vpop.f32.mrf.mxu1  ;;  %15910 = vst [vmem:[#allocation254_spill] sm:$0xff] %v11189_v16 }
 0x280   : > { %v11169_v31 = vpop.xlane.xlu1 %1276  ;;  %2647 = vrot.lane.b32.xlu0 %v9994_v51, %s8915_s20 }
 0x281   : > { %15903 = vst [vmem:[#allocation247_spill] sm:$0xff] %v11169_v31  ;;  %v7335_v43 = vpop.f32.mrf.mxu1 }
 0x282   : > { %v11173_v14 = vadd.f32 %v7335_v43, %v7334_v0 }
 0x283   : > { %v11179_v17 = vpop.f32.mrf.mxu1 }
 0x284   : > { %15904 = vst [vmem:[#allocation248_spill] sm:$0xff] %v11173_v14  ;;  %v11175_v55 = vpop.xlane.xlu1 %2817  ;;  %15907 = vst [vmem:[#allocation251_spill] sm:$0xff] %v11179_v17  ;;  %2651 = vrot.lane.b32.xlu0 %v10021_v8, %s8915_s20  ;;  %v11199_v17 = vpop.xlane.xlu0 %1255 }
 0x285   : > { %15905 = vst [vmem:[#allocation249_spill] sm:$0xff] %v11175_v55  ;;  %v11183_v19 = vpop.f32.mrf.mxu1  ;;  %15914 = vst [vmem:[#allocation258_spill] sm:$0xff] %v11199_v17 }
 0x286   : > { %15908 = vst [vmem:[#allocation252_spill] sm:$0xff] %v11183_v19 }
 0x287   : > { %v7340_v31 = vpop.f32.mrf.mxu1 }
 0x288   : > { %v11185_v3 = vpop.xlane.xlu1 %1282  ;;  %2655 = vrot.lane.b32.xlu0 %v10042_v57, %s8915_s20  ;;  %v11207_v16 = vpop.xlane.xlu0 %1261  ;;  %v16129_v57 = vld [vmem:[#allocation169_spill] sm:$0xff] }
 0x289   : > { %15909 = vst [vmem:[#allocation253_spill] sm:$0xff] %v11185_v3  ;;  %v7341_v43 = vpop.f32.mrf.mxu1  ;;  %15917 = vst [vmem:[#allocation261_spill] sm:$0xff] %v11207_v16 }
 0x28a   : > { %v11191_v0 = vadd.f32 %v7341_v43, %v7340_v31 }
 0x28b   : > { %v11195_v55 = vpop.f32.mrf.mxu1 }
 0x28c   : > { %15911 = vst [vmem:[#allocation255_spill] sm:$0xff] %v11191_v0  ;;  %v11193_v14 = vpop.xlane.xlu1 %1288  ;;  %15913 = vst [vmem:[#allocation257_spill] sm:$0xff] %v11195_v55  ;;  %2659 = vrot.lane.b32.xlu0 %v10070_v47, %s8915_s20  ;;  %v15981_v47 = vld [vmem:[#allocation122_spill] sm:$0xff] }
 0x28d   : > { %15912 = vst [vmem:[#allocation256_spill] sm:$0xff] %v11193_v14  ;;  %v11201_v19 = vpop.f32.mrf.mxu1  ;;  %v11217_v14 = vpop.xlane.xlu0 %1267 }
 0x28e   : > { %15915 = vst [vmem:[#allocation259_spill] sm:$0xff] %v11201_v19  ;;  %15921 = vst [vmem:[#allocation265_spill] sm:$0xff] %v11217_v14 }
 0x28f   : > { %v7346_v11 = vpop.f32.mrf.mxu1 }
 0x290   : > { %v11203_v3 = vpop.xlane.xlu1 %1294  ;;  %2663 = vrot.lane.b32.xlu0 %v10099_v44, %s8915_s20 }
 0x291   : > { %15916 = vst [vmem:[#allocation260_spill] sm:$0xff] %v11203_v3  ;;  %v7347_v31 = vpop.f32.mrf.mxu1  ;;  %v11225_v16 = vpop.xlane.xlu0 %1273 }
 0x292   : > { %v11209_v43 = vadd.f32 %v7347_v31, %v7346_v11  ;;  %15924 = vst [vmem:[#allocation268_spill] sm:$0xff] %v11225_v16 }
 0x293   : > { %v11213_v55 = vpop.f32.mrf.mxu1 }
 0x294   : > { %15918 = vst [vmem:[#allocation262_spill] sm:$0xff] %v11209_v43  ;;  %v11211_v0 = vpop.xlane.xlu1 %1300  ;;  %15920 = vst [vmem:[#allocation264_spill] sm:$0xff] %v11213_v55  ;;  %2667 = vrot.lane.b32.xlu0 %v10124_v7, %s8915_s20 }
 0x295   : > { %15919 = vst [vmem:[#allocation263_spill] sm:$0xff] %v11211_v0  ;;  %v11221_v3 = vpop.f32.mrf.mxu1  ;;  %v11229_v55 = vpop.xlane.xlu0 %1279 }
 0x296   : > { %15923 = vst [vmem:[#allocation267_spill] sm:$0xff] %v11221_v3  ;;  %15925 = vst [vmem:[#allocation269_spill] sm:$0xff] %v11229_v55 }
 0x298   : > { %v11219_v19 = vpop.xlane.xlu1 %1306  ;;  %2671 = vrot.lane.b32.xlu0 %v10149_v26, %s8915_s20 }
 0x299   : > { %15922 = vst [vmem:[#allocation266_spill] sm:$0xff] %v11219_v19  ;;  %v11241_v16 = vpop.xlane.xlu0 %1285 }
 0x29a   : > { %v7352_v31 = vpop.f32.mrf.mxu1  ;;  %15930 = vst [vmem:[#allocation274_spill] sm:$0xff] %v11241_v16 }
 0x29c   : > { %v1313_v11 = vpop.xlane.xlu1 %1312  ;;  %v7353_v43 = vpop.f32.mrf.mxu1  ;;  %2675 = vrot.lane.b32.xlu0 %v10174_v35, %s8915_s20 }
 0x29d   : > { %v11231_v0 = vadd.f32 %v7353_v43, %v7352_v31  ;;  %v11247_v43 = vpop.xlane.xlu0 %1291 }
 0x29e   : > { %v11235_v19 = vpop.f32.mrf.mxu1  ;;  %15932 = vst [vmem:[#allocation276_spill] sm:$0xff] %v11247_v43 }
 0x29f   : > { %15926 = vst [vmem:[#allocation270_spill] sm:$0xff] %v11231_v0  ;;  %15928 = vst [vmem:[#allocation272_spill] sm:$0xff] %v11235_v19 }
 0x2a0   : > { %v11233_v14 = vpop.xlane.xlu1 %1318  ;;  %v11237_v3 = vpop.f32.mrf.mxu1  ;;  %2679 = vrot.lane.b32.xlu0 %v10197_v20, %s8915_s20 }
 0x2a1   : > { %15927 = vst [vmem:[#allocation271_spill] sm:$0xff] %v11233_v14  ;;  %15929 = vst [vmem:[#allocation273_spill] sm:$0xff] %v11237_v3  ;;  %v1495_v3 = vadd.f32 %v10336_v1, %v1313_v11 }
 0x2a2   : > { %v7358_v26 = vpop.f32.mrf.mxu1 }
 0x2a3   : > { %v1883_v55 = vadd.f32 1e-06, %v1495_v3 }
 0x2a4   : > { %v11243_v17 = vpop.xlane.xlu1 %1324  ;;  %v7359_v7 = vpop.f32.mrf.mxu1  ;;  %2683 = vrot.lane.b32.xlu0 %v10219_v53, %s8915_s20 }
 0x2a5   : > { %15931 = vst [vmem:[#allocation275_spill] sm:$0xff] %v11243_v17  ;;  %v11249_v31 = vadd.f32 %v7359_v7, %v7358_v26  ;;  %v11260_v17 = vpop.xlane.xlu0 %1297  ;;  %v2046_v26 = vld [vmem:[#allocation2 + $0x20] sm:$0xff]  ;;  %8451 = vrcp.f32 %v1883_v55 }
 0x2a6   : > { %v11253_v19 = vpop.f32.mrf.mxu1  ;;  %15937 = vst [vmem:[#allocation281_spill] sm:$0xff] %v11260_v17 }
 0x2a7   : > { %15933 = vst [vmem:[#allocation277_spill] sm:$0xff] %v11249_v31  ;;  %15935 = vst [vmem:[#allocation279_spill] sm:$0xff] %v11253_v19  ;;  %v2047_v31 = vld [vmem:[#allocation2 + $0x28] sm:$0xff] }
 0x2a8   : > { %v11251_v0 = vpop.xlane.xlu1 %1330  ;;  %v11256_v14 = vpop.f32.mrf.mxu1  ;;  %2687 = vrot.lane.b32.xlu0 %v10243_v41, %s8915_s20  ;;  %v15975_v41 = vld [vmem:[#allocation127_spill] sm:$0xff] }
 0x2a9   : > { %15934 = vst [vmem:[#allocation278_spill] sm:$0xff] %v11251_v0  ;;  %15936 = vst [vmem:[#allocation280_spill] sm:$0xff] %v11256_v14  ;;  %v11266_v0 = vpop.xlane.xlu0 %1303  ;;  %v11272_v14 = vpack.c.bf16 %v2047_v31, %v2046_v26 }
 0x2aa   : > { %v7364_v16 = vpop.f32.mrf.mxu1  ;;  %15940 = vst [vmem:[#allocation284_spill] sm:$0xff] %v11266_v0 }
 0x2ac   : > { %v11262_v53 = vpop.xlane.xlu1 %1336  ;;  %v7365_v43 = vpop.f32.mrf.mxu1 }
 0x2ad   : > { %15938 = vst [vmem:[#allocation282_spill] sm:$0xff] %v11262_v53  ;;  %v11264_v7 = vadd.f32 %v7365_v43, %v7364_v16  ;;  %v11274_v17 = vpop.xlane.xlu0 %1309 }
 0x2ae   : > { %v11268_v19 = vpop.f32.mrf.mxu1  ;;  %15943 = vst [vmem:[#allocation287_spill] sm:$0xff] %v11274_v17 }
 0x2af   : > { %15939 = vst [vmem:[#allocation283_spill] sm:$0xff] %v11264_v7  ;;  %15941 = vst [vmem:[#allocation285_spill] sm:$0xff] %v11268_v19 }
 0x2b0   : > { %v11270_v11 = vpop.f32.mrf.mxu1 }
 0x2b1   : > { %15942 = vst [vmem:[#allocation286_spill] sm:$0xff] %v11270_v11  ;;  %v11281_v55 = vpop.xlane.xlu0 %1315 }
 0x2b2   : > { %v1980_v1 = vpop.trf.xlu1  ;;  %v7370_v3 = vpop.f32.mrf.mxu1  ;;  %15945 = vst [vmem:[#allocation289_spill] sm:$0xff] %v11281_v55 }
 0x2b3   : > { %2020 = vmatprep.mubr.bf16.mxu0 %v1980_v1 }
 0x2b4   : > { %2021 = vmatmul.mubr.bf16.vlgmr.msra.gmra.mxu0 %v10491_v38  ;;  %v7371_v16 = vpop.f32.mrf.mxu1 }
 0x2b5   : > { %8083 = vmatpush3.bf16.msra.mxu0 %v11048_v29  ;;  %v11279_v7 = vadd.f32 %v7371_v16, %v7370_v3  ;;  %v11284_v1 = vpop.xlane.xlu0 %1321  ;;  %v8452_v3 = vpop.eup %8451 }
 0x2b6   : > { %v1981_v43 = vpop.trf.xlu1  ;;  %8084 = vmatprep.subr.bf16.mxu0 %v11272_v14  ;;  %v7373_v11 = vpop.f32.mrf.mxu1  ;;  %15946 = vst [vmem:[#allocation290_spill] sm:$0xff] %v11284_v1  ;;  %v15971_v1 = vld [vmem:[#allocation118_spill] sm:$0xff] }
 0x2b7   : > { %15944 = vst [vmem:[#allocation288_spill] sm:$0xff] %v11279_v7  ;;  %2028 = vmatprep.mubr.bf16.mxu0 %v1981_v43 }
 0x2b8   : > { %v7374_v31 = vpop.f32.mrf.mxu1 }
 0x2b9   : > { %8085 = vmatpush3.bf16.msra.mxu0 %v11272_v14  ;;  %v7375_v26 = vadd.f32 %v7374_v31, %v7373_v11  ;;  %v11294_v53 = vpop.xlane.xlu0 %1327 }
 0x2ba   : > { %v7376_v38 = vpop.f32.mrf.mxu1  ;;  %15949 = vst [vmem:[#allocation293_spill] sm:$0xff] %v11294_v53 }
 0x2bb   : > { %v1825_v19 = vadd.f32 %v11036_v39, %v7375_v26 }
 0x2bc   : > { %2029 = vmatmul.mubr.bf16.gmra.mxu0 %v10520_v62  ;;  %v7377_v16 = vpop.f32.mrf.mxu1 }
 0x2bd   : > { %8086 = vmatprep.mubr.msk.bf16.mxu0 %vm15849_vm10, %v10994_v6  ;;  %v11290_v43 = vmul.f32 %v8452_v3, %v1825_v19  ;;  %v11292_v7 = vadd.f32 %v7377_v16, %v7376_v38  ;;  %v11300_v31 = vpop.xlane.xlu0 %1333  ;;  %vm15954_vm10 = vmmov %vm15953_vm9 }
 0x2be   : > { %v11296_v55 = vpop.f32.mrf.mxu1  ;;  %15952 = vst [vmem:[#allocation296_spill] sm:$0xff] %v11300_v31 }
 0x2bf   : > { %15947 = vst [vmem:[#allocation291_spill] sm:$0xff] %v11290_v43  ;;  %15948 = vst [vmem:[#allocation292_spill] sm:$0xff] %v11292_v7 }
 0x2c0   : > { %15950 = vst [vmem:[#allocation294_spill] sm:$0xff] %v11296_v55  ;;  %v11298_v11 = vpop.f32.mrf.mxu1 }
 0x2c1   : > { %15951 = vst [vmem:[#allocation295_spill] sm:$0xff] %v11298_v11  ;;  %v11310_v38 = vpop.trf.xlu0 }
 0x2c2   : > { %v7382_v62 = vpop.f32.mrf.mxu1 }
 0x2c4   : > { %8087 = vmatmul.mubr.msk.bf16.vlgmr.msra.gmra.mxu0 %vm15953_vm9, %v10370_v61  ;;  %v7383_v39 = vpop.f32.mrf.mxu1  ;;  %vm15964_vm9 = vmmov %vm15958_vm1 }
 0x2c5   : > { %8090 = vmatprep.mubr.msk.bf16.mxu0 %vm15954_vm10, %v10374_v5  ;;  %v11306_v19 = vadd.f32 %v7383_v39, %v7382_v62  ;;  %v11318_v31 = vpop.trf.xlu0  ;;  %vm15970_vm10 = vmmov %vm15958_vm1 }
 0x2c6   : > { %v11308_v26 = vpop.f32.mrf.mxu1 }
 0x2c7   : > { %15955 = vst [vmem:[#allocation297_spill] sm:$0xff] %v11306_v19  ;;  %15956 = vst [vmem:[#allocation298_spill] sm:$0xff] %v11308_v26  ;;  %v15963_v19 = vld [vmem:[#allocation110_spill] sm:$0xff] }
 0x2c8   : > { %v11312_v3 = vpop.f32.mrf.mxu1 }
 0x2c9   : > { %15957 = vst [vmem:[#allocation299_spill] sm:$0xff] %v11312_v3 }
 0x2ca   : > { %v7388_v16 = vpop.f32.mrf.mxu1 }
 0x2cc   : > { %8091 = vmatmul.mubr.msk.bf16.gmra.mxu0 %vm15958_vm1, %v10378_v10  ;;  %v7389_v7 = vpop.f32.mrf.mxu1 }
 0x2cd   : > { %8094 = vmatprep.mubr.msk.bf16.mxu0 %vm15959_vm15, %v11009_v12  ;;  %v11320_v53 = vadd.f32 %v7389_v7, %v7388_v16  ;;  %v15966_v16 = vld [vmem:[#allocation116_spill] sm:$0xff]  ;;  %vm15968_vm15 = vmmov %vm15958_vm1 }
 0x2ce   : > { %v11322_v62 = vpop.f32.mrf.mxu1 }
 0x2cf   : > { %15960 = vst [vmem:[#allocation300_spill] sm:$0xff] %v11320_v53  ;;  %15961 = vst [vmem:[#allocation301_spill] sm:$0xff] %v11322_v62  ;;  %v15967_v53 = vld [vmem:[#allocation111_spill] sm:$0xff]  ;;  %v15969_v62 = vmov 0.0|0.0  }
 0x2d0   : > { %v11324_v39 = vpop.f32.mrf.mxu1 }
 0x2d1   : > { %15962 = vst [vmem:[#allocation302_spill] sm:$0xff] %v11324_v39 }
 0x2d2   : > { %v11328_v43 = vpop.permute.xlu0 %2130  ;;  %v7394_v3 = vpop.f32.mrf.mxu1 }
 0x2d3   : > { %3399 = vxpose.xlu1.c.b16.start [1/8] (narrow) %v11328_v43, 32 }
 0x2d4   : > { %8095 = vmatmul.mubr.msk.bf16.gmra.mxu0 %vm15964_vm9, %v15963_v19  ;;  %v7395_v26 = vpop.f32.mrf.mxu1  ;;  %vm15972_vm9 = vmmov %vm15958_vm1 }
 0x2d5   : > { %8098 = vmatprep.mubr.msk.bf16.mxu0 %vm15958_vm1, %v11018_v48  ;;  %v11333_v11 = vadd.f32 %v7395_v26, %v7394_v3  ;;  %v2213_v17 = vsel %vm15972_vm9, %v11088_v22, 0  ;;  %v15973_v26 = vld [vmem:[#allocation120_spill] sm:$0xff]  ;;  %vm15978_vm9 = vmmov %vm15958_vm1  ;;  %v15979_v22 = vld [vmem:[#allocation130_spill] sm:$0xff] }
 0x2d6   : > { %v2135_v7 = vpop.permute.xlu0 %2134  ;;  %v2732_v44 = vsel %vm15958_vm1, %v15979_v22, 0.0  ;;  %v15992_v22 = vld [vmem:[#allocation78_spill] sm:$0xff] }
 0x2d7   : > { %15965 = vst [vmem:[#allocation110_spill] sm:$0xff] %v11333_v11  ;;  %3400 = vxpose.xlu1.c.b16.cont [2/8] (narrow) %v15966_v16, 32 }
 0x2da   : > { %v2139_v39 = vpop.permute.xlu0 %2138 }
 0x2db   : > { %3401 = vxpose.xlu1.c.b16.cont [3/8] (narrow) %v2135_v7, 32 }
 0x2dc   : > { %8099 = vmatmul.mubr.msk.bf16.gmra.mxu0 %vm15968_vm15, %v15967_v53  ;;  %vm15976_vm15 = vmmov %vm15958_vm1 }
 0x2dd   : > { %3142 = vmatprep.mubr.bf16.mxu0 %v15969_v62  ;;  %v2729_v20 = vsel %vm15976_vm15, %v15975_v41, 0.0  ;;  %vm15982_vm15 = vmmov %vm15958_vm1 }
 0x2de   : > { %v2143_v55 = vpop.permute.xlu0 %2142  ;;  %v2207_v41 = vsel %vm15982_vm15, %v11075_v13, 0  ;;  %v15987_v13 = vld [vmem:[#allocation89_spill] sm:$0xff]  ;;  %vm15988_vm15 = vmmov %vm15958_vm1 }
 0x2df   : > { %8203 = vmatprep.subr.msk.bf16.mxu1 %vm15970_vm10, %v2143_v55  ;;  %3402 = vxpose.xlu1.c.b16.cont [4/8] (narrow) %v15971_v1, 32  ;;  %vm15977_vm10 = vmmov %vm15958_vm1 }
 0x2e0   : > { %7431 = vmatpush3.bf16.xpose.msra.mxu1 %v2213_v17  ;;  %v2210_v35 = vsel %vm15977_vm10, %v10398_v56, 0  ;;  %vm15983_vm10 = vmmov %vm15958_vm1 }
 0x2e1   : > { %8204 = vmatprep.subr.msk.bf16.mxu1 %vm15958_vm1, %v15973_v26 }
 0x2e2   : > { %v2628_v3 = vpop.permute.xlu0 %2627 }
 0x2e3   : > { %3403 = vxpose.xlu1.c.b16.cont [5/8] (narrow) %v2139_v39, 32  ;;  %v2723_v11 = vsel %vm15974_vm13, %v2628_v3, 0.0  ;;  %vm15980_vm13 = vmmov %vm15958_vm1 }
 0x2e4   : > { %2724 = vadd.xlane.f32.xlu0 %v2723_v11 }
 0x2e6   : > { %v2636_v0 = vpop.permute.xlu0 %2635 }
 0x2e7   : > { %3404 = vxpose.xlu1.c.b16.cont [6/8] (narrow) %v15973_v26, 32  ;;  %v2735_v11 = vsel %vm15980_vm13, %v2636_v0, 0.0  ;;  %vm15986_vm13 = vmmov %vm15958_vm1 }
 0x2e8   : > { %7433 = vmatpush3.bf16.xpose.msra.mxu1 %v2210_v35  ;;  %2730 = vadd.xlane.f32.xlu0 %v2729_v20  ;;  %v15985_v20 = vld [vmem:[#allocation92_spill] sm:$0xff] }
 0x2e9   : > { %8205 = vmatprep.subr.msk.bf16.mxu1 %vm15978_vm9, %v2139_v39  ;;  %vm15984_vm9 = vmmov %vm15958_vm1  ;;  %v15990_v39 = vld [vmem:[#allocation85_spill] sm:$0xff] }
 0x2ea   : > { %v2640_v17 = vpop.permute.xlu0 %2639 }
 0x2eb   : > { %3405 = vxpose.xlu1.c.b16.cont [7/8] (narrow) %v2143_v55, 32  ;;  %v2741_v56 = vsel %vm15984_vm9, %v2640_v17, 0.0  ;;  %vm15991_vm9 = vmmov %vm15958_vm1 }
 0x2ec   : > { %2733 = vadd.xlane.f32.xlu0 %v2732_v44 }
 0x2ee   : > { %v2644_v3 = vpop.permute.xlu0 %2643 }
 0x2ef   : > { %3406 = vxpose.xlu1.c.b16.end [8/8] (narrow) %v15981_v47, 32  ;;  %v2747_v44 = vsel %vm15958_vm1, %v2644_v3, 0.0  ;;  %v2204_v47 = vsel %vm15986_vm13, %v10396_v2, 0  ;;  %v2201_v2 = vsel %vm15958_vm1, %v11063_v46, 0  ;;  %vm15993_vm13 = vmmov %vm15958_vm1  ;;  %v15995_v3 = vld [vmem:[#allocation70_spill] sm:$0xff] }
 0x2f0   : > { %7435 = vmatpush3.bf16.xpose.msra.mxu1 %v2207_v41  ;;  %2736 = vadd.xlane.f32.xlu0 %v2735_v11 }
 0x2f1   : > { %8206 = vmatprep.subr.msk.bf16.mxu1 %vm15983_vm10, %v15971_v1  ;;  %vm15989_vm10 = vmmov %vm15958_vm1 }
 0x2f2   : > { %v2648_v35 = vpop.permute.xlu0 %2647 }
 0x2f3   : > { %3064 = vrot.lane.b32.xlu1 %v15985_v20, %s8915_s20  ;;  %v2753_v55 = vsel %vm15989_vm10, %v2648_v35, 0.0  ;;  %vm15996_vm10 = vmmov %vm15958_vm1  ;;  %v15998_v35 = vld [vmem:[#allocation91_spill] sm:$0xff] }
 0x2f4   : > { %2742 = vadd.xlane.f32.xlu0 %v2741_v56 }
 0x2f6   : > { %v2652_v0 = vpop.permute.xlu0 %2651 }
 0x2f7   : > { %3066 = vrot.lane.b32.xlu1 %v15987_v13, %s8915_s20  ;;  %v2759_v26 = vsel %vm15991_vm9, %v2652_v0, 0.0  ;;  %vm15997_vm9 = vmmov %vm15958_vm1  ;;  %v16000_v0 = vld [vmem:[#allocation84_spill] sm:$0xff] }
 0x2f8   : > { %7437 = vmatpush3.bf16.xpose.msra.mxu1 %v2204_v47  ;;  %2748 = vadd.xlane.f32.xlu0 %v2747_v44  ;;  %v2198_v46 = vsel %vm15997_vm9, %v10394_v28, 0  ;;  %vm16004_vm9 = vmmov %vm15958_vm1 }
 0x2f9   : > { %8207 = vmatprep.subr.msk.bf16.mxu1 %vm15988_vm15, %v2135_v7  ;;  %vm15994_vm15 = vmmov %vm15958_vm1 }
 0x2fa   : > { %v2656_v1 = vpop.permute.xlu0 %2655 }
 0x2fb   : > { %3068 = vrot.lane.b32.xlu1 %v15990_v39, %s8915_s20  ;;  %v2765_v7 = vsel %vm15994_vm15, %v2656_v1, 0.0  ;;  %vm16001_vm15 = vmmov %vm15958_vm1  ;;  %v16003_v1 = vld [vmem:[#allocation77_spill] sm:$0xff] }
 0x2fc   : > { %2754 = vadd.xlane.f32.xlu0 %v2753_v55 }
 0x2fe   : > { %v2660_v17 = vpop.permute.xlu0 %2659 }
 0x2ff   : > { %3072 = vrot.lane.b32.xlu1 %v15992_v22, %s8915_s20  ;;  %v2771_v41 = vsel %vm15996_vm10, %v2660_v17, 0.0  ;;  %vm16002_vm10 = vmmov %vm15958_vm1  ;;  %v16005_v17 = vld [vmem:[#allocation68_spill] sm:$0xff] }
 0x300   : > { %7439 = vmatpush3.bf16.xpose.msra.mxu1 %v2201_v2  ;;  %2760 = vadd.xlane.f32.xlu0 %v2759_v26  ;;  %v2195_v28 = vsel %vm16002_vm10, %v11050_v58, 0  ;;  %vm16008_vm10 = vmmov %vm15958_vm1 }
 0x301   : > { %8208 = vmatprep.subr.msk.bf16.mxu1 %vm15993_vm13, %v15966_v16  ;;  %vm15999_vm13 = vmmov %vm15958_vm1 }
 0x302   : > { %v2664_v11 = vpop.permute.xlu0 %2663 }
 0x303   : > { %3076 = vrot.lane.b32.xlu1 %v15995_v3, %s8915_s20  ;;  %v2777_v16 = vsel %vm15999_vm13, %v2664_v11, 0.0  ;;  %vm16006_vm13 = vmmov %vm15958_vm1  ;;  %v8707_v3 = vld [vmem:[#allocation2] sm:$0xff] }
 0x304   : > { %2766 = vadd.xlane.f32.xlu0 %v2765_v7 }
 0x306   : > { %v2668_v56 = vpop.permute.xlu0 %2667 }
 0x307   : > { %3080 = vrot.lane.b32.xlu1 %v15998_v35, %s8915_s20  ;;  %v2783_v47 = vsel %vm16001_vm15, %v2668_v56, 0.0  ;;  %vm16007_vm15 = vmmov %vm15958_vm1  ;;  %v16013_v56 = vld [vmem:[#allocation53_spill] sm:$0xff] }
 0x308   : > { %7441 = vmatpush3.bf16.xpose.msra.mxu1 %v2198_v46  ;;  %2772 = vadd.xlane.f32.xlu0 %v2771_v41  ;;  %v16019_v46 = vld [vmem:[#allocation63_spill] sm:$0xff] }
 0x309   : > { %8209 = vmatprep.subr.msk.bf16.mxu1 %vm15958_vm1, %v11328_v43 }
 0x30a   : > { %v2672_v44 = vpop.permute.xlu0 %2671 }
 0x30b   : > { %3084 = vrot.lane.b32.xlu1 %v16000_v0, %s8915_s20  ;;  %v2789_v43 = vsel %vm16004_vm9, %v2672_v44, 0.0  ;;  %vm16009_vm9 = vmmov %vm15958_vm1  ;;  %v16026_v44 = vld [vmem:[#allocation75_spill] sm:$0xff] }
 0x30c   : > { %2778 = vadd.xlane.f32.xlu0 %v2777_v16  ;;  %v16023_v16 = vld [vmem:[#allocation96_spill] sm:$0xff] }
 0x30e   : > { %v2676_v55 = vpop.permute.xlu0 %2675 }
 0x30f   : > { %3088 = vrot.lane.b32.xlu1 %v16003_v1, %s8915_s20  ;;  %v2795_v2 = vsel %vm15958_vm1, %v2676_v55, 0.0  ;;  %v16034_v55 = vld [vmem:[#allocation73_spill] sm:$0xff] }
 0x310   : > { %7443 = vmatpush3.bf16.xpose.msra.mxu1 %v2195_v28  ;;  %2784 = vadd.xlane.f32.xlu0 %v2783_v47  ;;  %v16030_v47 = vld [vmem:[#allocation88_spill] sm:$0xff] }
 0x311   : > { %8190 = vmatprep.subr.bf16.mxu1 %v11048_v29  ;;  %v16036_v28 = vld [vmem:[#allocation112_spill] sm:$0xff] }
 0x312   : > { %v2680_v26 = vpop.permute.xlu0 %2679 }
 0x313   : > { %3092 = vrot.lane.b32.xlu1 %v16005_v17, %s8915_s20  ;;  %v2801_v7 = vsel %vm16008_vm10, %v2680_v26, 0.0  ;;  %vm16014_vm10 = vmmov %vm15958_vm1  ;;  %v16038_v26 = vld [vmem:[#allocation51_spill] sm:$0xff] }
 0x314   : > { %2790 = vadd.xlane.f32.xlu0 %v2789_v43 }
 0x316   : > { %v2684_v58 = vpop.permute.xlu0 %2683 }
 0x317   : > { %7445 = vmatmul.mubr.msk.bf16.vlgmr.msra.gmra.mxu1 %vm16006_vm13, %v10994_v6  ;;  %v2807_v11 = vsel %vm16009_vm9, %v2684_v58, 0.0  ;;  %vm16010_vm13 = vmmov %vm15958_vm1  ;;  %v16042_v58 = vld [vmem:[#allocation59_spill] sm:$0xff] }
 0x318   : > { %2796 = vadd.xlane.f32.xlu0 %v2795_v2  ;;  %7446 = vmatprep.mubr.msk.bf16.mxu1 %vm16007_vm15, %v10370_v61  ;;  %vm16011_vm15 = vmmov %vm15958_vm1 }
 0x319   : > { %8192 = vmatpush3.bf16.msra.mxu1 %v11048_v29  ;;  %v16012_v29 = vld [vmem:[#allocation50_spill] sm:$0xff]  ;;  %vm16015_vm9 = vmmov %vm15958_vm1 }
 0x31a   : > { %8191 = vmatprep.subr.bf16.mxu1 %v11272_v14  ;;  %v2688_v41 = vpop.permute.xlu0 %2687  ;;  %3479 = vrot.lane.b32.xlu1 %v16012_v29, %s8917_s27  ;;  %v8709_v29 = vld [vmem:[#allocation2 + $0x10] sm:$0xff] }
 0x31b   : > { %v2813_v6 = vsel %vm16011_vm15, %v2688_v41, 0.0  ;;  %vm16021_vm15 = vmmov %vm15958_vm1  ;;  %v16045_v41 = vld [vmem:[#allocation113_spill] sm:$0xff] }
 0x31c   : > { %2802 = vadd.xlane.f32.xlu0 %v2801_v7 }
 0x31d   : > { %8193 = vmatpush3.bf16.msra.mxu1 %v11272_v14  ;;  %v16017_v14 = vld [vmem:[#allocation61_spill] sm:$0xff] }
 0x31e   : > { %3483 = vrot.lane.b32.xlu1 %v16013_v56, %s8917_s27 }
 0x31f   : > { %7447 = vmatmul.mubr.msk.bf16.gmra.mxu1 %vm15958_vm1, %v10370_v61  ;;  %v16016_v61 = vld [vmem:[#allocation58_spill] sm:$0xff] }
 0x320   : > { %2808 = vadd.xlane.f32.xlu0 %v2807_v11  ;;  %7448 = vmatprep.mubr.msk.bf16.mxu1 %vm16010_vm13, %v10374_v5  ;;  %vm16018_vm13 = vmmov %vm15958_vm1  ;;  %v16043_v11 = vld [vmem:[#allocation64_spill] sm:$0xff] }
 0x322   : > { %3487 = vrot.lane.b32.xlu1 %v16016_v61, %s8917_s27 }
 0x324   : > { %2814 = vadd.xlane.f32.xlu0 %v2813_v6 }
 0x326   : > { %3491 = vrot.lane.b32.xlu1 %v16017_v14, %s8917_s27 }
 0x327   : > { %7449 = vmatmul.mubr.msk.bf16.gmra.mxu1 %vm16014_vm10, %v10374_v5  ;;  %v16020_v5 = vld [vmem:[#allocation66_spill] sm:$0xff]  ;;  %vm16022_vm10 = vmmov %vm15958_vm1 }
 0x328   : > { %7450 = vmatprep.mubr.msk.bf16.mxu1 %vm16015_vm9, %v10378_v10  ;;  %vm16025_vm9 = vmmov %vm15958_vm1 }
 0x32a   : > { %3495 = vrot.lane.b32.xlu1 %v16019_v46, %s8917_s27 }
 0x32e   : > { %3499 = vrot.lane.b32.xlu1 %v16020_v5, %s8917_s27 }
 0x32f   : > { %7451 = vmatmul.mubr.msk.bf16.gmra.mxu1 %vm15958_vm1, %v10378_v10  ;;  %v16024_v10 = vld [vmem:[#allocation82_spill] sm:$0xff] }
 0x330   : > { %7452 = vmatprep.mubr.msk.bf16.mxu1 %vm16018_vm13, %v11009_v12  ;;  %vm16028_vm13 = vmmov %vm15958_vm1 }
 0x335   : > { %v11472_v43 = vpop.trf.xlu1 }
 0x337   : > { %7453 = vmatmul.mubr.msk.bf16.gmra.mxu1 %vm16021_vm15, %v11009_v12  ;;  %v16027_v12 = vld [vmem:[#allocation94_spill] sm:$0xff]  ;;  %vm16029_vm15 = vmmov %vm15958_vm1 }
 0x338   : > { %7454 = vmatprep.mubr.msk.bf16.mxu1 %vm16022_vm10, %v15963_v19  ;;  %vm16032_vm10 = vmmov %vm15958_vm1 }
 0x339   : > { %v11480_v2 = vpop.trf.xlu1 }
 0x33a   : > { %3062 = vrot.lane.b32.xlu0 %v16023_v16, %s8915_s20 }
 0x33e   : > { %3070 = vrot.lane.b32.xlu0 %v16024_v10, %s8915_s20 }
 0x33f   : > { %7455 = vmatmul.mubr.msk.bf16.gmra.mxu1 %vm16025_vm9, %v15963_v19  ;;  %v16031_v19 = vld [vmem:[#allocation81_spill] sm:$0xff]  ;;  %vm16033_vm9 = vmmov %vm15958_vm1 }
 0x340   : > { %7456 = vmatprep.mubr.msk.bf16.mxu1 %vm15958_vm1, %v11018_v48 }
 0x342   : > { %3074 = vrot.lane.b32.xlu0 %v16026_v44, %s8915_s20 }
 0x346   : > { %3078 = vrot.lane.b32.xlu0 %v16027_v12, %s8915_s20 }
 0x347   : > { %7457 = vmatmul.mubr.msk.bf16.gmra.mxu1 %vm16028_vm13, %v11018_v48  ;;  %v16035_v48 = vld [vmem:[#allocation23_spill] sm:$0xff]  ;;  %vm16037_vm13 = vmmov %vm15958_vm1 }
 0x348   : > { %7458 = vmatprep.mubr.msk.bf16.mxu1 %vm16029_vm15, %v15967_v53  ;;  %vm16040_vm15 = vmmov %vm15958_vm1 }
 0x34a   : > { %3082 = vrot.lane.b32.xlu0 %v16030_v47, %s8915_s20 }
 0x34e   : > { %3086 = vrot.lane.b32.xlu0 %v16031_v19, %s8915_s20 }
 0x34f   : > { %7459 = vmatmul.mubr.msk.bf16.gmra.mxu1 %vm16032_vm10, %v15967_v53  ;;  %v16039_v53 = vld [vmem:[#allocation55_spill] sm:$0xff]  ;;  %vm16041_vm10 = vmmov %vm15958_vm1 }
 0x350   : > { %7460 = vmatprep.mubr.msk.bf16.mxu1 %vm16033_vm9, %v11024_v4  ;;  %vm16044_vm9 = vmmov %vm15958_vm1 }
 0x352   : > { %3090 = vrot.lane.b32.xlu0 %v16034_v55, %s8915_s20  ;;  %v16125_v55 = vld [vmem:[#allocation36_spill] sm:$0xff] }
 0x356   : > { %3477 = vrot.lane.b32.xlu0 %v16035_v48, %s8917_s27 }
 0x357   : > { %7461 = vmatmul.mubr.msk.bf16.gmra.mxu1 %vm15958_vm1, %v11024_v4 }
 0x358   : > { %7462 = vmatprep.mubr.msk.bf16.mxu1 %vm16037_vm13, %v16036_v28  ;;  %vm16049_vm13 = vmmov %vm15958_vm1 }
 0x35a   : > { %3481 = vrot.lane.b32.xlu0 %v16038_v26, %s8917_s27 }
 0x35e   : > { %3485 = vrot.lane.b32.xlu0 %v16039_v53, %s8917_s27  ;;  %v16046_v53 = vld [vmem:[#allocation71_spill] sm:$0xff] }
 0x35f   : > { %7463 = vmatmul.mubr.msk.bf16.gmra.mxu1 %vm16040_vm15, %v16036_v28  ;;  %vm16050_vm15 = vmmov %vm15958_vm1 }
 0x360   : > { %7464 = vmatprep.mubr.msk.bf16.mxu1 %vm16041_vm10, %v11030_v18  ;;  %vm16053_vm10 = vmmov %vm15958_vm1 }
 0x362   : > { %3489 = vrot.lane.b32.xlu0 %v16042_v58, %s8917_s27  ;;  %v16048_v58 = vld [vmem:[#allocation79_spill] sm:$0xff] }
 0x365   : > { %v11486_v7 = vpop.permute.xlu1 %3064 }
 0x366   : > { %3493 = vrot.lane.b32.xlu0 %v16043_v11, %s8917_s27 }
 0x367   : > { %7465 = vmatmul.mubr.msk.bf16.gmra.mxu1 %vm16044_vm9, %v11030_v18  ;;  %vm16055_vm9 = vmmov %vm15958_vm1 }
 0x368   : > { %7466 = vmatprep.mubr.msk.bf16.mxu1 %vm15958_vm1, %v16045_v41 }
 0x369   : > { %v11494_v6 = vpop.permute.xlu1 %3066 }
 0x36a   : > { %3497 = vrot.lane.b32.xlu0 %v16046_v53, %s8917_s27  ;;  %v16054_v53 = vld [vmem:[#allocation114_spill] sm:$0xff] }
 0x36d   : > { %v11498_v26 = vpop.xlane.xlu0 %2724  ;;  %v11500_v48 = vpop.permute.xlu1 %3068 }
 0x36e   : > { %16047 = vst [vmem:[#allocation116_spill] sm:$0xff] %v11498_v26  ;;  %3501 = vrot.lane.b32.xlu0 %v16048_v58, %s8917_s27 }
 0x36f   : > { %7467 = vmatmul.mubr.msk.bf16.gmra.mxu1 %vm16049_vm13, %v16045_v41  ;;  %vm16057_vm13 = vmmov %vm15958_vm1 }
 0x370   : > { %7468 = vmatprep.mubr.msk.bf16.mxu1 %vm16050_vm15, %v11034_v63  ;;  %vm16059_vm15 = vmmov %vm15958_vm1 }
 0x371   : > { %v11508_v16 = vpop.xlane.xlu0 %2730  ;;  %v11510_v20 = vpop.permute.xlu1 %3072 }
 0x372   : > { %16051 = vst [vmem:[#allocation111_spill] sm:$0xff] %v11508_v16 }
 0x374   : > { %v7416_v13 = vpop.f32.mrf.mxu0 }
 0x375   : > { %v11512_v22 = vpop.xlane.xlu0 %2733  ;;  %v3077_v26 = vpop.permute.xlu1 %3076 }
 0x376   : > { %v7417_v39 = vpop.f32.mrf.mxu0  ;;  %16052 = vst [vmem:[#allocation118_spill] sm:$0xff] %v11512_v22 }
 0x377   : > { %v7418_v10 = vadd.f32 %v7417_v39, %v7416_v13  ;;  %7469 = vmatmul.mubr.msk.bf16.gmra.mxu1 %vm16053_vm10, %v11034_v63  ;;  %v8708_v39 = vld [vmem:[#allocation2 + $0x8] sm:$0xff]  ;;  %vm16060_vm10 = vmmov %vm15958_vm1 }
 0x378   : > { %v7419_v44 = vpop.f32.mrf.mxu0  ;;  %7470 = vmatprep.mubr.msk.bf16.mxu1 %vm16055_vm9, %v16054_v53  ;;  %vm16061_vm9 = vmmov %vm15958_vm1 }
 0x379   : > { %v2037_v5 = vadd.f32 %v8707_v3, %v7418_v10  ;;  %v11519_v46 = vpop.xlane.xlu0 %2736  ;;  %v11521_v11 = vpop.permute.xlu1 %3080 }
 0x37a   : > { %v7420_v58 = vpop.f32.mrf.mxu0  ;;  %16056 = vst [vmem:[#allocation120_spill] sm:$0xff] %v11519_v46 }
 0x37b   : > { %2041 = vst.msk [vmem:[#allocation2] sm:$0xff] %vm15958_vm1, %v2037_v5  ;;  %v7421_v16 = vadd.f32 %v7420_v58, %v7419_v44 }
 0x37c   : > { %v7422_v13 = vpop.f32.mrf.mxu0 }
 0x37d   : > { %v2038_v22 = vadd.f32 %v8708_v39, %v7421_v16  ;;  %v11524_v10 = vpop.xlane.xlu0 %2742  ;;  %v3085_v61 = vpop.permute.xlu1 %3084  ;;  %v16065_v39 = vld [vmem:[#allocation115_spill] sm:$0xff] }
 0x37e   : > { %v7423_v14 = vpop.f32.mrf.mxu0  ;;  %16058 = vst [vmem:[#allocation127_spill] sm:$0xff] %v11524_v10  ;;  %v16101_v10 = vld [vmem:[#allocation141_spill] sm:$0xff] }
 0x37f   : > { %2042 = vst.msk [vmem:[#allocation2 + $0x8] sm:$0xff] %vm16057_vm13, %v2038_v22  ;;  %v7424_v3 = vadd.f32 %v7423_v14, %v7422_v13  ;;  %7471 = vmatmul.mubr.msk.bf16.gmra.mxu1 %vm16059_vm15, %v16054_v53  ;;  %v8710_v14 = vld [vmem:[#allocation2 + $0x18] sm:$0xff]  ;;  %vm16064_vm13 = vmmov %vm15958_vm1 }
 0x380   : > { %v7425_v56 = vpop.f32.mrf.mxu0  ;;  %7472 = vmatprep.mubr.msk.bf16.mxu1 %vm16060_vm10, %v11042_v59  ;;  %vm16066_vm15 = vmmov %vm15958_vm1 }
 0x381   : > { %v2039_v12 = vadd.f32 %v8709_v29, %v7424_v3  ;;  %v11531_v44 = vpop.xlane.xlu0 %2748  ;;  %v3089_v22 = vpop.permute.xlu1 %3088  ;;  %vm16069_vm10 = vmmov %vm15958_vm1 }
 0x382   : > { %v7426_v5 = vpop.f32.mrf.mxu0  ;;  %16062 = vst [vmem:[#allocation130_spill] sm:$0xff] %v11531_v44 }
 0x383   : > { %2043 = vst.msk [vmem:[#allocation2 + $0x10] sm:$0xff] %vm16061_vm9, %v2039_v12  ;;  %v7427_v16 = vadd.f32 %v7426_v5, %v7425_v56  ;;  %vm16070_vm9 = vmmov %vm15958_vm1 }
 0x385   : > { %v2040_v58 = vadd.f32 %v8710_v14, %v7427_v16  ;;  %v11534_v13 = vpop.xlane.xlu0 %2754  ;;  %v3093_v29 = vpop.permute.xlu1 %3092 }
 0x386   : > { %16063 = vst [vmem:[#allocation122_spill] sm:$0xff] %v11534_v13  ;;  %7494 = vmatprep.subr.bf16.mxu0 %v3093_v29  ;;  %7606 = vmatprep.subr.bf16.mxu1 %v3093_v29 }
 0x387   : > { %2044 = vst.msk [vmem:[#allocation2 + $0x18] sm:$0xff] %vm15958_vm1, %v2040_v58  ;;  %7473 = vmatmul.mubr.msk.bf16.gmra.mxu1 %vm16064_vm13, %v11042_v59  ;;  %7495 = vmatpush3.bf16.msra.mxu0 %v3077_v26  ;;  %vm16073_vm13 = vmmov %vm15958_vm1 }
 0x388   : > { %7474 = vmatprep.mubr.msk.bf16.mxu1 %vm16066_vm15, %v16065_v39  ;;  %vm16076_vm15 = vmmov %vm15958_vm1 }
 0x389   : > { %v11540_v56 = vpop.xlane.xlu0 %2760 }
 0x38a   : > { %16067 = vst [vmem:[#allocation112_spill] sm:$0xff] %v11540_v56  ;;  %v16099_v56 = vld [vmem:[#allocation136_spill] sm:$0xff] }
 0x38d   : > { %v11542_v12 = vpop.xlane.xlu0 %2766 }
 0x38e   : > { %16068 = vst [vmem:[#allocation113_spill] sm:$0xff] %v11542_v12 }
 0x38f   : > { %7475 = vmatmul.mubr.msk.bf16.gmra.mxu1 %vm16069_vm10, %v16065_v39  ;;  %vm16077_vm10 = vmmov %vm15958_vm1 }
 0x390   : > { %8102 = vmatprep.mubr.msk.bf16.mxu1 %vm16070_vm9, %v11024_v4  ;;  %vm16080_vm9 = vmmov %vm15958_vm1 }
 0x391   : > { %v11548_v3 = vpop.xlane.xlu0 %2772 }
 0x392   : > { %16071 = vst [vmem:[#allocation114_spill] sm:$0xff] %v11548_v3 }
 0x395   : > { %v11550_v5 = vpop.xlane.xlu0 %2778 }
 0x396   : > { %16072 = vst [vmem:[#allocation115_spill] sm:$0xff] %v11550_v5  ;;  %v16097_v5 = vld [vmem:[#allocation132_spill] sm:$0xff] }
 0x397   : > { %8103 = vmatmul.mubr.msk.bf16.vlgmr.msra.gmra.mxu1 %vm15958_vm1, %v16036_v28 }
 0x398   : > { %8106 = vmatprep.mubr.msk.bf16.mxu1 %vm16073_vm13, %v11030_v18  ;;  %7607 = vmatpush3.bf16.msra.mxu1 %v3077_v26  ;;  %vm16083_vm13 = vmmov %vm15958_vm1 }
 0x399   : > { %v11556_v16 = vpop.xlane.xlu0 %2784 }
 0x39a   : > { %16074 = vst [vmem:[#allocation303_spill] sm:$0xff] %v11556_v16 }
 0x39d   : > { %v11558_v14 = vpop.xlane.xlu0 %2790 }
 0x39e   : > { %16075 = vst [vmem:[#allocation304_spill] sm:$0xff] %v11558_v14 }
 0x39f   : > { %8107 = vmatmul.mubr.msk.bf16.gmra.mxu1 %vm16076_vm15, %v16045_v41  ;;  %vm16092_vm15 = vmmov %vm15958_vm1 }
 0x3a0   : > { %8110 = vmatprep.mubr.msk.bf16.mxu1 %vm16077_vm10, %v11034_v63  ;;  %vm16098_vm10 = vnez %v16097_v5 }
 0x3a1   : > { %v11564_v4 = vpop.xlane.xlu0 %2796 }
 0x3a2   : > { %16078 = vst [vmem:[#allocation305_spill] sm:$0xff] %v11564_v4 }
 0x3a5   : > { %v11566_v58 = vpop.xlane.xlu0 %2802 }
 0x3a6   : > { %16079 = vst [vmem:[#allocation306_spill] sm:$0xff] %v11566_v58 }
 0x3a7   : > { %8111 = vmatmul.mubr.msk.bf16.gmra.mxu1 %vm16080_vm9, %v16054_v53  ;;  %vm16100_vm9 = vnez %v16099_v56 }
 0x3a8   : > { %8114 = vmatprep.mubr.msk.bf16.mxu1 %vm15958_vm1, %v11042_v59  ;;  %v11581_v59 = vpop.f32.mrf.mxu1  ;;  %vm16102_vm1 = vnez %v16101_v10  ;;  %v16107_v10 = vld [vmem:[#allocation145_spill] sm:$0xff] }
 0x3a9   : > { %v11572_v18 = vpop.xlane.xlu0 %2808  ;;  %16084 = vst [vmem:[#allocation309_spill] sm:$0xff] %v11581_v59 }
 0x3aa   : > { %16081 = vst [vmem:[#allocation307_spill] sm:$0xff] %v11572_v18 }
 0x3ad   : > { %v11574_v28 = vpop.xlane.xlu0 %2814 }
 0x3ae   : > { %16082 = vst [vmem:[#allocation308_spill] sm:$0xff] %v11574_v28 }
 0x3af   : > { %8115 = vmatmul.mubr.msk.bf16.gmra.mxu1 %vm16083_vm13, %v16065_v39 }
 0x3b0   : > { %3447 = vmatprep.mubr.bf16.mxu1 %v11472_v43  ;;  %v11583_v43 = vpop.f32.mrf.mxu1 }
 0x3b1   : > { %v3063_v63 = vpop.permute.xlu0 %3062  ;;  %16085 = vst [vmem:[#allocation310_spill] sm:$0xff] %v11583_v43 }
 0x3b5   : > { %v3071_v26 = vpop.permute.xlu0 %3070 }
 0x3b9   : > { %v3075_v41 = vpop.permute.xlu0 %3074 }
 0x3bd   : > { %v3079_v29 = vpop.permute.xlu0 %3078 }
 0x3c1   : > { %v3083_v58 = vpop.permute.xlu0 %3082 }
 0x3c5   : > { %v3087_v4 = vpop.permute.xlu0 %3086 }
 0x3c9   : > { %v3091_v14 = vpop.permute.xlu0 %3090 }
 0x3ca   : > { %7496 = vmatprep.subr.bf16.mxu0 %v3091_v14  ;;  %7608 = vmatprep.subr.bf16.mxu1 %v3091_v14 }
 0x3cb   : > { %7497 = vmatpush3.bf16.msra.mxu0 %v3075_v41  ;;  %7609 = vmatpush3.bf16.msra.mxu1 %v3075_v41  ;;  %v3476_v41 = vld [vmem:[#allocation2 + $0x58] sm:$0xff] }
 0x3cc   : > { %7498 = vmatprep.subr.bf16.mxu0 %v3089_v22  ;;  %7610 = vmatprep.subr.bf16.mxu1 %v3089_v22 }
 0x3cf   : > { %7499 = vmatpush3.bf16.msra.mxu0 %v11510_v20  ;;  %7611 = vmatpush3.bf16.msra.mxu1 %v11510_v20 }
 0x3d0   : > { %7500 = vmatprep.subr.bf16.mxu0 %v3087_v4  ;;  %7612 = vmatprep.subr.bf16.mxu1 %v3087_v4 }
 0x3d3   : > { %7501 = vmatpush3.bf16.msra.mxu0 %v3071_v26  ;;  %7613 = vmatpush3.bf16.msra.mxu1 %v3071_v26  ;;  %v3475_v26 = vld [vmem:[#allocation2 + $0x50] sm:$0xff] }
 0x3d4   : > { %7502 = vmatprep.subr.bf16.mxu0 %v3085_v61  ;;  %7614 = vmatprep.subr.bf16.mxu1 %v3085_v61 }
 0x3d7   : > { %v2276_v53 = vpop.f32.mrf.mxu1  ;;  %7503 = vmatpush3.bf16.msra.mxu0 %v11500_v48  ;;  %7615 = vmatpush3.bf16.msra.mxu1 %v11500_v48 }
 0x3d8   : > { %v2435_v39 = vsel %vm10408_vm6, %v2276_v53, 0.0  ;;  %7504 = vmatprep.subr.bf16.mxu0 %v3083_v58  ;;  %7616 = vmatprep.subr.bf16.mxu1 %v3083_v58 }
 0x3d9   : > { %2500 = vadd.xlane.f32.xlu0 %v2435_v39  ;;  %v2278_v20 = vpop.f32.mrf.mxu1  ;;  %v3473_v39 = vld [vmem:[#allocation2 + $0x40] sm:$0xff] }
 0x3da   : > { %v3474_v20 = vld [vmem:[#allocation2 + $0x48] sm:$0xff] }
 0x3db   : > { %v2280_v14 = vpop.f32.mrf.mxu1  ;;  %7505 = vmatpush3.bf16.msra.mxu0 %v11494_v6  ;;  %7617 = vmatpush3.bf16.msra.mxu1 %v11494_v6  ;;  %v4247_v6 = vpack.c.bf16 %v3476_v41, %v3475_v26  ;;  %v16089_v41 = vld [vmem:[#allocation69_spill] sm:$0xff] }
 0x3dc   : > { %v2437_v4 = vsel %vm10417_vm7, %v2280_v14, 0.0  ;;  %7506 = vmatprep.subr.bf16.mxu0 %v11521_v11  ;;  %7618 = vmatprep.subr.bf16.mxu1 %v11521_v11  ;;  %v7009_v11 = vpack.c.bf16 %v2280_v14, %v2276_v53  ;;  %v11610_v14 = vpop.permute.xlu0 %3477 }
 0x3dd   : > { %v2282_v48 = vpop.f32.mrf.mxu1  ;;  %2503 = vadd.xlane.f32.xlu1 %v2437_v4 }
 0x3de   : > { %v4246_v48 = vpack.c.bf16 %v3474_v20, %v3473_v39  ;;  %v16093_v39 = vld [vmem:[#allocation74_spill] sm:$0xff]  ;;  %v16094_v20 = vld [vmem:[#allocation43_spill] sm:$0xff] }
 0x3df   : > { %v11595_v43 = vpop.f32.mrf.mxu1  ;;  %7507 = vmatpush3.bf16.msra.mxu0 %v11486_v7  ;;  %7619 = vmatpush3.bf16.msra.mxu1 %v11486_v7 }
 0x3e0   : > { %7508 = vmatprep.subr.bf16.mxu0 %v3079_v29  ;;  %7620 = vmatprep.subr.bf16.mxu1 %v3079_v29 }
 0x3e1   : > { %v2288_v58 = vpop.f32.mrf.mxu1 }
 0x3e3   : > { %v11599_v59 = vpop.f32.mrf.mxu1  ;;  %7509 = vmatpush3.bf16.msra.mxu0 %v3063_v63  ;;  %7621 = vmatpush3.bf16.msra.mxu1 %v3063_v63 }
 0x3e4   : > { %8118 = vmatprep.subr.bf16.mxu0 %v4247_v6  ;;  %v7012_v63 = vpack.c.bf16 %v11599_v59, %v11595_v43 }
 0x3e5   : > { %v2292_v4 = vpop.f32.mrf.mxu1 }
 0x3e6   : > { %7010 = vmatmul.mubr.msk.bf16.vlgmr.msra.gmra.mxu0 %vm10427_vm8, %v7009_v11  ;;  %3448 = vmatmul.mubr.bf16.vlgmr.msra.gmra.mxu1 %v11310_v38 }
 0x3e7   : > { %v11604_v7 = vpop.f32.mrf.mxu1  ;;  %3150 = vmatprep.mubr.bf16.mxu0 %v15969_v62  ;;  %3455 = vmatprep.mubr.bf16.mxu1 %v11480_v2  ;;  %v16091_v2 = vld [vmem:[#allocation86_spill] sm:$0xff] }
 0x3e8   : > { %8119 = vmatpush3.bf16.msra.mxu0 %v4247_v6 }
 0x3e9   : > { %v2298_v29 = vpop.f32.mrf.mxu1  ;;  %8120 = vmatprep.subr.bf16.mxu0 %v4246_v48 }
 0x3eb   : > { %v2300_v26 = vpop.f32.mrf.mxu1 }
 0x3ec   : > { %8121 = vmatpush3.bf16.msra.mxu0 %v4246_v48  ;;  %v16095_v48 = vld [vmem:[#allocation45_spill] sm:$0xff] }
 0x3ed   : > { %v2302_v53 = vpop.f32.mrf.mxu1 }
 0x3ee   : > { %3503 = vrot.lane.b32.xlu1 %v16089_v41, %s8917_s27  ;;  %7013 = vmatmul.mubr.msk.bf16.gmra.mxu0 %vm10461_vm11, %v7012_v63  ;;  %v16117_v41 = vld [vmem:[#allocation154_spill] sm:$0xff] }
 0x3ef   : > { %3456 = vmatmul.mubr.bf16.gmra.mxu1 %v11318_v31  ;;  %3505 = vrot.lane.b32.xlu0 %v16091_v2, %s8917_s27  ;;  %v11619_v6 = vpop.f32.mrf.mxu1  ;;  %v7015_v31 = vpack.c.bf16 %v2300_v26, %v11604_v7  ;;  %vm16118_vm11 = vnez %v16117_v41  ;;  %v16123_v41 = vld [vmem:[#allocation163_spill] sm:$0xff] }
 0x3f0   : > { %3158 = vmatprep.mubr.bf16.mxu0 %v15969_v62  ;;  %7650 = vmatprep.mubr.msk.bf16.mxu1 %vm16092_vm15, %v11610_v14 }
 0x3f1   : > { %v2308_v58 = vpop.f32.mrf.mxu1 }
 0x3f2   : > { %3507 = vrot.lane.b32.xlu1 %v16093_v39, %s8917_s27  ;;  %v16111_v39 = vld [vmem:[#allocation126_spill] sm:$0xff] }
 0x3f3   : > { %3509 = vrot.lane.b32.xlu0 %v16094_v20, %s8917_s27  ;;  %v11628_v11 = vpop.f32.mrf.mxu1 }
 0x3f4   : > { %v7018_v18 = vpack.c.bf16 %v11628_v11, %v11619_v6 }
 0x3f5   : > { %v2312_v4 = vpop.f32.mrf.mxu1 }
 0x3f6   : > { %3511 = vrot.lane.b32.xlu1 %v16095_v48, %s8917_s27  ;;  %7016 = vmatmul.mubr.msk.bf16.gmra.mxu0 %vm10497_vm14, %v7015_v31 }
 0x3f7   : > { %v11635_v63 = vpop.f32.mrf.mxu1  ;;  %3166 = vmatprep.mubr.bf16.mxu0 %v15969_v62 }
 0x3f9   : > { %v2318_v53 = vpop.f32.mrf.mxu1 }
 0x3fb   : > { %v11638_v58 = vpop.f32.mrf.mxu1 }
 0x3fc   : > { %v7021_v12 = vpack.c.bf16 %v11638_v58, %v11635_v63 }
 0x3fd   : > { %v2322_v16 = vpop.f32.mrf.mxu1 }
 0x3fe   : > { %7019 = vmatmul.mubr.msk.bf16.gmra.mxu0 %vm16098_vm10, %v7018_v18  ;;  %vm16112_vm10 = vnez %v16111_v39 }
 0x3ff   : > { %v11644_v4 = vpop.f32.mrf.mxu1  ;;  %3174 = vmatprep.mubr.bf16.mxu0 %v15969_v62  ;;  %v2445_v28 = vsel %vm16112_vm10, %v2300_v26, 0.0 }
 0x401   : > { %v2328_v3 = vpop.f32.mrf.mxu1 }
 0x403   : > { %v11647_v31 = vpop.f32.mrf.mxu1 }
 0x404   : > { %v7024_v44 = vpack.c.bf16 %v11647_v31, %v11644_v4 }
 0x405   : > { %v2332_v53 = vpop.f32.mrf.mxu1 }
 0x406   : > { %7022 = vmatmul.mubr.msk.bf16.gmra.mxu0 %vm16100_vm9, %v7021_v12  ;;  %v16103_v12 = vld [vmem:[#allocation123_spill] sm:$0xff] }
 0x407   : > { %v11653_v13 = vpop.f32.mrf.mxu1  ;;  %3182 = vmatprep.mubr.bf16.mxu0 %v15969_v62  ;;  %vm16104_vm13 = vnez %v16103_v12 }
 0x408   : > { %v2439_v56 = vsel %vm16104_vm13, %v11595_v43, 0.0 }
 0x409   : > { %v2338_v16 = vpop.f32.mrf.mxu1 }
 0x40b   : > { %v11656_v18 = vpop.f32.mrf.mxu1 }
 0x40c   : > { %v7027_v5 = vpack.c.bf16 %v11656_v18, %v11653_v13 }
 0x40d   : > { %v2342_v3 = vpop.f32.mrf.mxu1 }
 0x40e   : > { %7025 = vmatmul.mubr.msk.bf16.gmra.mxu0 %vm16102_vm1, %v7024_v44  ;;  %v16105_v3 = vld [vmem:[#allocation121_spill] sm:$0xff]  ;;  %vm16108_vm1 = vnez %v16107_v10 }
 0x40f   : > { %v11662_v46 = vpop.f32.mrf.mxu1  ;;  %3190 = vmatprep.mubr.bf16.mxu0 %v15969_v62  ;;  %vm16106_vm15 = vnez %v16105_v3 }
 0x410   : > { %v2441_v44 = vsel %vm16106_vm15, %v11599_v59, 0.0 }
 0x411   : > { %v2348_v53 = vpop.f32.mrf.mxu1 }
 0x412   : > { %2506 = vadd.xlane.f32.xlu0 %v2439_v56  ;;  %v16109_v56 = vld [vmem:[#allocation125_spill] sm:$0xff] }
 0x413   : > { %v11668_v16 = vpop.f32.mrf.mxu1  ;;  %vm16110_vm9 = vnez %v16109_v56 }
 0x414   : > { %v2443_v43 = vsel %vm16110_vm9, %v11604_v7, 0.0  ;;  %v16115_v7 = vld [vmem:[#allocation149_spill] sm:$0xff] }
 0x415   : > { %v2352_v29 = vpop.f32.mrf.mxu1 }
 0x416   : > { %2509 = vadd.xlane.f32.xlu0 %v2441_v44  ;;  %7028 = vmatmul.mubr.msk.bf16.gmra.mxu0 %vm16108_vm1, %v7027_v5  ;;  %v16113_v29 = vld [vmem:[#allocation151_spill] sm:$0xff]  ;;  %v7030_v5 = vpack.c.bf16 %v11668_v16, %v11662_v46  ;;  %vm16116_vm1 = vnez %v16115_v7  ;;  %v16121_v7 = vld [vmem:[#allocation160_spill] sm:$0xff] }
 0x417   : > { %v2356_v53 = vpop.f32.mrf.mxu1  ;;  %3198 = vmatprep.mubr.bf16.mxu0 %v15969_v62  ;;  %vm16114_vm14 = vnez %v16113_v29 }
 0x419   : > { %v2358_v38 = vpop.f32.mrf.mxu1 }
 0x41a   : > { %v2468_v2 = vsel %vm16114_vm14, %v2358_v38, 0.0  ;;  %2512 = vadd.xlane.f32.xlu0 %v2443_v43  ;;  %2515 = vadd.xlane.f32.xlu1 %v2445_v28  ;;  %v16119_v28 = vld [vmem:[#allocation156_spill] sm:$0xff] }
 0x41b   : > { %v11685_v59 = vadd.f32 %v2468_v2, %v2356_v53  ;;  %v11687_v44 = vpop.f32.mrf.mxu1  ;;  %vm16120_vm8 = vnez %v16119_v28 }
 0x41c   : > { %v2867_v47 = vpack.c.bf16 %v11687_v44, %v2356_v53 }
 0x41d   : > { %v11691_v10 = vpop.f32.mrf.mxu1 }
 0x41e   : > { %v7033_v20 = vpack.c.bf16 %v11691_v10, %v2358_v38  ;;  %7031 = vmatmul.mubr.msk.bf16.gmra.mxu0 %vm16116_vm1, %v7030_v5  ;;  %vm16122_vm1 = vnez %v16121_v7  ;;  %v16127_v7 = vld [vmem:[#allocation167_spill] sm:$0xff] }
 0x41f   : > { %v2366_v26 = vpop.f32.mrf.mxu1 }
 0x420   : > { %7034 = vmatprep.mubr.msk.bf16.mxu0 %vm16118_vm11, %v7033_v20  ;;  %vm16124_vm11 = vnez %v16123_v41 }
 0x421   : > { %v2368_v43 = vpop.f32.mrf.mxu1 }
 0x422   : > { %v2472_v2 = vsel %vm16120_vm8, %v2368_v43, 0.0 }
 0x423   : > { %v11700_v48 = vadd.f32 %v2472_v2, %v2366_v26  ;;  %v11702_v35 = vpop.f32.mrf.mxu1 }
 0x424   : > { %v2869_v53 = vpack.c.bf16 %v11702_v35, %v2366_v26 }
 0x425   : > { %v11705_v0 = vpop.f32.mrf.mxu1 }
 0x426   : > { %v7036_v38 = vpack.c.bf16 %v11705_v0, %v2368_v43  ;;  %3207 = vmatmul.mubr.bf16.gmra.mxu0 %v2867_v47 }
 0x427   : > { %v2376_v5 = vpop.f32.mrf.mxu1 }
 0x428   : > { %7037 = vmatprep.mubr.msk.bf16.mxu0 %vm16122_vm1, %v7036_v38  ;;  %v16126_v38 = vld [vmem:[#allocation39_spill] sm:$0xff]  ;;  %vm16128_vm1 = vnez %v16127_v7 }
 0x429   : > { %v2378_v20 = vpop.f32.mrf.mxu1 }
 0x42a   : > { %v2476_v19 = vsel %vm16124_vm11, %v2378_v20, 0.0  ;;  %vm16130_vm11 = vnez %v16129_v57 }
 0x42b   : > { %v11712_v1 = vadd.f32 %v2476_v19, %v2376_v5  ;;  %v11714_v2 = vpop.f32.mrf.mxu1  ;;  %3515 = vrot.lane.b32.xlu1 %v16125_v55, %s8917_s27 }
 0x42c   : > { %v2871_v26 = vpack.c.bf16 %v11714_v2, %v2376_v5 }
 0x42d   : > { %v11719_v17 = vpop.f32.mrf.mxu1 }
 0x42e   : > { %v7039_v47 = vpack.c.bf16 %v11719_v17, %v2378_v20  ;;  %3215 = vmatmul.mubr.bf16.gmra.mxu0 %v2869_v53 }
 0x42f   : > { %v2386_v43 = vpop.f32.mrf.mxu1 }
 0x430   : > { %3513 = vrot.lane.b32.xlu0 %v16126_v38, %s8917_s27  ;;  %7040 = vmatprep.mubr.msk.bf16.mxu0 %vm16128_vm1, %v7039_v47  ;;  %v16131_v38 = vld [vmem:[#allocation173_spill] sm:$0xff] }
 0x431   : > { %v2388_v19 = vpop.f32.mrf.mxu1  ;;  %vm16132_vm8 = vnez %v16131_v38 }
 0x432   : > { %v2480_v8 = vsel %vm16130_vm11, %v2388_v19, 0.0  ;;  %vm16274_vm11 = vnez %v15790_v50 }
 0x433   : > { %v11728_v51 = vadd.f32 %v2480_v8, %v2386_v43  ;;  %v11730_v55 = vpop.f32.mrf.mxu1 }
 0x434   : > { %v2873_v57 = vpack.c.bf16 %v11730_v55, %v2386_v43 }
 0x435   : > { %v11733_v37 = vpop.f32.mrf.mxu1 }
 0x436   : > { %v7042_v20 = vpack.c.bf16 %v11733_v37, %v2388_v19  ;;  %3223 = vmatmul.mubr.bf16.gmra.mxu0 %v2871_v26  ;;  %v16134_v26 = vld [vmem:[#allocation179_spill] sm:$0xff] }
 0x437   : > { %v2396_v53 = vpop.f32.mrf.mxu1  ;;  %vm16135_vm1 = vnez %v16134_v26 }
 0x438   : > { %7043 = vmatprep.mubr.msk.bf16.mxu0 %vm16132_vm8, %v7042_v20  ;;  %vm16141_vm8 = vnez %v15834_v42 }
 0x439   : > { %v2398_v47 = vpop.f32.mrf.mxu1 }
 0x43a   : > { %v2484_v25 = vsel %vm10837_vm4, %v2398_v47, 0.0  ;;  %vm16273_vm4 = vnez %v15777_v45 }
 0x43b   : > { %v11740_v23 = vadd.f32 %v2484_v25, %v2396_v53  ;;  %v11742_v8 = vpop.f32.mrf.mxu1 }
 0x43c   : > { %v2875_v29 = vpack.c.bf16 %v11742_v8, %v2396_v53 }
 0x43d   : > { %v11745_v5 = vpop.f32.mrf.mxu1 }
 0x43e   : > { %v7045_v41 = vpack.c.bf16 %v11745_v5, %v2398_v47  ;;  %3231 = vmatmul.mubr.bf16.gmra.mxu0 %v2873_v57 }
 0x43f   : > { %v2406_v19 = vpop.f32.mrf.mxu1 }
 0x440   : > { %7046 = vmatprep.mubr.msk.bf16.mxu0 %vm16135_vm1, %v7045_v41 }
 0x441   : > { %v2408_v20 = vpop.f32.mrf.mxu1 }
 0x442   : > { %v2488_v7 = vsel %vm10879_vm2, %v2408_v20, 0.0 }
 0x443   : > { %v11752_v28 = vadd.f32 %v2488_v7, %v2406_v19  ;;  %v11754_v25 = vpop.f32.mrf.mxu1 }
 0x444   : > { %v2877_v38 = vpack.c.bf16 %v11754_v25, %v2406_v19 }
 0x445   : > { %v11757_v43 = vpop.f32.mrf.mxu1 }
 0x446   : > { %v7048_v39 = vpack.c.bf16 %v11757_v43, %v2408_v20  ;;  %3239 = vmatmul.mubr.bf16.gmra.mxu0 %v2875_v29  ;;  %v16137_v29 = vld [vmem:[#allocation129_spill] sm:$0xff] }
 0x447   : > { %v2416_v57 = vpop.f32.mrf.mxu1  ;;  %vm16138_vm1 = vnez %v16137_v29 }
 0x448   : > { %7049 = vmatprep.mubr.msk.bf16.mxu0 %vm10908_vm0, %v7048_v39  ;;  %v2447_v20 = vsel %vm16138_vm1, %v11619_v6, 0.0  ;;  %v16139_v39 = vld [vmem:[#allocation131_spill] sm:$0xff] }
 0x449   : > { %v2418_v41 = vpop.f32.mrf.mxu1  ;;  %vm16140_vm0 = vnez %v16139_v39 }
 0x44a   : > { %v2492_v47 = vsel %vm10924_vm3, %v2418_v41, 0.0  ;;  %v2449_v15 = vsel %vm16140_vm0, %v11628_v11, 0.0 }
 0x44b   : > { %v11764_v26 = vadd.f32 %v2492_v47, %v2416_v57  ;;  %v11766_v7 = vpop.f32.mrf.mxu1 }
 0x44c   : > { %v2879_v6 = vpack.c.bf16 %v11766_v7, %v2416_v57  ;;  %v16144_v57 = vld [vmem:[#allocation33_spill] sm:$0xff] }
 0x44d   : > { %v11769_v53 = vpop.f32.mrf.mxu1 }
 0x44e   : > { %v7051_v56 = vpack.c.bf16 %v11769_v53, %v2418_v41  ;;  %3247 = vmatmul.mubr.bf16.gmra.mxu0 %v2877_v38 }
 0x44f   : > { %2518 = vadd.xlane.f32.xlu0 %v2447_v20  ;;  %v2426_v47 = vpop.f32.mrf.mxu1  ;;  %2521 = vadd.xlane.f32.xlu1 %v2449_v15  ;;  %v11801_v20 = vpop.permute.xlu0 %3481 }
 0x450   : > { %7052 = vmatprep.mubr.msk.bf16.mxu0 %vm16141_vm8, %v7051_v56  ;;  %vm16142_vm8 = vcmask 261120   ;;  %v11797_v56 = vpop.permute.xlu1 %3479 }
 0x451   : > { %v2428_v19 = vpop.f32.mrf.mxu1 }
 0x452   : > { %v2496_v40 = vsel %vm10962_vm12, %v2428_v19, 0.0  ;;  %vm16145_vm12 = vmmov %vm16142_vm8 }
 0x453   : > { %v11782_v41 = vadd.f32 %v2496_v40, %v2426_v47  ;;  %v11784_v38 = vpop.f32.mrf.mxu1  ;;  %v16143_v40 = vld [vmem:[#allocation30_spill] sm:$0xff]  ;;  %v11817_v27 = vpop.permute.xlu0 %3485 }
 0x454   : > { %v2881_v15 = vpack.c.bf16 %v11784_v38, %v2426_v47  ;;  %16152 = vst [vmem:[#allocation316_spill] sm:$0xff] %v11817_v27 }
 0x455   : > { %v11787_v29 = vpop.f32.mrf.mxu1 }
 0x456   : > { %v7054_v11 = vpack.c.bf16 %v11787_v29, %v2428_v19  ;;  %3255 = vmatmul.mubr.bf16.gmra.mxu0 %v2879_v6  ;;  %v11805_v19 = vpop.f32.mrf.mxu0 }
 0x457   : > { %16146 = vst [vmem:[#allocation311_spill] sm:$0xff] %v11805_v19  ;;  %v11809_v47 = vpop.f32.mrf.mxu1 }
 0x458   : > { %7055 = vmatprep.mubr.msk.bf16.mxu0 %vm10987_vm5, %v7054_v11  ;;  %vm16147_vm5 = vmmov %vm16142_vm8  ;;  %16148 = vst [vmem:[#allocation312_spill] sm:$0xff] %v11809_v47  ;;  %v11811_v6 = vpop.f32.mrf.mxu0 }
 0x459   : > { %16149 = vst [vmem:[#allocation313_spill] sm:$0xff] %v11811_v6  ;;  %v11813_v11 = vpop.f32.mrf.mxu1 }
 0x45a   : > { %16150 = vst [vmem:[#allocation314_spill] sm:$0xff] %v11813_v11  ;;  %v11821_v42 = vpop.f32.mrf.mxu0  ;;  %v11833_v11 = vpop.permute.xlu0 %3489 }
 0x45b   : > { %16154 = vst [vmem:[#allocation317_spill] sm:$0xff] %v11821_v42  ;;  %v11825_v19 = vpop.f32.mrf.mxu1  ;;  %16160 = vst [vmem:[#allocation322_spill] sm:$0xff] %v11833_v11 }
 0x45c   : > { %16156 = vst [vmem:[#allocation318_spill] sm:$0xff] %v11825_v19 }
 0x45d   : > { %v11829_v47 = vpop.f32.mrf.mxu1 }
 0x45e   : > { %3263 = vmatmul.mubr.bf16.gmra.mxu0 %v2881_v15  ;;  %v11815_v15 = vpop.permute.xlu1 %3483  ;;  %16158 = vst [vmem:[#allocation320_spill] sm:$0xff] %v11829_v47  ;;  %v11849_v47 = vpop.permute.xlu0 %3493 }
 0x45f   : > { %8122 = vmatprep.mubr.msk.bf16.mxu0 %vm16142_vm8, %v11610_v14  ;;  %16151 = vst [vmem:[#allocation315_spill] sm:$0xff] %v11815_v15  ;;  %vm16153_vm8 = vmmov %vm16147_vm5  ;;  %v11841_v42 = vpop.f32.mrf.mxu1 }
 0x460   : > { %3519 = vrot.lane.b32.xlu1 %v16143_v40, %s8917_s27  ;;  %16163 = vst [vmem:[#allocation324_spill] sm:$0xff] %v11841_v42  ;;  %16167 = vst [vmem:[#allocation328_spill] sm:$0xff] %v11849_v47  ;;  %v16172_v42 = vld [vmem:[#allocation133_spill] sm:$0xff] }
 0x461   : > { %v11845_v19 = vpop.f32.mrf.mxu1 }
 0x462   : > { %v11831_v6 = vpop.permute.xlu1 %3487  ;;  %16165 = vst [vmem:[#allocation326_spill] sm:$0xff] %v11845_v19  ;;  %v11871_v22 = vpop.permute.xlu0 %3497 }
 0x463   : > { %16159 = vst [vmem:[#allocation321_spill] sm:$0xff] %v11831_v6  ;;  %16178 = vst [vmem:[#allocation334_spill] sm:$0xff] %v11871_v22 }
 0x465   : > { %3517 = vrot.lane.b32.xlu0 %v16144_v57, %s8917_s27  ;;  %v11827_v57 = vpop.f32.mrf.mxu0 }
 0x466   : > { %8123 = vmatmul.mubr.msk.bf16.vlgmr.msra.gmra.mxu0 %vm16145_vm12, %v11797_v56  ;;  %vm16155_vm12 = vmmov %vm16147_vm5  ;;  %16157 = vst [vmem:[#allocation319_spill] sm:$0xff] %v11827_v57  ;;  %v11847_v57 = vpop.permute.xlu1 %3491 }
 0x467   : > { %8126 = vmatprep.mubr.msk.bf16.mxu0 %vm16147_vm5, %v11801_v20  ;;  %v11837_v40 = vpop.f32.mrf.mxu0  ;;  %16166 = vst [vmem:[#allocation327_spill] sm:$0xff] %v11847_v57 }
 0x468   : > { %16161 = vst [vmem:[#allocation323_spill] sm:$0xff] %v11837_v40  ;;  %v11857_v40 = vpop.f32.mrf.mxu1 }
 0x469   : > { %v11843_v30 = vpop.f32.mrf.mxu0  ;;  %16170 = vst [vmem:[#allocation330_spill] sm:$0xff] %v11857_v40 }
 0x46a   : > { %16164 = vst [vmem:[#allocation325_spill] sm:$0xff] %v11843_v30  ;;  %v16174_v30 = vld [vmem:[#allocation135_spill] sm:$0xff]  ;;  %v11867_v61 = vpop.f32.mrf.mxu1 }
 0x46b   : > { %v11853_v39 = vpop.f32.mrf.mxu0  ;;  %vm16175_vm0 = vnez %v16174_v30  ;;  %16176 = vst [vmem:[#allocation332_spill] sm:$0xff] %v11867_v61 }
 0x46c   : > { %16169 = vst [vmem:[#allocation329_spill] sm:$0xff] %v11853_v39  ;;  %v2453_v12 = vsel %vm16175_vm0, %v11638_v58, 0.0  ;;  %v11869_v39 = vpop.permute.xlu1 %3495  ;;  %vm16186_vm0 = vmmov %vm16147_vm5 }
 0x46d   : > { %v11859_v3 = vpop.f32.mrf.mxu0  ;;  %16177 = vst [vmem:[#allocation333_spill] sm:$0xff] %v11869_v39 }
 0x46e   : > { %8127 = vmatmul.mubr.msk.bf16.gmra.mxu0 %vm16153_vm8, %v11815_v15  ;;  %vm16162_vm8 = vmmov %vm16147_vm5  ;;  %16171 = vst [vmem:[#allocation331_spill] sm:$0xff] %v11859_v3 }
 0x46f   : > { %8130 = vmatprep.mubr.msk.bf16.mxu0 %vm16155_vm12, %v11817_v27  ;;  %vm16168_vm12 = vmmov %vm16147_vm5  ;;  %v11875_v40 = vpop.f32.mrf.mxu0 }
 0x470   : > { %16180 = vst [vmem:[#allocation335_spill] sm:$0xff] %v11875_v40  ;;  %v11883_v58 = vpop.permute.xlu1 %3499 }
 0x471   : > { %v11881_v3 = vpop.f32.mrf.mxu0  ;;  %16183 = vst [vmem:[#allocation338_spill] sm:$0xff] %v11883_v58 }
 0x472   : > { %16182 = vst [vmem:[#allocation337_spill] sm:$0xff] %v11881_v3 }
 0x473   : > { %v11891_v61 = vpop.f32.mrf.mxu0 }
 0x474   : > { %16187 = vst [vmem:[#allocation341_spill] sm:$0xff] %v11891_v61  ;;  %v11893_v30 = vpop.xlane.xlu1 %2503 }
 0x475   : > { %16188 = vst [vmem:[#allocation342_spill] sm:$0xff] %v11893_v30  ;;  %v11901_v3 = vpop.f32.mrf.mxu0 }
 0x476   : > { %8131 = vmatmul.mubr.msk.bf16.gmra.mxu0 %vm16147_vm5, %v11831_v6  ;;  %16192 = vst [vmem:[#allocation345_spill] sm:$0xff] %v11901_v3  ;;  %v16200_v3 = vld [vmem:[#allocation25_spill] sm:$0xff] }
 0x477   : > { %8134 = vmatprep.mubr.msk.bf16.mxu0 %vm16162_vm8, %v11833_v11  ;;  %vm16173_vm8 = vnez %v16172_v42  ;;  %v11915_v61 = vpop.f32.mrf.mxu0 }
 0x478   : > { %v2451_v19 = vsel %vm16173_vm8, %v11635_v63, 0.0  ;;  %v11879_v63 = vpop.f32.mrf.mxu1  ;;  %16198 = vst [vmem:[#allocation349_spill] sm:$0xff] %v11915_v61 }
 0x479   : > { %16181 = vst [vmem:[#allocation336_spill] sm:$0xff] %v11879_v63 }
 0x47e   : > { %8135 = vmatmul.mubr.msk.bf16.gmra.mxu0 %vm16168_vm12, %v11847_v57  ;;  %vm16179_vm12 = vmmov %vm16147_vm5  ;;  %v8711_v57 = vld [vmem:[#allocation2 + $0x20] sm:$0xff] }
 0x47f   : > { %8138 = vmatprep.mubr.msk.bf16.mxu0 %vm16147_vm5, %v11849_v47 }
 0x484   : > { %2524 = vadd.xlane.f32.xlu0 %v2451_v19  ;;  %2527 = vadd.xlane.f32.xlu1 %v2453_v12  ;;  %v11885_v19 = vpop.permute.xlu0 %3501  ;;  %v11887_v12 = vpop.f32.mrf.mxu1 }
 0x485   : > { %16184 = vst [vmem:[#allocation339_spill] sm:$0xff] %v11885_v19  ;;  %16185 = vst [vmem:[#allocation340_spill] sm:$0xff] %v11887_v12  ;;  %v16195_v12 = vld [vmem:[#allocation21_spill] sm:$0xff] }
 0x486   : > { %8139 = vmatmul.mubr.msk.bf16.gmra.mxu0 %vm16179_vm12, %v11869_v39  ;;  %vm16189_vm12 = vmmov %vm16186_vm0  ;;  %v11899_v63 = vpop.f32.mrf.mxu1 }
 0x487   : > { %8142 = vmatprep.mubr.msk.bf16.mxu0 %vm16147_vm5, %v11871_v22  ;;  %16191 = vst [vmem:[#allocation344_spill] sm:$0xff] %v11899_v63  ;;  %v11905_v22 = vpop.permute.xlu1 %3503  ;;  %vm16197_vm5 = vmmov %vm16186_vm0 }
 0x488   : > { %v11897_v40 = vpop.xlane.xlu0 %2500  ;;  %v11903_v42 = vpop.f32.mrf.mxu1  ;;  %16194 = vst [vmem:[#allocation347_spill] sm:$0xff] %v11905_v22 }
 0x489   : > { %16190 = vst [vmem:[#allocation343_spill] sm:$0xff] %v11897_v40  ;;  %16193 = vst [vmem:[#allocation346_spill] sm:$0xff] %v11903_v42  ;;  %v11921_v42 = vpop.f32.mrf.mxu0 }
 0x48a   : > { %v11917_v63 = vpop.f32.mrf.mxu1  ;;  %16201 = vst [vmem:[#allocation351_spill] sm:$0xff] %v11921_v42 }
 0x48b   : > { %16199 = vst [vmem:[#allocation350_spill] sm:$0xff] %v11917_v63  ;;  %v11925_v30 = vpop.permute.xlu1 %3507 }
 0x48c   : > { %v11923_v40 = vpop.f32.mrf.mxu1  ;;  %16203 = vst [vmem:[#allocation353_spill] sm:$0xff] %v11925_v30 }
 0x48d   : > { %16202 = vst [vmem:[#allocation352_spill] sm:$0xff] %v11923_v40 }
 0x48e   : > { %8143 = vmatmul.mubr.msk.bf16.gmra.mxu0 %vm16186_vm0, %v11883_v58  ;;  %v11909_v58 = vpop.permute.xlu0 %3505 }
 0x48f   : > { %8146 = vmatprep.mubr.msk.bf16.mxu0 %vm16189_vm12, %v11885_v19  ;;  %16196 = vst [vmem:[#allocation348_spill] sm:$0xff] %v11909_v58  ;;  %vm16204_vm12 = vmmov %vm16186_vm0 }
 0x495   : > { %3523 = vrot.lane.b32.xlu1 %v16195_v12, %s8917_s27  ;;  %v11930_v12 = vpop.f32.mrf.mxu0 }
 0x496   : > { %8147 = vmatmul.mubr.msk.bf16.gmra.mxu0 %vm16186_vm0, %v11905_v22  ;;  %16205 = vst [vmem:[#allocation354_spill] sm:$0xff] %v11930_v12 }
 0x497   : > { %8150 = vmatprep.mubr.msk.bf16.mxu0 %vm16197_vm5, %v11909_v58  ;;  %v11932_v58 = vpop.f32.mrf.mxu1  ;;  %v11934_v61 = vpop.f32.mrf.mxu0  ;;  %vm16212_vm5 = vmmov %vm16186_vm0 }
 0x498   : > { %16206 = vst [vmem:[#allocation355_spill] sm:$0xff] %v11932_v58  ;;  %16207 = vst [vmem:[#allocation356_spill] sm:$0xff] %v11934_v61 }
 0x499   : > { %v11936_v63 = vpop.f32.mrf.mxu1 }
 0x49a   : > { %3521 = vrot.lane.b32.xlu0 %v16200_v3, %s8917_s27  ;;  %16208 = vst [vmem:[#allocation357_spill] sm:$0xff] %v11936_v63  ;;  %v8712_v63 = vld [vmem:[#allocation2 + $0x28] sm:$0xff] }
 0x49e   : > { %8151 = vmatmul.mubr.msk.bf16.gmra.mxu0 %vm16204_vm12, %v11925_v30  ;;  %vm16216_vm12 = vmmov %vm16186_vm0 }
 0x49f   : > { %4489 = vmatprep.mubr.bf16.mxu0 %v15969_v62  ;;  %vm16222_vm3 = vmmov %vm16216_vm12 }
 0x4a6   : > { %v7510_v3 = vpop.f32.mrf.mxu0  ;;  %v7622_v22 = vpop.f32.mrf.mxu1 }
 0x4a8   : > { %v7511_v42 = vpop.f32.mrf.mxu0  ;;  %v7623_v19 = vpop.f32.mrf.mxu1 }
 0x4a9   : > { %v11938_v40 = vadd.f32 %v7511_v42, %v7510_v3  ;;  %v7624_v39 = vadd.f32 %v7623_v19, %v7622_v22 }
 0x4aa   : > { %v11940_v47 = vpop.f32.mrf.mxu0  ;;  %v7625_v30 = vpop.f32.mrf.mxu1 }
 0x4ab   : > { %16209 = vst [vmem:[#allocation358_spill] sm:$0xff] %v11938_v40  ;;  %16210 = vst [vmem:[#allocation359_spill] sm:$0xff] %v11940_v47  ;;  %v3464_v62 = vadd.f32 %v8711_v57, %v7624_v39  ;;  %v8713_v57 = vld [vmem:[#allocation2 + $0x30] sm:$0xff] }
 0x4ac   : > { %v11942_v11 = vpop.f32.mrf.mxu0  ;;  %v7626_v12 = vpop.f32.mrf.mxu1 }
 0x4ad   : > { %16211 = vst [vmem:[#allocation360_spill] sm:$0xff] %v11942_v11  ;;  %3468 = vst.msk [vmem:[#allocation2 + $0x20] sm:$0xff] %vm16186_vm0, %v3464_v62  ;;  %v7627_v58 = vadd.f32 %v7626_v12, %v7625_v30 }
 0x4ae   : > { %v7516_v61 = vpop.f32.mrf.mxu0 }
 0x4af   : > { %v3465_v6 = vadd.f32 %v8712_v63, %v7627_v58  ;;  %v7628_v27 = vpop.f32.mrf.mxu1  ;;  %v8714_v58 = vld [vmem:[#allocation2 + $0x38] sm:$0xff] }
 0x4b0   : > { %v7517_v15 = vpop.f32.mrf.mxu0 }
 0x4b1   : > { %3469 = vst.msk [vmem:[#allocation2 + $0x28] sm:$0xff] %vm16212_vm5, %v3465_v6  ;;  %v11946_v42 = vadd.f32 %v7517_v15, %v7516_v61  ;;  %v7629_v22 = vpop.f32.mrf.mxu1  ;;  %v16217_v61 = vld [vmem:[#allocation138_spill] sm:$0xff] }
 0x4b2   : > { %v7630_v3 = vadd.f32 %v7629_v22, %v7628_v27  ;;  %v11948_v19 = vpop.f32.mrf.mxu0  ;;  %vm16218_vm0 = vnez %v16217_v61  ;;  %v16219_v27 = vld [vmem:[#allocation139_spill] sm:$0xff] }
 0x4b3   : > { %16213 = vst [vmem:[#allocation361_spill] sm:$0xff] %v11946_v42  ;;  %16214 = vst [vmem:[#allocation362_spill] sm:$0xff] %v11948_v19  ;;  %v7631_v39 = vpop.f32.mrf.mxu1  ;;  %v2455_v6 = vsel %vm16218_vm0, %v11644_v4, 0.0  ;;  %vm16220_vm5 = vnez %v16219_v27 }
 0x4b4   : > { %v3466_v40 = vadd.f32 %v8713_v57, %v7630_v3  ;;  %v11950_v11 = vpop.f32.mrf.mxu0  ;;  %v2457_v15 = vsel %vm16220_vm5, %v11647_v31, 0.0  ;;  %vm16268_vm5 = vnez %v15741_v34 }
 0x4b5   : > { %16215 = vst [vmem:[#allocation363_spill] sm:$0xff] %v11950_v11  ;;  %v7632_v62 = vpop.f32.mrf.mxu1 }
 0x4b6   : > { %3470 = vst.msk [vmem:[#allocation2 + $0x30] sm:$0xff] %vm16216_vm12, %v3466_v40  ;;  %v7633_v30 = vadd.f32 %v7632_v62, %v7631_v39  ;;  %v7522_v63 = vpop.f32.mrf.mxu0 }
 0x4b8   : > { %v3467_v12 = vadd.f32 %v8714_v58, %v7633_v30  ;;  %v7523_v47 = vpop.f32.mrf.mxu0 }
 0x4b9   : > { %v11959_v22 = vadd.f32 %v7523_v47, %v7522_v63  ;;  %2530 = vadd.xlane.f32.xlu0 %v2455_v6  ;;  %2533 = vadd.xlane.f32.xlu1 %v2457_v15 }
 0x4ba   : > { %3471 = vst.msk [vmem:[#allocation2 + $0x38] sm:$0xff] %vm16222_vm3, %v3467_v12  ;;  %v11962_v40 = vpop.f32.mrf.mxu0 }
 0x4bb   : > { %16221 = vst [vmem:[#allocation364_spill] sm:$0xff] %v11959_v22  ;;  %16223 = vst [vmem:[#allocation365_spill] sm:$0xff] %v11962_v40 }
 0x4bc   : > { %v11964_v3 = vpop.f32.mrf.mxu0 }
 0x4bd   : > { %16224 = vst [vmem:[#allocation366_spill] sm:$0xff] %v11964_v3 }
 0x4be   : > { %v7528_v39 = vpop.f32.mrf.mxu0 }
 0x4c0   : > { %v7529_v57 = vpop.f32.mrf.mxu0 }
 0x4c1   : > { %v11966_v62 = vadd.f32 %v7529_v57, %v7528_v39 }
 0x4c2   : > { %v11968_v30 = vpop.f32.mrf.mxu0 }
 0x4c3   : > { %16225 = vst [vmem:[#allocation367_spill] sm:$0xff] %v11966_v62  ;;  %16226 = vst [vmem:[#allocation368_spill] sm:$0xff] %v11968_v30 }
 0x4c4   : > { %v11970_v4 = vpop.f32.mrf.mxu0 }
 0x4c5   : > { %16227 = vst [vmem:[#allocation369_spill] sm:$0xff] %v11970_v4 }
 0x4c6   : > { %v7534_v58 = vpop.f32.mrf.mxu0 }
 0x4c8   : > { %v7535_v31 = vpop.f32.mrf.mxu0 }
 0x4c9   : > { %v11972_v47 = vadd.f32 %v7535_v31, %v7534_v58 }
 0x4ca   : > { %3527 = vrot.lane.b32.xlu1 %v9754_v52, %s8917_s27  ;;  %v11976_v63 = vpop.f32.mrf.mxu0 }
 0x4cb   : > { %16228 = vst [vmem:[#allocation370_spill] sm:$0xff] %v11972_v47  ;;  %16229 = vst [vmem:[#allocation371_spill] sm:$0xff] %v11976_v63 }
 0x4cc   : > { %v11978_v12 = vpop.f32.mrf.mxu0 }
 0x4cd   : > { %16230 = vst [vmem:[#allocation372_spill] sm:$0xff] %v11978_v12 }
 0x4ce   : > { %v7540_v6 = vpop.f32.mrf.mxu0 }
 0x4cf   : > { %3525 = vrot.lane.b32.xlu0 %v9796_v32, %s8917_s27 }
 0x4d0   : > { %v7541_v15 = vpop.f32.mrf.mxu0 }
 0x4d1   : > { %v11982_v39 = vadd.f32 %v7541_v15, %v7540_v6 }
 0x4d2   : > { %v11984_v57 = vpop.f32.mrf.mxu0 }
 0x4d3   : > { %16231 = vst [vmem:[#allocation373_spill] sm:$0xff] %v11982_v39  ;;  %16232 = vst [vmem:[#allocation374_spill] sm:$0xff] %v11984_v57 }
 0x4d4   : > { %v11986_v62 = vpop.f32.mrf.mxu0 }
 0x4d5   : > { %16233 = vst [vmem:[#allocation375_spill] sm:$0xff] %v11986_v62 }
 0x4d6   : > { %v7546_v58 = vpop.f32.mrf.mxu0 }
 0x4d8   : > { %v7547_v31 = vpop.f32.mrf.mxu0 }
 0x4d9   : > { %v11988_v47 = vadd.f32 %v7547_v31, %v7546_v58  ;;  %v16243_v31 = vld [vmem:[#allocation142_spill] sm:$0xff] }
 0x4da   : > { %v11990_v22 = vpop.f32.mrf.mxu0  ;;  %vm16244_vm3 = vnez %v16243_v31 }
 0x4db   : > { %16234 = vst [vmem:[#allocation376_spill] sm:$0xff] %v11988_v47  ;;  %16235 = vst [vmem:[#allocation377_spill] sm:$0xff] %v11990_v22  ;;  %v2459_v47 = vsel %vm16244_vm3, %v11653_v13, 0.0 }
 0x4dc   : > { %v11992_v42 = vpop.f32.mrf.mxu0 }
 0x4dd   : > { %16236 = vst [vmem:[#allocation378_spill] sm:$0xff] %v11992_v42  ;;  %v16245_v42 = vld [vmem:[#allocation143_spill] sm:$0xff] }
 0x4de   : > { %v7552_v12 = vpop.f32.mrf.mxu0  ;;  %vm16246_vm12 = vnez %v16245_v42 }
 0x4e0   : > { %v7553_v63 = vpop.f32.mrf.mxu0 }
 0x4e1   : > { %v11994_v11 = vadd.f32 %v7553_v63, %v7552_v12  ;;  %v2461_v63 = vsel %vm16246_vm12, %v11656_v18, 0.0 }
 0x4e2   : > { %v11996_v19 = vpop.f32.mrf.mxu0 }
 0x4e3   : > { %16237 = vst [vmem:[#allocation379_spill] sm:$0xff] %v11994_v11  ;;  %16238 = vst [vmem:[#allocation380_spill] sm:$0xff] %v11996_v19 }
 0x4e4   : > { %v11998_v6 = vpop.f32.mrf.mxu0 }
 0x4e5   : > { %16239 = vst [vmem:[#allocation381_spill] sm:$0xff] %v11998_v6 }
 0x4e6   : > { %v7558_v15 = vpop.f32.mrf.mxu0 }
 0x4e8   : > { %v7559_v39 = vpop.f32.mrf.mxu0 }
 0x4e9   : > { %v12000_v57 = vadd.f32 %v7559_v39, %v7558_v15 }
 0x4ea   : > { %v12002_v62 = vpop.f32.mrf.mxu0 }
 0x4eb   : > { %16240 = vst [vmem:[#allocation382_spill] sm:$0xff] %v12000_v57  ;;  %16241 = vst [vmem:[#allocation383_spill] sm:$0xff] %v12002_v62 }
 0x4ec   : > { %v12004_v58 = vpop.f32.mrf.mxu0 }
 0x4ed   : > { %16242 = vst [vmem:[#allocation384_spill] sm:$0xff] %v12004_v58 }
 0x4ee   : > { %2536 = vadd.xlane.f32.xlu0 %v2459_v47  ;;  %2539 = vadd.xlane.f32.xlu1 %v2461_v63  ;;  %v7564_v12 = vpop.f32.mrf.mxu0 }
 0x4f0   : > { %v7565_v11 = vpop.f32.mrf.mxu0 }
 0x4f1   : > { %v12012_v6 = vadd.f32 %v7565_v11, %v7564_v12 }
 0x4f2   : > { %v12014_v39 = vpop.f32.mrf.mxu0 }
 0x4f3   : > { %16247 = vst [vmem:[#allocation385_spill] sm:$0xff] %v12012_v6  ;;  %16248 = vst [vmem:[#allocation386_spill] sm:$0xff] %v12014_v39 }
 0x4f4   : > { %v12016_v15 = vpop.f32.mrf.mxu0 }
 0x4f5   : > { %16249 = vst [vmem:[#allocation387_spill] sm:$0xff] %v12016_v15 }
 0x4f6   : > { %v7570_v57 = vpop.f32.mrf.mxu0 }
 0x4f8   : > { %v7571_v58 = vpop.f32.mrf.mxu0 }
 0x4f9   : > { %v12018_v62 = vadd.f32 %v7571_v58, %v7570_v57 }
 0x4fa   : > { %v12020_v19 = vpop.f32.mrf.mxu0 }
 0x4fb   : > { %16250 = vst [vmem:[#allocation388_spill] sm:$0xff] %v12018_v62  ;;  %16251 = vst [vmem:[#allocation389_spill] sm:$0xff] %v12020_v19 }
 0x4fc   : > { %v12022_v13 = vpop.f32.mrf.mxu0 }
 0x4fd   : > { %16252 = vst [vmem:[#allocation390_spill] sm:$0xff] %v12022_v13 }
 0x4fe   : > { %v7576_v22 = vpop.f32.mrf.mxu0 }
 0x4ff   : > { %3531 = vrot.lane.b32.xlu1 %v9640_v60, %s8917_s27 }
 0x500   : > { %v7577_v18 = vpop.f32.mrf.mxu0 }
 0x501   : > { %v12026_v47 = vadd.f32 %v7577_v18, %v7576_v22 }
 0x502   : > { %v12028_v11 = vpop.f32.mrf.mxu0 }
 0x503   : > { %16253 = vst [vmem:[#allocation391_spill] sm:$0xff] %v12026_v47  ;;  %16254 = vst [vmem:[#allocation392_spill] sm:$0xff] %v12028_v11 }
 0x504   : > { %3529 = vrot.lane.b32.xlu0 %v15876_v36, %s8917_s27  ;;  %v12032_v63 = vpop.f32.mrf.mxu0 }
 0x505   : > { %16255 = vst [vmem:[#allocation393_spill] sm:$0xff] %v12032_v63 }
 0x506   : > { %v7582_v57 = vpop.f32.mrf.mxu0 }
 0x508   : > { %v7583_v58 = vpop.f32.mrf.mxu0 }
 0x509   : > { %v12034_v12 = vadd.f32 %v7583_v58, %v7582_v57 }
 0x50a   : > { %v12036_v62 = vpop.f32.mrf.mxu0 }
 0x50b   : > { %16256 = vst [vmem:[#allocation394_spill] sm:$0xff] %v12034_v12  ;;  %16257 = vst [vmem:[#allocation395_spill] sm:$0xff] %v12036_v62 }
 0x50c   : > { %v12038_v6 = vpop.f32.mrf.mxu0 }
 0x50d   : > { %16258 = vst [vmem:[#allocation396_spill] sm:$0xff] %v12038_v6  ;;  %v16266_v6 = vld [vmem:[#allocation146_spill] sm:$0xff] }
 0x50e   : > { %v7588_v13 = vpop.f32.mrf.mxu0  ;;  %vm16267_vm12 = vnez %v16266_v6 }
 0x510   : > { %v7589_v19 = vpop.f32.mrf.mxu0 }
 0x511   : > { %v12040_v15 = vadd.f32 %v7589_v19, %v7588_v13  ;;  %v2463_v19 = vsel %vm16267_vm12, %v11662_v46, 0.0  ;;  %v2465_v13 = vsel %vm16268_vm5, %v11668_v16, 0.0  ;;  %v16269_v46 = vld [vmem:[#allocation152_spill] sm:$0xff] }
 0x512   : > { %v12042_v22 = vpop.f32.mrf.mxu0  ;;  %vm16270_vm2 = vnez %v16269_v46 }
 0x513   : > { %16259 = vst [vmem:[#allocation397_spill] sm:$0xff] %v12040_v15  ;;  %16260 = vst [vmem:[#allocation398_spill] sm:$0xff] %v12042_v22  ;;  %v16304_v22 = vld [vmem:[#allocation54_spill] sm:$0xff] }
 0x514   : > { %v12044_v18 = vpop.f32.mrf.mxu0 }
 0x515   : > { %16261 = vst [vmem:[#allocation399_spill] sm:$0xff] %v12044_v18 }
 0x516   : > { %v7594_v47 = vpop.f32.mrf.mxu0 }
 0x518   : > { %v7595_v11 = vpop.f32.mrf.mxu0 }
 0x519   : > { %v12046_v39 = vadd.f32 %v7595_v11, %v7594_v47  ;;  %v2470_v47 = vsel %vm16270_vm2, %v11691_v10, 0.0  ;;  %v16271_v11 = vld [vmem:[#allocation158_spill] sm:$0xff] }
 0x51a   : > { %v12048_v63 = vpop.f32.mrf.mxu0  ;;  %v2550_v16 = vadd.f32 %v2470_v47, %v11687_v44  ;;  %vm16272_vm5 = vnez %v16271_v11  ;;  %v2482_v44 = vsel %vm16274_vm11, %v11733_v37, 0.0 }
 0x51b   : > { %16262 = vst [vmem:[#allocation400_spill] sm:$0xff] %v12046_v39  ;;  %16263 = vst [vmem:[#allocation401_spill] sm:$0xff] %v12048_v63 }
 0x51c   : > { %v12050_v57 = vpop.f32.mrf.mxu0 }
 0x51d   : > { %16264 = vst [vmem:[#allocation402_spill] sm:$0xff] %v12050_v57 }
 0x51e   : > { %v7600_v58 = vpop.f32.mrf.mxu0 }
 0x520   : > { %v7601_v12 = vpop.f32.mrf.mxu0 }
 0x521   : > { %v12052_v62 = vadd.f32 %v7601_v12, %v7600_v58  ;;  %v2474_v12 = vsel %vm16272_vm5, %v11705_v0, 0.0  ;;  %v2568_v0 = vadd.f32 %v2482_v44, %v11730_v55  ;;  %vm16275_vm5 = vnez %v15804_v21 }
 0x522   : > { %v2556_v58 = vadd.f32 %v2474_v12, %v11702_v35  ;;  %v2486_v35 = vsel %vm16275_vm5, %v11745_v5, 0.0 }
 0x523   : > { %16265 = vst [vmem:[#allocation403_spill] sm:$0xff] %v12052_v62  ;;  %2542 = vadd.xlane.f32.xlu0 %v2463_v19  ;;  %2545 = vadd.xlane.f32.xlu1 %v2465_v13  ;;  %v2478_v19 = vsel %vm16273_vm4, %v11719_v17, 0.0  ;;  %v12091_v17 = vpop.permute.xlu0 %3509  ;;  %vm16276_vm4 = vnez %v15817_v9 }
 0x524   : > { %v2562_v10 = vadd.f32 %v2478_v19, %v11714_v2  ;;  %v2490_v37 = vsel %vm16276_vm4, %v11757_v43, 0.0 }
 0x525   : > { %v2580_v55 = vadd.f32 %v2490_v37, %v11754_v25 }
 0x534   : > { %3533 = vrot.lane.b32.xlu1 %v15882_v49, %s8917_s27 }
 0x538   : > { %3537 = vrot.lane.b32.xlu1 %v15888_v54, %s8917_s27 }
 0x539   : > { %3539 = vrot.lane.b32.xlu0 %v15627_v33, %s8917_s27 }
 0x53d   : > { %3535 = vrot.lane.b32.xlu0 %v15625_v24, %s8917_s27 }
 0x55c   : > { %2548 = vadd.xlane.f32.xlu0 %v11685_v59  ;;  %2551 = vadd.xlane.f32.xlu1 %v2550_v16  ;;  %v16278_v59 = vld [vmem:[#allocation189_spill] sm:$0xff] }
 0x55d   : > { %vm16279_vm5 = vnez %v16278_v59 }
 0x560   : > { %2554 = vadd.xlane.f32.xlu0 %v11700_v48  ;;  %2557 = vadd.xlane.f32.xlu1 %v2556_v58  ;;  %v2574_v48 = vadd.f32 %v2486_v35, %v11742_v8  ;;  %v16280_v8 = vld [vmem:[#allocation196_spill] sm:$0xff] }
 0x561   : > { %vm16281_vm11 = vnez %v16280_v8 }
 0x562   : > { %v2498_v5 = vsel %vm16281_vm11, %v11787_v29, 0.0  ;;  %vm16295_vm11 = vcmask 261120  }
 0x563   : > { %v2592_v25 = vadd.f32 %v2498_v5, %v11784_v38 }
 0x564   : > { %2560 = vadd.xlane.f32.xlu0 %v11712_v1  ;;  %2563 = vadd.xlane.f32.xlu1 %v2562_v10  ;;  %v12098_v1 = vpop.xlane.xlu0 %2506 }
 0x565   : > { %16277 = vst [vmem:[#allocation404_spill] sm:$0xff] %v12098_v1  ;;  %v16374_v1 = vld [vmem:[#allocation151_spill] sm:$0xff] }
 0x568   : > { %2566 = vadd.xlane.f32.xlu0 %v11728_v51  ;;  %2569 = vadd.xlane.f32.xlu1 %v2568_v0  ;;  %v2494_v51 = vsel %vm16279_vm5, %v11769_v53, 0.0  ;;  %v12109_v43 = vpop.xlane.xlu0 %2509  ;;  %vm16296_vm5 = vmmov %vm16295_vm11 }
 0x569   : > { %v2586_v2 = vadd.f32 %v2494_v51, %v11766_v7  ;;  %16282 = vst [vmem:[#allocation405_spill] sm:$0xff] %v12109_v43  ;;  %vm16297_vm4 = vmmov %vm16296_vm5 }
 0x56a   : > { %vm16298_vm2 = vmmov %vm16297_vm4 }
 0x56b   : > { %vm16299_vm14 = vmmov %vm16298_vm2 }
 0x56c   : > { %2572 = vadd.xlane.f32.xlu0 %v11740_v23  ;;  %2575 = vadd.xlane.f32.xlu1 %v2574_v48  ;;  %v12112_v23 = vpop.permute.xlu1 %3511  ;;  %vm16311_vm10 = vmmov %vm16298_vm2 }
 0x56d   : > { %vm16312_vm12 = vmmov %vm16298_vm2 }
 0x570   : > { %2578 = vadd.xlane.f32.xlu0 %v11752_v28  ;;  %2581 = vadd.xlane.f32.xlu1 %v2580_v55  ;;  %v12116_v28 = vpop.xlane.xlu0 %2512  ;;  %v12118_v53 = vpop.xlane.xlu1 %2515 }
 0x571   : > { %16283 = vst [vmem:[#allocation406_spill] sm:$0xff] %v12116_v28  ;;  %16284 = vst [vmem:[#allocation407_spill] sm:$0xff] %v12118_v53 }
 0x574   : > { %2584 = vadd.xlane.f32.xlu0 %v11764_v26  ;;  %2587 = vadd.xlane.f32.xlu1 %v2586_v2  ;;  %v3516_v7 = vpop.permute.xlu1 %3515  ;;  %v3514_v13 = vpop.permute.xlu0 %3513 }
 0x578   : > { %2590 = vadd.xlane.f32.xlu0 %v11782_v41  ;;  %2593 = vadd.xlane.f32.xlu1 %v2592_v25  ;;  %v12120_v47 = vpop.xlane.xlu0 %2518  ;;  %v12122_v29 = vpop.xlane.xlu1 %2521 }
 0x579   : > { %16285 = vst [vmem:[#allocation408_spill] sm:$0xff] %v12120_v47  ;;  %16286 = vst [vmem:[#allocation409_spill] sm:$0xff] %v12122_v29 }
 0x57c   : > { %v3520_v16 = vpop.permute.xlu1 %3519  ;;  %v3518_v26 = vpop.permute.xlu0 %3517 }
 0x580   : > { %v12124_v12 = vpop.xlane.xlu0 %2524  ;;  %v12126_v58 = vpop.xlane.xlu1 %2527 }
 0x581   : > { %16287 = vst [vmem:[#allocation410_spill] sm:$0xff] %v12124_v12  ;;  %16288 = vst [vmem:[#allocation411_spill] sm:$0xff] %v12126_v58 }
 0x584   : > { %v3524_v38 = vpop.permute.xlu1 %3523  ;;  %v3522_v19 = vpop.permute.xlu0 %3521 }
 0x585   : > { %v3611_v62 = vsel %vm16296_vm5, %v3524_v38, 0  ;;  %v3608_v57 = vsel %vm16298_vm2, %v3522_v19, 0  ;;  %vm16301_vm5 = vmmov %vm16298_vm2 }
 0x588   : > { %v12128_v41 = vpop.xlane.xlu0 %2530  ;;  %v12130_v10 = vpop.xlane.xlu1 %2533 }
 0x589   : > { %16289 = vst [vmem:[#allocation412_spill] sm:$0xff] %v12128_v41  ;;  %16290 = vst [vmem:[#allocation413_spill] sm:$0xff] %v12130_v10 }
 0x58c   : > { %v3528_v44 = vpop.permute.xlu1 %3527  ;;  %v3526_v0 = vpop.permute.xlu0 %3525 }
 0x590   : > { %v12132_v35 = vpop.xlane.xlu0 %2536  ;;  %v12134_v48 = vpop.xlane.xlu1 %2539 }
 0x591   : > { %16291 = vst [vmem:[#allocation414_spill] sm:$0xff] %v12132_v35  ;;  %16292 = vst [vmem:[#allocation415_spill] sm:$0xff] %v12134_v48 }
 0x594   : > { %v3532_v37 = vpop.permute.xlu1 %3531  ;;  %v3530_v55 = vpop.permute.xlu0 %3529 }
 0x5a5   : > { %4730 = vxpose.xlu0.c.b16.start [1/8] (narrow) %v12091_v17, 32  ;;  %4746 = vxpose.xlu1.c.b16.start [1/8] (narrow) %v3526_v0, 32 }
 0x5a9   : > { %4731 = vxpose.xlu0.c.b16.cont [2/8] (narrow) %v12112_v23, 32  ;;  %4747 = vxpose.xlu1.c.b16.cont [2/8] (narrow) %v3528_v44, 32 }
 0x5ac   : > { %v12138_v51 = vpop.xlane.xlu0 %2542  ;;  %v12140_v2 = vpop.xlane.xlu1 %2545 }
 0x5ad   : > { %16293 = vst [vmem:[#allocation416_spill] sm:$0xff] %v12138_v51  ;;  %16294 = vst [vmem:[#allocation417_spill] sm:$0xff] %v12140_v2  ;;  %4732 = vxpose.xlu0.c.b16.cont [3/8] (narrow) %v3514_v13, 32  ;;  %4748 = vxpose.xlu1.c.b16.cont [3/8] (narrow) %v3530_v55, 32  ;;  %v16366_v51 = vld [vmem:[#allocation28_spill] sm:$0xff] }
 0x5b0   : > { %v3540_v5 = vpop.permute.xlu0 %3539  ;;  %v3534_v25 = vpop.permute.xlu1 %3533 }
 0x5b1   : > { %8210 = vmatprep.subr.msk.bf16.mxu1 %vm16295_vm11, %v3540_v5  ;;  %4733 = vxpose.xlu0.c.b16.cont [4/8] (narrow) %v3516_v7, 32  ;;  %vm16300_vm11 = vmmov %vm16298_vm2 }
 0x5b2   : > { %4749 = vxpose.xlu1.c.b16.cont [4/8] (narrow) %v3532_v37, 32  ;;  %7635 = vmatpush3.bf16.xpose.msra.mxu1 %v3611_v62  ;;  %v3605_v63 = vsel %vm16300_vm11, %v3520_v16, 0  ;;  %v16302_v62 = vld [vmem:[#allocation22_spill] sm:$0xff]  ;;  %vm16308_vm11 = vmmov %vm16298_vm2 }
 0x5b4   : > { %v3538_v39 = vpop.permute.xlu1 %3537  ;;  %v3536_v15 = vpop.permute.xlu0 %3535 }
 0x5b5   : > { %4734 = vxpose.xlu0.c.b16.cont [5/8] (narrow) %v3518_v26, 32  ;;  %8211 = vmatprep.subr.msk.bf16.mxu1 %vm16297_vm4, %v3538_v39  ;;  %vm16303_vm4 = vmmov %vm16298_vm2 }
 0x5b6   : > { %4750 = vxpose.xlu1.c.b16.cont [5/8] (narrow) %v3534_v25, 32  ;;  %v3602_v18 = vsel %vm16303_vm4, %v3518_v26, 0  ;;  %vm16310_vm4 = vmmov %vm16298_vm2  ;;  %v16337_v26 = vld [vmem:[#allocation334_spill] sm:$0xff] }
 0x5b9   : > { %4735 = vxpose.xlu0.c.b16.cont [6/8] (narrow) %v3520_v16, 32  ;;  %v16334_v16 = vld [vmem:[#allocation333_spill] sm:$0xff] }
 0x5ba   : > { %4751 = vxpose.xlu1.c.b16.cont [6/8] (narrow) %v3536_v15, 32  ;;  %7637 = vmatpush3.bf16.xpose.msra.mxu1 %v3608_v57 }
 0x5bb   : > { %8212 = vmatprep.subr.msk.bf16.mxu1 %vm16299_vm14, %v3536_v15  ;;  %vm16306_vm14 = vmmov %vm16298_vm2 }
 0x5bc   : > { %v3599_v15 = vsel %vm16306_vm14, %v3516_v7, 0  ;;  %v3590_v7 = vsel %vm16312_vm12, %v12091_v17, 0  ;;  %vm16313_vm14 = vmmov %vm16298_vm2  ;;  %v16320_v17 = vld [vmem:[#allocation316_spill] sm:$0xff] }
 0x5bd   : > { %4736 = vxpose.xlu0.c.b16.cont [7/8] (narrow) %v3522_v19, 32  ;;  %vm16319_vm12 = vmmov %vm16298_vm2 }
 0x5be   : > { %4752 = vxpose.xlu1.c.b16.cont [7/8] (narrow) %v3538_v39, 32  ;;  %v16305_v39 = vld [vmem:[#allocation24_spill] sm:$0xff] }
 0x5c1   : > { %4737 = vxpose.xlu0.c.b16.end [8/8] (narrow) %v3524_v38, 32  ;;  %v16339_v38 = vld [vmem:[#allocation338_spill] sm:$0xff] }
 0x5c2   : > { %4753 = vxpose.xlu1.c.b16.end [8/8] (narrow) %v3540_v5, 32  ;;  %7639 = vmatpush3.bf16.xpose.msra.mxu1 %v3605_v63  ;;  %v16307_v63 = vld [vmem:[#allocation27_spill] sm:$0xff] }
 0x5c3   : > { %8213 = vmatprep.subr.msk.bf16.mxu1 %vm16301_vm5, %v3534_v25  ;;  %vm16309_vm5 = vmmov %vm16298_vm2  ;;  %v16351_v25 = vld [vmem:[#allocation348_spill] sm:$0xff] }
 0x5c4   : > { %v3596_v57 = vsel %vm16309_vm5, %v3514_v13, 0  ;;  %vm16315_vm5 = vmmov %vm16298_vm2  ;;  %v16331_v13 = vld [vmem:[#allocation328_spill] sm:$0xff] }
 0x5c6   : > { %3992 = vrot.lane.b32.xlu1 %v16302_v62, %s8917_s27 }
 0x5ca   : > { %7641 = vmatpush3.bf16.xpose.msra.mxu1 %v3602_v18  ;;  %3994 = vrot.lane.b32.xlu1 %v16304_v22, %s8917_s27  ;;  %v3593_v18 = vsel %vm16311_vm10, %v12112_v23, 0  ;;  %vm16317_vm10 = vmmov %vm16298_vm2  ;;  %v16318_v23 = vld [vmem:[#allocation315_spill] sm:$0xff] }
 0x5cb   : > { %8214 = vmatprep.subr.msk.bf16.mxu1 %vm16298_vm2, %v3532_v37 }
 0x5ce   : > { %3996 = vrot.lane.b32.xlu1 %v16305_v39, %s8917_s27 }
 0x5d2   : > { %7643 = vmatpush3.bf16.xpose.msra.mxu1 %v3599_v15  ;;  %4000 = vrot.lane.b32.xlu1 %v16307_v63, %s8917_s27 }
 0x5d3   : > { %8215 = vmatprep.subr.msk.bf16.mxu1 %vm16308_vm11, %v3530_v55  ;;  %vm16314_vm11 = vmmov %vm16298_vm2  ;;  %v16348_v55 = vld [vmem:[#allocation347_spill] sm:$0xff] }
 0x5da   : > { %7645 = vmatpush3.bf16.xpose.msra.mxu1 %v3596_v57 }
 0x5db   : > { %8216 = vmatprep.subr.msk.bf16.mxu1 %vm16310_vm4, %v3528_v44  ;;  %vm16316_vm4 = vmmov %vm16298_vm2 }
 0x5e2   : > { %7647 = vmatpush3.bf16.xpose.msra.mxu1 %v3593_v18  ;;  %v16356_v18 = vld [vmem:[#allocation353_spill] sm:$0xff] }
 0x5e3   : > { %8217 = vmatprep.subr.msk.bf16.mxu1 %vm16298_vm2, %v3526_v0  ;;  %v16344_v0 = vld [vmem:[#allocation339_spill] sm:$0xff] }
 0x5e5   : > { %v12212_v19 = vpop.xlane.xlu1 %2551 }
 0x5e6   : > { %16341 = vst [vmem:[#allocation315_spill] sm:$0xff] %v12212_v19 }
 0x5e9   : > { %v12216_v44 = vpop.xlane.xlu1 %2557 }
 0x5ea   : > { %7649 = vmatpush3.bf16.xpose.msra.mxu1 %v3590_v7  ;;  %16343 = vst [vmem:[#allocation316_spill] sm:$0xff] %v12216_v44  ;;  %v16369_v44 = vld [vmem:[#allocation32_spill] sm:$0xff] }
 0x5ed   : > { %v12220_v37 = vpop.xlane.xlu1 %2563 }
 0x5f1   : > { %7651 = vmatmul.mubr.msk.bf16.vlgmr.msra.gmra.mxu1 %vm16313_vm14, %v11610_v14  ;;  %vm16321_vm14 = vmmov %vm16298_vm2  ;;  %v16323_v14 = vld [vmem:[#allocation321_spill] sm:$0xff]  ;;  %v12226_v5 = vpop.xlane.xlu1 %2569 }
 0x5f2   : > { %7652 = vmatprep.mubr.msk.bf16.mxu1 %vm16314_vm11, %v11797_v56  ;;  %vm16322_vm11 = vmmov %vm16298_vm2  ;;  %16346 = vst [vmem:[#allocation321_spill] sm:$0xff] %v12220_v37 }
 0x5f5   : > { %v12232_v15 = vpop.xlane.xlu1 %2575 }
 0x5f9   : > { %7653 = vmatmul.mubr.msk.bf16.gmra.mxu1 %vm16315_vm5, %v11797_v56  ;;  %vm16324_vm5 = vmmov %vm16298_vm2  ;;  %v16326_v56 = vld [vmem:[#allocation322_spill] sm:$0xff]  ;;  %v12236_v57 = vpop.xlane.xlu1 %2581 }
 0x5fa   : > { %7654 = vmatprep.mubr.msk.bf16.mxu1 %vm16316_vm4, %v11801_v20  ;;  %vm16325_vm4 = vmmov %vm16298_vm2  ;;  %16350 = vst [vmem:[#allocation322_spill] sm:$0xff] %v12226_v5 }
 0x5fb   : > { %16355 = vst [vmem:[#allocation328_spill] sm:$0xff] %v12236_v57 }
 0x5fd   : > { %v12240_v7 = vpop.xlane.xlu1 %2587 }
 0x5fe   : > { %16358 = vst [vmem:[#allocation333_spill] sm:$0xff] %v12240_v7 }
 0x601   : > { %7655 = vmatmul.mubr.msk.bf16.gmra.mxu1 %vm16317_vm10, %v11801_v20  ;;  %vm16327_vm10 = vmmov %vm16298_vm2  ;;  %v16328_v20 = vld [vmem:[#allocation327_spill] sm:$0xff] }
 0x602   : > { %7656 = vmatprep.mubr.msk.bf16.mxu1 %vm16298_vm2, %v16318_v23  ;;  %16353 = vst [vmem:[#allocation327_spill] sm:$0xff] %v12232_v15 }
 0x609   : > { %7657 = vmatmul.mubr.msk.bf16.gmra.mxu1 %vm16319_vm12, %v16318_v23  ;;  %vm16329_vm12 = vmmov %vm16298_vm2  ;;  %v12244_v23 = vpop.xlane.xlu1 %2593 }
 0x60a   : > { %7658 = vmatprep.mubr.msk.bf16.mxu1 %vm16321_vm14, %v16320_v17  ;;  %vm16330_vm14 = vmmov %vm16298_vm2  ;;  %16360 = vst [vmem:[#allocation334_spill] sm:$0xff] %v12244_v23 }
 0x611   : > { %7659 = vmatmul.mubr.msk.bf16.gmra.mxu1 %vm16322_vm11, %v16320_v17  ;;  %vm16332_vm11 = vmmov %vm16298_vm2  ;;  %v4754_v17 = vpop.trf.xlu1 }
 0x612   : > { %7660 = vmatprep.mubr.msk.bf16.mxu1 %vm16324_vm5, %v16323_v14  ;;  %vm16333_vm5 = vmmov %vm16298_vm2 }
 0x619   : > { %7661 = vmatmul.mubr.msk.bf16.gmra.mxu1 %vm16325_vm4, %v16323_v14  ;;  %vm16335_vm4 = vmmov %vm16298_vm2 }
 0x61a   : > { %7662 = vmatprep.mubr.msk.bf16.mxu1 %vm16327_vm10, %v16326_v56  ;;  %vm16336_vm10 = vmmov %vm16298_vm2 }
 0x621   : > { %7663 = vmatmul.mubr.msk.bf16.gmra.mxu1 %vm16298_vm2, %v16326_v56 }
 0x622   : > { %7664 = vmatprep.mubr.msk.bf16.mxu1 %vm16329_vm12, %v16328_v20  ;;  %vm16338_vm12 = vmmov %vm16298_vm2 }
 0x629   : > { %7665 = vmatmul.mubr.msk.bf16.gmra.mxu1 %vm16330_vm14, %v16328_v20  ;;  %vm16340_vm14 = vmmov %vm16298_vm2 }
 0x62a   : > { %7666 = vmatprep.mubr.msk.bf16.mxu1 %vm16332_vm11, %v16331_v13  ;;  %vm16342_vm11 = vmmov %vm16298_vm2 }
 0x631   : > { %7667 = vmatmul.mubr.msk.bf16.gmra.mxu1 %vm16333_vm5, %v16331_v13  ;;  %vm16345_vm5 = vmmov %vm16298_vm2 }
 0x632   : > { %7668 = vmatprep.mubr.msk.bf16.mxu1 %vm16335_vm4, %v16334_v16  ;;  %vm16347_vm4 = vmmov %vm16298_vm2 }
 0x639   : > { %7669 = vmatmul.mubr.msk.bf16.gmra.mxu1 %vm16336_vm10, %v16334_v16  ;;  %vm16349_vm10 = vmmov %vm16298_vm2 }
 0x63a   : > { %7670 = vmatprep.mubr.msk.bf16.mxu1 %vm16298_vm2, %v16337_v26 }
 0x641   : > { %7671 = vmatmul.mubr.msk.bf16.gmra.mxu1 %vm16338_vm12, %v16337_v26  ;;  %vm16352_vm12 = vmmov %vm16298_vm2 }
 0x642   : > { %7672 = vmatprep.mubr.msk.bf16.mxu1 %vm16340_vm14, %v16339_v38  ;;  %vm16354_vm14 = vmmov %vm16298_vm2 }
 0x649   : > { %7673 = vmatmul.mubr.msk.bf16.gmra.mxu1 %vm16342_vm11, %v16339_v38  ;;  %vm16357_vm11 = vmmov %vm16298_vm2  ;;  %v16399_v38 = vld [vmem:[#allocation182_spill] sm:$0xff] }
 0x64a   : > { %7674 = vmatprep.mubr.msk.bf16.mxu1 %vm16345_vm5, %v16344_v0  ;;  %vm16359_vm5 = vmmov %vm16298_vm2 }
 0x651   : > { %7675 = vmatmul.mubr.msk.bf16.gmra.mxu1 %vm16347_vm4, %v16344_v0  ;;  %vm16371_vm4 = vnez %v16266_v6 }
 0x652   : > { %7676 = vmatprep.mubr.msk.bf16.mxu1 %vm16349_vm10, %v16348_v55 }
 0x659   : > { %7677 = vmatmul.mubr.msk.bf16.gmra.mxu1 %vm16298_vm2, %v16348_v55  ;;  %vm16375_vm2 = vnez %v16374_v1 }
 0x65a   : > { %7678 = vmatprep.mubr.msk.bf16.mxu1 %vm16352_vm12, %v16351_v25  ;;  %vm16376_vm12 = vnez %v16269_v46 }
 0x661   : > { %7679 = vmatmul.mubr.msk.bf16.gmra.mxu1 %vm16354_vm14, %v16351_v25 }
 0x662   : > { %7680 = vmatprep.mubr.msk.bf16.mxu1 %vm16357_vm11, %v16356_v18  ;;  %vm16379_vm11 = vnez %v16271_v11  ;;  %v16382_v11 = vld [vmem:[#allocation35_spill] sm:$0xff] }
 0x669   : > { %7681 = vmatmul.mubr.msk.bf16.gmra.mxu1 %vm16359_vm5, %v16356_v18 }
 0x66a   : > { %4794 = vmatprep.mubr.bf16.mxu1 %v4754_v17 }
 0x6b1   : > { %v12246_v14 = vpop.f32.mrf.mxu1 }
 0x6b2   : > { %v3830_v20 = vsel %vm10408_vm6, %v12246_v14, 0.0 }
 0x6b3   : > { %3895 = vadd.xlane.f32.xlu0 %v3830_v20  ;;  %v3673_v13 = vpop.f32.mrf.mxu1 }
 0x6b5   : > { %v12251_v16 = vpop.f32.mrf.mxu1 }
 0x6b6   : > { %v3832_v0 = vsel %vm10417_vm7, %v12251_v16, 0.0 }
 0x6b7   : > { %v3677_v55 = vpop.f32.mrf.mxu1  ;;  %3898 = vadd.xlane.f32.xlu1 %v3832_v0 }
 0x6b9   : > { %v12258_v25 = vpop.f32.mrf.mxu1 }
 0x6ba   : > { %v3834_v17 = vsel %vm16104_vm13, %v12258_v25, 0.0 }
 0x6bb   : > { %3901 = vadd.xlane.f32.xlu0 %v3834_v17  ;;  %v3683_v20 = vpop.f32.mrf.mxu1 }
 0x6bd   : > { %v12263_v13 = vpop.f32.mrf.mxu1 }
 0x6be   : > { %v3836_v7 = vsel %vm16106_vm15, %v12263_v13, 0.0 }
 0x6bf   : > { %3904 = vadd.xlane.f32.xlu0 %v3836_v7  ;;  %v3687_v55 = vpop.f32.mrf.mxu1 }
 0x6c1   : > { %v12270_v0 = vpop.f32.mrf.mxu1 }
 0x6c2   : > { %v3838_v15 = vsel %vm16110_vm9, %v12270_v0, 0.0 }
 0x6c3   : > { %3907 = vadd.xlane.f32.xlu0 %v3838_v15  ;;  %v3693_v17 = vpop.f32.mrf.mxu1  ;;  %v16368_v15 = vld [vmem:[#allocation31_spill] sm:$0xff] }
 0x6c5   : > { %v12275_v20 = vpop.f32.mrf.mxu1 }
 0x6c7   : > { %v3697_v23 = vpop.f32.mrf.mxu1 }
 0x6c8   : > { %4004 = vrot.lane.b32.xlu1 %v16366_v51, %s8917_s27 }
 0x6c9   : > { %v12281_v37 = vpop.f32.mrf.mxu1 }
 0x6ca   : > { %v3842_v55 = vsel %vm16138_vm1, %v12281_v37, 0.0 }
 0x6cb   : > { %3913 = vadd.xlane.f32.xlu0 %v3842_v55  ;;  %v3703_v35 = vpop.f32.mrf.mxu1 }
 0x6cc   : > { %4008 = vrot.lane.b32.xlu1 %v16368_v15, %s8917_s27  ;;  %v16377_v15 = vld [vmem:[#allocation156_spill] sm:$0xff] }
 0x6cd   : > { %v12288_v17 = vpop.f32.mrf.mxu1  ;;  %vm16378_vm14 = vnez %v16377_v15  ;;  %v16380_v15 = vld [vmem:[#allocation163_spill] sm:$0xff] }
 0x6ce   : > { %vm16381_vm5 = vnez %v16380_v15 }
 0x6cf   : > { %v3707_v23 = vpop.f32.mrf.mxu1 }
 0x6d0   : > { %4012 = vrot.lane.b32.xlu1 %v16369_v44, %s8917_s27 }
 0x6d1   : > { %v12294_v41 = vpop.f32.mrf.mxu1 }
 0x6d2   : > { %v3846_v12 = vsel %vm16173_vm8, %v12294_v41, 0.0 }
 0x6d3   : > { %3919 = vadd.xlane.f32.xlu0 %v3846_v12  ;;  %v3713_v35 = vpop.f32.mrf.mxu1 }
 0x6d5   : > { %v12299_v55 = vpop.f32.mrf.mxu1 }
 0x6d7   : > { %v3717_v30 = vpop.f32.mrf.mxu1 }
 0x6d9   : > { %v12303_v2 = vpop.f32.mrf.mxu1 }
 0x6da   : > { %v3850_v23 = vsel %vm16218_vm0, %v12303_v2, 0.0 }
 0x6db   : > { %3925 = vadd.xlane.f32.xlu0 %v3850_v23  ;;  %v3723_v5 = vpop.f32.mrf.mxu1 }
 0x6dd   : > { %v12308_v47 = vpop.f32.mrf.mxu1 }
 0x6df   : > { %v3727_v35 = vpop.f32.mrf.mxu1 }
 0x6e1   : > { %v12312_v28 = vpop.f32.mrf.mxu1 }
 0x6e2   : > { %v3854_v30 = vsel %vm16244_vm3, %v12312_v28, 0.0 }
 0x6e3   : > { %3931 = vadd.xlane.f32.xlu0 %v3854_v30  ;;  %v3733_v4 = vpop.f32.mrf.mxu1 }
 0x6e5   : > { %v12317_v48 = vpop.f32.mrf.mxu1 }
 0x6e7   : > { %v3737_v5 = vpop.f32.mrf.mxu1 }
 0x6e8   : > { %v16372_v5 = vld [vmem:[#allocation126_spill] sm:$0xff] }
 0x6e9   : > { %v12321_v3 = vpop.f32.mrf.mxu1  ;;  %vm16373_vm10 = vnez %v16372_v5  ;;  %v16392_v5 = vld [vmem:[#allocation175_spill] sm:$0xff] }
 0x6ea   : > { %v3858_v35 = vsel %vm16371_vm4, %v12321_v3, 0.0  ;;  %v3840_v23 = vsel %vm16373_vm10, %v12275_v20, 0.0  ;;  %vm16494_vm4 = vcmask 261120  }
 0x6eb   : > { %3937 = vadd.xlane.f32.xlu0 %v3858_v35  ;;  %v3743_v12 = vpop.f32.mrf.mxu1 }
 0x6ed   : > { %v12326_v40 = vpop.f32.mrf.mxu1 }
 0x6ef   : > { %v3747_v4 = vpop.f32.mrf.mxu1 }
 0x6f1   : > { %v12330_v10 = vpop.f32.mrf.mxu1 }
 0x6f3   : > { %v12332_v43 = vpop.f32.mrf.mxu1 }
 0x6f4   : > { %v3863_v58 = vsel %vm16375_vm2, %v12332_v43, 0.0  ;;  %3910 = vadd.xlane.f32.xlu1 %v3840_v23  ;;  %vm16474_vm2 = vnez %v16245_v42  ;;  %v16477_v42 = vld [vmem:[#allocation50_spill] sm:$0xff] }
 0x6f5   : > { %v3942_v12 = vadd.f32 %v3863_v58, %v12330_v10  ;;  %v12341_v35 = vpop.f32.mrf.mxu1 }
 0x6f7   : > { %3943 = vadd.xlane.f32.xlu0 %v3942_v12  ;;  %v12345_v30 = vpop.f32.mrf.mxu1 }
 0x6f8   : > { %v3865_v29 = vsel %vm16376_vm12, %v12345_v30, 0.0  ;;  %vm16472_vm12 = vcmask 261120  }
 0x6f9   : > { %v12353_v44 = vadd.f32 %v3865_v29, %v12341_v35  ;;  %v12355_v23 = vpop.f32.mrf.mxu1 }
 0x6fb   : > { %v12357_v58 = vpop.f32.mrf.mxu1 }
 0x6fc   : > { %v3867_v12 = vsel %vm16378_vm14, %v12357_v58, 0.0 }
 0x6fd   : > { %v3948_v4 = vadd.f32 %v3867_v12, %v12355_v23  ;;  %v12363_v51 = vpop.f32.mrf.mxu1 }
 0x6ff   : > { %3949 = vadd.xlane.f32.xlu0 %v3948_v4  ;;  %v12367_v53 = vpop.f32.mrf.mxu1 }
 0x700   : > { %v3869_v29 = vsel %vm16379_vm11, %v12367_v53, 0.0  ;;  %vm16383_vm11 = vnez %v15777_v45 }
 0x701   : > { %v12375_v22 = vadd.f32 %v3869_v29, %v12363_v51  ;;  %v12377_v62 = vpop.f32.mrf.mxu1 }
 0x703   : > { %v12379_v12 = vpop.f32.mrf.mxu1 }
 0x704   : > { %v3871_v4 = vsel %vm16381_vm5, %v12379_v12, 0.0 }
 0x705   : > { %v3954_v63 = vadd.f32 %v3871_v4, %v12377_v62  ;;  %v12385_v46 = vpop.f32.mrf.mxu1  ;;  %4016 = vrot.lane.b32.xlu1 %v16382_v11, %s8917_s27  ;;  %v16386_v11 = vld [vmem:[#allocation169_spill] sm:$0xff] }
 0x706   : > { %vm16387_vm5 = vnez %v16386_v11 }
 0x707   : > { %3955 = vadd.xlane.f32.xlu0 %v3954_v63  ;;  %v12391_v29 = vpop.f32.mrf.mxu1 }
 0x708   : > { %v3873_v1 = vsel %vm16383_vm11, %v12391_v29, 0.0  ;;  %vm16389_vm11 = vnez %v15790_v50 }
 0x709   : > { %v12399_v4 = vadd.f32 %v3873_v1, %v12385_v46  ;;  %v12401_v6 = vpop.f32.mrf.mxu1 }
 0x70a   : > { %16384 = vst [vmem:[#allocation338_spill] sm:$0xff] %v12401_v6 }
 0x70b   : > { %v12403_v31 = vpop.f32.mrf.mxu1 }
 0x70c   : > { %16385 = vst [vmem:[#allocation339_spill] sm:$0xff] %v12403_v31  ;;  %v3875_v63 = vsel %vm16387_vm5, %v12403_v31, 0.0  ;;  %vm16393_vm5 = vnez %v16392_v5  ;;  %v16485_v31 = vld [vmem:[#allocation64_spill] sm:$0xff] }
 0x70d   : > { %v3960_v39 = vadd.f32 %v3875_v63, %v12401_v6  ;;  %v12409_v61 = vpop.f32.mrf.mxu1  ;;  %v16479_v6 = vld [vmem:[#allocation53_spill] sm:$0xff] }
 0x70e   : > { %16388 = vst [vmem:[#allocation347_spill] sm:$0xff] %v12409_v61 }
 0x70f   : > { %3961 = vadd.xlane.f32.xlu0 %v3960_v39  ;;  %v12413_v15 = vpop.f32.mrf.mxu1 }
 0x710   : > { %v3877_v1 = vsel %vm16389_vm11, %v12413_v15, 0.0  ;;  %vm16396_vm11 = vnez %v15804_v21 }
 0x711   : > { %v12421_v11 = vadd.f32 %v3877_v1, %v12409_v61  ;;  %v12423_v7 = vpop.f32.mrf.mxu1 }
 0x712   : > { %16390 = vst [vmem:[#allocation348_spill] sm:$0xff] %v12423_v7 }
 0x713   : > { %v12425_v63 = vpop.f32.mrf.mxu1 }
 0x714   : > { %16391 = vst [vmem:[#allocation353_spill] sm:$0xff] %v12425_v63  ;;  %v3879_v39 = vsel %vm16393_vm5, %v12425_v63, 0.0  ;;  %vm16400_vm5 = vnez %v16399_v38  ;;  %v16406_v63 = vld [vmem:[#allocation188_spill] sm:$0xff] }
 0x715   : > { %v3966_v45 = vadd.f32 %v3879_v39, %v12423_v7  ;;  %v12431_v57 = vpop.f32.mrf.mxu1 }
 0x716   : > { %16394 = vst [vmem:[#allocation418_spill] sm:$0xff] %v12431_v57 }
 0x717   : > { %3967 = vadd.xlane.f32.xlu0 %v3966_v45  ;;  %v12435_v19 = vpop.f32.mrf.mxu1 }
 0x718   : > { %16395 = vst [vmem:[#allocation419_spill] sm:$0xff] %v12435_v19  ;;  %v3881_v1 = vsel %vm16396_vm11, %v12435_v19, 0.0  ;;  %vm16403_vm11 = vnez %v15817_v9  ;;  %v16415_v9 = vld [vmem:[#allocation194_spill] sm:$0xff] }
 0x719   : > { %v12443_v5 = vadd.f32 %v3881_v1, %v12431_v57  ;;  %v12445_v18 = vpop.f32.mrf.mxu1  ;;  %vm16416_vm14 = vnez %v16415_v9 }
 0x71a   : > { %16397 = vst [vmem:[#allocation420_spill] sm:$0xff] %v12445_v18 }
 0x71b   : > { %v12447_v39 = vpop.f32.mrf.mxu1 }
 0x71c   : > { %16398 = vst [vmem:[#allocation421_spill] sm:$0xff] %v12447_v39  ;;  %v3883_v45 = vsel %vm16400_vm5, %v12447_v39, 0.0  ;;  %vm16407_vm5 = vnez %v16406_v63  ;;  %v16411_v63 = vld [vmem:[#allocation131_spill] sm:$0xff] }
 0x71d   : > { %v3972_v50 = vadd.f32 %v3883_v45, %v12445_v18  ;;  %v12453_v56 = vpop.f32.mrf.mxu1 }
 0x71e   : > { %16401 = vst [vmem:[#allocation422_spill] sm:$0xff] %v12453_v56 }
 0x71f   : > { %3973 = vadd.xlane.f32.xlu0 %v3972_v50  ;;  %v12457_v26 = vpop.f32.mrf.mxu1 }
 0x720   : > { %16402 = vst [vmem:[#allocation423_spill] sm:$0xff] %v12457_v26  ;;  %v3885_v1 = vsel %vm16403_vm11, %v12457_v26, 0.0  ;;  %vm16410_vm11 = vnez %v16278_v59 }
 0x721   : > { %v12465_v38 = vadd.f32 %v3885_v1, %v12453_v56  ;;  %v12467_v57 = vpop.f32.mrf.mxu1  ;;  %v16424_v56 = vld [vmem:[#allocation57_spill] sm:$0xff] }
 0x722   : > { %16404 = vst [vmem:[#allocation424_spill] sm:$0xff] %v12467_v57 }
 0x723   : > { %v12469_v45 = vpop.f32.mrf.mxu1 }
 0x724   : > { %16405 = vst [vmem:[#allocation425_spill] sm:$0xff] %v12469_v45  ;;  %v3887_v50 = vsel %vm16407_vm5, %v12469_v45, 0.0  ;;  %vm16412_vm5 = vnez %v16411_v63  ;;  %v12504_v63 = vpop.xlane.xlu0 %2548 }
 0x725   : > { %v3978_v21 = vadd.f32 %v3887_v50, %v12467_v57  ;;  %v12475_v18 = vpop.f32.mrf.mxu1  ;;  %v3844_v39 = vsel %vm16412_vm5, %v12288_v17, 0.0  ;;  %16417 = vst [vmem:[#allocation430_spill] sm:$0xff] %v12504_v63 }
 0x726   : > { %16408 = vst [vmem:[#allocation426_spill] sm:$0xff] %v12475_v18 }
 0x727   : > { %3979 = vadd.xlane.f32.xlu0 %v3978_v21  ;;  %v12479_v7 = vpop.f32.mrf.mxu1 }
 0x728   : > { %16409 = vst [vmem:[#allocation427_spill] sm:$0xff] %v12479_v7  ;;  %v3889_v1 = vsel %vm16410_vm11, %v12479_v7, 0.0  ;;  %vm16456_vm11 = vnez %v16219_v27  ;;  %v16466_v27 = vld [vmem:[#allocation40_spill] sm:$0xff] }
 0x729   : > { %v12490_v50 = vadd.f32 %v3889_v1, %v12475_v18  ;;  %v12492_v26 = vpop.f32.mrf.mxu1  ;;  %3916 = vadd.xlane.f32.xlu1 %v3844_v39  ;;  %v16418_v1 = vld [vmem:[#allocation37_spill] sm:$0xff]  ;;  %v12508_v39 = vpop.xlane.xlu0 %2554  ;;  %v16420_v18 = vld [vmem:[#allocation52_spill] sm:$0xff] }
 0x72a   : > { %16413 = vst [vmem:[#allocation428_spill] sm:$0xff] %v12492_v26  ;;  %16419 = vst [vmem:[#allocation431_spill] sm:$0xff] %v12508_v39  ;;  %v16427_v39 = vld [vmem:[#allocation62_spill] sm:$0xff] }
 0x72b   : > { %v12494_v21 = vpop.f32.mrf.mxu1 }
 0x72c   : > { %16414 = vst [vmem:[#allocation429_spill] sm:$0xff] %v12494_v21  ;;  %v3891_v59 = vsel %vm16416_vm14, %v12494_v21, 0.0 }
 0x72d   : > { %v3984_v57 = vadd.f32 %v3891_v59, %v12492_v26  ;;  %v12500_v19 = vpop.f32.mrf.mxu1  ;;  %v12512_v9 = vpop.xlane.xlu0 %2560  ;;  %v16422_v59 = vld [vmem:[#allocation56_spill] sm:$0xff] }
 0x72e   : > { %16421 = vst [vmem:[#allocation432_spill] sm:$0xff] %v12512_v9  ;;  %v16429_v9 = vld [vmem:[#allocation65_spill] sm:$0xff] }
 0x72f   : > { %3985 = vadd.xlane.f32.xlu0 %v3984_v57  ;;  %v16425_v57 = vld [vmem:[#allocation60_spill] sm:$0xff] }
 0x731   : > { %v12516_v21 = vpop.xlane.xlu0 %2566 }
 0x732   : > { %16423 = vst [vmem:[#allocation433_spill] sm:$0xff] %v12516_v21  ;;  %v16431_v21 = vld [vmem:[#allocation135_spill] sm:$0xff] }
 0x733   : > { %vm16432_vm14 = vnez %v16431_v21 }
 0x735   : > { %v12522_v63 = vpop.xlane.xlu0 %2572 }
 0x736   : > { %16426 = vst [vmem:[#allocation434_spill] sm:$0xff] %v12522_v63  ;;  %v16434_v63 = vld [vmem:[#allocation72_spill] sm:$0xff] }
 0x73a   : > { %4020 = vrot.lane.b32.xlu1 %v16418_v1, %s8917_s27  ;;  %v12526_v1 = vpop.xlane.xlu0 %2578 }
 0x73b   : > { %16428 = vst [vmem:[#allocation435_spill] sm:$0xff] %v12526_v1  ;;  %v16436_v1 = vld [vmem:[#allocation76_spill] sm:$0xff] }
 0x745   : > { %3990 = vrot.lane.b32.xlu0 %v16420_v18, %s8917_s27  ;;  %v16430_v18 = vld [vmem:[#allocation67_spill] sm:$0xff] }
 0x749   : > { %3998 = vrot.lane.b32.xlu0 %v16422_v59, %s8917_s27  ;;  %v12535_v59 = vpop.xlane.xlu0 %2584 }
 0x74a   : > { %16433 = vst [vmem:[#allocation436_spill] sm:$0xff] %v12535_v59  ;;  %v16440_v59 = vld [vmem:[#allocation87_spill] sm:$0xff] }
 0x74d   : > { %4002 = vrot.lane.b32.xlu0 %v16424_v56, %s8917_s27  ;;  %v3848_v56 = vsel %vm16432_vm14, %v12299_v55, 0.0 }
 0x751   : > { %4006 = vrot.lane.b32.xlu0 %v16425_v57, %s8917_s27  ;;  %v12539_v57 = vpop.xlane.xlu0 %2590 }
 0x752   : > { %16435 = vst [vmem:[#allocation437_spill] sm:$0xff] %v12539_v57 }
 0x755   : > { %4010 = vrot.lane.b32.xlu0 %v16427_v39, %s8917_s27  ;;  %v12543_v39 = vpop.trf.xlu0 }
 0x759   : > { %4014 = vrot.lane.b32.xlu0 %v16429_v9, %s8917_s27  ;;  %v16437_v9 = vld [vmem:[#allocation80_spill] sm:$0xff]  ;;  %v12549_v21 = vpop.trf.xlu0 }
 0x75d   : > { %4018 = vrot.lane.b32.xlu0 %v16430_v18, %s8917_s27  ;;  %v16438_v18 = vld [vmem:[#allocation83_spill] sm:$0xff]  ;;  %v12555_v57 = vpop.xlane.xlu0 %3895 }
 0x75e   : > { %3922 = vadd.xlane.f32.xlu1 %v3848_v56  ;;  %v16439_v56 = vld [vmem:[#allocation38_spill] sm:$0xff]  ;;  %16441 = vst [vmem:[#allocation438_spill] sm:$0xff] %v12555_v57  ;;  %v16449_v57 = vld [vmem:[#allocation73_spill] sm:$0xff] }
 0x761   : > { %4022 = vrot.lane.b32.xlu0 %v16434_v63, %s8917_s27  ;;  %v12559_v63 = vpop.xlane.xlu0 %3901 }
 0x762   : > { %16443 = vst [vmem:[#allocation439_spill] sm:$0xff] %v12559_v63  ;;  %v16451_v63 = vld [vmem:[#allocation77_spill] sm:$0xff] }
 0x765   : > { %4026 = vrot.lane.b32.xlu0 %v16436_v1, %s8917_s27  ;;  %v16442_v1 = vld [vmem:[#allocation90_spill] sm:$0xff]  ;;  %v12565_v26 = vpop.xlane.xlu0 %3904 }
 0x766   : > { %16446 = vst [vmem:[#allocation440_spill] sm:$0xff] %v12565_v26  ;;  %v16455_v26 = vld [vmem:[#allocation84_spill] sm:$0xff] }
 0x769   : > { %4030 = vrot.lane.b32.xlu0 %v16437_v9, %s8917_s27  ;;  %v16444_v9 = vld [vmem:[#allocation93_spill] sm:$0xff]  ;;  %v12569_v45 = vpop.xlane.xlu0 %3907 }
 0x76a   : > { %16448 = vst [vmem:[#allocation441_spill] sm:$0xff] %v12569_v45  ;;  %v3852_v45 = vsel %vm16456_vm11, %v12308_v47, 0.0 }
 0x76d   : > { %4034 = vrot.lane.b32.xlu0 %v16438_v18, %s8917_s27  ;;  %v16445_v18 = vld [vmem:[#allocation97_spill] sm:$0xff] }
 0x76f   : > { %4024 = vrot.lane.b32.xlu1 %v16439_v56, %s8917_s27  ;;  %v16447_v56 = vld [vmem:[#allocation68_spill] sm:$0xff] }
 0x771   : > { %4038 = vrot.lane.b32.xlu0 %v16440_v59, %s8917_s27  ;;  %v12573_v59 = vpop.xlane.xlu0 %3913 }
 0x772   : > { %16450 = vst [vmem:[#allocation442_spill] sm:$0xff] %v12573_v59  ;;  %v16458_v59 = vld [vmem:[#allocation88_spill] sm:$0xff] }
 0x775   : > { %4042 = vrot.lane.b32.xlu0 %v16442_v1, %s8917_s27  ;;  %v12577_v1 = vpop.xlane.xlu0 %3919 }
 0x776   : > { %16452 = vst [vmem:[#allocation443_spill] sm:$0xff] %v12577_v1  ;;  %v16460_v1 = vld [vmem:[#allocation91_spill] sm:$0xff] }
 0x779   : > { %4046 = vrot.lane.b32.xlu0 %v16444_v9, %s8917_s27  ;;  %v16453_v9 = vld [vmem:[#allocation81_spill] sm:$0xff] }
 0x77d   : > { %4050 = vrot.lane.b32.xlu0 %v16445_v18, %s8917_s27  ;;  %v12581_v18 = vpop.xlane.xlu0 %3925 }
 0x77e   : > { %16454 = vst [vmem:[#allocation444_spill] sm:$0xff] %v12581_v18  ;;  %v16462_v18 = vld [vmem:[#allocation94_spill] sm:$0xff] }
 0x781   : > { %4439 = vrot.lane.b32.xlu0 %v16447_v56, %s8917_s27  ;;  %v12588_v7 = vpop.xlane.xlu0 %3931 }
 0x782   : > { %16457 = vst [vmem:[#allocation445_spill] sm:$0xff] %v12588_v7 }
 0x785   : > { %4437 = vrot.lane.b32.xlu0 %v16449_v57, %s8917_s27 }
 0x789   : > { %4435 = vrot.lane.b32.xlu0 %v16451_v63, %s8917_s27  ;;  %v12592_v63 = vpop.xlane.xlu0 %3937 }
 0x78a   : > { %16459 = vst [vmem:[#allocation446_spill] sm:$0xff] %v12592_v63 }
 0x78d   : > { %4433 = vrot.lane.b32.xlu0 %v16453_v9, %s8917_s27  ;;  %v12596_v9 = vpop.xlane.xlu0 %3943 }
 0x78e   : > { %16461 = vst [vmem:[#allocation447_spill] sm:$0xff] %v12596_v9 }
 0x791   : > { %4431 = vrot.lane.b32.xlu0 %v16455_v26, %s8917_s27  ;;  %v12600_v26 = vpop.xlane.xlu0 %3949 }
 0x792   : > { %16463 = vst [vmem:[#allocation448_spill] sm:$0xff] %v12600_v26 }
 0x793   : > { %3928 = vadd.xlane.f32.xlu1 %v3852_v45  ;;  %v16464_v45 = vld [vmem:[#allocation21_spill] sm:$0xff] }
 0x795   : > { %4429 = vrot.lane.b32.xlu0 %v16458_v59, %s8917_s27  ;;  %v12604_v7 = vpop.xlane.xlu0 %3955 }
 0x796   : > { %16465 = vst [vmem:[#allocation21_spill] sm:$0xff] %v12604_v7 }
 0x799   : > { %4427 = vrot.lane.b32.xlu0 %v16460_v1, %s8917_s27  ;;  %v12608_v63 = vpop.xlane.xlu0 %3961 }
 0x79a   : > { %16467 = vst [vmem:[#allocation449_spill] sm:$0xff] %v12608_v63  ;;  %v3856_v63 = vsel %vm16474_vm2, %v12317_v48, 0.0 }
 0x79d   : > { %4425 = vrot.lane.b32.xlu0 %v16462_v18, %s8917_s27 }
 0x7a0   : > { %v12610_v59 = vpop.xlane.xlu0 %3967 }
 0x7a1   : > { %4870 = vrot.lane.b32.xlu0 %v16464_v45, %s8918_s8  ;;  %16468 = vst [vmem:[#allocation450_spill] sm:$0xff] %v12610_v59 }
 0x7a4   : > { %4028 = vrot.lane.b32.xlu1 %v16466_v27, %s8917_s27  ;;  %v16476_v27 = vld [vmem:[#allocation42_spill] sm:$0xff] }
 0x7a8   : > { %v12612_v1 = vpop.xlane.xlu0 %3973 }
 0x7a9   : > { %16469 = vst [vmem:[#allocation451_spill] sm:$0xff] %v12612_v1 }
 0x7b0   : > { %v12614_v9 = vpop.xlane.xlu0 %3979 }
 0x7b1   : > { %16470 = vst [vmem:[#allocation452_spill] sm:$0xff] %v12614_v9 }
 0x7b8   : > { %v12616_v18 = vpop.xlane.xlu0 %3985 }
 0x7b9   : > { %16471 = vst [vmem:[#allocation453_spill] sm:$0xff] %v12616_v18 }
 0x7bc   : > { %v3991_v26 = vpop.permute.xlu0 %3990 }
 0x7bd   : > { %v4086_v57 = vsel %vm16472_vm12, %v3991_v26, 0.0  ;;  %v16475_v26 = vld [vmem:[#allocation45_spill] sm:$0xff]  ;;  %vm16491_vm12 = vnez %v15741_v34 }
 0x7c0   : > { %4087 = vadd.xlane.f32.xlu0 %v4086_v57  ;;  %v12619_v45 = vpop.permute.xlu0 %3998 }
 0x7c1   : > { %16473 = vst [vmem:[#allocation454_spill] sm:$0xff] %v12619_v45 }
 0x7c4   : > { %v12621_v7 = vpop.permute.xlu0 %4002 }
 0x7c8   : > { %3934 = vadd.xlane.f32.xlu1 %v3856_v63  ;;  %v12626_v59 = vpop.permute.xlu0 %4006 }
 0x7cc   : > { %v12628_v1 = vpop.permute.xlu0 %4010 }
 0x7d0   : > { %v12630_v9 = vpop.permute.xlu0 %4014 }
 0x7d4   : > { %v12632_v18 = vpop.permute.xlu0 %4018 }
 0x7d6   : > { %4858 = vrot.lane.b32.xlu0 %v16475_v26, %s8918_s8  ;;  %v16481_v26 = vld [vmem:[#allocation58_spill] sm:$0xff] }
 0x7d8   : > { %v12636_v57 = vpop.permute.xlu0 %4022 }
 0x7d9   : > { %4032 = vrot.lane.b32.xlu1 %v16476_v27, %s8917_s27  ;;  %v16483_v27 = vld [vmem:[#allocation61_spill] sm:$0xff] }
 0x7da   : > { %4872 = vrot.lane.b32.xlu0 %v9796_v32, %s8918_s8 }
 0x7dc   : > { %v12642_v63 = vpop.permute.xlu0 %4026 }
 0x7de   : > { %4826 = vrot.lane.b32.xlu0 %v16477_v42, %s8918_s8 }
 0x7e0   : > { %v12646_v45 = vpop.permute.xlu0 %4030 }
 0x7e1   : > { %16478 = vst [vmem:[#allocation45_spill] sm:$0xff] %v12646_v45  ;;  %v16487_v45 = vld [vmem:[#allocation63_spill] sm:$0xff] }
 0x7e2   : > { %4830 = vrot.lane.b32.xlu0 %v16479_v6, %s8918_s8 }
 0x7e4   : > { %v12650_v61 = vpop.permute.xlu0 %4034 }
 0x7e5   : > { %16480 = vst [vmem:[#allocation50_spill] sm:$0xff] %v12650_v61  ;;  %v16489_v61 = vld [vmem:[#allocation71_spill] sm:$0xff] }
 0x7e6   : > { %4834 = vrot.lane.b32.xlu0 %v16481_v26, %s8918_s8 }
 0x7e8   : > { %v12654_v56 = vpop.permute.xlu0 %4038 }
 0x7e9   : > { %16482 = vst [vmem:[#allocation53_spill] sm:$0xff] %v12654_v56 }
 0x7ea   : > { %4838 = vrot.lane.b32.xlu0 %v16483_v27, %s8918_s8  ;;  %v16490_v27 = vld [vmem:[#allocation66_spill] sm:$0xff] }
 0x7ec   : > { %v12658_v32 = vpop.permute.xlu0 %4042 }
 0x7ed   : > { %16484 = vst [vmem:[#allocation58_spill] sm:$0xff] %v12658_v32 }
 0x7ee   : > { %4840 = vrot.lane.b32.xlu0 %v16485_v31, %s8918_s8  ;;  %v3860_v31 = vsel %vm16491_vm12, %v12326_v40, 0.0  ;;  %vm16552_vm12 = vcmask 261120  }
 0x7ef   : > { %vm16553_vm2 = vmmov %vm16552_vm12 }
 0x7f0   : > { %v12662_v42 = vpop.permute.xlu0 %4046 }
 0x7f1   : > { %16486 = vst [vmem:[#allocation61_spill] sm:$0xff] %v12662_v42  ;;  %v12675_v42 = vpop.trf.xlu1 }
 0x7f2   : > { %4842 = vrot.lane.b32.xlu0 %v16487_v45, %s8918_s8  ;;  %v16492_v45 = vld [vmem:[#allocation44_spill] sm:$0xff] }
 0x7f4   : > { %v12666_v6 = vpop.permute.xlu0 %4050 }
 0x7f5   : > { %16488 = vst [vmem:[#allocation64_spill] sm:$0xff] %v12666_v6  ;;  %v12679_v6 = vpop.permute.xlu1 %3992 }
 0x7f6   : > { %4844 = vrot.lane.b32.xlu0 %v16489_v61, %s8918_s8  ;;  %v16493_v61 = vld [vmem:[#allocation46_spill] sm:$0xff] }
 0x7f8   : > { %v4440_v26 = vpop.permute.xlu0 %4439 }
 0x7f9   : > { %7700 = vmatprep.subr.bf16.mxu0 %v4440_v26  ;;  %7812 = vmatprep.subr.bf16.mxu1 %v4440_v26  ;;  %v3995_v32 = vpop.permute.xlu1 %3994 }
 0x7fa   : > { %4846 = vrot.lane.b32.xlu0 %v16490_v27, %s8918_s8  ;;  %v4092_v26 = vsel %vm16494_vm4, %v3995_v32, 0.0  ;;  %v16495_v27 = vld [vmem:[#allocation69_spill] sm:$0xff]  ;;  %vm16527_vm4 = vnez %v16280_v8 }
 0x7fd   : > { %3940 = vadd.xlane.f32.xlu1 %v3860_v31  ;;  %v16496_v31 = vld [vmem:[#allocation47_spill] sm:$0xff]  ;;  %v12696_v32 = vpop.permute.xlu1 %3996 }
 0x80e   : > { %4036 = vrot.lane.b32.xlu1 %v16492_v45, %s8917_s27  ;;  %v16497_v45 = vld [vmem:[#allocation48_spill] sm:$0xff] }
 0x812   : > { %4040 = vrot.lane.b32.xlu1 %v16493_v61, %s8917_s27  ;;  %v16498_v61 = vld [vmem:[#allocation49_spill] sm:$0xff] }
 0x819   : > { %4093 = vadd.xlane.f32.xlu0 %v4092_v26  ;;  %v12698_v26 = vpop.permute.xlu1 %4000 }
 0x82f   : > { %4850 = vrot.lane.b32.xlu0 %v16495_v27, %s8918_s8  ;;  %v12702_v27 = vpop.xlane.xlu1 %3898 }
 0x830   : > { %16500 = vst [vmem:[#allocation63_spill] sm:$0xff] %v12702_v27  ;;  %v16510_v27 = vld [vmem:[#allocation75_spill] sm:$0xff] }
 0x836   : > { %3946 = vadd.xlane.f32.xlu1 %v12353_v44  ;;  %v16499_v44 = vld [vmem:[#allocation70_spill] sm:$0xff] }
 0x847   : > { %4044 = vrot.lane.b32.xlu1 %v16496_v31, %s8917_s27 }
 0x86b   : > { %3952 = vadd.xlane.f32.xlu1 %v12375_v22  ;;  %v12704_v22 = vpop.permute.xlu1 %4004 }
 0x86c   : > { %16501 = vst [vmem:[#allocation71_spill] sm:$0xff] %v12704_v22 }
 0x86f   : > { %v12706_v31 = vpop.permute.xlu1 %4008 }
 0x870   : > { %16502 = vst [vmem:[#allocation66_spill] sm:$0xff] %v12706_v31 }
 0x87c   : > { %4048 = vrot.lane.b32.xlu1 %v16497_v45, %s8917_s27  ;;  %v12708_v45 = vpop.permute.xlu1 %4012 }
 0x87d   : > { %16503 = vst [vmem:[#allocation69_spill] sm:$0xff] %v12708_v45 }
 0x8a0   : > { %3958 = vadd.xlane.f32.xlu1 %v12399_v4  ;;  %v12710_v4 = vpop.xlane.xlu1 %3910 }
 0x8a1   : > { %16504 = vst [vmem:[#allocation455_spill] sm:$0xff] %v12710_v4 }
 0x8b1   : > { %4052 = vrot.lane.b32.xlu1 %v16498_v61, %s8917_s27  ;;  %v12712_v61 = vpop.permute.xlu1 %4016 }
 0x8b2   : > { %16505 = vst [vmem:[#allocation456_spill] sm:$0xff] %v12712_v61 }
 0x8d5   : > { %3964 = vadd.xlane.f32.xlu1 %v12421_v11  ;;  %v12714_v11 = vpop.xlane.xlu1 %3916 }
 0x8d6   : > { %16506 = vst [vmem:[#allocation457_spill] sm:$0xff] %v12714_v11 }
 0x8d9   : > { %v12717_v34 = vpop.permute.xlu1 %4020 }
 0x8da   : > { %16507 = vst [vmem:[#allocation458_spill] sm:$0xff] %v12717_v34 }
 0x8dd   : > { %v12719_v56 = vpop.xlane.xlu1 %3922 }
 0x8de   : > { %16508 = vst [vmem:[#allocation459_spill] sm:$0xff] %v12719_v56 }
 0x8e6   : > { %4423 = vrot.lane.b32.xlu1 %v16499_v44, %s8917_s27  ;;  %v12721_v44 = vpop.permute.xlu1 %4024 }
 0x8e7   : > { %16509 = vst [vmem:[#allocation460_spill] sm:$0xff] %v12721_v44 }
 0x8ea   : > { %v12725_v31 = vpop.xlane.xlu1 %3928 }
 0x8eb   : > { %16511 = vst [vmem:[#allocation75_spill] sm:$0xff] %v12725_v31 }
 0x8ee   : > { %v12727_v45 = vpop.permute.xlu1 %4028 }
 0x8ef   : > { %16512 = vst [vmem:[#allocation461_spill] sm:$0xff] %v12727_v45  ;;  %v4438_v45 = vpop.permute.xlu0 %4437 }
 0x8f2   : > { %v12729_v4 = vpop.xlane.xlu1 %3934 }
 0x8f3   : > { %16513 = vst [vmem:[#allocation462_spill] sm:$0xff] %v12729_v4  ;;  %v16521_v4 = vld [vmem:[#allocation78_spill] sm:$0xff] }
 0x8f6   : > { %v12731_v61 = vpop.permute.xlu1 %4032 }
 0x8f7   : > { %16514 = vst [vmem:[#allocation463_spill] sm:$0xff] %v12731_v61 }
 0x8fa   : > { %v12733_v11 = vpop.xlane.xlu1 %3940 }
 0x8fb   : > { %16515 = vst [vmem:[#allocation464_spill] sm:$0xff] %v12733_v11 }
 0x90a   : > { %3970 = vadd.xlane.f32.xlu1 %v12443_v5  ;;  %v12735_v5 = vpop.permute.xlu1 %4036 }
 0x90b   : > { %16516 = vst [vmem:[#allocation465_spill] sm:$0xff] %v12735_v5 }
 0x90e   : > { %v12737_v34 = vpop.permute.xlu1 %4040 }
 0x90f   : > { %16517 = vst [vmem:[#allocation466_spill] sm:$0xff] %v12737_v34 }
 0x912   : > { %v12740_v56 = vpop.xlane.xlu1 %3946 }
 0x913   : > { %16518 = vst [vmem:[#allocation467_spill] sm:$0xff] %v12740_v56 }
 0x916   : > { %v12742_v44 = vpop.permute.xlu1 %4044 }
 0x91a   : > { %v12744_v22 = vpop.xlane.xlu1 %3952 }
 0x91b   : > { %4421 = vrot.lane.b32.xlu1 %v16510_v27, %s8917_s27  ;;  %16519 = vst [vmem:[#allocation468_spill] sm:$0xff] %v12744_v22 }
 0x91e   : > { %v12746_v31 = vpop.permute.xlu1 %4048 }
 0x91f   : > { %16520 = vst [vmem:[#allocation469_spill] sm:$0xff] %v12746_v31  ;;  %v4436_v31 = vpop.permute.xlu0 %4435 }
 0x929   : > { %v12750_v61 = vpop.xlane.xlu1 %3958 }
 0x92a   : > { %16522 = vst [vmem:[#allocation78_spill] sm:$0xff] %v12750_v61  ;;  %v16530_v61 = vld [vmem:[#allocation92_spill] sm:$0xff] }
 0x92d   : > { %v12752_v11 = vpop.permute.xlu1 %4052 }
 0x92e   : > { %16523 = vst [vmem:[#allocation470_spill] sm:$0xff] %v12752_v11  ;;  %v16534_v11 = vld [vmem:[#allocation30_spill] sm:$0xff] }
 0x93f   : > { %3976 = vadd.xlane.f32.xlu1 %v12465_v38  ;;  %v16525_v38 = vld [vmem:[#allocation82_spill] sm:$0xff] }
 0x950   : > { %4419 = vrot.lane.b32.xlu1 %v16521_v4, %s8917_s27 }
 0x95e   : > { %v12754_v5 = vpop.xlane.xlu1 %3964 }
 0x95f   : > { %16524 = vst [vmem:[#allocation471_spill] sm:$0xff] %v12754_v5  ;;  %v12761_v5 = vpop.f32.mrf.mxu1 }
 0x962   : > { %v4424_v34 = vpop.permute.xlu1 %4423 }
 0x963   : > { %7701 = vmatpush3.bf16.msra.mxu0 %v4424_v34  ;;  %7813 = vmatpush3.bf16.msra.mxu1 %v4424_v34  ;;  %v3893_v34 = vsel %vm16527_vm4, %v12761_v5, 0.0  ;;  %vm16544_vm4 = vcmask 261120  }
 0x964   : > { %7702 = vmatprep.subr.bf16.mxu0 %v4438_v45  ;;  %7814 = vmatprep.subr.bf16.mxu1 %v4438_v45  ;;  %v3987_v45 = vadd.f32 %v3893_v34, %v12500_v19  ;;  %v4434_v34 = vpop.permute.xlu0 %4433 }
 0x974   : > { %3982 = vadd.xlane.f32.xlu1 %v12490_v50  ;;  %v16528_v50 = vld [vmem:[#allocation85_spill] sm:$0xff] }
 0x985   : > { %4417 = vrot.lane.b32.xlu1 %v16525_v38, %s8917_s27 }
 0x993   : > { %v12759_v22 = vpop.xlane.xlu1 %3970 }
 0x994   : > { %16526 = vst [vmem:[#allocation82_spill] sm:$0xff] %v12759_v22  ;;  %v16529_v22 = vld [vmem:[#allocation89_spill] sm:$0xff] }
 0x997   : > { %v4422_v56 = vpop.permute.xlu1 %4421 }
 0x998   : > { %7703 = vmatpush3.bf16.msra.mxu0 %v4422_v56  ;;  %7815 = vmatpush3.bf16.msra.mxu1 %v4422_v56  ;;  %v16531_v56 = vld [vmem:[#allocation96_spill] sm:$0xff] }
 0x999   : > { %7704 = vmatprep.subr.bf16.mxu0 %v4436_v31  ;;  %7816 = vmatprep.subr.bf16.mxu1 %v4436_v31 }
 0x9a9   : > { %3988 = vadd.xlane.f32.xlu1 %v3987_v45  ;;  %v16533_v45 = vld [vmem:[#allocation25_spill] sm:$0xff] }
 0x9ba   : > { %4415 = vrot.lane.b32.xlu1 %v16528_v50, %s8917_s27 }
 0x9be   : > { %4413 = vrot.lane.b32.xlu1 %v16529_v22, %s8917_s27 }
 0x9c2   : > { %4411 = vrot.lane.b32.xlu1 %v16530_v61, %s8917_s27 }
 0x9c6   : > { %4409 = vrot.lane.b32.xlu1 %v16531_v56, %s8917_s27 }
 0x9c8   : > { %v12775_v31 = vpop.xlane.xlu1 %3976 }
 0x9c9   : > { %16532 = vst [vmem:[#allocation85_spill] sm:$0xff] %v12775_v31 }
 0x9ca   : > { %4886 = vrot.lane.b32.xlu1 %v15627_v33, %s8918_s8  ;;  %v16535_v33 = vld [vmem:[#allocation33_spill] sm:$0xff] }
 0x9cc   : > { %v4420_v8 = vpop.permute.xlu1 %4419 }
 0x9cd   : > { %7705 = vmatpush3.bf16.msra.mxu0 %v4420_v8  ;;  %7817 = vmatpush3.bf16.msra.mxu1 %v4420_v8  ;;  %v16536_v8 = vld [vmem:[#allocation36_spill] sm:$0xff] }
 0x9ce   : > { %4868 = vrot.lane.b32.xlu1 %v16533_v45, %s8918_s8  ;;  %7706 = vmatprep.subr.bf16.mxu0 %v4434_v34  ;;  %v4432_v45 = vpop.permute.xlu0 %4431 }
 0x9cf   : > { %7818 = vmatprep.subr.bf16.mxu1 %v4434_v34 }
 0x9d2   : > { %4884 = vrot.lane.b32.xlu1 %v15888_v54, %s8918_s8  ;;  %v16537_v54 = vld [vmem:[#allocation39_spill] sm:$0xff] }
 0x9d6   : > { %4866 = vrot.lane.b32.xlu1 %v16534_v11, %s8918_s8 }
 0x9da   : > { %4882 = vrot.lane.b32.xlu1 %v15625_v24, %s8918_s8  ;;  %v16538_v24 = vld [vmem:[#allocation43_spill] sm:$0xff] }
 0x9de   : > { %4864 = vrot.lane.b32.xlu1 %v16535_v33, %s8918_s8  ;;  %v4089_v33 = vsel %vm16544_vm4, %v12679_v6, 0.0  ;;  %v16546_v6 = vld [vmem:[#allocation79_spill] sm:$0xff] }
 0x9e2   : > { %4880 = vrot.lane.b32.xlu1 %v15882_v49, %s8918_s8  ;;  %v16540_v49 = vld [vmem:[#allocation23_spill] sm:$0xff] }
 0x9e6   : > { %4862 = vrot.lane.b32.xlu1 %v16536_v8, %s8918_s8 }
 0x9ea   : > { %4878 = vrot.lane.b32.xlu1 %v9640_v60, %s8918_s8  ;;  %v16541_v60 = vld [vmem:[#allocation51_spill] sm:$0xff] }
 0x9ee   : > { %4860 = vrot.lane.b32.xlu1 %v16537_v54, %s8918_s8  ;;  %v4430_v54 = vpop.permute.xlu0 %4429 }
 0x9f2   : > { %4876 = vrot.lane.b32.xlu1 %v15876_v36, %s8918_s8  ;;  %v16542_v36 = vld [vmem:[#allocation55_spill] sm:$0xff] }
 0x9f6   : > { %4874 = vrot.lane.b32.xlu1 %v9754_v52, %s8918_s8  ;;  %v16543_v52 = vld [vmem:[#allocation59_spill] sm:$0xff] }
 0x9fa   : > { %4856 = vrot.lane.b32.xlu1 %v16538_v24, %s8918_s8 }
 0x9fd   : > { %v12803_v11 = vpop.xlane.xlu1 %3982 }
 0x9fe   : > { %16539 = vst [vmem:[#allocation89_spill] sm:$0xff] %v12803_v11  ;;  %4824 = vrot.lane.b32.xlu1 %v16540_v49, %s8918_s8  ;;  %v4428_v49 = vpop.permute.xlu0 %4427  ;;  %v16549_v11 = vld [vmem:[#allocation119_spill] sm:$0xff] }
 0x9ff   : > { %vm16550_vm4 = vnez %v16549_v11 }
 0xa01   : > { %v4418_v34 = vpop.permute.xlu1 %4417 }
 0xa02   : > { %4828 = vrot.lane.b32.xlu1 %v16541_v60, %s8918_s8  ;;  %7707 = vmatpush3.bf16.msra.mxu0 %v4418_v34  ;;  %v4823_v60 = vld [vmem:[#allocation2 + $0x78] sm:$0xff] }
 0xa03   : > { %7819 = vmatpush3.bf16.msra.mxu1 %v4418_v34  ;;  %7708 = vmatprep.subr.bf16.mxu0 %v4432_v45 }
 0xa04   : > { %7820 = vmatprep.subr.bf16.mxu1 %v4432_v45  ;;  %v4822_v45 = vld [vmem:[#allocation2 + $0x70] sm:$0xff] }
 0xa06   : > { %4832 = vrot.lane.b32.xlu1 %v16542_v36, %s8918_s8 }
 0xa0a   : > { %4836 = vrot.lane.b32.xlu1 %v16543_v52, %s8918_s8  ;;  %v4426_v52 = vpop.permute.xlu0 %4425 }
 0xa2e   : > { %4090 = vadd.xlane.f32.xlu1 %v4089_v33  ;;  %v5594_v33 = vpack.c.bf16 %v4823_v60, %v4822_v45  ;;  %v16551_v45 = vld [vmem:[#allocation74_spill] sm:$0xff] }
 0xa32   : > { %v12815_v8 = vpop.xlane.xlu1 %3988 }
 0xa33   : > { %16545 = vst [vmem:[#allocation92_spill] sm:$0xff] %v12815_v8  ;;  %v16548_v8 = vpack.c.bf16 %v12251_v16, %v12246_v14  ;;  %v16554_v16 = vmov 0.0|0.0  }
 0xa36   : > { %v4416_v24 = vpop.permute.xlu1 %4415 }
 0xa37   : > { %7709 = vmatpush3.bf16.msra.mxu0 %v4416_v24  ;;  %7821 = vmatpush3.bf16.msra.mxu1 %v4416_v24 }
 0xa38   : > { %7710 = vmatprep.subr.bf16.mxu0 %v4430_v54  ;;  %7822 = vmatprep.subr.bf16.mxu1 %v4430_v54  ;;  %v16547_v54 = vld [vmem:[#allocation86_spill] sm:$0xff] }
 0xa3a   : > { %v4414_v34 = vpop.permute.xlu1 %4413 }
 0xa3b   : > { %7711 = vmatpush3.bf16.msra.mxu0 %v4414_v34  ;;  %7823 = vmatpush3.bf16.msra.mxu1 %v4414_v34  ;;  %v4821_v34 = vld [vmem:[#allocation2 + $0x68] sm:$0xff] }
 0xa3c   : > { %7712 = vmatprep.subr.bf16.mxu0 %v4428_v49  ;;  %7824 = vmatprep.subr.bf16.mxu1 %v4428_v49  ;;  %v4820_v49 = vld [vmem:[#allocation2 + $0x60] sm:$0xff] }
 0xa3d   : > { %v5593_v60 = vpack.c.bf16 %v4821_v34, %v4820_v49  ;;  %v16564_v34 = vpack.c.bf16 %v12288_v17, %v12281_v37 }
 0xa3e   : > { %v4412_v36 = vpop.permute.xlu1 %4411 }
 0xa3f   : > { %4848 = vrot.lane.b32.xlu1 %v16546_v6, %s8918_s8  ;;  %7713 = vmatpush3.bf16.msra.mxu0 %v4412_v36 }
 0xa40   : > { %7825 = vmatpush3.bf16.msra.mxu1 %v4412_v36  ;;  %7714 = vmatprep.subr.bf16.mxu0 %v4426_v52  ;;  %v12828_v36 = vpop.permute.xlu0 %4870 }
 0xa41   : > { %7826 = vmatprep.subr.bf16.mxu1 %v4426_v52  ;;  %v4958_v14 = vsel %vm16553_vm2, %v12828_v36, 0  ;;  %v16556_v52 = vld [vmem:[#allocation124_spill] sm:$0xff] }
 0xa42   : > { %v4410_v24 = vpop.permute.xlu1 %4409  ;;  %vm16557_vm3 = vnez %v16556_v52 }
 0xa43   : > { %4852 = vrot.lane.b32.xlu1 %v16547_v54, %s8918_s8  ;;  %7715 = vmatpush3.bf16.msra.mxu0 %v4410_v24 }
 0xa44   : > { %7827 = vmatpush3.bf16.msra.mxu1 %v4410_v24  ;;  %8154 = vmatprep.subr.bf16.mxu0 %v5594_v33 }
 0xa46   : > { %7090 = vmatmul.mubr.msk.bf16.vlgmr.msra.gmra.mxu0 %vm16550_vm4, %v16548_v8  ;;  %v12826_v6 = vpop.permute.xlu1 %4886 }
 0xa47   : > { %4795 = vmatmul.mubr.bf16.vlgmr.msra.gmra.mxu1 %v12543_v39  ;;  %4854 = vrot.lane.b32.xlu1 %v16551_v45, %s8918_s8  ;;  %v16555_v39 = vpack.c.bf16 %v12263_v13, %v12258_v25  ;;  %v16559_v25 = vpack.c.bf16 %v12275_v20, %v12270_v0  ;;  %v16560_v13 = vld [vmem:[#allocation128_spill] sm:$0xff] }
 0xa48   : > { %4802 = vmatprep.mubr.bf16.mxu1 %v12675_v42  ;;  %8218 = vmatprep.subr.msk.bf16.mxu1 %vm16552_vm12, %v12826_v6  ;;  %vm16558_vm12 = vmmov %vm16553_vm2  ;;  %vm16561_vm11 = vnez %v16560_v13  ;;  %v16565_v0 = vld [vmem:[#allocation132_spill] sm:$0xff] }
 0xa49   : > { %7841 = vmatpush3.bf16.xpose.msra.mxu1 %v4958_v14  ;;  %4497 = vmatprep.mubr.bf16.mxu0 %v16554_v16  ;;  %v16568_v14 = vpack.c.bf16 %v12299_v55, %v12294_v41  ;;  %v16574_v41 = vpack.c.bf16 %v12308_v47, %v12303_v2  ;;  %v16575_v55 = vld [vmem:[#allocation141_spill] sm:$0xff] }
 0xa4a   : > { %v12839_v8 = vpop.permute.xlu1 %4868  ;;  %8155 = vmatpush3.bf16.msra.mxu0 %v5594_v33 }
 0xa4b   : > { %8156 = vmatprep.subr.bf16.mxu0 %v5593_v60  ;;  %v4955_v24 = vsel %vm16553_vm2, %v12839_v8, 0 }
 0xa4e   : > { %7093 = vmatmul.mubr.msk.bf16.gmra.mxu0 %vm16557_vm3, %v16555_v39  ;;  %v12846_v42 = vpop.permute.xlu1 %4884  ;;  %vm16562_vm3 = vmmov %vm16553_vm2  ;;  %v16569_v39 = vld [vmem:[#allocation136_spill] sm:$0xff] }
 0xa4f   : > { %4803 = vmatmul.mubr.bf16.gmra.mxu1 %v12549_v21  ;;  %8219 = vmatprep.subr.msk.bf16.mxu1 %vm16558_vm12, %v12846_v42  ;;  %vm16563_vm12 = vmmov %vm16553_vm2  ;;  %vm16566_vm2 = vnez %v16565_v0 }
 0xa50   : > { %4505 = vmatprep.mubr.bf16.mxu0 %v16554_v16  ;;  %8157 = vmatpush3.bf16.msra.mxu0 %v5593_v60 }
 0xa51   : > { %7843 = vmatpush3.bf16.xpose.msra.mxu1 %v4955_v24 }
 0xa52   : > { %v12854_v33 = vpop.permute.xlu1 %4866 }
 0xa53   : > { %v4952_v21 = vsel %vm16563_vm12, %v12854_v33, 0  ;;  %vm16570_vm12 = vnez %v16569_v39 }
 0xa56   : > { %7096 = vmatmul.mubr.msk.bf16.gmra.mxu0 %vm16561_vm11, %v16559_v25  ;;  %v12861_v54 = vpop.permute.xlu1 %4882  ;;  %vm16567_vm11 = vmmov %vm16562_vm3 }
 0xa57   : > { %8220 = vmatprep.subr.msk.bf16.mxu1 %vm16562_vm3, %v12861_v54  ;;  %4513 = vmatprep.mubr.bf16.mxu0 %v16554_v16 }
 0xa59   : > { %7845 = vmatpush3.bf16.xpose.msra.mxu1 %v4952_v21 }
 0xa5a   : > { %v12868_v49 = vpop.permute.xlu1 %4864 }
 0xa5b   : > { %v4949_v45 = vsel %vm16562_vm3, %v12868_v49, 0 }
 0xa5e   : > { %7099 = vmatmul.mubr.msk.bf16.gmra.mxu0 %vm16566_vm2, %v16564_v34  ;;  %v12875_v20 = vpop.permute.xlu1 %4880  ;;  %vm16571_vm2 = vmmov %vm16562_vm3 }
 0xa5f   : > { %8221 = vmatprep.subr.msk.bf16.mxu1 %vm16567_vm11, %v12875_v20  ;;  %4521 = vmatprep.mubr.bf16.mxu0 %v16554_v16  ;;  %vm16572_vm11 = vmmov %vm16571_vm2  ;;  %v4101_v34 = vsel %vm16571_vm2, %v12698_v26, 0.0  ;;  %v16581_v26 = vpack.c.bf16 %v12317_v48, %v12312_v28  ;;  %v16587_v48 = vpack.c.bf16 %v12326_v40, %v12321_v3 }
 0xa60   : > { %vm16573_vm3 = vmmov %vm16571_vm2 }
 0xa61   : > { %7847 = vmatpush3.bf16.xpose.msra.mxu1 %v4949_v45  ;;  %v4095_v25 = vsel %vm16573_vm3, %v12696_v32, 0.0  ;;  %v12904_v45 = vpop.xlane.xlu0 %4087  ;;  %vm16578_vm0 = vmmov %vm16571_vm2 }
 0xa62   : > { %v4863_v60 = vpop.permute.xlu1 %4862  ;;  %vm16579_vm3 = vmmov %vm16578_vm0  ;;  %v4128_v40 = vsel %vm16578_vm0, %v12632_v18, 0.0 }
 0xa63   : > { %v4946_v17 = vsel %vm16572_vm11, %v4863_v60, 0  ;;  %vm16577_vm11 = vmmov %vm16571_vm2  ;;  %v4104_v2 = vsel %vm16579_vm3, %v12621_v7, 0.0 }
 0xa64   : > { %vm16585_vm3 = vmmov %vm16578_vm0 }
 0xa66   : > { %7102 = vmatmul.mubr.msk.bf16.gmra.mxu0 %vm16570_vm12, %v16568_v14  ;;  %v12887_v37 = vpop.permute.xlu1 %4878  ;;  %vm16576_vm12 = vnez %v16575_v55  ;;  %v4859_v14 = vpop.permute.xlu0 %4858 }
 0xa67   : > { %8222 = vmatprep.subr.msk.bf16.mxu1 %vm16571_vm2, %v12887_v37  ;;  %4529 = vmatprep.mubr.bf16.mxu0 %v16554_v16  ;;  %vm16580_vm2 = vmmov %vm16578_vm0 }
 0xa69   : > { %7849 = vmatpush3.bf16.xpose.msra.mxu1 %v4946_v17  ;;  %v16582_v17 = vld [vmem:[#allocation145_spill] sm:$0xff] }
 0xa6a   : > { %v4861_v24 = vpop.permute.xlu1 %4860  ;;  %v12925_v7 = vpop.permute.xlu0 %4872 }
 0xa6b   : > { %4096 = vadd.xlane.f32.xlu1 %v4095_v25  ;;  %v4943_v32 = vsel %vm16578_vm0, %v4861_v24, 0 }
 0xa6e   : > { %7105 = vmatmul.mubr.msk.bf16.gmra.mxu0 %vm16576_vm12, %v16574_v41  ;;  %v12900_v21 = vpop.permute.xlu1 %4876  ;;  %v4110_v41 = vsel %vm16578_vm0, %v12626_v59, 0.0  ;;  %vm16584_vm12 = vmmov %vm16578_vm0  ;;  %v16588_v59 = vld [vmem:[#allocation149_spill] sm:$0xff]  ;;  %v12966_v18 = vpop.permute.xlu0 %4826 }
 0xa6f   : > { %4102 = vadd.xlane.f32.xlu1 %v4101_v34  ;;  %8223 = vmatprep.subr.msk.bf16.mxu1 %vm16577_vm11, %v12900_v21  ;;  %vm16583_vm11 = vnez %v16582_v17  ;;  %v4940_v34 = vsel %vm16584_vm12, %v4859_v14, 0  ;;  %vm16589_vm12 = vnez %v16588_v59 }
 0xa70   : > { %4537 = vmatprep.mubr.bf16.mxu0 %v16554_v16 }
 0xa71   : > { %7851 = vmatpush3.bf16.xpose.msra.mxu1 %v4943_v32  ;;  %v4116_v32 = vsel %vm16585_vm3, %v12628_v1, 0.0  ;;  %vm16591_vm3 = vmmov %vm16578_vm0 }
 0xa72   : > { %v12910_v47 = vpop.permute.xlu1 %4874 }
 0xa73   : > { %4105 = vadd.xlane.f32.xlu1 %v4104_v2  ;;  %8224 = vmatprep.subr.msk.bf16.mxu1 %vm16580_vm2, %v12910_v47  ;;  %vm16586_vm2 = vmmov %vm16578_vm0 }
 0xa76   : > { %7108 = vmatmul.mubr.msk.bf16.gmra.mxu0 %vm16583_vm11, %v16581_v26  ;;  %v4857_v25 = vpop.permute.xlu1 %4856  ;;  %vm16590_vm11 = vmmov %vm16578_vm0  ;;  %v16592_v26 = vpack.c.bf16 %v12345_v30, %v12332_v43  ;;  %v16597_v30 = vpack.c.bf16 %v12367_v53, %v12357_v58 }
 0xa77   : > { %4111 = vadd.xlane.f32.xlu1 %v4110_v41  ;;  %6077 = vxpose.xlu0.c.b16.start [1/8] (narrow) %v4857_v25, 32  ;;  %v4122_v2 = vsel %vm16590_vm11, %v12630_v9, 0.0  ;;  %v4937_v1 = vsel %vm16591_vm3, %v4857_v25, 0  ;;  %v16593_v41 = vld [vmem:[#allocation154_spill] sm:$0xff]  ;;  %v16595_v9 = vpack.c.bf16 %v12341_v35, %v12330_v10  ;;  %vm16596_vm11 = vmmov %vm16578_vm0  ;;  %v16604_v35 = vpack.c.bf16 %v12363_v51, %v12355_v23 }
 0xa78   : > { %4545 = vmatprep.mubr.bf16.mxu0 %v16554_v16  ;;  %v4134_v43 = vsel %vm16596_vm11, %v12636_v57, 0.0  ;;  %vm16602_vm11 = vmmov %vm16578_vm0  ;;  %v16605_v57 = vpack.c.bf16 %v12391_v29, %v12379_v12  ;;  %v16609_v23 = vpack.c.bf16 %v12385_v46, %v12377_v62  ;;  %v16610_v12 = vld [vmem:[#allocation339_spill] sm:$0xff]  ;;  %v16617_v46 = vld [vmem:[#allocation68_spill] sm:$0xff] }
 0xa79   : > { %7853 = vmatpush3.bf16.xpose.msra.mxu1 %v4940_v34  ;;  %v4140_v10 = vsel %vm16602_vm11, %v12642_v63, 0.0  ;;  %v16611_v29 = vpack.c.bf16 %v12413_v15, %v16610_v12  ;;  %v16612_v63 = vld [vmem:[#allocation173_spill] sm:$0xff]  ;;  %v16618_v62 = vld [vmem:[#allocation347_spill] sm:$0xff]  ;;  %v16619_v15 = vld [vmem:[#allocation338_spill] sm:$0xff] }
 0xa7a   : > { %8225 = vmatprep.subr.msk.bf16.mxu1 %vm16586_vm2, %v12925_v7  ;;  %v12931_v28 = vpop.permute.xlu1 %4824  ;;  %vm16594_vm2 = vnez %v16593_v41  ;;  %v16620_v34 = vpack.c.bf16 %v16618_v62, %v16619_v15  ;;  %v16635_v12 = vld [vmem:[#allocation348_spill] sm:$0xff]  ;;  %v16638_v62 = vld [vmem:[#allocation421_spill] sm:$0xff] }
 0xa7b   : > { %4117 = vadd.xlane.f32.xlu1 %v4116_v32  ;;  %6078 = vxpose.xlu0.c.b16.cont [2/8] (narrow) %v4859_v14, 32  ;;  %v12948_v14 = vpop.f32.mrf.mxu0 }
 0xa7c   : > { %7856 = vmatprep.mubr.msk.bf16.mxu1 %vm16578_vm0, %v12931_v28 }
 0xa7d   : > { %v12952_v3 = vpop.f32.mrf.mxu0 }
 0xa7e   : > { %7111 = vmatmul.mubr.msk.bf16.gmra.mxu0 %vm16589_vm12, %v16587_v48  ;;  %v12981_v58 = vpop.permute.xlu1 %4828  ;;  %v16621_v48 = vld [vmem:[#allocation419_spill] sm:$0xff] }
 0xa7f   : > { %4123 = vadd.xlane.f32.xlu1 %v4122_v2  ;;  %7114 = vmatprep.mubr.msk.bf16.mxu0 %vm16594_vm2, %v16592_v26  ;;  %v12964_v25 = vpop.f32.mrf.mxu0  ;;  %vm16601_vm2 = vmmov %vm16578_vm0  ;;  %v16622_v2 = vld [vmem:[#allocation353_spill] sm:$0xff]  ;;  %v16624_v26 = vld [vmem:[#allocation179_spill] sm:$0xff] }
 0xa80   : > { %6079 = vxpose.xlu0.c.b16.cont [3/8] (narrow) %v4861_v24, 32  ;;  %v16598_v24 = vld [vmem:[#allocation160_spill] sm:$0xff]  ;;  %16600 = vst [vmem:[#allocation96_spill] sm:$0xff] %v12964_v25  ;;  %vm16608_vm11 = vmmov %vm16601_vm2 }
 0xa81   : > { %7855 = vmatpush3.bf16.xpose.msra.mxu1 %v4937_v1  ;;  %vm16599_vm3 = vnez %v16598_v24  ;;  %v12975_v53 = vpop.f32.mrf.mxu0  ;;  %v16623_v1 = vpack.c.bf16 %v16621_v48, %v16622_v2 }
 0xa82   : > { %16603 = vst [vmem:[#allocation25_spill] sm:$0xff] %v12975_v53  ;;  %v13021_v32 = vpop.permute.xlu1 %4832 }
 0xa83   : > { %4129 = vadd.xlane.f32.xlu1 %v4128_v40 }
 0xa84   : > { %6080 = vxpose.xlu0.c.b16.cont [4/8] (narrow) %v4863_v60, 32  ;;  %v12988_v60 = vpop.f32.mrf.mxu0 }
 0xa86   : > { %4554 = vmatmul.mubr.bf16.gmra.mxu0 %v16595_v9  ;;  %v12995_v51 = vpop.f32.mrf.mxu0  ;;  %v16627_v9 = vld [vmem:[#allocation73_spill] sm:$0xff] }
 0xa87   : > { %4135 = vadd.xlane.f32.xlu1 %v4134_v43  ;;  %7117 = vmatprep.mubr.msk.bf16.mxu0 %vm16599_vm3, %v16597_v30  ;;  %v16628_v43 = vld [vmem:[#allocation454_spill] sm:$0xff]  ;;  %vm16630_vm3 = vmmov %vm16601_vm2 }
 0xa88   : > { %6081 = vxpose.xlu0.c.b16.cont [5/8] (narrow) %v12868_v49, 32  ;;  %7857 = vmatmul.mubr.msk.bf16.vlgmr.msra.gmra.mxu1 %vm16578_vm0, %v12931_v28  ;;  %v16606_v49 = vld [vmem:[#allocation167_spill] sm:$0xff] }
 0xa89   : > { %7858 = vmatprep.mubr.msk.bf16.mxu1 %vm16601_vm2, %v12966_v18  ;;  %vm16607_vm0 = vnez %v16606_v49 }
 0xa8b   : > { %4141 = vadd.xlane.f32.xlu1 %v4140_v10 }
 0xa8c   : > { %6082 = vxpose.xlu0.c.b16.cont [6/8] (narrow) %v12854_v33, 32  ;;  %v13008_v33 = vpop.permute.xlu0 %4830 }
 0xa8e   : > { %4562 = vmatmul.mubr.bf16.gmra.mxu0 %v16604_v35  ;;  %v16632_v35 = vld [vmem:[#allocation71_spill] sm:$0xff] }
 0xa8f   : > { %7120 = vmatprep.mubr.msk.bf16.mxu0 %vm16607_vm0, %v16605_v57  ;;  %vm16613_vm0 = vnez %v16612_v63 }
 0xa90   : > { %6083 = vxpose.xlu0.c.b16.cont [7/8] (narrow) %v12839_v8, 32  ;;  %7859 = vmatmul.mubr.msk.bf16.gmra.mxu1 %vm16601_vm2, %v12966_v18  ;;  %v13006_v8 = vpop.f32.mrf.mxu0  ;;  %v4835_v2 = vpop.permute.xlu0 %4834 }
 0xa91   : > { %7860 = vmatprep.mubr.msk.bf16.mxu1 %vm16608_vm11, %v12981_v58  ;;  %16614 = vst [vmem:[#allocation30_spill] sm:$0xff] %v13006_v8  ;;  %vm16615_vm11 = vmmov %vm16601_vm2 }
 0xa94   : > { %6084 = vxpose.xlu0.c.b16.end [8/8] (narrow) %v12828_v36, 32  ;;  %v13014_v36 = vpop.f32.mrf.mxu0 }
 0xa95   : > { %16616 = vst [vmem:[#allocation33_spill] sm:$0xff] %v13014_v36  ;;  %v16753_v36 = vld [vmem:[#allocation465_spill] sm:$0xff] }
 0xa96   : > { %4570 = vmatmul.mubr.bf16.gmra.mxu0 %v16609_v23  ;;  %v13028_v40 = vpop.f32.mrf.mxu0  ;;  %v16634_v23 = vld [vmem:[#allocation418_spill] sm:$0xff] }
 0xa97   : > { %7123 = vmatprep.mubr.msk.bf16.mxu0 %vm16613_vm0, %v16611_v29  ;;  %vm16625_vm0 = vnez %v16624_v26  ;;  %16626 = vst [vmem:[#allocation36_spill] sm:$0xff] %v13028_v40  ;;  %v16636_v29 = vpack.c.bf16 %v16634_v23, %v16635_v12  ;;  %v16653_v12 = vld [vmem:[#allocation425_spill] sm:$0xff] }
 0xa98   : > { %7861 = vmatmul.mubr.msk.bf16.gmra.mxu1 %vm16601_vm2, %v12981_v58  ;;  %v13038_v10 = vpop.f32.mrf.mxu0 }
 0xa99   : > { %7862 = vmatprep.mubr.msk.bf16.mxu1 %vm16615_vm11, %v13008_v33  ;;  %vm16629_vm11 = vmmov %vm16601_vm2  ;;  %16631 = vst [vmem:[#allocation39_spill] sm:$0xff] %v13038_v10 }
 0xa9a   : > { %v4098_v30 = vsel %vm16629_vm11, %v16628_v43, 0.0  ;;  %v13052_v48 = vpop.f32.mrf.mxu0  ;;  %v16647_v43 = vld [vmem:[#allocation69_spill] sm:$0xff] }
 0xa9b   : > { %16642 = vst [vmem:[#allocation43_spill] sm:$0xff] %v13052_v48  ;;  %v8715_v48 = vld [vmem:[#allocation2 + $0x40] sm:$0xff] }
 0xa9c   : > { %5786 = vrot.lane.b32.xlu1 %v16617_v46, %s8918_s8  ;;  %v16637_v46 = vld [vmem:[#allocation423_spill] sm:$0xff] }
 0xa9d   : > { %v16639_v15 = vpack.c.bf16 %v16637_v46, %v16638_v62  ;;  %v16655_v46 = vld [vmem:[#allocation192_spill] sm:$0xff] }
 0xa9e   : > { %4578 = vmatmul.mubr.bf16.gmra.mxu0 %v16620_v34  ;;  %v16640_v34 = vld [vmem:[#allocation186_spill] sm:$0xff] }
 0xa9f   : > { %7126 = vmatprep.mubr.msk.bf16.mxu0 %vm16625_vm0, %v16623_v1  ;;  %vm16633_vm0 = vmmov %vm16601_vm2 }
 0xaa0   : > { %7863 = vmatmul.mubr.msk.bf16.gmra.mxu1 %vm16601_vm2, %v13008_v33  ;;  %5784 = vrot.lane.b32.xlu1 %v16627_v9, %s8918_s8  ;;  %v4107_v57 = vsel %vm16633_vm0, %v16632_v35, 0.0  ;;  %vm16641_vm2 = vnez %v16640_v34  ;;  %vm16645_vm11 = vmmov %vm16633_vm0  ;;  %v13061_v9 = vpop.f32.mrf.mxu0  ;;  %v16649_v35 = vld [vmem:[#allocation422_spill] sm:$0xff] }
 0xaa1   : > { %4099 = vadd.xlane.f32.xlu0 %v4098_v30  ;;  %7864 = vmatprep.mubr.msk.bf16.mxu1 %vm16630_vm3, %v13021_v32  ;;  %vm16643_vm3 = vmmov %vm16633_vm0  ;;  %16646 = vst [vmem:[#allocation23_spill] sm:$0xff] %v13061_v9 }
 0xaa2   : > { %v13075_v62 = vpop.f32.mrf.mxu0 }
 0xaa3   : > { %16657 = vst [vmem:[#allocation51_spill] sm:$0xff] %v13075_v62 }
 0xaa4   : > { %5768 = vrot.lane.b32.xlu1 %v16510_v27, %s8918_s8  ;;  %v16644_v27 = vld [vmem:[#allocation66_spill] sm:$0xff] }
 0xaa5   : > { %4108 = vadd.xlane.f32.xlu0 %v4107_v57  ;;  %v4113_v1 = vsel %vm16633_vm0, %v16644_v27, 0.0  ;;  %v16650_v57 = vld [vmem:[#allocation420_spill] sm:$0xff]  ;;  %v4837_v27 = vpop.permute.xlu1 %4836 }
 0xaa6   : > { %4586 = vmatmul.mubr.bf16.gmra.mxu0 %v16636_v29  ;;  %v16651_v23 = vpack.c.bf16 %v16649_v35, %v16650_v57  ;;  %v16664_v35 = vld [vmem:[#allocation429_spill] sm:$0xff] }
 0xaa7   : > { %7129 = vmatprep.mubr.msk.bf16.mxu0 %vm16641_vm2, %v16639_v15  ;;  %vm16648_vm2 = vmmov %vm16633_vm0  ;;  %v7134_v57 = vpack.c.bf16 %v12761_v5, %v16664_v35  ;;  %v16677_v35 = vld [vmem:[#allocation428_spill] sm:$0xff] }
 0xaa8   : > { %7865 = vmatmul.mubr.msk.bf16.gmra.mxu1 %vm16643_vm3, %v13021_v32  ;;  %5766 = vrot.lane.b32.xlu1 %v16521_v4, %s8918_s8  ;;  %v4119_v30 = vsel %vm16648_vm2, %v16647_v43, 0.0  ;;  %v16652_v4 = vld [vmem:[#allocation427_spill] sm:$0xff]  ;;  %vm16656_vm3 = vnez %v16655_v46  ;;  %vm16659_vm2 = vmmov %vm16633_vm0  ;;  %v16662_v43 = vld [vmem:[#allocation458_spill] sm:$0xff] }
 0xaa9   : > { %4114 = vadd.xlane.f32.xlu0 %v4113_v1  ;;  %7866 = vmatprep.mubr.msk.bf16.mxu1 %vm16645_vm11, %v4835_v2  ;;  %v16654_v29 = vpack.c.bf16 %v16652_v4, %v16653_v12  ;;  %vm16660_vm11 = vmmov %vm16633_vm0  ;;  %v13083_v1 = vpop.f32.mrf.mxu0  ;;  %v16668_v12 = vld [vmem:[#allocation198_spill] sm:$0xff] }
 0xaaa   : > { %16661 = vst [vmem:[#allocation55_spill] sm:$0xff] %v13083_v1 }
 0xaac   : > { %5764 = vrot.lane.b32.xlu1 %v16525_v38, %s8918_s8  ;;  %v16658_v38 = vld [vmem:[#allocation456_spill] sm:$0xff] }
 0xaad   : > { %4120 = vadd.xlane.f32.xlu0 %v4119_v30  ;;  %v4125_v15 = vsel %vm16659_vm2, %v16658_v38, 0.0  ;;  %v4839_v38 = vpop.permute.xlu0 %4838 }
 0xaae   : > { %4594 = vmatmul.mubr.bf16.gmra.mxu0 %v16651_v23  ;;  %v16666_v23 = vld [vmem:[#allocation424_spill] sm:$0xff] }
 0xaaf   : > { %7132 = vmatprep.mubr.msk.bf16.mxu0 %vm16656_vm3, %v16654_v29  ;;  %vm16663_vm3 = vmmov %vm16633_vm0  ;;  %v13096_v29 = vpop.f32.mrf.mxu0 }
 0xab0   : > { %7867 = vmatmul.mubr.msk.bf16.gmra.mxu1 %vm16633_vm0, %v4835_v2  ;;  %5762 = vrot.lane.b32.xlu1 %v16528_v50, %s8918_s8  ;;  %v4131_v30 = vsel %vm16663_vm3, %v16662_v43, 0.0  ;;  %v16665_v50 = vld [vmem:[#allocation426_spill] sm:$0xff]  ;;  %vm16669_vm0 = vnez %v16668_v12  ;;  %16670 = vst [vmem:[#allocation59_spill] sm:$0xff] %v13096_v29  ;;  %vm16672_vm3 = vmmov %vm16659_vm2  ;;  %v16675_v43 = vld [vmem:[#allocation461_spill] sm:$0xff] }
 0xab1   : > { %4126 = vadd.xlane.f32.xlu0 %v4125_v15  ;;  %7868 = vmatprep.mubr.msk.bf16.mxu1 %vm16660_vm11, %v4837_v27  ;;  %v16667_v4 = vpack.c.bf16 %v16665_v50, %v16666_v23  ;;  %vm16673_vm11 = vmmov %vm16659_vm2  ;;  %v13104_v5 = vpop.f32.mrf.mxu0  ;;  %v4841_v50 = vpop.permute.xlu0 %4840 }
 0xab2   : > { %16674 = vst [vmem:[#allocation79_spill] sm:$0xff] %v13104_v5 }
 0xab4   : > { %5760 = vrot.lane.b32.xlu1 %v16529_v22, %s8918_s8  ;;  %v16671_v22 = vld [vmem:[#allocation460_spill] sm:$0xff] }
 0xab5   : > { %4132 = vadd.xlane.f32.xlu0 %v4131_v30  ;;  %v4137_v15 = vsel %vm16672_vm3, %v16671_v22, 0.0 }
 0xab6   : > { %4602 = vmatmul.mubr.bf16.gmra.mxu0 %v16667_v4 }
 0xab7   : > { %7135 = vmatprep.mubr.msk.bf16.mxu0 %vm16669_vm0, %v7134_v57  ;;  %vm16676_vm0 = vmmov %vm16659_vm2  ;;  %v16678_v57 = vpack.c.bf16 %v12500_v19, %v16677_v35 }
 0xab8   : > { %7869 = vmatmul.mubr.msk.bf16.gmra.mxu1 %vm16659_vm2, %v4837_v27  ;;  %5758 = vrot.lane.b32.xlu1 %v16530_v61, %s8918_s8  ;;  %v4143_v30 = vsel %vm16676_vm0, %v16675_v43, 0.0  ;;  %vm16679_vm2 = vmmov %vm16676_vm0  ;;  %v13115_v61 = vpop.f32.mrf.mxu0  ;;  %v13151_v43 = vpop.xlane.xlu1 %4090 }
 0xab9   : > { %4138 = vadd.xlane.f32.xlu0 %v4137_v15  ;;  %7870 = vmatprep.mubr.msk.bf16.mxu1 %vm16673_vm11, %v4839_v38  ;;  %16680 = vst [vmem:[#allocation86_spill] sm:$0xff] %v13115_v61  ;;  %vm16681_vm3 = vmmov %vm16676_vm0  ;;  %v16696_v15 = vld [vmem:[#allocation77_spill] sm:$0xff]  ;;  %v16749_v61 = vld [vmem:[#allocation50_spill] sm:$0xff] }
 0xaba   : > { %vm16682_vm11 = vmmov %vm16676_vm0  ;;  %v13119_v23 = vpop.f32.mrf.mxu0 }
 0xabb   : > { %16683 = vst [vmem:[#allocation119_spill] sm:$0xff] %v13119_v23  ;;  %vm16684_vm12 = vmmov %vm16676_vm0 }
 0xabc   : > { %5756 = vrot.lane.b32.xlu1 %v16531_v56, %s8918_s8  ;;  %v13125_v19 = vpop.f32.mrf.mxu0  ;;  %v4843_v56 = vpop.permute.xlu0 %4842  ;;  %vm16686_vm14 = vmmov %vm16676_vm0 }
 0xabd   : > { %4144 = vadd.xlane.f32.xlu0 %v4143_v30  ;;  %16685 = vst [vmem:[#allocation74_spill] sm:$0xff] %v13125_v19  ;;  %v16701_v30 = vld [vmem:[#allocation81_spill] sm:$0xff] }
 0xabe   : > { %4610 = vmatmul.mubr.bf16.gmra.mxu0 %v16678_v57  ;;  %v16704_v57 = vld [vmem:[#allocation84_spill] sm:$0xff] }
 0xabf   : > { %8158 = vmatprep.mubr.msk.bf16.mxu0 %vm16679_vm2, %v12931_v28  ;;  %vm16687_vm2 = vmmov %vm16676_vm0  ;;  %v13129_v28 = vpop.f32.mrf.mxu0 }
 0xac0   : > { %7871 = vmatmul.mubr.msk.bf16.gmra.mxu1 %vm16681_vm3, %v4839_v38  ;;  %16688 = vst [vmem:[#allocation124_spill] sm:$0xff] %v13129_v28  ;;  %vm16689_vm3 = vmmov %vm16676_vm0 }
 0xac1   : > { %7872 = vmatprep.mubr.msk.bf16.mxu1 %vm16682_vm11, %v4841_v50  ;;  %vm16690_vm11 = vmmov %vm16676_vm0  ;;  %v13135_v4 = vpop.f32.mrf.mxu0 }
 0xac2   : > { %16691 = vst [vmem:[#allocation128_spill] sm:$0xff] %v13135_v4 }
 0xac3   : > { %v13141_v22 = vpop.f32.mrf.mxu0 }
 0xac4   : > { %16694 = vst [vmem:[#allocation132_spill] sm:$0xff] %v13141_v22 }
 0xac6   : > { %8159 = vmatmul.mubr.msk.bf16.vlgmr.msra.gmra.mxu0 %vm16684_vm12, %v12966_v18  ;;  %v4845_v18 = vpop.permute.xlu0 %4844  ;;  %vm16692_vm12 = vmmov %vm16676_vm0 }
 0xac7   : > { %8162 = vmatprep.mubr.msk.bf16.mxu0 %vm16676_vm0, %v12981_v58  ;;  %v16693_v58 = vld [vmem:[#allocation70_spill] sm:$0xff] }
 0xac8   : > { %7873 = vmatmul.mubr.msk.bf16.gmra.mxu1 %vm16686_vm14, %v4841_v50  ;;  %vm16695_vm14 = vmmov %vm16676_vm0 }
 0xac9   : > { %7874 = vmatprep.mubr.msk.bf16.mxu1 %vm16687_vm2, %v4843_v56  ;;  %vm16697_vm2 = vmmov %vm16676_vm0 }
 0xace   : > { %8163 = vmatmul.mubr.msk.bf16.gmra.mxu0 %vm16689_vm3, %v13008_v33  ;;  %v13147_v33 = vpop.f32.mrf.mxu0  ;;  %vm16699_vm3 = vmmov %vm16676_vm0 }
 0xacf   : > { %8166 = vmatprep.mubr.msk.bf16.mxu0 %vm16690_vm11, %v13021_v32  ;;  %16698 = vst [vmem:[#allocation136_spill] sm:$0xff] %v13147_v33  ;;  %v4847_v32 = vpop.permute.xlu0 %4846  ;;  %vm16700_vm11 = vmmov %vm16676_vm0  ;;  %v16711_v33 = vld [vmem:[#allocation53_spill] sm:$0xff] }
 0xad0   : > { %7875 = vmatmul.mubr.msk.bf16.gmra.mxu1 %vm16692_vm12, %v4843_v56  ;;  %v13155_v35 = vpop.f32.mrf.mxu0  ;;  %vm16703_vm12 = vmmov %vm16676_vm0 }
 0xad1   : > { %7876 = vmatprep.mubr.msk.bf16.mxu1 %vm16676_vm0, %v4845_v18  ;;  %16702 = vst [vmem:[#allocation141_spill] sm:$0xff] %v13155_v35 }
 0xad3   : > { %5770 = vrot.lane.b32.xlu0 %v16693_v58, %s8918_s8 }
 0xad6   : > { %8167 = vmatmul.mubr.msk.bf16.gmra.mxu0 %vm16695_vm14, %v4835_v2  ;;  %v4849_v2 = vpop.permute.xlu1 %4848  ;;  %vm16706_vm14 = vmmov %vm16676_vm0 }
 0xad7   : > { %5782 = vrot.lane.b32.xlu0 %v16696_v15, %s8918_s8  ;;  %8170 = vmatprep.mubr.msk.bf16.mxu0 %vm16697_vm2, %v4837_v27  ;;  %v16705_v27 = vld [vmem:[#allocation463_spill] sm:$0xff]  ;;  %v13163_v15 = vpop.f32.mrf.mxu0  ;;  %vm16708_vm2 = vmmov %vm16676_vm0 }
 0xad8   : > { %7877 = vmatmul.mubr.msk.bf16.gmra.mxu1 %vm16699_vm3, %v4845_v18  ;;  %v4149_v58 = vsel %vm16676_vm0, %v16705_v27, 0.0  ;;  %16707 = vst [vmem:[#allocation145_spill] sm:$0xff] %v13163_v15  ;;  %vm16709_vm3 = vmmov %vm16676_vm0  ;;  %v16715_v27 = vld [vmem:[#allocation91_spill] sm:$0xff] }
 0xad9   : > { %7878 = vmatprep.mubr.msk.bf16.mxu1 %vm16700_vm11, %v4847_v32  ;;  %vm16712_vm11 = vmmov %vm16676_vm0  ;;  %v13173_v35 = vpop.f32.mrf.mxu0 }
 0xada   : > { %16713 = vst [vmem:[#allocation149_spill] sm:$0xff] %v13173_v35  ;;  %v16746_v35 = vld [vmem:[#allocation45_spill] sm:$0xff] }
 0xadb   : > { %5780 = vrot.lane.b32.xlu0 %v16701_v30, %s8918_s8  ;;  %v13167_v30 = vpop.xlane.xlu0 %4093  ;;  %v13181_v15 = vpop.f32.mrf.mxu0 }
 0xadc   : > { %16718 = vst [vmem:[#allocation154_spill] sm:$0xff] %v13181_v15 }
 0xade   : > { %8171 = vmatmul.mubr.msk.bf16.gmra.mxu0 %vm16703_vm12, %v4839_v38  ;;  %v16710_v38 = vld [vmem:[#allocation88_spill] sm:$0xff]  ;;  %vm16714_vm12 = vmmov %vm16676_vm0 }
 0xadf   : > { %5778 = vrot.lane.b32.xlu0 %v16704_v57, %s8918_s8  ;;  %8174 = vmatprep.mubr.msk.bf16.mxu0 %vm16706_vm14, %v4841_v50  ;;  %v4158_v57 = vsel %vm16712_vm11, %v16711_v33, 0.0  ;;  %v4851_v50 = vpop.permute.xlu0 %4850  ;;  %vm16717_vm14 = vmmov %vm16676_vm0  ;;  %v4853_v33 = vpop.permute.xlu1 %4852 }
 0xae0   : > { %7879 = vmatmul.mubr.msk.bf16.gmra.mxu1 %vm16708_vm2, %v4847_v32  ;;  %4150 = vadd.xlane.f32.xlu1 %v4149_v58  ;;  %v16716_v58 = vld [vmem:[#allocation58_spill] sm:$0xff]  ;;  %vm16719_vm2 = vmmov %vm16676_vm0 }
 0xae1   : > { %7880 = vmatprep.mubr.msk.bf16.mxu1 %vm16709_vm3, %v4849_v2  ;;  %v4164_v19 = vsel %vm16676_vm0, %v16716_v58, 0.0  ;;  %vm16720_vm3 = vmmov %vm16676_vm0  ;;  %v16726_v58 = vld [vmem:[#allocation64_spill] sm:$0xff] }
 0xae2   : > { %vm16723_vm11 = vmmov %vm16676_vm0  ;;  %v4176_v15 = vsel %vm16676_vm0, %v16726_v58, 0.0 }
 0xae3   : > { %5776 = vrot.lane.b32.xlu0 %v16710_v38, %s8918_s8  ;;  %v16721_v38 = vld [vmem:[#allocation94_spill] sm:$0xff] }
 0xae4   : > { %4159 = vadd.xlane.f32.xlu1 %v4158_v57 }
 0xae6   : > { %8175 = vmatmul.mubr.msk.bf16.gmra.mxu0 %vm16714_vm12, %v4843_v56  ;;  %v16722_v56 = vld [vmem:[#allocation61_spill] sm:$0xff]  ;;  %vm16725_vm12 = vmmov %vm16676_vm0 }
 0xae7   : > { %5774 = vrot.lane.b32.xlu0 %v16715_v27, %s8918_s8  ;;  %8178 = vmatprep.mubr.msk.bf16.mxu0 %vm16717_vm14, %v4845_v18  ;;  %v4170_v57 = vsel %vm16723_vm11, %v16722_v56, 0.0  ;;  %v13189_v27 = vpop.f32.mrf.mxu0  ;;  %v4855_v18 = vpop.permute.xlu1 %4854  ;;  %vm16727_vm14 = vmmov %vm16676_vm0 }
 0xae8   : > { %7881 = vmatmul.mubr.msk.bf16.gmra.mxu1 %vm16719_vm2, %v4849_v2  ;;  %4165 = vadd.xlane.f32.xlu1 %v4164_v19  ;;  %16724 = vst [vmem:[#allocation160_spill] sm:$0xff] %v13189_v27  ;;  %vm16729_vm2 = vmmov %vm16676_vm0 }
 0xae9   : > { %7882 = vmatprep.mubr.msk.bf16.mxu1 %vm16720_vm3, %v4851_v50  ;;  %v13195_v19 = vpop.f32.mrf.mxu0  ;;  %vm16730_vm3 = vmmov %vm16676_vm0 }
 0xaea   : > { %16728 = vst [vmem:[#allocation167_spill] sm:$0xff] %v13195_v19  ;;  %vm16732_vm11 = vmmov %vm16676_vm0 }
 0xaeb   : > { %5772 = vrot.lane.b32.xlu0 %v16721_v38, %s8918_s8  ;;  %v13199_v38 = vpop.f32.mrf.mxu0 }
 0xaec   : > { %4171 = vadd.xlane.f32.xlu1 %v4170_v57  ;;  %16731 = vst [vmem:[#allocation339_spill] sm:$0xff] %v13199_v38 }
 0xaee   : > { %8179 = vmatmul.mubr.msk.bf16.gmra.mxu0 %vm16725_vm12, %v4847_v32  ;;  %vm16733_vm12 = vmmov %vm16676_vm0  ;;  %v13205_v32 = vpop.f32.mrf.mxu0 }
 0xaef   : > { %8182 = vmatprep.mubr.msk.bf16.mxu0 %vm16727_vm14, %v4849_v2  ;;  %16734 = vst [vmem:[#allocation173_spill] sm:$0xff] %v13205_v32  ;;  %vm16735_vm14 = vmmov %vm16676_vm0 }
 0xaf0   : > { %7883 = vmatmul.mubr.msk.bf16.gmra.mxu1 %vm16729_vm2, %v4851_v50  ;;  %4177 = vadd.xlane.f32.xlu1 %v4176_v15  ;;  %v13211_v57 = vpop.f32.mrf.mxu0  ;;  %vm16738_vm2 = vmmov %vm16676_vm0 }
 0xaf1   : > { %7884 = vmatprep.mubr.msk.bf16.mxu1 %vm16730_vm3, %v4853_v33  ;;  %16736 = vst [vmem:[#allocation68_spill] sm:$0xff] %v13211_v57  ;;  %vm16740_vm3 = vmmov %vm16676_vm0 }
 0xaf2   : > { %v13217_v58 = vpop.f32.mrf.mxu0 }
 0xaf3   : > { %16739 = vst [vmem:[#allocation338_spill] sm:$0xff] %v13217_v58 }
 0xaf4   : > { %v13201_v56 = vpop.xlane.xlu1 %4096  ;;  %v13222_v32 = vpop.f32.mrf.mxu0 }
 0xaf5   : > { %16742 = vst [vmem:[#allocation353_spill] sm:$0xff] %v13222_v32 }
 0xaf6   : > { %8183 = vmatmul.mubr.msk.bf16.gmra.mxu0 %vm16732_vm11, %v4851_v50  ;;  %vm16747_vm11 = vmmov %vm16676_vm0 }
 0xaf7   : > { %8186 = vmatprep.mubr.msk.bf16.mxu0 %vm16733_vm12, %v4853_v33  ;;  %v4146_v5 = vsel %vm16747_vm11, %v16746_v35, 0.0  ;;  %vm16750_vm12 = vmmov %vm16676_vm0 }
 0xaf8   : > { %7885 = vmatmul.mubr.msk.bf16.gmra.mxu1 %vm16676_vm0, %v4853_v33  ;;  %v13208_v2 = vpop.xlane.xlu1 %4102  ;;  %vm16759_vm11 = vmmov %vm16676_vm0 }
 0xaf9   : > { %7886 = vmatprep.mubr.msk.bf16.mxu1 %vm16735_vm14, %v4855_v18  ;;  %vm16754_vm14 = vmmov %vm16676_vm0 }
 0xafc   : > { %v13213_v15 = vpop.xlane.xlu1 %4105 }
 0xafd   : > { %16737 = vst [vmem:[#allocation347_spill] sm:$0xff] %v13213_v15 }
 0xafe   : > { %8187 = vmatmul.mubr.msk.bf16.gmra.mxu0 %vm16738_vm2, %v4855_v18  ;;  %vm16755_vm2 = vmmov %vm16676_vm0 }
 0xaff   : > { %5836 = vmatprep.mubr.bf16.mxu0 %v16554_v16 }
 0xb00   : > { %7887 = vmatmul.mubr.msk.bf16.gmra.mxu1 %vm16740_vm3, %v4855_v18  ;;  %v13220_v50 = vpop.xlane.xlu1 %4111  ;;  %vm16758_vm3 = vmmov %vm16676_vm0 }
 0xb01   : > { %16741 = vst [vmem:[#allocation419_spill] sm:$0xff] %v13220_v50 }
 0xb04   : > { %v13224_v33 = vpop.xlane.xlu1 %4117 }
 0xb05   : > { %16743 = vst [vmem:[#allocation179_spill] sm:$0xff] %v13224_v33 }
 0xb06   : > { %v7716_v27 = vpop.f32.mrf.mxu0 }
 0xb07   : > { %v7828_v19 = vpop.f32.mrf.mxu1 }
 0xb08   : > { %v7717_v38 = vpop.f32.mrf.mxu0  ;;  %v13226_v57 = vpop.xlane.xlu1 %4123 }
 0xb09   : > { %16744 = vst [vmem:[#allocation73_spill] sm:$0xff] %v13226_v57  ;;  %v13228_v28 = vadd.f32 %v7717_v38, %v7716_v27  ;;  %v7829_v29 = vpop.f32.mrf.mxu1  ;;  %v4152_v27 = vsel %vm16750_vm12, %v16749_v61, 0.0  ;;  %vm16761_vm12 = vmmov %vm16676_vm0 }
 0xb0a   : > { %v7830_v58 = vadd.f32 %v7829_v29, %v7828_v19  ;;  %4147 = vadd.xlane.f32.xlu0 %v4146_v5  ;;  %v13232_v18 = vpop.f32.mrf.mxu0  ;;  %v8716_v5 = vld [vmem:[#allocation2 + $0x48] sm:$0xff] }
 0xb0b   : > { %16745 = vst [vmem:[#allocation454_spill] sm:$0xff] %v13228_v28  ;;  %v7831_v4 = vpop.f32.mrf.mxu1 }
 0xb0c   : > { %v4811_v32 = vadd.f32 %v8715_v48, %v7830_v58  ;;  %v13234_v22 = vpop.f32.mrf.mxu0  ;;  %v13236_v31 = vpop.xlane.xlu1 %4129 }
 0xb0d   : > { %16748 = vst [vmem:[#allocation71_spill] sm:$0xff] %v13236_v31  ;;  %v7832_v9 = vpop.f32.mrf.mxu1  ;;  %v4155_v31 = vsel %vm16754_vm14, %v16753_v36, 0.0  ;;  %vm16765_vm14 = vmmov %vm16676_vm0 }
 0xb0e   : > { %4815 = vst.msk [vmem:[#allocation2 + $0x40] sm:$0xff] %vm16676_vm0, %v4811_v32  ;;  %v7833_v38 = vadd.f32 %v7832_v9, %v7831_v4  ;;  %4153 = vadd.xlane.f32.xlu0 %v4152_v27  ;;  %v7722_v35 = vpop.f32.mrf.mxu0  ;;  %v8717_v4 = vld [vmem:[#allocation2 + $0x50] sm:$0xff] }
 0xb0f   : > { %v7834_v29 = vpop.f32.mrf.mxu1 }
 0xb10   : > { %v4812_v19 = vadd.f32 %v8716_v5, %v7833_v38  ;;  %v7723_v8 = vpop.f32.mrf.mxu0  ;;  %v13241_v23 = vpop.xlane.xlu1 %4135 }
 0xb11   : > { %16751 = vst [vmem:[#allocation418_spill] sm:$0xff] %v13241_v23  ;;  %v13243_v48 = vadd.f32 %v7723_v8, %v7722_v35  ;;  %v7835_v58 = vpop.f32.mrf.mxu1  ;;  %v16757_v8 = vld [vmem:[#allocation466_spill] sm:$0xff] }
 0xb12   : > { %4816 = vst.msk [vmem:[#allocation2 + $0x48] sm:$0xff] %vm16755_vm2, %v4812_v19  ;;  %v7836_v61 = vadd.f32 %v7835_v58, %v7834_v29  ;;  %4156 = vadd.xlane.f32.xlu0 %v4155_v31  ;;  %v13248_v32 = vpop.f32.mrf.mxu0  ;;  %v4161_v35 = vsel %vm16758_vm3, %v16757_v8, 0.0  ;;  %v8718_v29 = vld [vmem:[#allocation2 + $0x58] sm:$0xff]  ;;  %vm16768_vm2 = vmmov %vm16676_vm0  ;;  %vm16832_vm3 = vnez %v16569_v39  ;;  %v16838_v39 = vld [vmem:[#allocation156_spill] sm:$0xff] }
 0xb13   : > { %16752 = vst [vmem:[#allocation348_spill] sm:$0xff] %v13243_v48  ;;  %v7837_v9 = vpop.f32.mrf.mxu1 }
 0xb14   : > { %v4813_v27 = vadd.f32 %v8717_v4, %v7836_v61  ;;  %v13250_v62 = vpop.f32.mrf.mxu0  ;;  %v13252_v38 = vpop.xlane.xlu1 %4141  ;;  %v4167_v61 = vsel %vm16761_vm12, %v12742_v44, 0.0  ;;  %v16767_v44 = vld [vmem:[#allocation470_spill] sm:$0xff] }
 0xb15   : > { %16756 = vst [vmem:[#allocation423_spill] sm:$0xff] %v13252_v38  ;;  %v7838_v5 = vpop.f32.mrf.mxu1 }
 0xb16   : > { %4817 = vst.msk [vmem:[#allocation2 + $0x50] sm:$0xff] %vm16759_vm11, %v4813_v27  ;;  %v7839_v36 = vadd.f32 %v7838_v5, %v7837_v9  ;;  %4162 = vadd.xlane.f32.xlu0 %v4161_v35  ;;  %v7728_v19 = vpop.f32.mrf.mxu0  ;;  %v16764_v9 = vld [vmem:[#allocation469_spill] sm:$0xff]  ;;  %v13268_v35 = vpop.trf.xlu0 }
 0xb17   : > { %v4173_v5 = vsel %vm16765_vm14, %v16764_v9, 0.0  ;;  %vm16839_vm14 = vnez %v16838_v39 }
 0xb18   : > { %v4814_v31 = vadd.f32 %v8718_v29, %v7839_v36  ;;  %v7729_v58 = vpop.f32.mrf.mxu0  ;;  %v5787_v23 = vpop.permute.xlu1 %5786 }
 0xb19   : > { %v13257_v25 = vadd.f32 %v7729_v58, %v7728_v19  ;;  %7906 = vmatprep.subr.bf16.mxu0 %v5787_v23  ;;  %8018 = vmatprep.subr.bf16.mxu1 %v5787_v23  ;;  %v4179_v23 = vsel %vm16768_vm2, %v16767_v44, 0.0 }
 0xb1a   : > { %4818 = vst.msk [vmem:[#allocation2 + $0x58] sm:$0xff] %vm16676_vm0, %v4814_v31  ;;  %4168 = vadd.xlane.f32.xlu0 %v4167_v61  ;;  %v13262_v4 = vpop.f32.mrf.mxu0  ;;  %v13278_v58 = vpop.trf.xlu0  ;;  %vm16837_vm0 = vnez %v16575_v55  ;;  %v16843_v55 = vld [vmem:[#allocation163_spill] sm:$0xff] }
 0xb1b   : > { %16760 = vst [vmem:[#allocation421_spill] sm:$0xff] %v13257_v25  ;;  %16762 = vst [vmem:[#allocation186_spill] sm:$0xff] %v13262_v4 }
 0xb1c   : > { %v13264_v27 = vpop.f32.mrf.mxu0  ;;  %v5785_v28 = vpop.permute.xlu1 %5784 }
 0xb1d   : > { %16763 = vst [vmem:[#allocation66_spill] sm:$0xff] %v13264_v27 }
 0xb1e   : > { %4174 = vadd.xlane.f32.xlu0 %v4173_v5  ;;  %v7734_v8 = vpop.f32.mrf.mxu0 }
 0xb20   : > { %v7735_v36 = vpop.f32.mrf.mxu0 }
 0xb21   : > { %v13270_v19 = vadd.f32 %v7735_v36, %v7734_v8 }
 0xb22   : > { %4180 = vadd.xlane.f32.xlu0 %v4179_v23  ;;  %v13274_v29 = vpop.f32.mrf.mxu0 }
 0xb23   : > { %16766 = vst [vmem:[#allocation69_spill] sm:$0xff] %v13270_v19  ;;  %16769 = vst [vmem:[#allocation422_spill] sm:$0xff] %v13274_v29 }
 0xb24   : > { %v13276_v31 = vpop.f32.mrf.mxu0 }
 0xb25   : > { %16770 = vst [vmem:[#allocation420_spill] sm:$0xff] %v13276_v31 }
 0xb26   : > { %v7740_v61 = vpop.f32.mrf.mxu0 }
 0xb28   : > { %v7741_v38 = vpop.f32.mrf.mxu0 }
 0xb29   : > { %v13280_v9 = vadd.f32 %v7741_v38, %v7740_v61 }
 0xb2a   : > { %v13282_v5 = vpop.xlane.xlu0 %4099  ;;  %v13284_v25 = vpop.f32.mrf.mxu0 }
 0xb2b   : > { %16771 = vst [vmem:[#allocation427_spill] sm:$0xff] %v13280_v9  ;;  %16772 = vst [vmem:[#allocation425_spill] sm:$0xff] %v13282_v5 }
 0xb2c   : > { %16773 = vst [vmem:[#allocation192_spill] sm:$0xff] %v13284_v25  ;;  %v13286_v8 = vpop.f32.mrf.mxu0 }
 0xb2d   : > { %16774 = vst [vmem:[#allocation456_spill] sm:$0xff] %v13286_v8 }
 0xb2e   : > { %v13288_v36 = vpop.xlane.xlu0 %4108  ;;  %v7746_v44 = vpop.f32.mrf.mxu0 }
 0xb30   : > { %v7747_v23 = vpop.f32.mrf.mxu0 }
 0xb31   : > { %v13290_v19 = vadd.f32 %v7747_v23, %v7746_v44 }
 0xb32   : > { %v13292_v48 = vpop.xlane.xlu0 %4114  ;;  %v13294_v1 = vpop.f32.mrf.mxu0 }
 0xb33   : > { %16775 = vst [vmem:[#allocation458_spill] sm:$0xff] %v13290_v19  ;;  %16776 = vst [vmem:[#allocation429_spill] sm:$0xff] %v13294_v1  ;;  %v5769_v19 = vpop.permute.xlu1 %5768 }
 0xb34   : > { %v13296_v57 = vpop.f32.mrf.mxu0 }
 0xb35   : > { %16777 = vst [vmem:[#allocation426_spill] sm:$0xff] %v13296_v57 }
 0xb36   : > { %v13298_v38 = vpop.xlane.xlu0 %4120  ;;  %v7752_v61 = vpop.f32.mrf.mxu0 }
 0xb38   : > { %v7753_v9 = vpop.f32.mrf.mxu0 }
 0xb39   : > { %v13300_v33 = vadd.f32 %v7753_v9, %v7752_v61  ;;  %v5767_v61 = vpop.permute.xlu1 %5766 }
 0xb3a   : > { %v13302_v53 = vpop.xlane.xlu0 %4126  ;;  %v13304_v8 = vpop.f32.mrf.mxu0 }
 0xb3b   : > { %16778 = vst [vmem:[#allocation424_spill] sm:$0xff] %v13300_v33  ;;  %16779 = vst [vmem:[#allocation198_spill] sm:$0xff] %v13302_v53 }
 0xb3c   : > { %16780 = vst [vmem:[#allocation460_spill] sm:$0xff] %v13304_v8  ;;  %v13306_v25 = vpop.f32.mrf.mxu0 }
 0xb3d   : > { %16781 = vst [vmem:[#allocation461_spill] sm:$0xff] %v13306_v25 }
 0xb3e   : > { %v13308_v44 = vpop.xlane.xlu0 %4132  ;;  %v7758_v23 = vpop.f32.mrf.mxu0 }
 0xb3f   : > { %16782 = vst [vmem:[#allocation428_spill] sm:$0xff] %v13308_v44 }
 0xb40   : > { %v7759_v1 = vpop.f32.mrf.mxu0 }
 0xb41   : > { %v13310_v40 = vadd.f32 %v7759_v1, %v7758_v23 }
 0xb42   : > { %v13312_v57 = vpop.xlane.xlu0 %4138  ;;  %v13314_v50 = vpop.f32.mrf.mxu0 }
 0xb43   : > { %16783 = vst [vmem:[#allocation70_spill] sm:$0xff] %v13310_v40  ;;  %16784 = vst [vmem:[#allocation77_spill] sm:$0xff] %v13312_v57 }
 0xb44   : > { %16785 = vst [vmem:[#allocation81_spill] sm:$0xff] %v13314_v50  ;;  %v13316_v9 = vpop.f32.mrf.mxu0 }
 0xb45   : > { %16786 = vst [vmem:[#allocation84_spill] sm:$0xff] %v13316_v9  ;;  %v5765_v9 = vpop.permute.xlu1 %5764 }
 0xb46   : > { %v13318_v33 = vpop.xlane.xlu0 %4144  ;;  %v7764_v31 = vpop.f32.mrf.mxu0 }
 0xb47   : > { %16787 = vst [vmem:[#allocation463_spill] sm:$0xff] %v13318_v33 }
 0xb48   : > { %v13320_v8 = vpop.f32.mrf.mxu1  ;;  %v7765_v25 = vpop.f32.mrf.mxu0 }
 0xb49   : > { %v13322_v29 = vadd.f32 %v7765_v25, %v7764_v31  ;;  %v5177_v1 = vsel %vm10408_vm6, %v13320_v8, 0.0 }
 0xb4a   : > { %v5771_v23 = vpop.permute.xlu0 %5770  ;;  %v5020_v40 = vpop.f32.mrf.mxu1  ;;  %5242 = vadd.xlane.f32.xlu1 %v5177_v1 }
 0xb4b   : > { %16788 = vst [vmem:[#allocation88_spill] sm:$0xff] %v13322_v29  ;;  %v13327_v57 = vpop.f32.mrf.mxu0  ;;  %7907 = vmatpush3.bf16.msra.mxu0 %v5771_v23  ;;  %8019 = vmatpush3.bf16.msra.mxu1 %v5771_v23 }
 0xb4c   : > { %16790 = vst [vmem:[#allocation53_spill] sm:$0xff] %v13327_v57  ;;  %v13329_v50 = vpop.f32.mrf.mxu1  ;;  %7908 = vmatprep.subr.bf16.mxu0 %v5785_v28  ;;  %8020 = vmatprep.subr.bf16.mxu1 %v5785_v28  ;;  %v5763_v57 = vpop.permute.xlu1 %5762 }
 0xb4d   : > { %v13331_v33 = vpop.f32.mrf.mxu0  ;;  %v5179_v31 = vsel %vm10417_vm7, %v13329_v50, 0.0 }
 0xb4e   : > { %16791 = vst [vmem:[#allocation91_spill] sm:$0xff] %v13331_v33  ;;  %v5024_v15 = vpop.f32.mrf.mxu1  ;;  %v5783_v29 = vpop.permute.xlu0 %5782  ;;  %5245 = vadd.xlane.f32.xlu0 %v5179_v31 }
 0xb4f   : > { %v7770_v40 = vpop.f32.mrf.mxu0  ;;  %7909 = vmatpush3.bf16.msra.mxu0 %v5769_v19  ;;  %8021 = vmatpush3.bf16.msra.mxu1 %v5769_v19 }
 0xb50   : > { %v13336_v1 = vpop.f32.mrf.mxu1  ;;  %7910 = vmatprep.subr.bf16.mxu0 %v5783_v29  ;;  %8022 = vmatprep.subr.bf16.mxu1 %v5783_v29 }
 0xb51   : > { %v7771_v23 = vpop.f32.mrf.mxu0  ;;  %v5181_v33 = vsel %vm16104_vm13, %v13336_v1, 0.0 }
 0xb52   : > { %v13341_v10 = vadd.f32 %v7771_v23, %v7770_v40  ;;  %v5030_v25 = vpop.f32.mrf.mxu1  ;;  %v5781_v44 = vpop.permute.xlu0 %5780  ;;  %5248 = vadd.xlane.f32.xlu1 %v5181_v33 }
 0xb53   : > { %v13343_v15 = vpop.f32.mrf.mxu0  ;;  %7911 = vmatpush3.bf16.msra.mxu0 %v5767_v61  ;;  %8023 = vmatpush3.bf16.msra.mxu1 %v5767_v61  ;;  %v5761_v33 = vpop.permute.xlu1 %5760 }
 0xb54   : > { %16794 = vst [vmem:[#allocation58_spill] sm:$0xff] %v13341_v10  ;;  %16795 = vst [vmem:[#allocation94_spill] sm:$0xff] %v13343_v15  ;;  %v13345_v19 = vpop.f32.mrf.mxu1  ;;  %7912 = vmatprep.subr.bf16.mxu0 %v5781_v44  ;;  %8024 = vmatprep.subr.bf16.mxu1 %v5781_v44 }
 0xb55   : > { %v13347_v29 = vpop.f32.mrf.mxu0  ;;  %v5183_v28 = vsel %vm16106_vm15, %v13345_v19, 0.0  ;;  %vm16821_vm15 = vnez %v16560_v13 }
 0xb56   : > { %16796 = vst [vmem:[#allocation61_spill] sm:$0xff] %v13347_v29  ;;  %v5034_v53 = vpop.f32.mrf.mxu1  ;;  %v5779_v40 = vpop.permute.xlu0 %5778  ;;  %5251 = vadd.xlane.f32.xlu0 %v5183_v28 }
 0xb57   : > { %v7776_v23 = vpop.f32.mrf.mxu0  ;;  %7913 = vmatpush3.bf16.msra.mxu0 %v5765_v9  ;;  %8025 = vmatpush3.bf16.msra.mxu1 %v5765_v9 }
 0xb58   : > { %v13352_v25 = vpop.f32.mrf.mxu1  ;;  %7914 = vmatprep.subr.bf16.mxu0 %v5779_v40  ;;  %8026 = vmatprep.subr.bf16.mxu1 %v5779_v40  ;;  %v5759_v40 = vpop.permute.xlu1 %5758 }
 0xb59   : > { %v7777_v61 = vpop.f32.mrf.mxu0  ;;  %v5185_v10 = vsel %vm16110_vm9, %v13352_v25, 0.0  ;;  %vm16815_vm9 = vnez %v16556_v52 }
 0xb5a   : > { %v13357_v29 = vadd.f32 %v7777_v61, %v7776_v23  ;;  %v5040_v31 = vpop.f32.mrf.mxu1  ;;  %v5777_v15 = vpop.permute.xlu0 %5776  ;;  %5254 = vadd.xlane.f32.xlu1 %v5185_v10 }
 0xb5b   : > { %v13359_v53 = vpop.f32.mrf.mxu0  ;;  %7915 = vmatpush3.bf16.msra.mxu0 %v5763_v57  ;;  %8027 = vmatpush3.bf16.msra.mxu1 %v5763_v57 }
 0xb5c   : > { %16799 = vst [vmem:[#allocation64_spill] sm:$0xff] %v13357_v29  ;;  %16800 = vst [vmem:[#allocation45_spill] sm:$0xff] %v13359_v53  ;;  %v13361_v28 = vpop.f32.mrf.mxu1  ;;  %7916 = vmatprep.subr.bf16.mxu0 %v5777_v15  ;;  %8028 = vmatprep.subr.bf16.mxu1 %v5777_v15 }
 0xb5d   : > { %v13363_v9 = vpop.f32.mrf.mxu0  ;;  %v5187_v44 = vsel %vm16373_vm10, %v13361_v28, 0.0 }
 0xb5e   : > { %16801 = vst [vmem:[#allocation50_spill] sm:$0xff] %v13363_v9  ;;  %v5044_v23 = vpop.f32.mrf.mxu1  ;;  %v5775_v61 = vpop.permute.xlu0 %5774  ;;  %5257 = vadd.xlane.f32.xlu0 %v5187_v44 }
 0xb5f   : > { %v7782_v31 = vpop.f32.mrf.mxu0  ;;  %7917 = vmatpush3.bf16.msra.mxu0 %v5761_v33  ;;  %8029 = vmatpush3.bf16.msra.mxu1 %v5761_v33  ;;  %v5757_v33 = vpop.permute.xlu1 %5756 }
 0xb60   : > { %v13368_v10 = vpop.f32.mrf.mxu1  ;;  %7918 = vmatprep.subr.bf16.mxu0 %v5775_v61  ;;  %8030 = vmatprep.subr.bf16.mxu1 %v5775_v61 }
 0xb61   : > { %v7783_v57 = vpop.f32.mrf.mxu0  ;;  %v5189_v29 = vsel %vm16138_vm1, %v13368_v10, 0.0 }
 0xb62   : > { %v13373_v9 = vadd.f32 %v7783_v57, %v7782_v31  ;;  %v5050_v53 = vpop.f32.mrf.mxu1  ;;  %v5773_v27 = vpop.permute.xlu0 %5772  ;;  %5260 = vadd.xlane.f32.xlu1 %v5189_v29  ;;  %v7169_v29 = vpack.c.bf16 %v13329_v50, %v13320_v8  ;;  %v16810_v50 = vld [vmem:[#allocation135_spill] sm:$0xff] }
 0xb63   : > { %v13375_v23 = vpop.f32.mrf.mxu0  ;;  %7919 = vmatpush3.bf16.msra.mxu0 %v5759_v40  ;;  %8031 = vmatpush3.bf16.msra.mxu1 %v5759_v40  ;;  %vm16811_vm6 = vnez %v16810_v50 }
 0xb64   : > { %16804 = vst [vmem:[#allocation465_spill] sm:$0xff] %v13373_v9  ;;  %16805 = vst [vmem:[#allocation466_spill] sm:$0xff] %v13375_v23  ;;  %v13377_v44 = vpop.f32.mrf.mxu1  ;;  %7920 = vmatprep.subr.bf16.mxu0 %v5773_v27  ;;  %8032 = vmatprep.subr.bf16.mxu1 %v5773_v27 }
 0xb65   : > { %v13379_v61 = vpop.f32.mrf.mxu0  ;;  %v5191_v15 = vsel %vm16412_vm5, %v13377_v44, 0.0  ;;  %vm16828_vm5 = vnez %v16565_v0  ;;  %v16833_v0 = vld [vmem:[#allocation151_spill] sm:$0xff] }
 0xb66   : > { %16806 = vst [vmem:[#allocation469_spill] sm:$0xff] %v13379_v61  ;;  %v5054_v31 = vpop.f32.mrf.mxu1  ;;  %5263 = vadd.xlane.f32.xlu0 %v5191_v15  ;;  %vm16834_vm11 = vnez %v16833_v0 }
 0xb67   : > { %v7788_v53 = vpop.f32.mrf.mxu0  ;;  %7921 = vmatpush3.bf16.msra.mxu0 %v5757_v33  ;;  %8033 = vmatpush3.bf16.msra.mxu1 %v5757_v33 }
 0xb68   : > { %v13386_v40 = vpop.f32.mrf.mxu1 }
 0xb69   : > { %v7789_v57 = vpop.f32.mrf.mxu0  ;;  %v5193_v27 = vsel %vm16173_vm8, %v13386_v40, 0.0 }
 0xb6a   : > { %v13391_v61 = vadd.f32 %v7789_v57, %v7788_v53  ;;  %v5060_v23 = vpop.f32.mrf.mxu1  ;;  %7170 = vmatmul.mubr.msk.bf16.vlgmr.msra.gmra.mxu0 %vm16550_vm4, %v7169_v29  ;;  %5266 = vadd.xlane.f32.xlu1 %v5193_v27  ;;  %v16812_v29 = vld [vmem:[#allocation138_spill] sm:$0xff] }
 0xb6b   : > { %v7791_v4 = vpop.f32.mrf.mxu0  ;;  %5844 = vmatprep.mubr.bf16.mxu0 %v16554_v16  ;;  %v7172_v23 = vpack.c.bf16 %v13345_v19, %v13336_v1  ;;  %vm16813_vm7 = vnez %v16812_v29  ;;  %v16816_v1 = vld [vmem:[#allocation139_spill] sm:$0xff] }
 0xb6c   : > { %16809 = vst [vmem:[#allocation470_spill] sm:$0xff] %v13391_v61  ;;  %v5062_v33 = vpop.f32.mrf.mxu1  ;;  %vm16817_vm1 = vnez %v16816_v1 }
 0xb6d   : > { %v7792_v15 = vpop.f32.mrf.mxu0  ;;  %v5195_v8 = vsel %vm16811_vm6, %v5062_v33, 0.0  ;;  %vm16842_vm6 = vnez %v16582_v17 }
 0xb6e   : > { %v13398_v31 = vadd.f32 %v7792_v15, %v7791_v4  ;;  %v5064_v5 = vpop.f32.mrf.mxu1  ;;  %5269 = vadd.xlane.f32.xlu0 %v5195_v8 }
 0xb6f   : > { %v7794_v9 = vpop.f32.mrf.mxu0 }
 0xb70   : > { %v13402_v53 = vpop.f32.mrf.mxu1 }
 0xb71   : > { %v7795_v11 = vpop.f32.mrf.mxu0  ;;  %v5197_v57 = vsel %vm16813_vm7, %v13402_v53, 0.0  ;;  %vm16844_vm7 = vnez %v16843_v55 }
 0xb72   : > { %v13407_v27 = vadd.f32 %v7795_v11, %v7794_v9  ;;  %v5070_v61 = vpop.f32.mrf.mxu1  ;;  %7173 = vmatmul.mubr.msk.bf16.gmra.mxu0 %vm16815_vm9, %v7172_v23  ;;  %5272 = vadd.xlane.f32.xlu1 %v5197_v57  ;;  %v16818_v23 = vld [vmem:[#allocation142_spill] sm:$0xff] }
 0xb73   : > { %v7797_v5 = vpop.f32.mrf.mxu0  ;;  %5852 = vmatprep.mubr.bf16.mxu0 %v16554_v16  ;;  %v7175_v61 = vpack.c.bf16 %v13361_v28, %v13352_v25  ;;  %vm16819_vm13 = vnez %v16818_v23 }
 0xb74   : > { %16814 = vst [vmem:[#allocation20_spill] sm:$0xff] %v13407_v27  ;;  %v5072_v4 = vpop.f32.mrf.mxu1 }
 0xb75   : > { %v7798_v15 = vpop.f32.mrf.mxu0  ;;  %v5199_v19 = vsel %vm16817_vm1, %v5072_v4, 0.0  ;;  %vm16847_vm1 = vnez %v16588_v59 }
 0xb76   : > { %v13414_v50 = vadd.f32 %v7798_v15, %v7797_v5  ;;  %v5074_v8 = vpop.f32.mrf.mxu1  ;;  %5275 = vadd.xlane.f32.xlu0 %v5199_v19  ;;  %v16822_v19 = vld [vmem:[#allocation143_spill] sm:$0xff] }
 0xb77   : > { %v7800_v29 = vpop.f32.mrf.mxu0  ;;  %vm16823_vm8 = vnez %v16822_v19 }
 0xb78   : > { %v5078_v9 = vpop.f32.mrf.mxu1 }
 0xb79   : > { %v7801_v52 = vpop.f32.mrf.mxu0  ;;  %v5201_v11 = vsel %vm16819_vm13, %v5078_v9, 0.0 }
 0xb7a   : > { %v13420_v57 = vadd.f32 %v7801_v52, %v7800_v29  ;;  %v5080_v27 = vpop.f32.mrf.mxu1  ;;  %7176 = vmatmul.mubr.msk.bf16.gmra.mxu0 %vm16821_vm15, %v7175_v61  ;;  %5278 = vadd.xlane.f32.xlu1 %v5201_v11  ;;  %v16825_v61 = vld [vmem:[#allocation146_spill] sm:$0xff]  ;;  %vm16850_vm15 = vnez %v16593_v41 }
 0xb7b   : > { %v7803_v5 = vpop.f32.mrf.mxu0  ;;  %5860 = vmatprep.mubr.bf16.mxu0 %v16554_v16  ;;  %v7178_v27 = vpack.c.bf16 %v13377_v44, %v13368_v10  ;;  %vm16826_vm10 = vnez %v16825_v61 }
 0xb7c   : > { %16820 = vst [vmem:[#allocation117_spill] sm:$0xff] %v13420_v57  ;;  %v5082_v15 = vpop.f32.mrf.mxu1 }
 0xb7d   : > { %v7804_v1 = vpop.f32.mrf.mxu0  ;;  %v5203_v25 = vsel %vm16823_vm8, %v5082_v15, 0.0 }
 0xb7e   : > { %v13427_v28 = vadd.f32 %v7804_v1, %v7803_v5  ;;  %v5084_v8 = vpop.f32.mrf.mxu1  ;;  %5281 = vadd.xlane.f32.xlu0 %v5203_v25  ;;  %v16829_v25 = vld [vmem:[#allocation148_spill] sm:$0xff] }
 0xb7f   : > { %v7806_v23 = vpop.f32.mrf.mxu0  ;;  %vm16830_vm4 = vnez %v16829_v25 }
 0xb80   : > { %16824 = vst [vmem:[#allocation123_spill] sm:$0xff] %v13427_v28  ;;  %v5088_v29 = vpop.f32.mrf.mxu1 }
 0xb81   : > { %v7807_v13 = vpop.f32.mrf.mxu0  ;;  %v5205_v52 = vsel %vm16826_vm10, %v5088_v29, 0.0 }
 0xb82   : > { %v13433_v11 = vadd.f32 %v7807_v13, %v7806_v23  ;;  %v5090_v57 = vpop.f32.mrf.mxu1  ;;  %7179 = vmatmul.mubr.msk.bf16.gmra.mxu0 %vm16828_vm5, %v7178_v27  ;;  %5284 = vadd.xlane.f32.xlu1 %v5205_v52  ;;  %v7181_v23 = vpack.c.bf16 %v5062_v33, %v13386_v40  ;;  %vm16855_vm5 = vnez %v16598_v24  ;;  %v16860_v24 = vld [vmem:[#allocation182_spill] sm:$0xff] }
 0xb83   : > { %v7809_v5 = vpop.f32.mrf.mxu0  ;;  %5868 = vmatprep.mubr.bf16.mxu0 %v16554_v16 }
 0xb84   : > { %16827 = vst [vmem:[#allocation121_spill] sm:$0xff] %v13433_v11  ;;  %v5092_v1 = vpop.f32.mrf.mxu1 }
 0xb85   : > { %v7810_v19 = vpop.f32.mrf.mxu0  ;;  %v5207_v10 = vsel %vm16830_vm4, %v5092_v1, 0.0 }
 0xb86   : > { %v13440_v44 = vadd.f32 %v7810_v19, %v7809_v5  ;;  %v5094_v8 = vpop.f32.mrf.mxu1  ;;  %5287 = vadd.xlane.f32.xlu0 %v5207_v10  ;;  %v16835_v5 = vld [vmem:[#allocation152_spill] sm:$0xff]  ;;  %v7184_v10 = vpack.c.bf16 %v5072_v4, %v13402_v53  ;;  %v7187_v53 = vpack.c.bf16 %v5082_v15, %v5078_v9  ;;  %v7190_v9 = vpack.c.bf16 %v5092_v1, %v5088_v29  ;;  %v16851_v29 = vld [vmem:[#allocation170_spill] sm:$0xff] }
 0xb87   : > { %vm16836_vm12 = vnez %v16835_v5  ;;  %v16840_v5 = vld [vmem:[#allocation158_spill] sm:$0xff]  ;;  %vm16852_vm8 = vnez %v16851_v29 }
 0xb88   : > { %16831 = vst [vmem:[#allocation125_spill] sm:$0xff] %v13440_v44  ;;  %v5098_v13 = vpop.f32.mrf.mxu1  ;;  %vm16841_vm2 = vnez %v16840_v5 }
 0xb8a   : > { %v5100_v57 = vpop.f32.mrf.mxu1  ;;  %7182 = vmatmul.mubr.msk.bf16.gmra.mxu0 %vm16832_vm3, %v7181_v23  ;;  %vm16861_vm3 = vnez %v16860_v24 }
 0xb8b   : > { %v5210_v27 = vsel %vm16834_vm11, %v5100_v57, 0.0  ;;  %5876 = vmatprep.mubr.bf16.mxu0 %v16554_v16  ;;  %vm16862_vm11 = vnez %v16606_v49  ;;  %v16867_v49 = vld [vmem:[#allocation188_spill] sm:$0xff] }
 0xb8c   : > { %v5289_v61 = vadd.f32 %v5210_v27, %v5098_v13  ;;  %v5102_v52 = vpop.f32.mrf.mxu1 }
 0xb8e   : > { %v5104_v25 = vpop.f32.mrf.mxu1  ;;  %5290 = vadd.xlane.f32.xlu1 %v5289_v61 }
 0xb8f   : > { %v5212_v19 = vsel %vm16836_vm12, %v5104_v25, 0.0  ;;  %v7193_v28 = vpack.c.bf16 %v5104_v25, %v5100_v57  ;;  %v5577_v57 = vpack.c.bf16 %v5102_v52, %v5098_v13  ;;  %v16857_v13 = vld [vmem:[#allocation177_spill] sm:$0xff] }
 0xb90   : > { %v5292_v40 = vadd.f32 %v5212_v19, %v5102_v52  ;;  %v5108_v33 = vpop.f32.mrf.mxu1  ;;  %vm16858_vm4 = vnez %v16857_v13 }
 0xb92   : > { %v5110_v8 = vpop.f32.mrf.mxu1  ;;  %7185 = vmatmul.mubr.msk.bf16.gmra.mxu0 %vm16837_vm0, %v7184_v10  ;;  %5293 = vadd.xlane.f32.xlu0 %v5292_v40  ;;  %vm16868_vm0 = vnez %v16867_v49 }
 0xb93   : > { %v5214_v23 = vsel %vm16839_vm14, %v5110_v8, 0.0  ;;  %5884 = vmatprep.mubr.bf16.mxu0 %v16554_v16  ;;  %vm16869_vm14 = vnez %v16612_v63  ;;  %v16874_v63 = vld [vmem:[#allocation194_spill] sm:$0xff] }
 0xb94   : > { %v5295_v0 = vadd.f32 %v5214_v23, %v5108_v33  ;;  %v5112_v27 = vpop.f32.mrf.mxu1 }
 0xb96   : > { %v5114_v61 = vpop.f32.mrf.mxu1  ;;  %5296 = vadd.xlane.f32.xlu1 %v5295_v0  ;;  %v16845_v0 = vld [vmem:[#allocation164_spill] sm:$0xff] }
 0xb97   : > { %v5216_v11 = vsel %vm16841_vm2, %v5114_v61, 0.0  ;;  %vm16846_vm9 = vnez %v16845_v0  ;;  %v7196_v59 = vpack.c.bf16 %v5114_v61, %v5110_v8  ;;  %v5579_v61 = vpack.c.bf16 %v5112_v27, %v5108_v33 }
 0xb98   : > { %v5298_v4 = vadd.f32 %v5216_v11, %v5112_v27  ;;  %v5118_v19 = vpop.f32.mrf.mxu1 }
 0xb9a   : > { %v5120_v44 = vpop.f32.mrf.mxu1  ;;  %7188 = vmatmul.mubr.msk.bf16.gmra.mxu0 %vm16842_vm6, %v7187_v53  ;;  %5299 = vadd.xlane.f32.xlu0 %v5298_v4  ;;  %v16848_v53 = vld [vmem:[#allocation169_spill] sm:$0xff]  ;;  %vm16875_vm6 = vnez %v16874_v63 }
 0xb9b   : > { %v5218_v10 = vsel %vm16844_vm7, %v5120_v44, 0.0  ;;  %5892 = vmatprep.mubr.bf16.mxu0 %v16554_v16  ;;  %vm16849_vm13 = vnez %v16848_v53  ;;  %vm16876_vm7 = vnez %v16624_v26 }
 0xb9c   : > { %v5301_v40 = vadd.f32 %v5218_v10, %v5118_v19  ;;  %v5122_v39 = vpop.f32.mrf.mxu1 }
 0xb9e   : > { %v5124_v23 = vpop.f32.mrf.mxu1  ;;  %5302 = vadd.xlane.f32.xlu1 %v5301_v40 }
 0xb9f   : > { %v5220_v5 = vsel %vm16846_vm9, %v5124_v23, 0.0  ;;  %v7199_v29 = vpack.c.bf16 %v5124_v23, %v5120_v44  ;;  %v5581_v44 = vpack.c.bf16 %v5122_v39, %v5118_v19 }
 0xba0   : > { %v5304_v15 = vadd.f32 %v5220_v5, %v5122_v39  ;;  %v13465_v11 = vpop.f32.mrf.mxu1  ;;  %v16853_v5 = vld [vmem:[#allocation175_spill] sm:$0xff] }
 0xba1   : > { %vm16854_vm10 = vnez %v16853_v5 }
 0xba2   : > { %v5130_v17 = vpop.f32.mrf.mxu1  ;;  %7191 = vmatmul.mubr.msk.bf16.gmra.mxu0 %vm16847_vm1, %v7190_v9  ;;  %5305 = vadd.xlane.f32.xlu0 %v5304_v15  ;;  %vm16881_vm1 = vnez %v16640_v34 }
 0xba3   : > { %v5222_v16 = vsel %vm16849_vm13, %v5130_v17, 0.0  ;;  %7194 = vmatprep.mubr.msk.bf16.mxu0 %vm16850_vm15, %v7193_v28  ;;  %v13482_v28 = vpop.f32.mrf.mxu0  ;;  %vm16884_vm13 = vnez %v16655_v46  ;;  %vm16887_vm15 = vnez %v16668_v12 }
 0xba4   : > { %v5307_v4 = vadd.f32 %v5222_v16, %v13465_v11  ;;  %v5132_v55 = vpop.f32.mrf.mxu1  ;;  %16856 = vst [vmem:[#allocation126_spill] sm:$0xff] %v13482_v28 }
 0xba5   : > { %v13487_v8 = vpop.f32.mrf.mxu0 }
 0xba6   : > { %v5134_v10 = vpop.f32.mrf.mxu1  ;;  %5308 = vadd.xlane.f32.xlu1 %v5307_v4  ;;  %16859 = vst [vmem:[#allocation129_spill] sm:$0xff] %v13487_v8 }
 0xba7   : > { %v5224_v1 = vsel %vm16852_vm8, %v5134_v10, 0.0  ;;  %vm16978_vm8 = vcmask 261120  }
 0xba8   : > { %v5310_v25 = vadd.f32 %v5224_v1, %v5132_v55  ;;  %v13476_v40 = vpop.f32.mrf.mxu1 }
 0xbaa   : > { %v5140_v0 = vpop.f32.mrf.mxu1  ;;  %5901 = vmatmul.mubr.bf16.gmra.mxu0 %v5577_v57  ;;  %5311 = vadd.xlane.f32.xlu0 %v5310_v25  ;;  %v13493_v25 = vpop.f32.mrf.mxu0 }
 0xbab   : > { %v5226_v41 = vsel %vm16854_vm10, %v5140_v0, 0.0  ;;  %7197 = vmatprep.mubr.msk.bf16.mxu0 %vm16855_vm5, %v7196_v59  ;;  %16863 = vst [vmem:[#allocation131_spill] sm:$0xff] %v13493_v25  ;;  %vm16979_vm10 = vmmov %vm16978_vm8 }
 0xbac   : > { %v5313_v9 = vadd.f32 %v5226_v41, %v13476_v40  ;;  %v5142_v15 = vpop.f32.mrf.mxu1  ;;  %v13497_v27 = vpop.f32.mrf.mxu0  ;;  %vm16980_vm5 = vmmov %vm16978_vm8 }
 0xbad   : > { %16866 = vst [vmem:[#allocation133_spill] sm:$0xff] %v13497_v27 }
 0xbae   : > { %v5144_v53 = vpop.f32.mrf.mxu1  ;;  %5314 = vadd.xlane.f32.xlu1 %v5313_v9  ;;  %v16864_v9 = vld [vmem:[#allocation183_spill] sm:$0xff] }
 0xbaf   : > { %v5228_v52 = vsel %vm16858_vm4, %v5144_v53, 0.0  ;;  %vm16865_vm12 = vnez %v16864_v9  ;;  %v16871_v9 = vld [vmem:[#allocation189_spill] sm:$0xff]  ;;  %vm16981_vm4 = vmmov %vm16980_vm5 }
 0xbb0   : > { %v5316_v16 = vadd.f32 %v5228_v52, %v5142_v15  ;;  %v5148_v4 = vpop.f32.mrf.mxu1  ;;  %v7202_v52 = vpack.c.bf16 %v5134_v10, %v5130_v17  ;;  %vm16872_vm2 = vnez %v16871_v9  ;;  %v5583_v17 = vpack.c.bf16 %v5132_v55, %v13465_v11 }
 0xbb2   : > { %v5150_v1 = vpop.f32.mrf.mxu1  ;;  %5909 = vmatmul.mubr.bf16.gmra.mxu0 %v5579_v61  ;;  %5317 = vadd.xlane.f32.xlu0 %v5316_v16 }
 0xbb3   : > { %v5230_v57 = vsel %vm16861_vm3, %v5150_v1, 0.0  ;;  %7200 = vmatprep.mubr.msk.bf16.mxu0 %vm16862_vm11, %v7199_v29  ;;  %v13503_v29 = vpop.f32.mrf.mxu0  ;;  %vm16982_vm3 = vmmov %vm16981_vm4 }
 0xbb4   : > { %v5319_v59 = vadd.f32 %v5230_v57, %v5148_v4  ;;  %v5152_v5 = vpop.f32.mrf.mxu1  ;;  %16870 = vst [vmem:[#allocation135_spill] sm:$0xff] %v13503_v29  ;;  %v16878_v29 = vld [vmem:[#allocation196_spill] sm:$0xff]  ;;  %vm16983_vm11 = vmmov %vm16982_vm3 }
 0xbb5   : > { %v13507_v39 = vpop.f32.mrf.mxu0  ;;  %vm16879_vm9 = vnez %v16878_v29 }
 0xbb6   : > { %v5154_v41 = vpop.f32.mrf.mxu1  ;;  %5320 = vadd.xlane.f32.xlu1 %v5319_v59  ;;  %16873 = vst [vmem:[#allocation138_spill] sm:$0xff] %v13507_v39 }
 0xbb7   : > { %v5232_v33 = vsel %vm16865_vm12, %v5154_v41, 0.0  ;;  %v13514_v49 = vpop.f32.mrf.mxu0  ;;  %vm16984_vm12 = vmmov %vm16982_vm3 }
 0xbb8   : > { %v5322_v23 = vadd.f32 %v5232_v33, %v5152_v5  ;;  %v5158_v13 = vpop.f32.mrf.mxu1  ;;  %16877 = vst [vmem:[#allocation139_spill] sm:$0xff] %v13514_v49 }
 0xbb9   : > { %v13518_v55 = vpop.f32.mrf.mxu0 }
 0xbba   : > { %v5160_v61 = vpop.f32.mrf.mxu1  ;;  %5917 = vmatmul.mubr.bf16.gmra.mxu0 %v5581_v44  ;;  %5323 = vadd.xlane.f32.xlu0 %v5322_v23  ;;  %v7205_v44 = vpack.c.bf16 %v5144_v53, %v5140_v0  ;;  %16880 = vst [vmem:[#allocation142_spill] sm:$0xff] %v13518_v55  ;;  %v5585_v0 = vpack.c.bf16 %v5142_v15, %v13476_v40 }
 0xbbb   : > { %v5234_v16 = vsel %vm16868_vm0, %v5160_v61, 0.0  ;;  %7203 = vmatprep.mubr.msk.bf16.mxu0 %vm16869_vm14, %v7202_v52  ;;  %v13523_v26 = vpop.f32.mrf.mxu0  ;;  %vm16985_vm0 = vmmov %vm16982_vm3 }
 0xbbc   : > { %v5325_v24 = vadd.f32 %v5234_v16, %v5158_v13  ;;  %v5162_v57 = vpop.f32.mrf.mxu1  ;;  %16882 = vst [vmem:[#allocation143_spill] sm:$0xff] %v13523_v26  ;;  %vm16986_vm14 = vmmov %vm16985_vm0 }
 0xbbd   : > { %v5589_v15 = vpack.c.bf16 %v5162_v57, %v5158_v13 }
 0xbbe   : > { %v5164_v59 = vpop.f32.mrf.mxu1  ;;  %5326 = vadd.xlane.f32.xlu1 %v5325_v24 }
 0xbbf   : > { %v5236_v19 = vsel %vm16872_vm2, %v5164_v59, 0.0  ;;  %vm16987_vm2 = vmmov %vm16985_vm0 }
 0xbc0   : > { %v5328_v10 = vadd.f32 %v5236_v19, %v5162_v57  ;;  %v5168_v33 = vpop.f32.mrf.mxu1  ;;  %v7208_v19 = vpack.c.bf16 %v5154_v41, %v5150_v1  ;;  %v16894_v57 = vld [vmem:[#allocation57_spill] sm:$0xff] }
 0xbc2   : > { %v5170_v23 = vpop.f32.mrf.mxu1  ;;  %5925 = vmatmul.mubr.bf16.gmra.mxu0 %v5583_v17  ;;  %5329 = vadd.xlane.f32.xlu0 %v5328_v10  ;;  %v13525_v17 = vpop.f32.mrf.mxu0  ;;  %v5587_v10 = vpack.c.bf16 %v5152_v5, %v5148_v4  ;;  %v16890_v5 = vld [vmem:[#allocation22_spill] sm:$0xff] }
 0xbc3   : > { %v5238_v52 = vsel %vm16875_vm6, %v5170_v23, 0.0  ;;  %7206 = vmatprep.mubr.msk.bf16.mxu0 %vm16876_vm7, %v7205_v44  ;;  %16883 = vst [vmem:[#allocation146_spill] sm:$0xff] %v13525_v17  ;;  %v7211_v44 = vpack.c.bf16 %v5164_v59, %v5160_v61  ;;  %v16892_v61 = vld [vmem:[#allocation56_spill] sm:$0xff]  ;;  %vm16988_vm6 = vmmov %vm16985_vm0 }
 0xbc4   : > { %v5331_v16 = vadd.f32 %v5238_v52, %v5168_v33  ;;  %v5172_v24 = vpop.f32.mrf.mxu1  ;;  %v13529_v29 = vpop.f32.mrf.mxu0  ;;  %v16896_v59 = vld [vmem:[#allocation60_spill] sm:$0xff]  ;;  %v16900_v52 = vld [vmem:[#allocation65_spill] sm:$0xff]  ;;  %vm16989_vm7 = vmmov %vm16985_vm0 }
 0xbc5   : > { %16885 = vst [vmem:[#allocation148_spill] sm:$0xff] %v13529_v29  ;;  %v5591_v4 = vpack.c.bf16 %v5172_v24, %v5168_v33 }
 0xbc6   : > { %5332 = vadd.xlane.f32.xlu1 %v5331_v16  ;;  %v5174_v9 = vpop.f32.mrf.mxu1  ;;  %v13531_v40 = vpop.f32.mrf.mxu0 }
 0xbc7   : > { %v5240_v11 = vsel %vm16879_vm9, %v5174_v9, 0.0  ;;  %16886 = vst [vmem:[#allocation151_spill] sm:$0xff] %v13531_v40  ;;  %v7214_v1 = vpack.c.bf16 %v5174_v9, %v5170_v23  ;;  %v16898_v23 = vld [vmem:[#allocation62_spill] sm:$0xff]  ;;  %v13567_v9 = vpop.xlane.xlu1 %4150  ;;  %vm16990_vm9 = vmmov %vm16985_vm0 }
 0xbc8   : > { %v5334_v53 = vadd.f32 %v5240_v11, %v5172_v24  ;;  %v13535_v34 = vpop.f32.mrf.mxu0  ;;  %v16902_v24 = vld [vmem:[#allocation67_spill] sm:$0xff] }
 0xbc9   : > { %16888 = vst [vmem:[#allocation152_spill] sm:$0xff] %v13535_v34  ;;  %v16939_v34 = vld [vmem:[#allocation35_spill] sm:$0xff] }
 0xbca   : > { %5933 = vmatmul.mubr.bf16.gmra.mxu0 %v5585_v0  ;;  %5335 = vadd.xlane.f32.xlu0 %v5334_v53  ;;  %v13537_v41 = vpop.f32.mrf.mxu0 }
 0xbcb   : > { %7209 = vmatprep.mubr.msk.bf16.mxu0 %vm16881_vm1, %v7208_v19  ;;  %16889 = vst [vmem:[#allocation156_spill] sm:$0xff] %v13537_v41  ;;  %v13574_v0 = vpop.xlane.xlu1 %4159  ;;  %vm16991_vm1 = vmmov %vm16985_vm0 }
 0xbcc   : > { %v13541_v46 = vpop.f32.mrf.mxu0 }
 0xbcd   : > { %16891 = vst [vmem:[#allocation158_spill] sm:$0xff] %v13541_v46 }
 0xbce   : > { %v13545_v13 = vpop.f32.mrf.mxu0 }
 0xbcf   : > { %16893 = vst [vmem:[#allocation163_spill] sm:$0xff] %v13545_v13 }
 0xbd0   : > { %v13549_v12 = vpop.f32.mrf.mxu0 }
 0xbd1   : > { %16895 = vst [vmem:[#allocation164_spill] sm:$0xff] %v13549_v12  ;;  %v16935_v12 = vld [vmem:[#allocation32_spill] sm:$0xff] }
 0xbd2   : > { %5941 = vmatmul.mubr.bf16.gmra.mxu0 %v5587_v10  ;;  %v13553_v33 = vpop.f32.mrf.mxu0  ;;  %v13586_v10 = vpop.xlane.xlu1 %4165 }
 0xbd3   : > { %7212 = vmatprep.mubr.msk.bf16.mxu0 %vm16884_vm13, %v7211_v44  ;;  %16897 = vst [vmem:[#allocation169_spill] sm:$0xff] %v13553_v33  ;;  %vm16992_vm13 = vmmov %vm16985_vm0 }
 0xbd4   : > { %v13558_v63 = vpop.f32.mrf.mxu0 }
 0xbd5   : > { %16899 = vst [vmem:[#allocation170_spill] sm:$0xff] %v13558_v63 }
 0xbd6   : > { %v13563_v16 = vpop.f32.mrf.mxu0 }
 0xbd7   : > { %16901 = vst [vmem:[#allocation175_spill] sm:$0xff] %v13563_v16 }
 0xbd8   : > { %v13570_v11 = vpop.f32.mrf.mxu0 }
 0xbd9   : > { %16903 = vst [vmem:[#allocation177_spill] sm:$0xff] %v13570_v11 }
 0xbda   : > { %5949 = vmatmul.mubr.bf16.gmra.mxu0 %v5589_v15  ;;  %v13577_v53 = vpop.f32.mrf.mxu0  ;;  %v13593_v15 = vpop.xlane.xlu0 %4147 }
 0xbdb   : > { %7215 = vmatprep.mubr.msk.bf16.mxu0 %vm16887_vm15, %v7214_v1  ;;  %16905 = vst [vmem:[#allocation182_spill] sm:$0xff] %v13577_v53  ;;  %v13595_v1 = vpop.xlane.xlu1 %4171  ;;  %vm16993_vm15 = vmmov %vm16985_vm0 }
 0xbdc   : > { %v13582_v19 = vpop.f32.mrf.mxu0 }
 0xbdd   : > { %16907 = vst [vmem:[#allocation183_spill] sm:$0xff] %v13582_v19 }
 0xbde   : > { %v13589_v44 = vpop.f32.mrf.mxu0 }
 0xbdf   : > { %16909 = vst [vmem:[#allocation188_spill] sm:$0xff] %v13589_v44 }
 0xbe0   : > { %5339 = vrot.lane.b32.xlu0 %v16890_v5, %s8918_s8  ;;  %v13602_v5 = vpop.xlane.xlu0 %4153 }
 0xbe2   : > { %5957 = vmatmul.mubr.bf16.gmra.mxu0 %v5591_v4  ;;  %v16912_v4 = vld [vmem:[#allocation87_spill] sm:$0xff] }
 0xbe4   : > { %5345 = vrot.lane.b32.xlu0 %v16892_v61, %s8918_s8  ;;  %v16914_v61 = vld [vmem:[#allocation90_spill] sm:$0xff] }
 0xbe8   : > { %5349 = vrot.lane.b32.xlu0 %v16894_v57, %s8918_s8  ;;  %v13609_v57 = vpop.xlane.xlu1 %4177 }
 0xbec   : > { %5353 = vrot.lane.b32.xlu0 %v16896_v59, %s8918_s8  ;;  %v16915_v59 = vld [vmem:[#allocation52_spill] sm:$0xff] }
 0xbf0   : > { %5357 = vrot.lane.b32.xlu0 %v16898_v23, %s8918_s8  ;;  %v16917_v23 = vld [vmem:[#allocation93_spill] sm:$0xff] }
 0xbf3   : > { %6093 = vxpose.xlu1.c.b16.start [1/8] (narrow) %v12925_v7, 32  ;;  %v16904_v7 = vld [vmem:[#allocation72_spill] sm:$0xff] }
 0xbf4   : > { %5361 = vrot.lane.b32.xlu0 %v16900_v52, %s8918_s8  ;;  %v13617_v52 = vpop.xlane.xlu0 %4156 }
 0xbf7   : > { %6094 = vxpose.xlu1.c.b16.cont [2/8] (narrow) %v12910_v47, 32  ;;  %v16906_v47 = vld [vmem:[#allocation76_spill] sm:$0xff] }
 0xbf8   : > { %5365 = vrot.lane.b32.xlu0 %v16902_v24, %s8918_s8  ;;  %v13619_v24 = vpop.xlane.xlu1 %5242 }
 0xbf9   : > { %16918 = vst [vmem:[#allocation22_spill] sm:$0xff] %v13619_v24 }
 0xbfb   : > { %6095 = vxpose.xlu1.c.b16.cont [3/8] (narrow) %v12900_v21, 32  ;;  %v16908_v21 = vld [vmem:[#allocation80_spill] sm:$0xff] }
 0xbfc   : > { %5369 = vrot.lane.b32.xlu0 %v16904_v7, %s8918_s8 }
 0xbff   : > { %6096 = vxpose.xlu1.c.b16.cont [4/8] (narrow) %v12887_v37, 32  ;;  %v16910_v37 = vld [vmem:[#allocation83_spill] sm:$0xff] }
 0xc00   : > { %5373 = vrot.lane.b32.xlu0 %v16906_v47, %s8918_s8  ;;  %v16921_v47 = vld [vmem:[#allocation97_spill] sm:$0xff] }
 0xc03   : > { %6097 = vxpose.xlu1.c.b16.cont [5/8] (narrow) %v12875_v20, 32  ;;  %v13598_v20 = vpop.f32.mrf.mxu0 }
 0xc04   : > { %5377 = vrot.lane.b32.xlu0 %v16908_v21, %s8918_s8  ;;  %16911 = vst [vmem:[#allocation189_spill] sm:$0xff] %v13598_v20  ;;  %v13627_v21 = vpop.xlane.xlu1 %5248 }
 0xc05   : > { %16922 = vst [vmem:[#allocation57_spill] sm:$0xff] %v13627_v21  ;;  %v17057_v21 = vld [vmem:[#allocation371_spill] sm:$0xff] }
 0xc07   : > { %6098 = vxpose.xlu1.c.b16.cont [6/8] (narrow) %v12861_v54, 32  ;;  %v13605_v54 = vpop.f32.mrf.mxu0 }
 0xc08   : > { %5381 = vrot.lane.b32.xlu0 %v16910_v37, %s8918_s8  ;;  %16913 = vst [vmem:[#allocation194_spill] sm:$0xff] %v13605_v54  ;;  %v13629_v37 = vpop.xlane.xlu0 %4162 }
 0xc0b   : > { %6099 = vxpose.xlu1.c.b16.cont [7/8] (narrow) %v12846_v42, 32  ;;  %v13613_v42 = vpop.f32.mrf.mxu0 }
 0xc0c   : > { %5385 = vrot.lane.b32.xlu0 %v16912_v4, %s8918_s8  ;;  %16916 = vst [vmem:[#allocation196_spill] sm:$0xff] %v13613_v42  ;;  %v16923_v4 = vld [vmem:[#allocation24_spill] sm:$0xff]  ;;  %v13641_v20 = vpop.xlane.xlu0 %4168 }
 0xc0d   : > { %v13623_v7 = vpop.f32.mrf.mxu0 }
 0xc0e   : > { %16920 = vst [vmem:[#allocation56_spill] sm:$0xff] %v13623_v7 }
 0xc0f   : > { %6100 = vxpose.xlu1.c.b16.end [8/8] (narrow) %v12826_v6, 32  ;;  %v16919_v6 = vld [vmem:[#allocation54_spill] sm:$0xff] }
 0xc10   : > { %5389 = vrot.lane.b32.xlu0 %v16914_v61, %s8918_s8  ;;  %v13633_v61 = vpop.f32.mrf.mxu0 }
 0xc11   : > { %16924 = vst [vmem:[#allocation60_spill] sm:$0xff] %v13633_v61  ;;  %v16932_v61 = vld [vmem:[#allocation31_spill] sm:$0xff] }
 0xc13   : > { %5337 = vrot.lane.b32.xlu1 %v16915_v59, %s8918_s8  ;;  %v13635_v59 = vpop.xlane.xlu1 %5254 }
 0xc14   : > { %5393 = vrot.lane.b32.xlu0 %v16917_v23, %s8918_s8  ;;  %16925 = vst [vmem:[#allocation62_spill] sm:$0xff] %v13635_v59  ;;  %v16926_v23 = vld [vmem:[#allocation27_spill] sm:$0xff] }
 0xc17   : > { %5341 = vrot.lane.b32.xlu1 %v16919_v6, %s8918_s8  ;;  %v13639_v6 = vpop.f32.mrf.mxu0  ;;  %v13643_v54 = vpop.xlane.xlu1 %5260 }
 0xc18   : > { %5397 = vrot.lane.b32.xlu0 %v16921_v47, %s8918_s8  ;;  %16927 = vst [vmem:[#allocation65_spill] sm:$0xff] %v13639_v6  ;;  %16928 = vst [vmem:[#allocation67_spill] sm:$0xff] %v13643_v54  ;;  %v16929_v47 = vld [vmem:[#allocation28_spill] sm:$0xff] }
 0xc19   : > { %v13647_v11 = vpop.f32.mrf.mxu0 }
 0xc1a   : > { %16930 = vst [vmem:[#allocation72_spill] sm:$0xff] %v13647_v11 }
 0xc1b   : > { %5343 = vrot.lane.b32.xlu1 %v16923_v4, %s8918_s8  ;;  %v13649_v53 = vpop.xlane.xlu1 %5266  ;;  %v13651_v4 = vpop.xlane.xlu0 %4174 }
 0xc1c   : > { %16931 = vst [vmem:[#allocation76_spill] sm:$0xff] %v13649_v53  ;;  %v13655_v42 = vpop.f32.mrf.mxu0 }
 0xc1d   : > { %16933 = vst [vmem:[#allocation80_spill] sm:$0xff] %v13655_v42 }
 0xc1f   : > { %5347 = vrot.lane.b32.xlu1 %v16926_v23, %s8918_s8  ;;  %v13657_v23 = vpop.xlane.xlu1 %5272  ;;  %v13661_v33 = vpop.xlane.xlu0 %4180 }
 0xc20   : > { %16934 = vst [vmem:[#allocation83_spill] sm:$0xff] %v13657_v23  ;;  %v16967_v23 = vld [vmem:[#allocation48_spill] sm:$0xff] }
 0xc23   : > { %5351 = vrot.lane.b32.xlu1 %v16929_v47, %s8918_s8  ;;  %v13663_v47 = vpop.xlane.xlu1 %5278  ;;  %v13673_v42 = vpop.xlane.xlu0 %5245 }
 0xc24   : > { %16936 = vst [vmem:[#allocation87_spill] sm:$0xff] %v13663_v47 }
 0xc27   : > { %5355 = vrot.lane.b32.xlu1 %v16932_v61, %s8918_s8  ;;  %v13675_v44 = vpop.xlane.xlu1 %5284  ;;  %v13679_v26 = vpop.xlane.xlu0 %5251 }
 0xc28   : > { %16941 = vst [vmem:[#allocation54_spill] sm:$0xff] %v13675_v44 }
 0xc2a   : > { %v7922_v6 = vpop.f32.mrf.mxu0 }
 0xc2b   : > { %5359 = vrot.lane.b32.xlu1 %v16935_v12, %s8918_s8  ;;  %v16942_v12 = vld [vmem:[#allocation37_spill] sm:$0xff]  ;;  %v13691_v46 = vpop.xlane.xlu0 %5257 }
 0xc2c   : > { %v7923_v7 = vpop.f32.mrf.mxu0 }
 0xc2d   : > { %v13665_v11 = vadd.f32 %v7923_v7, %v7922_v6  ;;  %v13681_v7 = vpop.xlane.xlu1 %5290 }
 0xc2e   : > { %v13667_v19 = vpop.f32.mrf.mxu0  ;;  %16943 = vst [vmem:[#allocation97_spill] sm:$0xff] %v13681_v7 }
 0xc2f   : > { %16937 = vst [vmem:[#allocation90_spill] sm:$0xff] %v13665_v11  ;;  %16938 = vst [vmem:[#allocation52_spill] sm:$0xff] %v13667_v19  ;;  %5363 = vrot.lane.b32.xlu1 %v16939_v34, %s8918_s8  ;;  %v16946_v34 = vld [vmem:[#allocation38_spill] sm:$0xff]  ;;  %v13697_v29 = vpop.xlane.xlu0 %5263 }
 0xc30   : > { %v13671_v61 = vpop.f32.mrf.mxu0 }
 0xc31   : > { %16940 = vst [vmem:[#allocation93_spill] sm:$0xff] %v13671_v61  ;;  %v13693_v13 = vpop.xlane.xlu1 %5296  ;;  %v17058_v61 = vld [vmem:[#allocation372_spill] sm:$0xff] }
 0xc32   : > { %v7928_v41 = vpop.f32.mrf.mxu0  ;;  %16948 = vst [vmem:[#allocation31_spill] sm:$0xff] %v13693_v13 }
 0xc33   : > { %5367 = vrot.lane.b32.xlu1 %v16942_v12, %s8918_s8  ;;  %v16949_v12 = vld [vmem:[#allocation40_spill] sm:$0xff] }
 0xc34   : > { %v7929_v63 = vpop.f32.mrf.mxu0 }
 0xc35   : > { %v13683_v6 = vadd.f32 %v7929_v63, %v7928_v41  ;;  %v13699_v41 = vpop.xlane.xlu1 %5302 }
 0xc36   : > { %v13685_v16 = vpop.f32.mrf.mxu0  ;;  %16950 = vst [vmem:[#allocation32_spill] sm:$0xff] %v13699_v41  ;;  %v16961_v41 = vld [vmem:[#allocation46_spill] sm:$0xff] }
 0xc37   : > { %16944 = vst [vmem:[#allocation24_spill] sm:$0xff] %v13683_v6  ;;  %16945 = vst [vmem:[#allocation27_spill] sm:$0xff] %v13685_v16  ;;  %5371 = vrot.lane.b32.xlu1 %v16946_v34, %s8918_s8  ;;  %v16953_v34 = vld [vmem:[#allocation42_spill] sm:$0xff]  ;;  %v13709_v6 = vpop.xlane.xlu0 %5269 }
 0xc38   : > { %v13689_v17 = vpop.f32.mrf.mxu0  ;;  %16955 = vst [vmem:[#allocation40_spill] sm:$0xff] %v13709_v6 }
 0xc39   : > { %16947 = vst [vmem:[#allocation28_spill] sm:$0xff] %v13689_v17  ;;  %v13711_v13 = vpop.xlane.xlu1 %5308  ;;  %v17034_v17 = vld [vmem:[#allocation366_spill] sm:$0xff] }
 0xc3a   : > { %v7934_v39 = vpop.f32.mrf.mxu0  ;;  %16956 = vst [vmem:[#allocation42_spill] sm:$0xff] %v13711_v13  ;;  %v16964_v13 = vld [vmem:[#allocation47_spill] sm:$0xff] }
 0xc3b   : > { %5375 = vrot.lane.b32.xlu1 %v16949_v12, %s8918_s8  ;;  %v16957_v12 = vld [vmem:[#allocation44_spill] sm:$0xff]  ;;  %v13715_v11 = vpop.xlane.xlu0 %5275 }
 0xc3c   : > { %v7935_v44 = vpop.f32.mrf.mxu0  ;;  %16958 = vst [vmem:[#allocation44_spill] sm:$0xff] %v13715_v11  ;;  %v17056_v11 = vld [vmem:[#allocation329_spill] sm:$0xff] }
 0xc3d   : > { %v13701_v63 = vadd.f32 %v7935_v44, %v7934_v39  ;;  %v13719_v44 = vpop.xlane.xlu1 %5314 }
 0xc3e   : > { %v13703_v7 = vpop.f32.mrf.mxu0  ;;  %16960 = vst [vmem:[#allocation473_spill] sm:$0xff] %v13719_v44 }
 0xc3f   : > { %16951 = vst [vmem:[#allocation35_spill] sm:$0xff] %v13701_v63  ;;  %16952 = vst [vmem:[#allocation37_spill] sm:$0xff] %v13703_v7  ;;  %5379 = vrot.lane.b32.xlu1 %v16953_v34, %s8918_s8  ;;  %v13723_v34 = vpop.xlane.xlu0 %5281 }
 0xc40   : > { %v13707_v28 = vpop.f32.mrf.mxu0  ;;  %16962 = vst [vmem:[#allocation46_spill] sm:$0xff] %v13723_v34  ;;  %v17019_v34 = vld [vmem:[#allocation411_spill] sm:$0xff] }
 0xc41   : > { %16954 = vst [vmem:[#allocation38_spill] sm:$0xff] %v13707_v28  ;;  %v13725_v63 = vpop.xlane.xlu1 %5320  ;;  %v17013_v28 = vld [vmem:[#allocation116_spill] sm:$0xff] }
 0xc42   : > { %v7940_v47 = vpop.f32.mrf.mxu0  ;;  %16963 = vst [vmem:[#allocation474_spill] sm:$0xff] %v13725_v63 }
 0xc43   : > { %5383 = vrot.lane.b32.xlu1 %v16957_v12, %s8918_s8  ;;  %v13729_v8 = vpop.xlane.xlu0 %5287 }
 0xc44   : > { %v7941_v40 = vpop.f32.mrf.mxu0  ;;  %16965 = vst [vmem:[#allocation47_spill] sm:$0xff] %v13729_v8 }
 0xc45   : > { %v13717_v39 = vadd.f32 %v7941_v40, %v7940_v47 }
 0xc47   : > { %16959 = vst [vmem:[#allocation472_spill] sm:$0xff] %v13717_v39  ;;  %5387 = vrot.lane.b32.xlu1 %v16961_v41, %s8918_s8  ;;  %v13731_v12 = vpop.xlane.xlu1 %5326  ;;  %v13735_v40 = vpop.xlane.xlu0 %5293  ;;  %v16970_v41 = vld [vmem:[#allocation49_spill] sm:$0xff] }
 0xc48   : > { %16966 = vst [vmem:[#allocation475_spill] sm:$0xff] %v13731_v12  ;;  %16968 = vst [vmem:[#allocation48_spill] sm:$0xff] %v13735_v40 }
 0xc4b   : > { %5391 = vrot.lane.b32.xlu1 %v16964_v13, %s8918_s8  ;;  %v13741_v44 = vpop.xlane.xlu0 %5299 }
 0xc4c   : > { %16971 = vst [vmem:[#allocation49_spill] sm:$0xff] %v13741_v44 }
 0xc4f   : > { %5395 = vrot.lane.b32.xlu1 %v16967_v23, %s8918_s8  ;;  %v13737_v47 = vpop.xlane.xlu1 %5332  ;;  %v13744_v13 = vpop.xlane.xlu0 %5305 }
 0xc50   : > { %16969 = vst [vmem:[#allocation476_spill] sm:$0xff] %v13737_v47  ;;  %16972 = vst [vmem:[#allocation477_spill] sm:$0xff] %v13744_v13 }
 0xc53   : > { %5399 = vrot.lane.b32.xlu1 %v16970_v41, %s8918_s8  ;;  %v13746_v12 = vpop.xlane.xlu0 %5311 }
 0xc54   : > { %16973 = vst [vmem:[#allocation478_spill] sm:$0xff] %v13746_v12 }
 0xc55   : > { %v6101_v63 = vpop.trf.xlu1 }
 0xc56   : > { %6141 = vmatprep.mubr.bf16.mxu1 %v6101_v63 }
 0xc57   : > { %6142 = vmatmul.mubr.bf16.vlgmr.msra.gmra.mxu1 %v13268_v35  ;;  %v13749_v23 = vpop.xlane.xlu0 %5317 }
 0xc58   : > { %16974 = vst [vmem:[#allocation479_spill] sm:$0xff] %v13749_v23 }
 0xc59   : > { %v6102_v39 = vpop.trf.xlu1 }
 0xc5a   : > { %6149 = vmatprep.mubr.bf16.mxu1 %v6102_v39 }
 0xc5b   : > { %v13751_v47 = vpop.xlane.xlu0 %5323 }
 0xc5c   : > { %16975 = vst [vmem:[#allocation480_spill] sm:$0xff] %v13751_v47 }
 0xc5f   : > { %6150 = vmatmul.mubr.bf16.gmra.mxu1 %v13278_v58  ;;  %v13753_v49 = vpop.xlane.xlu0 %5329 }
 0xc60   : > { %16976 = vst [vmem:[#allocation481_spill] sm:$0xff] %v13753_v49 }
 0xc63   : > { %v13755_v41 = vpop.xlane.xlu0 %5335 }
 0xc64   : > { %16977 = vst [vmem:[#allocation482_spill] sm:$0xff] %v13755_v41 }
 0xc67   : > { %v5340_v44 = vpop.permute.xlu0 %5339 }
 0xc68   : > { %v5436_v63 = vsel %vm16978_vm8, %v5340_v44, 0.0  ;;  %vm16994_vm8 = vmmov %vm16985_vm0 }
 0xc6b   : > { %v5346_v13 = vpop.permute.xlu0 %5345 }
 0xc6c   : > { %v5445_v41 = vsel %vm16982_vm3, %v5346_v13, 0.0  ;;  %vm16998_vm3 = vmmov %vm16985_vm0 }
 0xc6f   : > { %v5350_v40 = vpop.permute.xlu0 %5349 }
 0xc73   : > { %v5354_v47 = vpop.permute.xlu0 %5353 }
 0xc74   : > { %v5457_v13 = vsel %vm16987_vm2, %v5354_v47, 0.0  ;;  %vm17002_vm2 = vmmov %vm16985_vm0 }
 0xc77   : > { %5437 = vadd.xlane.f32.xlu1 %v5436_v63  ;;  %v5358_v44 = vpop.permute.xlu0 %5357 }
 0xc85   : > { %v5338_v35 = vpop.permute.xlu1 %5337 }
 0xc86   : > { %v5433_v39 = vsel %vm16979_vm10, %v5338_v35, 0.0  ;;  %v5362_v35 = vpop.permute.xlu0 %5361  ;;  %vm16995_vm10 = vmmov %vm16985_vm0 }
 0xc87   : > { %5434 = vadd.xlane.f32.xlu0 %v5433_v39  ;;  %v5451_v39 = vsel %vm16984_vm12, %v5350_v40, 0.0  ;;  %v5463_v40 = vsel %vm16989_vm7, %v5358_v44, 0.0  ;;  %v5469_v47 = vsel %vm16993_vm15, %v5362_v35, 0.0  ;;  %vm17000_vm12 = vmmov %vm16985_vm0 }
 0xc88   : > { %vm17006_vm7 = vmmov %vm16985_vm0 }
 0xc89   : > { %v5342_v12 = vpop.permute.xlu1 %5341  ;;  %vm17023_vm15 = vmmov %vm16985_vm0 }
 0xc8a   : > { %v5439_v58 = vsel %vm16980_vm5, %v5342_v12, 0.0  ;;  %vm16996_vm5 = vmmov %vm16985_vm0 }
 0xc8b   : > { %5440 = vadd.xlane.f32.xlu1 %v5439_v58  ;;  %v5366_v58 = vpop.permute.xlu0 %5365 }
 0xc8d   : > { %v5344_v23 = vpop.permute.xlu1 %5343 }
 0xc8e   : > { %v5442_v49 = vsel %vm16981_vm4, %v5344_v23, 0.0  ;;  %vm16997_vm4 = vmmov %vm16985_vm0 }
 0xc8f   : > { %5443 = vadd.xlane.f32.xlu1 %v5442_v49 }
 0xc91   : > { %v5348_v53 = vpop.permute.xlu1 %5347 }
 0xc92   : > { %v5448_v63 = vsel %vm16983_vm11, %v5348_v53, 0.0  ;;  %vm16999_vm11 = vmmov %vm16985_vm0 }
 0xc93   : > { %5446 = vadd.xlane.f32.xlu1 %v5445_v41 }
 0xc95   : > { %v5352_v55 = vpop.permute.xlu1 %5351 }
 0xc96   : > { %v5454_v23 = vsel %vm16986_vm14, %v5352_v55, 0.0  ;;  %vm17001_vm14 = vmmov %vm16985_vm0 }
 0xc97   : > { %5449 = vadd.xlane.f32.xlu1 %v5448_v63  ;;  %v5370_v63 = vpop.permute.xlu0 %5369 }
 0xc99   : > { %v5356_v8 = vpop.permute.xlu1 %5355 }
 0xc9a   : > { %v5460_v12 = vsel %vm16985_vm0, %v5356_v8, 0.0 }
 0xc9b   : > { %5452 = vadd.xlane.f32.xlu1 %v5451_v39  ;;  %5461 = vadd.xlane.f32.xlu0 %v5460_v12  ;;  %v5374_v12 = vpop.permute.xlu0 %5373 }
 0xc9c   : > { %v5487_v35 = vsel %vm16999_vm11, %v5374_v12, 0.0  ;;  %v17004_v12 = vld [vmem:[#allocation342_spill] sm:$0xff]  ;;  %vm17422_vm11 = vmmov %vm16985_vm0 }
 0xc9d   : > { %v5360_v49 = vpop.permute.xlu1 %5359 }
 0xc9e   : > { %v5466_v55 = vsel %vm16991_vm1, %v5360_v49, 0.0  ;;  %v5481_v49 = vsel %vm16997_vm4, %v5370_v63, 0.0  ;;  %vm17009_vm1 = vmmov %vm16985_vm0 }
 0xc9f   : > { %5455 = vadd.xlane.f32.xlu1 %v5454_v23  ;;  %v5378_v44 = vpop.permute.xlu0 %5377  ;;  %vm17279_vm4 = vmmov %vm16985_vm0 }
 0xca1   : > { %v5364_v41 = vpop.permute.xlu1 %5363 }
 0xca2   : > { %v5472_v53 = vsel %vm16988_vm6, %v5364_v41, 0.0  ;;  %vm17003_vm6 = vmmov %vm16985_vm0 }
 0xca3   : > { %5458 = vadd.xlane.f32.xlu1 %v5457_v13  ;;  %5473 = vadd.xlane.f32.xlu0 %v5472_v53 }
 0xca5   : > { %v5368_v54 = vpop.permute.xlu1 %5367 }
 0xca6   : > { %v5478_v8 = vsel %vm16990_vm9, %v5368_v54, 0.0  ;;  %v5475_v54 = vsel %vm16995_vm10, %v5366_v58, 0.0  ;;  %vm17008_vm9 = vmmov %vm16985_vm0 }
 0xca7   : > { %5464 = vadd.xlane.f32.xlu1 %v5463_v40  ;;  %5479 = vadd.xlane.f32.xlu0 %v5478_v8  ;;  %vm17249_vm10 = vmmov %vm16985_vm0 }
 0xca9   : > { %v5372_v39 = vpop.permute.xlu1 %5371 }
 0xcaa   : > { %v5484_v23 = vsel %vm16992_vm13, %v5372_v39, 0.0  ;;  %vm17017_vm13 = vmmov %vm16985_vm0 }
 0xcab   : > { %5467 = vadd.xlane.f32.xlu1 %v5466_v55  ;;  %5485 = vadd.xlane.f32.xlu0 %v5484_v23  ;;  %v5382_v55 = vpop.permute.xlu0 %5381 }
 0xcac   : > { %v5499_v63 = vsel %vm17002_vm2, %v5382_v55, 0.0  ;;  %vm17461_vm2 = vmmov %vm16985_vm0 }
 0xcad   : > { %v5376_v13 = vpop.permute.xlu1 %5375 }
 0xcae   : > { %v5490_v41 = vsel %vm16994_vm8, %v5376_v13, 0.0  ;;  %v5493_v13 = vsel %vm16985_vm0, %v5378_v44, 0.0  ;;  %v13787_v44 = vpop.f32.mrf.mxu0  ;;  %vm17232_vm8 = vmmov %vm16985_vm0 }
 0xcaf   : > { %5470 = vadd.xlane.f32.xlu1 %v5469_v47  ;;  %5491 = vadd.xlane.f32.xlu0 %v5490_v41  ;;  %v5386_v58 = vpop.permute.xlu0 %5385  ;;  %17007 = vst [vmem:[#allocation342_spill] sm:$0xff] %v13787_v44 }
 0xcb1   : > { %v5380_v53 = vpop.permute.xlu1 %5379 }
 0xcb2   : > { %v5496_v40 = vsel %vm16996_vm5, %v5380_v53, 0.0  ;;  %vm17267_vm5 = vmmov %vm16985_vm0 }
 0xcb3   : > { %5476 = vadd.xlane.f32.xlu1 %v5475_v54  ;;  %5497 = vadd.xlane.f32.xlu0 %v5496_v40  ;;  %v5390_v40 = vpop.permute.xlu0 %5389 }
 0xcb5   : > { %v5384_v8 = vpop.permute.xlu1 %5383 }
 0xcb6   : > { %v5502_v39 = vsel %vm16998_vm3, %v5384_v8, 0.0  ;;  %v17005_v8 = vld [vmem:[#allocation207_spill] sm:$0xff]  ;;  %vm17407_vm3 = vmmov %vm16985_vm0 }
 0xcb7   : > { %5482 = vadd.xlane.f32.xlu1 %v5481_v49  ;;  %5503 = vadd.xlane.f32.xlu0 %v5502_v39  ;;  %v2820_v39 = vadd.f32 %v17005_v8, %v17004_v12  ;;  %v13795_v12 = vpop.f32.mrf.mxu0  ;;  %v17016_v8 = vld [vmem:[#allocation211_spill] sm:$0xff] }
 0xcb8   : > { %17014 = vst [vmem:[#allocation207_spill] sm:$0xff] %v13795_v12 }
 0xcb9   : > { %v5388_v23 = vpop.permute.xlu1 %5387  ;;  %v3272_v55 = vadd.f32 1e-06, %v2820_v39  ;;  %v13800_v44 = vpop.f32.mrf.mxu0 }
 0xcba   : > { %v5508_v47 = vsel %vm17000_vm12, %v5388_v23, 0.0  ;;  %vm17436_vm12 = vmmov %vm16985_vm0 }
 0xcbb   : > { %5488 = vadd.xlane.f32.xlu1 %v5487_v35  ;;  %5509 = vadd.xlane.f32.xlu0 %v5508_v47  ;;  %v5505_v35 = vsel %vm17006_vm7, %v5386_v58, 0.0  ;;  %v17015_v58 = vld [vmem:[#allocation409_spill] sm:$0xff]  ;;  %8453 = vrcp.f32 %v3272_v55  ;;  %vm17475_vm7 = vmmov %vm16985_vm0 }
 0xcbc   : > { %v2826_v25 = vadd.f32 %v17016_v8, %v17015_v58  ;;  %v17024_v55 = vld [vmem:[#allocation405_spill] sm:$0xff]  ;;  %v17027_v58 = vld [vmem:[#allocation360_spill] sm:$0xff]  ;;  %v13811_v8 = vpop.f32.mrf.mxu0 }
 0xcbd   : > { %v5392_v41 = vpop.permute.xlu1 %5391 }
 0xcbe   : > { %v5514_v54 = vsel %vm17001_vm14, %v5392_v41, 0.0  ;;  %v5511_v41 = vsel %vm17009_vm1, %v5390_v40, 0.0  ;;  %v3278_v40 = vadd.f32 1e-06, %v2826_v25  ;;  %vm17450_vm14 = vmmov %vm16985_vm0 }
 0xcbf   : > { %5494 = vadd.xlane.f32.xlu1 %v5493_v13  ;;  %5515 = vadd.xlane.f32.xlu0 %v5514_v54  ;;  %v5394_v13 = vpop.permute.xlu0 %5393  ;;  %v17010_v54 = vld [vmem:[#allocation407_spill] sm:$0xff]  ;;  %vm17488_vm1 = vmmov %vm16985_vm0 }
 0xcc0   : > { %17018 = vst [vmem:[#allocation407_spill] sm:$0xff] %v13800_v44  ;;  %v17029_v44 = vld [vmem:[#allocation413_spill] sm:$0xff] }
 0xcc1   : > { %v5396_v53 = vpop.permute.xlu1 %5395 }
 0xcc2   : > { %v5520_v49 = vsel %vm17003_vm6, %v5396_v53, 0.0  ;;  %v17011_v53 = vld [vmem:[#allocation209_spill] sm:$0xff]  ;;  %vm17463_vm6 = vmmov %vm16985_vm0 }
 0xcc3   : > { %5500 = vadd.xlane.f32.xlu1 %v5499_v63  ;;  %5521 = vadd.xlane.f32.xlu0 %v5520_v49  ;;  %v2824_v63 = vadd.f32 %v17011_v53, %v17010_v54  ;;  %v17012_v49 = vld [vmem:[#allocation343_spill] sm:$0xff]  ;;  %v17020_v54 = vld [vmem:[#allocation213_spill] sm:$0xff]  ;;  %17028 = vst [vmem:[#allocation209_spill] sm:$0xff] %v13811_v8 }
 0xcc4   : > { %v2819_v7 = vadd.f32 %v17013_v28, %v17012_v49  ;;  %v2828_v53 = vadd.f32 %v17020_v54, %v17019_v34  ;;  %v17021_v28 = vld [vmem:[#allocation404_spill] sm:$0xff]  ;;  %v17022_v49 = vld [vmem:[#allocation111_spill] sm:$0xff] }
 0xcc5   : > { %v5400_v23 = vpop.permute.xlu1 %5399  ;;  %v2821_v12 = vadd.f32 %v17022_v49, %v17021_v28  ;;  %v17030_v34 = vld [vmem:[#allocation215_spill] sm:$0xff] }
 0xcc6   : > { %v5526_v47 = vsel %vm17008_vm9, %v5400_v23, 0.0  ;;  %v3276_v23 = vadd.f32 1e-06, %v2824_v63  ;;  %v3271_v39 = vadd.f32 1e-06, %v2819_v7  ;;  %v17026_v63 = vld [vmem:[#allocation359_spill] sm:$0xff]  ;;  %vm17478_vm9 = vmmov %vm16985_vm0 }
 0xcc7   : > { %5506 = vadd.xlane.f32.xlu1 %v5505_v35  ;;  %5527 = vadd.xlane.f32.xlu0 %v5526_v47  ;;  %v5517_v35 = vsel %vm17017_vm13, %v5394_v13, 0.0  ;;  %v5398_v47 = vpop.permute.xlu0 %5397  ;;  %v7515_v7 = vadd.f32 %v17027_v58, %v17026_v63  ;;  %v3280_v25 = vadd.f32 1e-06, %v2828_v53  ;;  %v3273_v54 = vadd.f32 1e-06, %v2821_v12  ;;  %v17031_v49 = vld [vmem:[#allocation319_spill] sm:$0xff]  ;;  %vm17490_vm13 = vmmov %vm16985_vm0 }
 0xcc8   : > { %v5523_v59 = vsel %vm17023_vm15, %v5398_v47, 0.0  ;;  %8455 = vrcp.f32 %v3276_v23  ;;  %v13816_v23 = vpop.f32.mrf.mxu0  ;;  %v17035_v63 = vld [vmem:[#allocation415_spill] sm:$0xff]  ;;  %v17036_v58 = vld [vmem:[#allocation217_spill] sm:$0xff]  ;;  %v17038_v53 = vld [vmem:[#allocation120_spill] sm:$0xff] }
 0xcc9   : > { %8457 = vrcp.f32 %v3271_v39  ;;  %v3148_v47 = vadd.f32 %v7515_v7, %v17031_v49  ;;  %17032 = vst [vmem:[#allocation343_spill] sm:$0xff] %v13816_v23  ;;  %v17033_v39 = vld [vmem:[#allocation365_spill] sm:$0xff]  ;;  %v2832_v8 = vadd.f32 %v17036_v58, %v17035_v63  ;;  %v17039_v12 = vld [vmem:[#allocation408_spill] sm:$0xff]  ;;  %v17042_v49 = vld [vmem:[#allocation331_spill] sm:$0xff] }
 0xcca   : > { %8459 = vrcp.f32 %v3278_v40  ;;  %v17037_v40 = vld [vmem:[#allocation406_spill] sm:$0xff]  ;;  %vm17501_vm15 = vmmov %vm16985_vm0 }
 0xccb   : > { %5512 = vadd.xlane.f32.xlu1 %v5511_v41  ;;  %v17025_v41 = vld [vmem:[#allocation118_spill] sm:$0xff]  ;;  %8461 = vrcp.f32 %v3280_v25  ;;  %v2823_v16 = vadd.f32 %v17038_v53, %v17037_v40  ;;  %v17043_v25 = vld [vmem:[#allocation417_spill] sm:$0xff]  ;;  %v17047_v40 = vld [vmem:[#allocation368_spill] sm:$0xff] }
 0xccc   : > { %v2822_v13 = vadd.f32 %v17025_v41, %v17024_v55  ;;  %v7527_v55 = vadd.f32 %v17034_v17, %v17033_v39  ;;  %8463 = vrcp.f32 %v3273_v54  ;;  %v3284_v17 = vadd.f32 1e-06, %v2832_v8  ;;  %v17045_v54 = vld [vmem:[#allocation313_spill] sm:$0xff]  ;;  %v17046_v58 = vld [vmem:[#allocation358_spill] sm:$0xff] }
 0xccd   : > { %v3275_v63 = vadd.f32 1e-06, %v2823_v16  ;;  %v3145_v27 = vadd.f32 %v17046_v58, %v17045_v54  ;;  %v17048_v53 = vld [vmem:[#allocation369_spill] sm:$0xff]  ;;  %v17052_v16 = vld [vmem:[#allocation315_spill] sm:$0xff] }
 0xcce   : > { %v3274_v28 = vadd.f32 1e-06, %v2822_v13  ;;  %v17040_v13 = vld [vmem:[#allocation127_spill] sm:$0xff]  ;;  %v3164_v23 = vadd.f32 %v7527_v55, %v17042_v49 }
 0xccf   : > { %5518 = vadd.xlane.f32.xlu1 %v5517_v35  ;;  %v2830_v35 = vadd.f32 %v17030_v34, %v17029_v44  ;;  %v8454_v44 = vpop.eup %8453  ;;  %v2825_v7 = vadd.f32 %v17040_v13, %v17039_v12  ;;  %v13826_v34 = vpop.f32.mrf.mxu0  ;;  %v17049_v12 = vld [vmem:[#allocation410_spill] sm:$0xff] }
 0xcd0   : > { %8465 = vrcp.f32 %v3274_v28  ;;  %17041 = vst [vmem:[#allocation116_spill] sm:$0xff] %v13826_v34  ;;  %v7533_v28 = vadd.f32 %v17048_v53, %v17047_v40  ;;  %v17050_v13 = vld [vmem:[#allocation130_spill] sm:$0xff]  ;;  %v17055_v53 = vld [vmem:[#allocation363_spill] sm:$0xff] }
 0xcd1   : > { %v3282_v41 = vadd.f32 1e-06, %v2830_v35  ;;  %v17044_v35 = vld [vmem:[#allocation219_spill] sm:$0xff]  ;;  %v2827_v34 = vadd.f32 %v17050_v13, %v17049_v12  ;;  %v13838_v55 = vpop.f32.mrf.mxu0  ;;  %v17054_v40 = vld [vmem:[#allocation362_spill] sm:$0xff]  ;;  %v7539_v12 = vadd.f32 %v17058_v61, %v17057_v21  ;;  %v17059_v13 = vld [vmem:[#allocation361_spill] sm:$0xff] }
 0xcd2   : > { %v2834_v39 = vadd.f32 %v17044_v35, %v17043_v25  ;;  %17051 = vst [vmem:[#allocation409_spill] sm:$0xff] %v13838_v55  ;;  %v17053_v25 = vld [vmem:[#allocation221_spill] sm:$0xff] }
 0xcd3   : > { %5524 = vadd.xlane.f32.xlu1 %v5523_v59  ;;  %v3336_v59 = vmul.f32 %v8454_v44, %v3148_v47  ;;  %8467 = vrcp.f32 %v3282_v41  ;;  %v3277_v44 = vadd.f32 1e-06, %v2825_v7  ;;  %v2836_v35 = vadd.f32 %v17053_v25, %v17052_v16  ;;  %v17062_v16 = vld [vmem:[#allocation122_spill] sm:$0xff]  ;;  %v17066_v61 = vld [vmem:[#allocation317_spill] sm:$0xff] }
 0xcd4   : > { %8469 = vrcp.f32 %v3284_v17  ;;  %v3286_v49 = vadd.f32 1e-06, %v2834_v39  ;;  %v3172_v7 = vadd.f32 %v17056_v11, %v7533_v28  ;;  %v3279_v39 = vadd.f32 1e-06, %v2827_v34  ;;  %v17068_v34 = vld [vmem:[#allocation374_spill] sm:$0xff] }
 0xcd5   : > { %v8456_v47 = vpop.eup %8455  ;;  %8471 = vrcp.f32 %v3275_v63  ;;  %v13852_v63 = vpop.f32.mrf.mxu0 }
 0xcd6   : > { %v8458_v8 = vpop.eup %8457  ;;  %v3340_v41 = vmul.f32 %v8456_v47, %v3164_v23  ;;  %v17060_v23 = vld [vmem:[#allocation311_spill] sm:$0xff]  ;;  %8473 = vrcp.f32 %v3277_v44  ;;  %v17061_v47 = vld [vmem:[#allocation412_spill] sm:$0xff]  ;;  %17063 = vst [vmem:[#allocation211_spill] sm:$0xff] %v13852_v63  ;;  %v17081_v63 = vld [vmem:[#allocation113_spill] sm:$0xff] }
 0xcd7   : > { %v8460_v54 = vpop.eup %8459  ;;  %v3335_v58 = vmul.f32 %v8458_v8, %v3145_v27  ;;  %v3153_v17 = vadd.f32 %v17060_v23, %v17059_v13  ;;  %v2829_v25 = vadd.f32 %v17062_v16, %v17061_v47  ;;  %8475 = vrcp.f32 %v3286_v49  ;;  %v17064_v8 = vld [vmem:[#allocation316_spill] sm:$0xff]  ;;  %v17067_v13 = vld [vmem:[#allocation345_spill] sm:$0xff]  ;;  %v17069_v23 = vld [vmem:[#allocation375_spill] sm:$0xff] }
 0xcd8   : > { %v3288_v27 = vadd.f32 1e-06, %v2836_v35  ;;  %v3342_v28 = vmul.f32 %v8460_v54, %v3172_v7  ;;  %v3180_v44 = vadd.f32 %v7539_v12, %v17067_v13  ;;  %v7545_v55 = vadd.f32 %v17069_v23, %v17068_v34  ;;  %v17070_v35 = vld [vmem:[#allocation414_spill] sm:$0xff]  ;;  %v17071_v16 = vld [vmem:[#allocation112_spill] sm:$0xff]  ;;  %v13864_v54 = vpop.f32.mrf.mxu0  ;;  %v17078_v23 = vld [vmem:[#allocation325_spill] sm:$0xff] }
 0xcd9   : > { %8477 = vrcp.f32 %v3279_v39  ;;  %v3281_v49 = vadd.f32 1e-06, %v2829_v25  ;;  %17072 = vst [vmem:[#allocation411_spill] sm:$0xff] %v13864_v54  ;;  %v17076_v39 = vld [vmem:[#allocation377_spill] sm:$0xff]  ;;  %v17077_v25 = vld [vmem:[#allocation378_spill] sm:$0xff] }
 0xcda   : > { %8479 = vrcp.f32 %v3288_v27 }
 0xcdb   : > { %8481 = vrcp.f32 %v3281_v49  ;;  %v17087_v49 = vld [vmem:[#allocation381_spill] sm:$0xff] }
 0xcdd   : > { %6200 = vrot.lane.b32.xlu0 %v3336_v59, %s8918_s8  ;;  %v7521_v59 = vadd.f32 %v17055_v53, %v17054_v40  ;;  %v17065_v40 = vld [vmem:[#allocation223_spill] sm:$0xff]  ;;  %v8462_v53 = vpop.eup %8461 }
 0xcde   : > { %v2838_v11 = vadd.f32 %v17065_v40, %v17064_v8  ;;  %v8464_v21 = vpop.eup %8463  ;;  %v2831_v8 = vadd.f32 %v17071_v16, %v17070_v35  ;;  %v17073_v40 = vld [vmem:[#allocation321_spill] sm:$0xff]  ;;  %v3344_v12 = vmul.f32 %v8462_v53, %v3180_v44  ;;  %v17079_v35 = vld [vmem:[#allocation364_spill] sm:$0xff]  ;;  %v13877_v53 = vpop.f32.mrf.mxu0 }
 0xcdf   : > { %v3337_v47 = vmul.f32 %v8464_v21, %v3153_v17  ;;  %v8466_v7 = vpop.eup %8465  ;;  %v7551_v21 = vadd.f32 %v17077_v25, %v17076_v39  ;;  %v3161_v16 = vadd.f32 %v17079_v35, %v17078_v23  ;;  %17082 = vst [vmem:[#allocation213_spill] sm:$0xff] %v13877_v53  ;;  %v17086_v25 = vld [vmem:[#allocation380_spill] sm:$0xff]  ;;  %v17093_v53 = vld [vmem:[#allocation250_spill] sm:$0xff] }
 0xce0   : > { %v8468_v13 = vpop.eup %8467  ;;  %v3283_v27 = vadd.f32 1e-06, %v2831_v8  ;;  %v7557_v8 = vadd.f32 %v17087_v49, %v17086_v25  ;;  %v17094_v25 = vld [vmem:[#allocation134_spill] sm:$0xff] }
 0xce1   : > { %6208 = vrot.lane.b32.xlu0 %v3340_v41, %s8918_s8  ;;  %v3156_v41 = vadd.f32 %v17066_v61, %v7521_v59  ;;  %v17074_v59 = vld [vmem:[#allocation225_spill] sm:$0xff]  ;;  %v1472_v49 = vadd.f32 %v17094_v25, %v17093_v53 }
 0xce2   : > { %v2840_v61 = vadd.f32 %v17074_v59, %v17073_v40  ;;  %v8470_v59 = vpop.eup %8469 }
 0xce3   : > { %v3338_v34 = vmul.f32 %v8466_v7, %v3156_v41  ;;  %v17083_v41 = vld [vmem:[#allocation322_spill] sm:$0xff]  ;;  %v1860_v19 = vadd.f32 1e-06, %v1472_v49  ;;  %v17115_v49 = vld [vmem:[#allocation303_spill] sm:$0xff] }
 0xce4   : > { %6198 = vrot.lane.b32.xlu1 %v3335_v58, %s8918_s8  ;;  %v3290_v58 = vadd.f32 1e-06, %v2838_v11  ;;  %v17080_v11 = vld [vmem:[#allocation416_spill] sm:$0xff]  ;;  %v3292_v44 = vadd.f32 1e-06, %v2840_v61  ;;  %v17089_v61 = vld [vmem:[#allocation114_spill] sm:$0xff] }
 0xce5   : > { %6212 = vrot.lane.b32.xlu0 %v3342_v28, %s8918_s8  ;;  %v17075_v28 = vld [vmem:[#allocation341_spill] sm:$0xff]  ;;  %v2833_v40 = vadd.f32 %v17081_v63, %v17080_v11  ;;  %v13888_v11 = vpop.f32.mrf.mxu0 }
 0xce6   : > { %v3188_v17 = vadd.f32 %v17075_v28, %v7545_v55  ;;  %8483 = vrcp.f32 %v3290_v58  ;;  %v17085_v28 = vld [vmem:[#allocation356_spill] sm:$0xff]  ;;  %v17088_v58 = vld [vmem:[#allocation430_spill] sm:$0xff]  ;;  %17090 = vst [vmem:[#allocation404_spill] sm:$0xff] %v13888_v11 }
 0xce7   : > { %v3196_v39 = vadd.f32 %v7551_v21, %v17085_v28  ;;  %8485 = vrcp.f32 %v3283_v27  ;;  %v3285_v23 = vadd.f32 1e-06, %v2833_v40  ;;  %v2835_v35 = vadd.f32 %v17089_v61, %v17088_v58  ;;  %v17097_v40 = vld [vmem:[#allocation254_spill] sm:$0xff] }
 0xce8   : > { %6202 = vrot.lane.b32.xlu1 %v3337_v47, %s8918_s8  ;;  %v17084_v47 = vld [vmem:[#allocation230_spill] sm:$0xff]  ;;  %v3346_v7 = vmul.f32 %v8468_v13, %v3188_v17  ;;  %8487 = vrcp.f32 %v3292_v44  ;;  %v17100_v44 = vld [vmem:[#allocation383_spill] sm:$0xff] }
 0xce9   : > { %6216 = vrot.lane.b32.xlu0 %v3344_v12, %s8918_s8  ;;  %v2842_v55 = vadd.f32 %v17084_v47, %v17083_v41  ;;  %v8472_v12 = vpop.eup %8471  ;;  %v17092_v41 = vld [vmem:[#allocation234_spill] sm:$0xff]  ;;  %v3348_v21 = vmul.f32 %v8470_v59, %v3196_v39  ;;  %8489 = vrcp.f32 %v3285_v23  ;;  %v3287_v59 = vadd.f32 1e-06, %v2835_v35  ;;  %v17102_v39 = vld [vmem:[#allocation431_spill] sm:$0xff]  ;;  %v17109_v23 = vld [vmem:[#allocation337_spill] sm:$0xff] }
 0xcea   : > { %v3339_v63 = vmul.f32 %v8472_v12, %v3161_v16  ;;  %v8474_v13 = vpop.eup %8473  ;;  %v17096_v16 = vld [vmem:[#allocation323_spill] sm:$0xff]  ;;  %v17099_v61 = vld [vmem:[#allocation354_spill] sm:$0xff] }
 0xceb   : > { %v3294_v17 = vadd.f32 1e-06, %v2842_v55  ;;  %v8476_v28 = vpop.eup %8475  ;;  %v17098_v12 = vld [vmem:[#allocation95_spill] sm:$0xff]  ;;  %v3204_v11 = vadd.f32 %v17099_v61, %v7557_v8  ;;  %v17101_v55 = vld [vmem:[#allocation384_spill] sm:$0xff]  ;;  %v17110_v35 = vld [vmem:[#allocation370_spill] sm:$0xff] }
 0xcec   : > { %6204 = vrot.lane.b32.xlu1 %v3338_v34, %s8918_s8  ;;  %v17091_v34 = vld [vmem:[#allocation327_spill] sm:$0xff]  ;;  %v1473_v58 = vadd.f32 %v17098_v12, %v17097_v40  ;;  %v7563_v54 = vadd.f32 %v17101_v55, %v17100_v44  ;;  %v17107_v44 = vld [vmem:[#allocation258_spill] sm:$0xff]  ;;  %v17108_v55 = vld [vmem:[#allocation140_spill] sm:$0xff]  ;;  %v3177_v6 = vadd.f32 %v17110_v35, %v17109_v23 }
 0xced   : > { %6220 = vrot.lane.b32.xlu0 %v3346_v7, %s8918_s8  ;;  %v2844_v47 = vadd.f32 %v17092_v41, %v17091_v34  ;;  %v17095_v7 = vld [vmem:[#allocation367_spill] sm:$0xff]  ;;  %v13905_v41 = vpop.f32.mrf.mxu0  ;;  %8491 = vrcp.f32 %v3294_v17  ;;  %v3350_v8 = vmul.f32 %v8476_v28, %v3204_v11  ;;  %v17114_v28 = vld [vmem:[#allocation432_spill] sm:$0xff] }
 0xcee   : > { %v3169_v27 = vadd.f32 %v17096_v16, %v17095_v7  ;;  %v17103_v34 = vld [vmem:[#allocation115_spill] sm:$0xff]  ;;  %17104 = vst [vmem:[#allocation111_spill] sm:$0xff] %v13905_v41  ;;  %v8478_v7 = vpop.eup %8477  ;;  %v17105_v16 = vld [vmem:[#allocation328_spill] sm:$0xff]  ;;  %8493 = vrcp.f32 %v3287_v59 }
 0xcef   : > { %v2837_v53 = vadd.f32 %v17103_v34, %v17102_v39  ;;  %v17106_v40 = vld [vmem:[#allocation239_spill] sm:$0xff]  ;;  %v8480_v61 = vpop.eup %8479  ;;  %v1861_v39 = vadd.f32 1e-06, %v1473_v58  ;;  %v17111_v34 = vld [vmem:[#allocation320_spill] sm:$0xff] }
 0xcf0   : > { %6206 = vrot.lane.b32.xlu1 %v3339_v63, %s8918_s8  ;;  %v3341_v25 = vmul.f32 %v8474_v13, %v3169_v27  ;;  %v3296_v63 = vadd.f32 1e-06, %v2844_v47  ;;  %v2846_v12 = vadd.f32 %v17106_v40, %v17105_v16  ;;  %v3212_v13 = vadd.f32 %v7563_v54, %v17111_v34  ;;  %v17112_v27 = vld [vmem:[#allocation386_spill] sm:$0xff]  ;;  %v17113_v17 = vld [vmem:[#allocation387_spill] sm:$0xff]  ;;  %v13920_v40 = vpop.f32.mrf.mxu0  ;;  %v17118_v58 = vld [vmem:[#allocation244_spill] sm:$0xff] }
 0xcf1   : > { %6224 = vrot.lane.b32.xlu0 %v3348_v21, %s8918_s8  ;;  %v1476_v21 = vadd.f32 %v17108_v55, %v17107_v44  ;;  %v7569_v47 = vadd.f32 %v17113_v17, %v17112_v27  ;;  %v3289_v11 = vadd.f32 1e-06, %v2837_v53  ;;  %v2839_v16 = vadd.f32 %v17115_v49, %v17114_v28  ;;  %17116 = vst [vmem:[#allocation405_spill] sm:$0xff] %v13920_v40  ;;  %v8482_v55 = vpop.eup %8481  ;;  %v17119_v17 = vld [vmem:[#allocation261_spill] sm:$0xff]  ;;  %v17122_v41 = vld [vmem:[#allocation335_spill] sm:$0xff] }
 0xcf2   : > { %v3343_v44 = vmul.f32 %v8478_v7, %v3177_v6  ;;  %8495 = vrcp.f32 %v3296_v63  ;;  %v3298_v23 = vadd.f32 1e-06, %v2846_v12  ;;  %v3352_v54 = vmul.f32 %v8480_v61, %v3212_v13  ;;  %v17121_v53 = vld [vmem:[#allocation373_spill] sm:$0xff]  ;;  %v17124_v7 = vld [vmem:[#allocation147_spill] sm:$0xff]  ;;  %v17125_v12 = vld [vmem:[#allocation318_spill] sm:$0xff] }
 0xcf3   : > { %v8484_v34 = vpop.eup %8483  ;;  %8497 = vrcp.f32 %v1860_v19  ;;  %v1864_v27 = vadd.f32 1e-06, %v1476_v21  ;;  %v3185_v24 = vadd.f32 %v17122_v41, %v17121_v53  ;;  %v17123_v6 = vld [vmem:[#allocation265_spill] sm:$0xff]  ;;  %v3220_v28 = vadd.f32 %v17125_v12, %v7569_v47  ;;  %v17129_v13 = vld [vmem:[#allocation304_spill] sm:$0xff] }
 0xcf4   : > { %6210 = vrot.lane.b32.xlu1 %v3341_v25, %s8918_s8  ;;  %v17117_v25 = vld [vmem:[#allocation333_spill] sm:$0xff]  ;;  %8499 = vrcp.f32 %v1861_v39  ;;  %v1480_v63 = vadd.f32 %v17124_v7, %v17123_v6  ;;  %v3291_v19 = vadd.f32 1e-06, %v2839_v16  ;;  %v17135_v16 = vld [vmem:[#allocation351_spill] sm:$0xff] }
 0xcf5   : > { %6228 = vrot.lane.b32.xlu0 %v3350_v8, %s8918_s8  ;;  %v2848_v35 = vadd.f32 %v17118_v58, %v17117_v25  ;;  %v17120_v8 = vld [vmem:[#allocation144_spill] sm:$0xff]  ;;  %v17126_v49 = vld [vmem:[#allocation389_spill] sm:$0xff]  ;;  %v17127_v25 = vld [vmem:[#allocation390_spill] sm:$0xff]  ;;  %8501 = vrcp.f32 %v3289_v11  ;;  %v3345_v41 = vmul.f32 %v8482_v55, %v3185_v24  ;;  %v3354_v47 = vmul.f32 %v8484_v34, %v3220_v28 }
 0xcf6   : > { %v1478_v59 = vadd.f32 %v17120_v8, %v17119_v17  ;;  %v7575_v61 = vadd.f32 %v17127_v25, %v17126_v49  ;;  %v17128_v21 = vld [vmem:[#allocation433_spill] sm:$0xff]  ;;  %v13937_v17 = vpop.f32.mrf.mxu0  ;;  %8503 = vrcp.f32 %v3298_v23  ;;  %v17131_v8 = vld [vmem:[#allocation334_spill] sm:$0xff]  ;;  %v17133_v49 = vld [vmem:[#allocation268_spill] sm:$0xff] }
 0xcf7   : > { %v2841_v58 = vadd.f32 %v17129_v13, %v17128_v21  ;;  %17130 = vst [vmem:[#allocation118_spill] sm:$0xff] %v13937_v17  ;;  %v3300_v39 = vadd.f32 1e-06, %v2848_v35  ;;  %v17132_v53 = vld [vmem:[#allocation249_spill] sm:$0xff]  ;;  %8505 = vrcp.f32 %v1864_v27  ;;  %v17136_v25 = vld [vmem:[#allocation376_spill] sm:$0xff] }
 0xcf8   : > { %6214 = vrot.lane.b32.xlu1 %v3343_v44, %s8918_s8  ;;  %v8486_v44 = vpop.eup %8485  ;;  %v2850_v6 = vadd.f32 %v17132_v53, %v17131_v8  ;;  %v1866_v12 = vadd.f32 1e-06, %v1478_v59  ;;  %v3193_v40 = vadd.f32 %v17136_v25, %v17135_v16  ;;  %v1868_v21 = vadd.f32 1e-06, %v1480_v63  ;;  %v17137_v24 = vld [vmem:[#allocation269_spill] sm:$0xff]  ;;  %v17139_v35 = vld [vmem:[#allocation332_spill] sm:$0xff] }
 0xcf9   : > { %6232 = vrot.lane.b32.xlu0 %v3352_v54, %s8918_s8  ;;  %v8488_v7 = vpop.eup %8487  ;;  %v17134_v54 = vld [vmem:[#allocation150_spill] sm:$0xff]  ;;  %v17138_v55 = vld [vmem:[#allocation153_spill] sm:$0xff]  ;;  %v3228_v13 = vadd.f32 %v7575_v61, %v17139_v35  ;;  %v17140_v17 = vld [vmem:[#allocation392_spill] sm:$0xff]  ;;  %8507 = vrcp.f32 %v3291_v19  ;;  %v3293_v27 = vadd.f32 1e-06, %v2841_v58 }
 0xcfa   : > { %v1482_v11 = vadd.f32 %v17134_v54, %v17133_v49  ;;  %v1484_v23 = vadd.f32 %v17138_v55, %v17137_v24  ;;  %v17141_v8 = vld [vmem:[#allocation393_spill] sm:$0xff]  ;;  %v17142_v59 = vld [vmem:[#allocation434_spill] sm:$0xff]  ;;  %v13954_v49 = vpop.f32.mrf.mxu0  ;;  %v3347_v54 = vmul.f32 %v8486_v44, %v3193_v40  ;;  %8509 = vrcp.f32 %v3300_v39  ;;  %v17147_v35 = vld [vmem:[#allocation379_spill] sm:$0xff] }
 0xcfb   : > { %v7581_v34 = vadd.f32 %v17141_v8, %v17140_v17  ;;  %v17143_v28 = vld [vmem:[#allocation305_spill] sm:$0xff]  ;;  %17144 = vst [vmem:[#allocation359_spill] sm:$0xff] %v13954_v49  ;;  %v17145_v63 = vld [vmem:[#allocation274_spill] sm:$0xff]  ;;  %v3302_v24 = vadd.f32 1e-06, %v2850_v6  ;;  %v3356_v61 = vmul.f32 %v8488_v7, %v3228_v13  ;;  %8511 = vrcp.f32 %v1866_v12  ;;  %v17149_v58 = vld [vmem:[#allocation63_spill] sm:$0xff] }
 0xcfc   : > { %6218 = vrot.lane.b32.xlu1 %v3345_v41, %s8918_s8  ;;  %v2843_v53 = vadd.f32 %v17143_v28, %v17142_v59  ;;  %v8490_v41 = vpop.eup %8489  ;;  %v17146_v16 = vld [vmem:[#allocation157_spill] sm:$0xff]  ;;  %v1870_v17 = vadd.f32 1e-06, %v1482_v11  ;;  %v4183_v8 = vadd.f32 %v13151_v43, %v17149_v58  ;;  %8513 = vrcp.f32 %v1868_v21  ;;  %v17150_v44 = vld [vmem:[#allocation330_spill] sm:$0xff]  ;;  %v17151_v28 = vld [vmem:[#allocation395_spill] sm:$0xff]  ;;  %v13969_v13 = vpop.f32.mrf.mxu0 }
 0xcfd   : > { %6236 = vrot.lane.b32.xlu0 %v3354_v47, %s8918_s8  ;;  %v1486_v25 = vadd.f32 %v17146_v16, %v17145_v63  ;;  %v8492_v55 = vpop.eup %8491  ;;  %v17148_v47 = vld [vmem:[#allocation349_spill] sm:$0xff]  ;;  %v1872_v40 = vadd.f32 1e-06, %v1484_v23  ;;  %v3236_v59 = vadd.f32 %v17150_v44, %v7581_v34  ;;  %v17152_v63 = vld [vmem:[#allocation396_spill] sm:$0xff]  ;;  %8515 = vrcp.f32 %v3293_v27  ;;  %v17153_v7 = vld [vmem:[#allocation435_spill] sm:$0xff]  ;;  %17155 = vst [vmem:[#allocation360_spill] sm:$0xff] %v13969_v13 }
 0xcfe   : > { %v3201_v19 = vadd.f32 %v17148_v47, %v17147_v35  ;;  %v7587_v39 = vadd.f32 %v17152_v63, %v17151_v28  ;;  %v3295_v6 = vadd.f32 1e-06, %v2843_v53  ;;  %v17154_v12 = vld [vmem:[#allocation306_spill] sm:$0xff]  ;;  %v8494_v43 = vpop.eup %8493  ;;  %8517 = vrcp.f32 %v3302_v24  ;;  %v17158_v58 = vld [vmem:[#allocation436_spill] sm:$0xff]  ;;  %v17159_v44 = vld [vmem:[#allocation307_spill] sm:$0xff] }
 0xcff   : > { %v2845_v11 = vadd.f32 %v17154_v12, %v17153_v7  ;;  %v1874_v35 = vadd.f32 1e-06, %v1486_v25  ;;  %v3358_v21 = vmul.f32 %v8492_v55, %v3236_v59  ;;  %v8496_v23 = vpop.eup %8495  ;;  %8519 = vrcp.f32 %v1870_v17  ;;  %v17156_v34 = vld [vmem:[#allocation314_spill] sm:$0xff]  ;;  %v17162_v25 = vld [vmem:[#allocation399_spill] sm:$0xff]  ;;  %v17163_v55 = vld [vmem:[#allocation440_spill] sm:$0xff] }
 0xd00   : > { %6222 = vrot.lane.b32.xlu1 %v3347_v54, %s8918_s8  ;;  %v3349_v16 = vmul.f32 %v8490_v41, %v3201_v19  ;;  %v17157_v54 = vld [vmem:[#allocation382_spill] sm:$0xff]  ;;  %v4619_v27 = vadd.f32 1e-06, %v4183_v8  ;;  %v13976_v53 = vpop.eup %8497  ;;  %8521 = vrcp.f32 %v1872_v40  ;;  %v4185_v17 = vadd.f32 %v13201_v56, %v17163_v55  ;;  %v13986_v8 = vpop.f32.mrf.mxu0 }
 0xd01   : > { %6240 = vrot.lane.b32.xlu0 %v3356_v61, %s8918_s8  ;;  %v3209_v47 = vadd.f32 %v17157_v54, %v17156_v34  ;;  %v2847_v61 = vadd.f32 %v17159_v44, %v17158_v58  ;;  %v17160_v28 = vld [vmem:[#allocation346_spill] sm:$0xff]  ;;  %v13984_v59 = vpop.eup %8499  ;;  %8523 = vrcp.f32 %v3295_v6  ;;  %v3297_v63 = vadd.f32 1e-06, %v2845_v11  ;;  %17164 = vst [vmem:[#allocation413_spill] sm:$0xff] %v13986_v8  ;;  %v17167_v58 = vld [vmem:[#allocation385_spill] sm:$0xff]  ;;  %v17168_v44 = vld [vmem:[#allocation312_spill] sm:$0xff] }
 0xd02   : > { %v3244_v41 = vadd.f32 %v7587_v39, %v17160_v28  ;;  %v17161_v19 = vld [vmem:[#allocation398_spill] sm:$0xff]  ;;  %v8502_v12 = vpop.eup %8501  ;;  %8525 = vrcp.f32 %v1874_v35  ;;  %v3217_v28 = vadd.f32 %v17168_v44, %v17167_v58  ;;  %v17171_v11 = vld [vmem:[#allocation344_spill] sm:$0xff]  ;;  %v17172_v35 = vld [vmem:[#allocation401_spill] sm:$0xff] }
 0xd03   : > { %v7593_v24 = vadd.f32 %v17162_v25, %v17161_v19  ;;  %v3351_v7 = vmul.f32 %v8494_v43, %v3209_v47  ;;  %v17165_v40 = vld [vmem:[#allocation226_spill] sm:$0xff]  ;;  %v8504_v54 = vpop.eup %8503  ;;  %v3299_v56 = vadd.f32 1e-06, %v2847_v61  ;;  %v17169_v19 = vld [vmem:[#allocation437_spill] sm:$0xff]  ;;  %8527 = vrcp.f32 %v4619_v27  ;;  %v14003_v61 = vpop.f32.mrf.mxu0 }
 0xd04   : > { %6226 = vrot.lane.b32.xlu1 %v3349_v16, %s8918_s8  ;;  %v17166_v16 = vld [vmem:[#allocation137_spill] sm:$0xff]  ;;  %v3360_v34 = vmul.f32 %v8496_v23, %v3244_v41  ;;  %v13995_v6 = vpop.eup %8505  ;;  %v17173_v47 = vld [vmem:[#allocation402_spill] sm:$0xff]  ;;  %v17174_v23 = vld [vmem:[#allocation455_spill] sm:$0xff]  ;;  %8529 = vrcp.f32 %v3297_v63  ;;  %17175 = vst [vmem:[#allocation215_spill] sm:$0xff] %v14003_v61 }
 0xd05   : > { %6244 = vrot.lane.b32.xlu0 %v3358_v21, %s8918_s8  ;;  %v1474_v39 = vadd.f32 %v17166_v16, %v17165_v40  ;;  %v17170_v21 = vld [vmem:[#allocation308_spill] sm:$0xff]  ;;  %v3252_v43 = vadd.f32 %v17171_v11, %v7593_v24  ;;  %v7599_v55 = vadd.f32 %v17173_v47, %v17172_v35  ;;  %v4621_v40 = vadd.f32 1e-06, %v4185_v17  ;;  %v17177_v44 = vld [vmem:[#allocation98_spill] sm:$0xff] }
 0xd06   : > { %v2849_v25 = vadd.f32 %v17170_v21, %v17169_v19  ;;  %v4187_v41 = vadd.f32 %v13208_v2, %v17174_v23  ;;  %v3353_v16 = vmul.f32 %v8502_v12, %v3217_v28  ;;  %v8508_v27 = vpop.eup %8507  ;;  %v17178_v21 = vld [vmem:[#allocation457_spill] sm:$0xff]  ;;  %v17179_v17 = vld [vmem:[#allocation276_spill] sm:$0xff]  ;;  %v17180_v47 = vld [vmem:[#allocation162_spill] sm:$0xff]  ;;  %8531 = vrcp.f32 %v3299_v56 }
 0xd07   : > { %v1862_v58 = vadd.f32 1e-06, %v1474_v39  ;;  %v4189_v24 = vadd.f32 %v13288_v36, %v17178_v21  ;;  %v3362_v11 = vmul.f32 %v8504_v54, %v3252_v43  ;;  %v8510_v35 = vpop.eup %8509  ;;  %v1488_v13 = vadd.f32 %v17180_v47, %v17179_v17  ;;  %v17181_v2 = vld [vmem:[#allocation326_spill] sm:$0xff]  ;;  %v17182_v23 = vld [vmem:[#allocation388_spill] sm:$0xff]  ;;  %v17183_v39 = vld [vmem:[#allocation357_spill] sm:$0xff]  ;;  %v14028_v47 = vpop.f32.mrf.mxu0 }
 0xd08   : > { %6230 = vrot.lane.b32.xlu1 %v3351_v7, %s8918_s8  ;;  %v17176_v7 = vld [vmem:[#allocation229_spill] sm:$0xff]  ;;  %v3301_v63 = vadd.f32 1e-06, %v2849_v25  ;;  %v14014_v12 = vpop.eup %8511  ;;  %v3260_v28 = vadd.f32 %v7599_v55, %v17183_v39  ;;  %8533 = vrcp.f32 %v4621_v40  ;;  %v4623_v36 = vadd.f32 1e-06, %v4187_v41  ;;  %v17184_v43 = vld [vmem:[#allocation159_spill] sm:$0xff] }
 0xd09   : > { %6248 = vrot.lane.b32.xlu0 %v3360_v34, %s8918_s8  ;;  %v1475_v19 = vadd.f32 %v17177_v44, %v17176_v7  ;;  %v3225_v34 = vadd.f32 %v17182_v23, %v17181_v2  ;;  %v7605_v7 = vadd.f32 %v12952_v3, %v12948_v14  ;;  %v14020_v54 = vpop.eup %8513  ;;  %v17185_v44 = vld [vmem:[#allocation41_spill] sm:$0xff]  ;;  %v17186_v56 = vld [vmem:[#allocation227_spill] sm:$0xff]  ;;  %v17187_v25 = vld [vmem:[#allocation228_spill] sm:$0xff]  ;;  %17188 = vst [vmem:[#allocation319_spill] sm:$0xff] %v14028_v47  ;;  %8535 = vrcp.f32 %v1862_v58 }
 0xd0a   : > { %v1734_v21 = vadd.f32 %v17185_v44, %v17184_v43  ;;  %v7309_v17 = vadd.f32 %v17187_v25, %v17186_v56  ;;  %v8516_v2 = vpop.eup %8515  ;;  %v4625_v14 = vadd.f32 1e-06, %v4189_v24  ;;  %v17189_v3 = vld [vmem:[#allocation459_spill] sm:$0xff]  ;;  %v3364_v41 = vmul.f32 %v8510_v35, %v3260_v28  ;;  %v17191_v43 = vld [vmem:[#allocation324_spill] sm:$0xff]  ;;  %v17192_v56 = vld [vmem:[#allocation438_spill] sm:$0xff] }
 0xd0b   : > { %v3355_v55 = vmul.f32 %v8508_v27, %v3225_v34  ;;  %v4191_v40 = vadd.f32 %v13292_v48, %v17189_v3  ;;  %v1863_v23 = vadd.f32 1e-06, %v1475_v19  ;;  %v17190_v39 = vld [vmem:[#allocation391_spill] sm:$0xff]  ;;  %8537 = vrcp.f32 %v3301_v63  ;;  %v17193_v58 = vld [vmem:[#allocation233_spill] sm:$0xff]  ;;  %v14051_v3 = vpop.f32.mrf.mxu0 }
 0xd0c   : > { %6234 = vrot.lane.b32.xlu1 %v3353_v16, %s8918_s8  ;;  %v7721_v16 = vadd.f32 %v13234_v22, %v13232_v18  ;;  %v3233_v44 = vadd.f32 %v17191_v43, %v17190_v39  ;;  %v4182_v25 = vadd.f32 %v12904_v45, %v17192_v56  ;;  %v14036_v22 = vpop.xlane.xlu1 %5437  ;;  %v1876_v27 = vadd.f32 1e-06, %v1488_v13  ;;  %v17194_v24 = vld [vmem:[#allocation99_spill] sm:$0xff]  ;;  %v17196_v63 = vld [vmem:[#allocation165_spill] sm:$0xff]  ;;  %17197 = vst [vmem:[#allocation365_spill] sm:$0xff] %v14051_v3 }
 0xd0d   : > { %6252 = vrot.lane.b32.xlu0 %v3362_v11, %s8918_s8  ;;  %v8518_v11 = vpop.eup %8517  ;;  %v1477_v48 = vadd.f32 %v17194_v24, %v17193_v58  ;;  %v17195_v35 = vld [vmem:[#allocation355_spill] sm:$0xff]  ;;  %8539 = vrcp.f32 %v4623_v36  ;;  %v1737_v28 = vadd.f32 %v7309_v17, %v17196_v63  ;;  %v4627_v43 = vadd.f32 1e-06, %v4191_v40  ;;  %v17199_v58 = vld [vmem:[#allocation340_spill] sm:$0xff]  ;;  %v17200_v17 = vld [vmem:[#allocation394_spill] sm:$0xff]  ;;  %v14073_v63 = vpop.f32.mrf.mxu0 }
 0xd0e   : > { %v14039_v18 = vpop.eup %8519  ;;  %v3268_v34 = vadd.f32 %v17195_v35, %v7605_v7  ;;  %v4495_v45 = vadd.f32 %v7721_v16, %v12995_v51  ;;  %v3357_v13 = vmul.f32 %v8516_v2, %v3233_v44  ;;  %8541 = vrcp.f32 %v4625_v14  ;;  %v17198_v56 = vld [vmem:[#allocation75_spill] sm:$0xff]  ;;  %v17203_v40 = vld [vmem:[#allocation281_spill] sm:$0xff]  ;;  %17207 = vst [vmem:[#allocation415_spill] sm:$0xff] %v14073_v63 }
 0xd0f   : > { %v14045_v19 = vpop.eup %8521  ;;  %v4193_v7 = vadd.f32 %v13298_v38, %v17198_v56  ;;  %8543 = vrcp.f32 %v1863_v23  ;;  %v3241_v24 = vadd.f32 %v17200_v17, %v17199_v58  ;;  %v4618_v51 = vadd.f32 1e-06, %v4182_v25  ;;  %v17201_v16 = vld [vmem:[#allocation439_spill] sm:$0xff]  ;;  %v17205_v35 = vld [vmem:[#allocation441_spill] sm:$0xff]  ;;  %v17208_v58 = vld [vmem:[#allocation186_spill] sm:$0xff] }
 0xd10   : > { %6238 = vrot.lane.b32.xlu1 %v3355_v55, %s8918_s8  ;;  %v7727_v55 = vadd.f32 %v13250_v62, %v13248_v32  ;;  %v8524_v39 = vpop.eup %8523  ;;  %v3366_v36 = vmul.f32 %v8518_v11, %v3268_v34  ;;  %v4184_v62 = vadd.f32 %v13167_v30, %v17201_v16  ;;  %v14065_v14 = vmul.f32 %v13976_v53, %v1734_v21  ;;  %v17204_v11 = vld [vmem:[#allocation166_spill] sm:$0xff]  ;;  %v17206_v30 = vld [vmem:[#allocation425_spill] sm:$0xff]  ;;  %v17221_v47 = vld [vmem:[#allocation39_spill] sm:$0xff] }
 0xd11   : > { %6256 = vrot.lane.b32.xlu0 %v3364_v41, %s8918_s8  ;;  %v14055_v41 = vpop.eup %8525  ;;  %8545 = vrcp.f32 %v1876_v27  ;;  %v1865_v38 = vadd.f32 1e-06, %v1477_v48  ;;  %v1490_v23 = vadd.f32 %v17204_v11, %v17203_v40  ;;  %v4186_v34 = vadd.f32 %v17206_v30, %v17205_v35  ;;  %v17209_v53 = vld [vmem:[#allocation66_spill] sm:$0xff]  ;;  %v17214_v11 = vld [vmem:[#allocation231_spill] sm:$0xff]  ;;  %v17216_v30 = vld [vmem:[#allocation352_spill] sm:$0xff] }
 0xd12   : > { %v8528_v2 = vpop.eup %8527  ;;  %17202 = vst [vmem:[#allocation366_spill] sm:$0xff] %v14065_v14  ;;  %v4503_v25 = vadd.f32 %v12988_v60, %v7727_v55  ;;  %v7733_v21 = vadd.f32 %v17209_v53, %v17208_v58  ;;  %8547 = vrcp.f32 %v4627_v43  ;;  %v4629_v27 = vadd.f32 1e-06, %v4193_v7  ;;  %v17210_v48 = vld [vmem:[#allocation462_spill] sm:$0xff]  ;;  %v17212_v60 = vld [vmem:[#allocation397_spill] sm:$0xff]  ;;  %v17213_v55 = vld [vmem:[#allocation336_spill] sm:$0xff] }
 0xd13   : > { %v4683_v44 = vmul.f32 %v8528_v2, %v4495_v45  ;;  %v8530_v56 = vpop.eup %8529  ;;  %v17211_v17 = vld [vmem:[#allocation198_spill] sm:$0xff]  ;;  %v14080_v45 = vmul.f32 %v13984_v59, %v1737_v28  ;;  %8549 = vrcp.f32 %v4618_v51  ;;  %v4620_v2 = vadd.f32 1e-06, %v4184_v62  ;;  %v17215_v43 = vld [vmem:[#allocation232_spill] sm:$0xff] }
 0xd14   : > { %6242 = vrot.lane.b32.xlu1 %v3357_v13, %s8918_s8  ;;  %v14062_v32 = vpop.xlane.xlu1 %5440  ;;  %v3359_v13 = vmul.f32 %v8524_v39, %v3241_v24  ;;  %v4195_v16 = vadd.f32 %v17211_v17, %v17210_v48  ;;  %v8532_v24 = vpop.eup %8531  ;;  %v7315_v7 = vadd.f32 %v17215_v43, %v17214_v11  ;;  %8551 = vrcp.f32 %v1865_v38  ;;  %v17217_v58 = vld [vmem:[#allocation400_spill] sm:$0xff]  ;;  %v8719_v61 = vld [vmem:[#allocation2 + $0x60] sm:$0xff] }
 0xd15   : > { %6260 = vrot.lane.b32.xlu0 %v3366_v36, %s8918_s8  ;;  %v3249_v36 = vadd.f32 %v17213_v55, %v17212_v60  ;;  %v1878_v35 = vadd.f32 1e-06, %v1490_v23  ;;  %v3257_v53 = vadd.f32 %v17217_v58, %v17216_v30  ;;  %v8534_v28 = vpop.eup %8533  ;;  %v4622_v48 = vadd.f32 1e-06, %v4186_v34  ;;  %v17218_v51 = vld [vmem:[#allocation464_spill] sm:$0xff]  ;;  %v17222_v30 = vld [vmem:[#allocation34_spill] sm:$0xff] }
 0xd16   : > { %v17219_v62 = vld [vmem:[#allocation428_spill] sm:$0xff]  ;;  %v4685_v3 = vmul.f32 %v8534_v28, %v4503_v25  ;;  %v4511_v11 = vadd.f32 %v7733_v21, %v17221_v47  ;;  %8553 = vrcp.f32 %v4629_v27  ;;  %v4631_v38 = vadd.f32 1e-06, %v4195_v16  ;;  %v8536_v43 = vpop.eup %8535  ;;  %v17223_v58 = vld [vmem:[#allocation155_spill] sm:$0xff]  ;;  %v17227_v21 = vld [vmem:[#allocation422_spill] sm:$0xff] }
 0xd17   : > { %v8034_v40 = vpop.f32.mrf.mxu1  ;;  %v4197_v17 = vadd.f32 %v17219_v62, %v17218_v51  ;;  %v3361_v55 = vmul.f32 %v8530_v56, %v3249_v36  ;;  %v1742_v49 = vadd.f32 %v17223_v58, %v17222_v30  ;;  %8555 = vrcp.f32 %v4620_v2  ;;  %v17225_v34 = vld [vmem:[#allocation347_spill] sm:$0xff]  ;;  %v17226_v56 = vld [vmem:[#allocation161_spill] sm:$0xff]  ;;  %v17228_v27 = vld [vmem:[#allocation420_spill] sm:$0xff] }
 0xd18   : > { %6246 = vrot.lane.b32.xlu1 %v3359_v13, %s8918_s8  ;;  %v14085_v39 = vpop.xlane.xlu1 %5443  ;;  %v14094_v13 = vpop.f32.mrf.mxu0  ;;  %v14105_v47 = vadd.f32 %v17226_v56, %v7315_v7  ;;  %8557 = vrcp.f32 %v1878_v35  ;;  %v7739_v16 = vadd.f32 %v17228_v27, %v17227_v21  ;;  %v3363_v2 = vmul.f32 %v8532_v24, %v3257_v53  ;;  %v17230_v62 = vld [vmem:[#allocation77_spill] sm:$0xff]  ;;  %v17233_v30 = vld [vmem:[#allocation171_spill] sm:$0xff]  ;;  %v17234_v35 = vld [vmem:[#allocation26_spill] sm:$0xff] }
 0xd19   : > { %v8035_v59 = vpop.f32.mrf.mxu1  ;;  %6328 = vrot.lane.b32.xlu0 %v4683_v44, %s8917_s27  ;;  %17220 = vst [vmem:[#allocation217_spill] sm:$0xff] %v14094_v13  ;;  %v17224_v44 = vld [vmem:[#allocation442_spill] sm:$0xff]  ;;  %v8538_v25 = vpop.eup %8537  ;;  %8559 = vrcp.f32 %v4622_v48  ;;  %v4633_v28 = vadd.f32 1e-06, %v4197_v17  ;;  %v1750_v58 = vadd.f32 %v17234_v35, %v17233_v30  ;;  %v14119_v53 = vmul.f32 %v8536_v43, %v1742_v49  ;;  %v17238_v17 = vld [vmem:[#allocation443_spill] sm:$0xff]  ;;  %v17241_v30 = vld [vmem:[#allocation29_spill] sm:$0xff] }
 0xd1a   : > { %v8036_v60 = vadd.f32 %v8035_v59, %v8034_v40  ;;  %v4188_v63 = vadd.f32 %v17225_v34, %v17224_v44  ;;  %v8540_v59 = vpop.eup %8539  ;;  %v17235_v44 = vld [vmem:[#allocation403_spill] sm:$0xff]  ;;  %v17236_v34 = vld [vmem:[#allocation350_spill] sm:$0xff]  ;;  %8561 = vrcp.f32 %v4631_v38 }
 0xd1b   : > { %v8037_v23 = vpop.f32.mrf.mxu1  ;;  %v3265_v56 = vadd.f32 %v17236_v34, %v17235_v44  ;;  %v4687_v21 = vmul.f32 %v8540_v59, %v4511_v11  ;;  %v8542_v24 = vpop.eup %8541  ;;  %17237 = vst [vmem:[#allocation120_spill] sm:$0xff] %v14119_v53  ;;  %v17239_v27 = vld [vmem:[#allocation419_spill] sm:$0xff]  ;;  %v17242_v11 = vld [vmem:[#allocation36_spill] sm:$0xff]  ;;  %8563 = vrcp.f32 %v4633_v28 }
 0xd1c   : > { %v6158_v51 = vadd.f32 %v8719_v61, %v8036_v60  ;;  %6250 = vrot.lane.b32.xlu1 %v3361_v55, %s8918_s8  ;;  %v14102_v40 = vpop.xlane.xlu1 %5446  ;;  %v17229_v61 = vld [vmem:[#allocation467_spill] sm:$0xff]  ;;  %v14112_v55 = vpop.f32.mrf.mxu0  ;;  %v4624_v48 = vadd.f32 1e-06, %v4188_v63  ;;  %v4519_v38 = vadd.f32 %v17242_v11, %v7739_v16  ;;  %v17243_v59 = vld [vmem:[#allocation192_spill] sm:$0xff] }
 0xd1d   : > { %v8038_v36 = vpop.f32.mrf.mxu1  ;;  %6332 = vrot.lane.b32.xlu0 %v4685_v3, %s8917_s27  ;;  %v4199_v60 = vadd.f32 %v17230_v62, %v17229_v61  ;;  %17231 = vst [vmem:[#allocation406_spill] sm:$0xff] %v14112_v55  ;;  %v4190_v61 = vadd.f32 %v17239_v27, %v17238_v17  ;;  %v8720_v62 = vld [vmem:[#allocation2 + $0x68] sm:$0xff]  ;;  %v3365_v63 = vmul.f32 %v8538_v25, %v3265_v56  ;;  %v17247_v17 = vld [vmem:[#allocation454_spill] sm:$0xff] }
 0xd1e   : > { %6162 = vst.msk [vmem:[#allocation2 + $0x60] sm:$0xff] %vm17232_vm8, %v6158_v51  ;;  %v8039_v7 = vadd.f32 %v8038_v36, %v8037_v23  ;;  %v8544_v51 = vpop.eup %8543  ;;  %v17240_v36 = vld [vmem:[#allocation237_spill] sm:$0xff]  ;;  %v17244_v44 = vld [vmem:[#allocation456_spill] sm:$0xff]  ;;  %v17250_v16 = vld [vmem:[#allocation235_spill] sm:$0xff]  ;;  %v4689_v53 = vmul.f32 %v8542_v24, %v4519_v38  ;;  %8565 = vrcp.f32 %v4624_v48 }
 0xd1f   : > { %v8040_v3 = vpop.f32.mrf.mxu1  ;;  %v1479_v35 = vadd.f32 %v17241_v30, %v17240_v36  ;;  %v7745_v49 = vadd.f32 %v17244_v44, %v17243_v59  ;;  %v14132_v34 = vpop.eup %8545  ;;  %v4635_v27 = vadd.f32 1e-06, %v4199_v60  ;;  %v17251_v30 = vld [vmem:[#allocation236_spill] sm:$0xff]  ;;  %v17255_v25 = vld [vmem:[#allocation463_spill] sm:$0xff]  ;;  %v4626_v28 = vadd.f32 1e-06, %v4190_v61  ;;  %vm17502_vm8 = vmmov %vm16985_vm0 }
 0xd20   : > { %v6159_v55 = vadd.f32 %v8720_v62, %v8039_v7  ;;  %6254 = vrot.lane.b32.xlu1 %v3363_v2, %s8918_s8  ;;  %v14124_v23 = vpop.xlane.xlu1 %5449  ;;  %17245 = vst [vmem:[#allocation408_spill] sm:$0xff] %v14132_v34  ;;  %v17246_v7 = vld [vmem:[#allocation25_spill] sm:$0xff]  ;;  %v14136_v62 = vpop.f32.mrf.mxu0  ;;  %v7321_v11 = vadd.f32 %v17251_v30, %v17250_v16  ;;  %v17252_v59 = vld [vmem:[#allocation284_spill] sm:$0xff]  ;;  %v17261_v24 = vld [vmem:[#allocation55_spill] sm:$0xff] }
 0xd21   : > { %v8041_v43 = vpop.f32.mrf.mxu1  ;;  %6336 = vrot.lane.b32.xlu0 %v4687_v21, %s8917_s27  ;;  %v4492_v2 = vadd.f32 %v17247_v17, %v17246_v7  ;;  %17248 = vst [vmem:[#allocation127_spill] sm:$0xff] %v14136_v62  ;;  %v17253_v44 = vld [vmem:[#allocation172_spill] sm:$0xff]  ;;  %v8548_v14 = vpop.eup %8547  ;;  %v17257_v7 = vld [vmem:[#allocation179_spill] sm:$0xff]  ;;  %v1867_v30 = vadd.f32 1e-06, %v1479_v35  ;;  %v4527_v38 = vadd.f32 %v7745_v49, %v17261_v24  ;;  %v17262_v48 = vld [vmem:[#allocation429_spill] sm:$0xff]  ;;  %8567 = vrcp.f32 %v4635_v27 }
 0xd22   : > { %6163 = vst.msk [vmem:[#allocation2 + $0x68] sm:$0xff] %vm17249_vm10, %v6159_v55  ;;  %v8042_v36 = vadd.f32 %v8041_v43, %v8040_v3  ;;  %v1492_v13 = vadd.f32 %v17253_v44, %v17252_v59  ;;  %v17254_v21 = vld [vmem:[#allocation468_spill] sm:$0xff]  ;;  %v14147_v62 = vpop.xlane.xlu0 %5434  ;;  %v8550_v16 = vpop.eup %8549  ;;  %v17259_v59 = vld [vmem:[#allocation445_spill] sm:$0xff]  ;;  %v17263_v61 = vld [vmem:[#allocation426_spill] sm:$0xff]  ;;  %v14166_v49 = vmul.f32 %v13995_v6, %v1750_v58  ;;  %8569 = vrcp.f32 %v4626_v28 }
 0xd23   : > { %v4201_v56 = vadd.f32 %v17255_v25, %v17254_v21  ;;  %v8043_v8 = vpop.f32.mrf.mxu1  ;;  %v17256_v60 = vld [vmem:[#allocation444_spill] sm:$0xff]  ;;  %v17260_v44 = vld [vmem:[#allocation73_spill] sm:$0xff]  ;;  %v7751_v25 = vadd.f32 %v17263_v61, %v17262_v48  ;;  %v17270_v61 = vld [vmem:[#allocation178_spill] sm:$0xff]  ;;  %v14179_v58 = vmul.f32 %v8544_v51, %v14105_v47  ;;  %8571 = vrcp.f32 %v1867_v30 }
 0xd24   : > { %v4192_v17 = vadd.f32 %v17257_v7, %v17256_v60  ;;  %v8721_v55 = vld [vmem:[#allocation2 + $0x70] sm:$0xff]  ;;  %6258 = vrot.lane.b32.xlu1 %v3365_v63, %s8918_s8  ;;  %v14150_v43 = vpop.xlane.xlu1 %5452  ;;  %v4194_v21 = vadd.f32 %v17260_v44, %v17259_v59  ;;  %v14158_v60 = vpop.eup %8551  ;;  %17268 = vst [vmem:[#allocation219_spill] sm:$0xff] %v14166_v49  ;;  %v17269_v44 = vld [vmem:[#allocation78_spill] sm:$0xff]  ;;  %v17280_v51 = vld [vmem:[#allocation471_spill] sm:$0xff] }
 0xd25   : > { %v6160_v3 = vadd.f32 %v8721_v55, %v8042_v36  ;;  %17258 = vst [vmem:[#allocation331_spill] sm:$0xff] %v14150_v43  ;;  %v8044_v34 = vpop.f32.mrf.mxu1  ;;  %6340 = vrot.lane.b32.xlu0 %v4689_v53, %s8917_s27  ;;  %v4682_v36 = vmul.f32 %v8550_v16, %v4492_v2  ;;  %v17264_v7 = vld [vmem:[#allocation348_spill] sm:$0xff]  ;;  %v14162_v43 = vpop.f32.mrf.mxu0  ;;  %v4637_v59 = vadd.f32 1e-06, %v4201_v56  ;;  %v4203_v24 = vadd.f32 %v13567_v9, %v17269_v44  ;;  %v17282_v30 = vld [vmem:[#allocation71_spill] sm:$0xff]  ;;  %vm17513_vm10 = vmmov %vm16985_vm0 }
 0xd26   : > { %v17265_v63 = vld [vmem:[#allocation96_spill] sm:$0xff]  ;;  %17266 = vst [vmem:[#allocation417_spill] sm:$0xff] %v14162_v43  ;;  %v8045_v35 = vadd.f32 %v8044_v34, %v8043_v8  ;;  %v4691_v53 = vmul.f32 %v8548_v14, %v4527_v38  ;;  %v8554_v48 = vpop.eup %8553  ;;  %v14171_v2 = vadd.f32 %v7321_v11, %v17270_v61  ;;  %v4628_v16 = vadd.f32 1e-06, %v4192_v17  ;;  %v14173_v27 = vpop.xlane.xlu0 %5461  ;;  %17271 = vst [vmem:[#allocation313_spill] sm:$0xff] %v14179_v58  ;;  %v17272_v14 = vld [vmem:[#allocation51_spill] sm:$0xff] }
 0xd27   : > { %v4500_v55 = vadd.f32 %v17265_v63, %v17264_v7  ;;  %6164 = vst.msk [vmem:[#allocation2 + $0x70] sm:$0xff] %vm17267_vm5, %v6160_v3  ;;  %v8722_v7 = vld [vmem:[#allocation2 + $0x78] sm:$0xff]  ;;  %v8556_v6 = vpop.eup %8555  ;;  %v1880_v9 = vadd.f32 1e-06, %v1492_v13  ;;  %v4535_v34 = vadd.f32 %v17272_v14, %v7751_v25  ;;  %v17273_v56 = vld [vmem:[#allocation460_spill] sm:$0xff]  ;;  %v17277_v38 = vld [vmem:[#allocation19_spill] sm:$0xff]  ;;  %v14189_v61 = vpop.f32.mrf.mxu0  ;;  %8573 = vrcp.f32 %v4637_v59 }
 0xd28   : > { %v6161_v63 = vadd.f32 %v8722_v7, %v8045_v35  ;;  %6326 = vrot.lane.b32.xlu1 %v4682_v36, %s8917_s27  ;;  %v14176_v8 = vpop.xlane.xlu1 %5455  ;;  %v17274_v11 = vld [vmem:[#allocation461_spill] sm:$0xff]  ;;  %v14185_v28 = vpop.eup %8557  ;;  %v17276_v17 = vld [vmem:[#allocation242_spill] sm:$0xff]  ;;  %v4630_v35 = vadd.f32 1e-06, %v4194_v21  ;;  %17278 = vst [vmem:[#allocation368_spill] sm:$0xff] %v14189_v61  ;;  %v4205_v25 = vadd.f32 %v13617_v52, %v17280_v51  ;;  %8575 = vrcp.f32 %v4628_v16  ;;  %v17290_v52 = vld [vmem:[#allocation168_spill] sm:$0xff] }
 0xd29   : > { %v7757_v3 = vadd.f32 %v17274_v11, %v17273_v56  ;;  %6344 = vrot.lane.b32.xlu0 %v4691_v53, %s8917_s27  ;;  %17275 = vst [vmem:[#allocation358_spill] sm:$0xff] %v14185_v28  ;;  %v1481_v36 = vadd.f32 %v17277_v38, %v17276_v17  ;;  %v4684_v44 = vmul.f32 %v8556_v6, %v4500_v55  ;;  %v8560_v13 = vpop.eup %8559  ;;  %v4639_v47 = vadd.f32 1e-06, %v4203_v24  ;;  %v17281_v14 = vld [vmem:[#allocation446_spill] sm:$0xff]  ;;  %v17283_v11 = vld [vmem:[#allocation33_spill] sm:$0xff]  ;;  %v17286_v6 = vld [vmem:[#allocation84_spill] sm:$0xff]  ;;  %v14215_v43 = vpop.f32.mrf.mxu0 }
 0xd2a   : > { %6165 = vst.msk [vmem:[#allocation2 + $0x78] sm:$0xff] %vm17279_vm4, %v6161_v63  ;;  %v4693_v7 = vmul.f32 %v8554_v48, %v4535_v34  ;;  %v8562_v53 = vpop.eup %8561  ;;  %v4196_v56 = vadd.f32 %v17282_v30, %v17281_v14  ;;  %v17284_v17 = vld [vmem:[#allocation421_spill] sm:$0xff]  ;;  %v17289_v24 = vld [vmem:[#allocation238_spill] sm:$0xff]  ;;  %v17291_v34 = vld [vmem:[#allocation240_spill] sm:$0xff]  ;;  %8577 = vrcp.f32 %v4630_v35 }
 0xd2b   : > { %v4508_v21 = vadd.f32 %v17284_v17, %v17283_v11  ;;  %v17285_v55 = vld [vmem:[#allocation81_spill] sm:$0xff]  ;;  %v1758_v48 = vadd.f32 %v17290_v52, %v17289_v24  ;;  %v17293_v28 = vld [vmem:[#allocation447_spill] sm:$0xff]  ;;  %v17294_v14 = vld [vmem:[#allocation418_spill] sm:$0xff]  ;;  %v1869_v17 = vadd.f32 1e-06, %v1481_v36  ;;  %17298 = vst [vmem:[#allocation130_spill] sm:$0xff] %v14215_v43  ;;  %v8564_v58 = vpop.eup %8563  ;;  %8579 = vrcp.f32 %v4639_v47 }
 0xd2c   : > { %v7763_v38 = vadd.f32 %v17286_v6, %v17285_v55  ;;  %6330 = vrot.lane.b32.xlu1 %v4684_v44, %s8917_s27  ;;  %v14201_v63 = vpop.xlane.xlu0 %5473  ;;  %v14203_v59 = vpop.xlane.xlu1 %5458  ;;  %v17292_v16 = vld [vmem:[#allocation241_spill] sm:$0xff]  ;;  %v4198_v30 = vadd.f32 %v17294_v14, %v17293_v28  ;;  %v17295_v61 = vld [vmem:[#allocation119_spill] sm:$0xff]  ;;  %v17297_v55 = vld [vmem:[#allocation30_spill] sm:$0xff]  ;;  %v4641_v52 = vadd.f32 1e-06, %v4205_v25  ;;  %8581 = vrcp.f32 %v1880_v9 }
 0xd2d   : > { %17287 = vst [vmem:[#allocation369_spill] sm:$0xff] %v14201_v63  ;;  %17288 = vst [vmem:[#allocation410_spill] sm:$0xff] %v14203_v59  ;;  %v7327_v51 = vadd.f32 %v17292_v16, %v17291_v34  ;;  %v4543_v11 = vadd.f32 %v7757_v3, %v17295_v61  ;;  %6348 = vrot.lane.b32.xlu0 %v4693_v7, %s8917_s27  ;;  %v17296_v44 = vld [vmem:[#allocation69_spill] sm:$0xff]  ;;  %v4686_v49 = vmul.f32 %v8560_v13, %v4508_v21  ;;  %v17299_v34 = vld [vmem:[#allocation82_spill] sm:$0xff]  ;;  %v8566_v47 = vpop.eup %8565 }
 0xd2e   : > { %v4516_v6 = vadd.f32 %v17297_v55, %v17296_v44  ;;  %v4207_v16 = vadd.f32 %v13629_v37, %v17299_v34  ;;  %v17300_v28 = vld [vmem:[#allocation287_spill] sm:$0xff]  ;;  %v17301_v14 = vld [vmem:[#allocation176_spill] sm:$0xff]  ;;  %v4632_v61 = vadd.f32 1e-06, %v4196_v56  ;;  %v17302_v7 = vld [vmem:[#allocation86_spill] sm:$0xff]  ;;  %v14230_v25 = vmul.f32 %v14014_v12, %v1758_v48  ;;  %v14236_v55 = vpop.f32.mrf.mxu0  ;;  %v8568_v34 = vpop.eup %8567 }
 0xd2f   : > { %v4695_v24 = vmul.f32 %v8562_v53, %v4543_v11  ;;  %v1494_v3 = vadd.f32 %v17301_v14, %v17300_v28  ;;  %v4551_v36 = vadd.f32 %v17302_v7, %v7763_v38  ;;  %v17303_v35 = vld [vmem:[#allocation53_spill] sm:$0xff]  ;;  %v17304_v59 = vld [vmem:[#allocation91_spill] sm:$0xff]  ;;  %v17305_v37 = vld [vmem:[#allocation174_spill] sm:$0xff]  ;;  %v4634_v21 = vadd.f32 1e-06, %v4198_v30  ;;  %17308 = vst [vmem:[#allocation315_spill] sm:$0xff] %v14236_v55 }
 0xd30   : > { %v7769_v63 = vadd.f32 %v17304_v59, %v17303_v35  ;;  %6334 = vrot.lane.b32.xlu1 %v4686_v49, %s8917_s27  ;;  %v14225_v44 = vpop.xlane.xlu0 %5479  ;;  %v14227_v13 = vpop.xlane.xlu1 %5464  ;;  %v1761_v53 = vadd.f32 %v17305_v37, %v7327_v51  ;;  %8583 = vrcp.f32 %v1869_v17  ;;  %v4688_v56 = vmul.f32 %v8566_v47, %v4516_v6  ;;  %v17306_v38 = vld [vmem:[#allocation23_spill] sm:$0xff]  ;;  %v17309_v28 = vld [vmem:[#allocation94_spill] sm:$0xff]  ;;  %v17310_v14 = vld [vmem:[#allocation61_spill] sm:$0xff] }
 0xd31   : > { %6352 = vrot.lane.b32.xlu0 %v4695_v24, %s8917_s27  ;;  %v17307_v59 = vld [vmem:[#allocation427_spill] sm:$0xff]  ;;  %v4697_v49 = vmul.f32 %v8564_v58, %v4551_v36  ;;  %v7775_v9 = vadd.f32 %v17310_v14, %v17309_v28  ;;  %8585 = vrcp.f32 %v4641_v52  ;;  %v4643_v12 = vadd.f32 1e-06, %v4207_v16  ;;  %v17311_v48 = vld [vmem:[#allocation85_spill] sm:$0xff]  ;;  %v17312_v24 = vld [vmem:[#allocation448_spill] sm:$0xff]  ;;  %v8570_v47 = vpop.eup %8569  ;;  %v14261_v55 = vpop.f32.mrf.mxu0 }
 0xd32   : > { %v4524_v11 = vadd.f32 %v17307_v59, %v17306_v38  ;;  %v4209_v51 = vadd.f32 %v13641_v20, %v17311_v48  ;;  %v1882_v30 = vadd.f32 1e-06, %v1494_v3  ;;  %8587 = vrcp.f32 %v4632_v61  ;;  %v17313_v17 = vld [vmem:[#allocation423_spill] sm:$0xff]  ;;  %v17314_v7 = vld [vmem:[#allocation132_spill] sm:$0xff]  ;;  %v17317_v38 = vld [vmem:[#allocation245_spill] sm:$0xff] }
 0xd33   : > { %v4200_v6 = vadd.f32 %v17313_v17, %v17312_v24  ;;  %v4559_v35 = vadd.f32 %v7769_v63, %v17314_v7  ;;  %v17315_v37 = vld [vmem:[#allocation184_spill] sm:$0xff]  ;;  %v17316_v52 = vld [vmem:[#allocation243_spill] sm:$0xff]  ;;  %v17318_v59 = vld [vmem:[#allocation246_spill] sm:$0xff]  ;;  %8589 = vrcp.f32 %v4634_v21 }
 0xd34   : > { %6338 = vrot.lane.b32.xlu1 %v4688_v56, %s8917_s27  ;;  %v14246_v58 = vpop.xlane.xlu0 %5485  ;;  %v14248_v36 = vpop.xlane.xlu1 %5467  ;;  %v1766_v16 = vadd.f32 %v17316_v52, %v17315_v37  ;;  %v7333_v20 = vadd.f32 %v17318_v59, %v17317_v38  ;;  %v17319_v3 = vld [vmem:[#allocation247_spill] sm:$0xff]  ;;  %v17320_v61 = vld [vmem:[#allocation100_spill] sm:$0xff]  ;;  %v4690_v63 = vmul.f32 %v8570_v47, %v4524_v11  ;;  %v17321_v14 = vld [vmem:[#allocation458_spill] sm:$0xff]  ;;  %8591 = vrcp.f32 %v4643_v12 }
 0xd35   : > { %v1483_v28 = vadd.f32 %v17320_v61, %v17319_v3  ;;  %6356 = vrot.lane.b32.xlu0 %v4697_v49, %s8917_s27  ;;  %v17322_v56 = vld [vmem:[#allocation43_spill] sm:$0xff]  ;;  %v4699_v24 = vmul.f32 %v8568_v34, %v4559_v35  ;;  %v17323_v17 = vld [vmem:[#allocation21_spill] sm:$0xff]  ;;  %v8572_v37 = vpop.eup %8571  ;;  %v17324_v52 = vld [vmem:[#allocation128_spill] sm:$0xff]  ;;  %v4645_v38 = vadd.f32 1e-06, %v4209_v51  ;;  %v14268_v11 = vmul.f32 %v14158_v60, %v14171_v2 }
 0xd36   : > { %v4532_v48 = vadd.f32 %v17322_v56, %v17321_v14  ;;  %v4202_v7 = vadd.f32 %v13593_v15, %v17323_v17  ;;  %v4567_v43 = vadd.f32 %v17324_v52, %v7775_v9  ;;  %v17325_v59 = vld [vmem:[#allocation89_spill] sm:$0xff]  ;;  %v8574_v3 = vpop.eup %8573  ;;  %8593 = vrcp.f32 %v1882_v30  ;;  %v17328_v61 = vld [vmem:[#allocation79_spill] sm:$0xff]  ;;  %v17329_v14 = vld [vmem:[#allocation424_spill] sm:$0xff] }
 0xd37   : > { %v4211_v21 = vadd.f32 %v13651_v4, %v17325_v59  ;;  %v17326_v49 = vld [vmem:[#allocation289_spill] sm:$0xff]  ;;  %v4636_v15 = vadd.f32 1e-06, %v4200_v6  ;;  %v8576_v12 = vpop.eup %8575  ;;  %v14278_v51 = vmul.f32 %v14020_v54, %v1766_v16  ;;  %v1871_v4 = vadd.f32 1e-06, %v1483_v28  ;;  %v17331_v30 = vld [vmem:[#allocation50_spill] sm:$0xff]  ;;  %vm17514_vm5 = vmmov %vm16985_vm0 }
 0xd38   : > { %v17327_v34 = vld [vmem:[#allocation181_spill] sm:$0xff]  ;;  %6342 = vrot.lane.b32.xlu1 %v4690_v63, %s8917_s27  ;;  %v14273_v47 = vpop.xlane.xlu0 %5491  ;;  %v14275_v9 = vpop.xlane.xlu1 %5470  ;;  %v4540_v60 = vadd.f32 %v17329_v14, %v17328_v61  ;;  %v17332_v6 = vld [vmem:[#allocation190_spill] sm:$0xff]  ;;  %v4692_v63 = vmul.f32 %v8576_v12, %v4532_v48  ;;  %v4638_v52 = vadd.f32 1e-06, %v4202_v7  ;;  %v4701_v16 = vmul.f32 %v8574_v3, %v4567_v43  ;;  %v17335_v61 = vld [vmem:[#allocation92_spill] sm:$0xff] }
 0xd39   : > { %v1496_v35 = vadd.f32 %v17327_v34, %v17326_v49  ;;  %v17330_v2 = vld [vmem:[#allocation45_spill] sm:$0xff]  ;;  %6360 = vrot.lane.b32.xlu0 %v4699_v24, %s8917_s27  ;;  %v14286_v17 = vadd.f32 %v7333_v20, %v17332_v6  ;;  %v14290_v34 = vpop.f32.mrf.mxu0  ;;  %v8578_v54 = vpop.eup %8577  ;;  %8595 = vrcp.f32 %v4645_v38  ;;  %v4647_v28 = vadd.f32 1e-06, %v4211_v21  ;;  %v17339_v3 = vld [vmem:[#allocation466_spill] sm:$0xff]  ;;  %vm17526_vm4 = vmmov %vm16985_vm0 }
 0xd3a   : > { %v7781_v56 = vadd.f32 %v17331_v30, %v17330_v2  ;;  %v17333_v59 = vld [vmem:[#allocation449_spill] sm:$0xff]  ;;  %17334 = vst [vmem:[#allocation221_spill] sm:$0xff] %v14290_v34  ;;  %v4213_v14 = vadd.f32 %v13661_v33, %v17335_v61  ;;  %v8580_v2 = vpop.eup %8579  ;;  %v14294_v30 = vmul.f32 %v8572_v37, %v1761_v53  ;;  %8597 = vrcp.f32 %v4636_v15  ;;  %v17342_v37 = vld [vmem:[#allocation70_spill] sm:$0xff] }
 0xd3b   : > { %v4204_v49 = vadd.f32 %v13602_v5, %v17333_v59  ;;  %v1884_v24 = vadd.f32 1e-06, %v1496_v35  ;;  %v17336_v20 = vld [vmem:[#allocation253_spill] sm:$0xff]  ;;  %8599 = vrcp.f32 %v1871_v4  ;;  %v4694_v43 = vmul.f32 %v8578_v54, %v4540_v60  ;;  %v14307_v53 = vpop.eup %8581  ;;  %v17343_v35 = vld [vmem:[#allocation59_spill] sm:$0xff]  ;;  %v17344_v59 = vld [vmem:[#allocation450_spill] sm:$0xff] }
 0xd3c   : > { %v17337_v6 = vld [vmem:[#allocation101_spill] sm:$0xff]  ;;  %6346 = vrot.lane.b32.xlu1 %v4692_v63, %s8917_s27  ;;  %v14299_v5 = vpop.xlane.xlu0 %5497  ;;  %v14301_v7 = vpop.xlane.xlu1 %5476  ;;  %17341 = vst [vmem:[#allocation362_spill] sm:$0xff] %v14307_v53  ;;  %v4548_v15 = vadd.f32 %v17343_v35, %v17342_v37  ;;  %v4206_v63 = vadd.f32 %v13574_v0, %v17344_v59  ;;  %8601 = vrcp.f32 %v4638_v52  ;;  %v4649_v60 = vadd.f32 1e-06, %v4213_v14  ;;  %v17349_v37 = vld [vmem:[#allocation252_spill] sm:$0xff]  ;;  %v17351_v52 = vld [vmem:[#allocation102_spill] sm:$0xff] }
 0xd3d   : > { %v1485_v48 = vadd.f32 %v17337_v6, %v17336_v20  ;;  %v17338_v38 = vld [vmem:[#allocation149_spill] sm:$0xff]  ;;  %6364 = vrot.lane.b32.xlu0 %v4701_v16, %s8917_s27  ;;  %v4640_v61 = vadd.f32 1e-06, %v4204_v49  ;;  %v14313_v20 = vpop.f32.mrf.mxu0  ;;  %v8584_v4 = vpop.eup %8583  ;;  %8603 = vrcp.f32 %v4647_v28  ;;  %v17346_v6 = vld [vmem:[#allocation248_spill] sm:$0xff] }
 0xd3e   : > { %v4575_v21 = vadd.f32 %v7781_v56, %v17338_v38  ;;  %v17340_v33 = vld [vmem:[#allocation469_spill] sm:$0xff]  ;;  %17345 = vst [vmem:[#allocation363_spill] sm:$0xff] %v14313_v20  ;;  %v5530_v56 = vadd.f32 %v14036_v22, %v13673_v42  ;;  %v8586_v16 = vpop.eup %8585  ;;  %v17347_v38 = vld [vmem:[#allocation180_spill] sm:$0xff]  ;;  %8605 = vrcp.f32 %v1884_v24  ;;  %v17352_v42 = vld [vmem:[#allocation290_spill] sm:$0xff] }
 0xd3f   : > { %v7787_v12 = vadd.f32 %v17340_v33, %v17339_v3  ;;  %v1774_v3 = vadd.f32 %v17347_v38, %v17346_v6  ;;  %v17348_v33 = vld [vmem:[#allocation251_spill] sm:$0xff]  ;;  %v1873_v53 = vadd.f32 1e-06, %v1485_v48  ;;  %v17350_v0 = vld [vmem:[#allocation256_spill] sm:$0xff]  ;;  %v8588_v14 = vpop.eup %8587  ;;  %v17353_v22 = vld [vmem:[#allocation185_spill] sm:$0xff]  ;;  %8607 = vrcp.f32 %v4640_v61  ;;  %v14336_v34 = vpop.f32.mrf.mxu0 }
 0xd40   : > { %v4703_v54 = vmul.f32 %v8580_v2, %v4575_v21  ;;  %v7339_v35 = vadd.f32 %v17349_v37, %v17348_v33  ;;  %v1487_v49 = vadd.f32 %v17351_v52, %v17350_v0  ;;  %6350 = vrot.lane.b32.xlu1 %v4694_v43, %s8917_s27  ;;  %v14324_v59 = vpop.xlane.xlu0 %5503  ;;  %v14326_v28 = vpop.xlane.xlu1 %5482  ;;  %v1498_v2 = vadd.f32 %v17353_v22, %v17352_v42  ;;  %v17354_v21 = vld [vmem:[#allocation124_spill] sm:$0xff]  ;;  %v17356_v20 = vld [vmem:[#allocation145_spill] sm:$0xff]  ;;  %v17357_v43 = vld [vmem:[#allocation451_spill] sm:$0xff] }
 0xd41   : > { %v17355_v6 = vld [vmem:[#allocation88_spill] sm:$0xff]  ;;  %v4583_v33 = vadd.f32 %v17356_v20, %v7787_v12  ;;  %v8590_v48 = vpop.eup %8589  ;;  %v4696_v37 = vmul.f32 %v8588_v14, %v4548_v15  ;;  %v4642_v0 = vadd.f32 1e-06, %v4206_v63  ;;  %v4208_v52 = vadd.f32 %v13586_v10, %v17357_v43  ;;  %17358 = vst [vmem:[#allocation329_spill] sm:$0xff] %v14336_v34  ;;  %v17359_v20 = vld [vmem:[#allocation187_spill] sm:$0xff]  ;;  %v17432_v34 = vld [vmem:[#allocation117_spill] sm:$0xff] }
 0xd42   : > { %v4556_v38 = vadd.f32 %v17355_v6, %v17354_v21  ;;  %6368 = vrot.lane.b32.xlu0 %v4703_v54, %s8917_s27  ;;  %8609 = vrcp.f32 %v4649_v60  ;;  %v5966_v24 = vadd.f32 1e-06, %v5530_v56  ;;  %v5532_v42 = vadd.f32 %v14085_v39, %v13679_v26  ;;  %v8592_v21 = vpop.eup %8591  ;;  %v17361_v56 = vld [vmem:[#allocation197_spill] sm:$0xff]  ;;  %v17362_v26 = vld [vmem:[#allocation255_spill] sm:$0xff]  ;;  %v17366_v6 = vld [vmem:[#allocation452_spill] sm:$0xff] }
 0xd43   : > { %v4705_v22 = vmul.f32 %v8586_v16, %v4583_v33  ;;  %v14341_v12 = vmul.f32 %v14039_v18, %v1774_v3  ;;  %v1777_v54 = vadd.f32 %v17359_v20, %v7339_v35  ;;  %8611 = vrcp.f32 %v1873_v53  ;;  %v14349_v61 = vpop.eup %8593  ;;  %v17363_v14 = vld [vmem:[#allocation339_spill] sm:$0xff]  ;;  %v17364_v53 = vld [vmem:[#allocation58_spill] sm:$0xff] }
 0xd44   : > { %v1875_v15 = vadd.f32 1e-06, %v1487_v49  ;;  %6354 = vrot.lane.b32.xlu1 %v4696_v37, %s8917_s27  ;;  %v14345_v10 = vpop.xlane.xlu0 %5509  ;;  %v14347_v63 = vpop.xlane.xlu1 %5488  ;;  %17360 = vst [vmem:[#allocation371_spill] sm:$0xff] %v14349_v61  ;;  %v1886_v60 = vadd.f32 1e-06, %v1498_v2  ;;  %v1782_v39 = vadd.f32 %v17362_v26, %v17361_v56  ;;  %v4698_v16 = vmul.f32 %v8590_v48, %v4556_v38  ;;  %v17365_v3 = vld [vmem:[#allocation74_spill] sm:$0xff] }
 0xd45   : > { %v4591_v18 = vadd.f32 %v13398_v31, %v17363_v14  ;;  %v4564_v35 = vadd.f32 %v17365_v3, %v17364_v53  ;;  %8613 = vrcp.f32 %v4642_v0  ;;  %v4644_v49 = vadd.f32 1e-06, %v4208_v52  ;;  %v14360_v37 = vpop.f32.mrf.mxu0  ;;  %v17368_v20 = vld [vmem:[#allocation259_spill] sm:$0xff]  ;;  %v17369_v52 = vld [vmem:[#allocation260_spill] sm:$0xff]  ;;  %v17374_v53 = vld [vmem:[#allocation453_spill] sm:$0xff] }
 0xd46   : > { %6372 = vrot.lane.b32.xlu0 %v4705_v22, %s8917_s27  ;;  %v4210_v33 = vadd.f32 %v13595_v1, %v17366_v6  ;;  %8615 = vrcp.f32 %v5966_v24  ;;  %v5968_v2 = vadd.f32 1e-06, %v5532_v42  ;;  %v5534_v38 = vadd.f32 %v14124_v23, %v13691_v46  ;;  %v8596_v43 = vpop.eup %8595  ;;  %v17367_v22 = vld [vmem:[#allocation257_spill] sm:$0xff]  ;;  %v17370_v56 = vld [vmem:[#allocation103_spill] sm:$0xff]  ;;  %v17418_v61 = vld [vmem:[#allocation154_spill] sm:$0xff] }
 0xd47   : > { %v4707_v48 = vmul.f32 %v8592_v21, %v4591_v18  ;;  %v14365_v31 = vmul.f32 %v8584_v4, %v14286_v17  ;;  %8617 = vrcp.f32 %v1875_v15  ;;  %v7345_v0 = vadd.f32 %v17368_v20, %v17367_v22  ;;  %v8598_v42 = vpop.eup %8597  ;;  %v17371_v23 = vld [vmem:[#allocation263_spill] sm:$0xff]  ;;  %v17372_v17 = vld [vmem:[#allocation104_spill] sm:$0xff]  ;;  %v14386_v6 = vpop.f32.mrf.mxu0 }
 0xd48   : > { %v1489_v26 = vadd.f32 %v17370_v56, %v17369_v52  ;;  %6358 = vrot.lane.b32.xlu1 %v4698_v16, %s8917_s27  ;;  %v14372_v1 = vpop.xlane.xlu0 %5515  ;;  %v14374_v24 = vpop.xlane.xlu1 %5494  ;;  %8619 = vrcp.f32 %v1886_v60  ;;  %v14377_v46 = vmul.f32 %v14045_v19, %v1782_v39  ;;  %v1491_v4 = vadd.f32 %v17372_v17, %v17371_v23  ;;  %v17373_v21 = vld [vmem:[#allocation167_spill] sm:$0xff]  ;;  %v17376_v56 = vld [vmem:[#allocation266_spill] sm:$0xff] }
 0xd49   : > { %v4599_v15 = vadd.f32 %v17373_v21, %v13414_v50  ;;  %v8600_v14 = vpop.eup %8599  ;;  %v4700_v18 = vmul.f32 %v8598_v42, %v4564_v35  ;;  %8621 = vrcp.f32 %v4644_v49  ;;  %v4646_v16 = vadd.f32 1e-06, %v4210_v33  ;;  %v17375_v50 = vld [vmem:[#allocation200_spill] sm:$0xff]  ;;  %v17377_v35 = vld [vmem:[#allocation105_spill] sm:$0xff] }
 0xd4a   : > { %6376 = vrot.lane.b32.xlu0 %v4707_v48, %s8917_s27  ;;  %v4212_v3 = vadd.f32 %v13609_v57, %v17374_v53  ;;  %v8602_v60 = vpop.eup %8601  ;;  %8623 = vrcp.f32 %v5968_v2  ;;  %v5970_v19 = vadd.f32 1e-06, %v5534_v38  ;;  %v5536_v39 = vadd.f32 %v14176_v8, %v13697_v29  ;;  %v17378_v33 = vld [vmem:[#allocation141_spill] sm:$0xff]  ;;  %v17379_v42 = vld [vmem:[#allocation64_spill] sm:$0xff]  ;;  %v17380_v29 = vld [vmem:[#allocation262_spill] sm:$0xff] }
 0xd4b   : > { %v4709_v22 = vmul.f32 %v8596_v43, %v4599_v15  ;;  %v8604_v20 = vpop.eup %8603  ;;  %v1785_v52 = vadd.f32 %v7345_v0, %v17375_v50  ;;  %v1877_v48 = vadd.f32 1e-06, %v1489_v26  ;;  %v1493_v49 = vadd.f32 %v17377_v35, %v17376_v56  ;;  %v17381_v8 = vld [vmem:[#allocation193_spill] sm:$0xff]  ;;  %v17383_v26 = vld [vmem:[#allocation123_spill] sm:$0xff]  ;;  %v17386_v50 = vld [vmem:[#allocation22_spill] sm:$0xff] }
 0xd4c   : > { %v4572_v23 = vadd.f32 %v17379_v42, %v17378_v33  ;;  %6362 = vrot.lane.b32.xlu1 %v4700_v18, %s8917_s27  ;;  %v14396_v57 = vpop.xlane.xlu0 %5521  ;;  %v14398_v2 = vpop.xlane.xlu1 %5500  ;;  %v14400_v38 = vmul.f32 %v8600_v14, %v1777_v54  ;;  %v1790_v43 = vadd.f32 %v17381_v8, %v17380_v29  ;;  %v1879_v17 = vadd.f32 1e-06, %v1491_v4  ;;  %v17382_v0 = vld [vmem:[#allocation353_spill] sm:$0xff]  ;;  %v17387_v35 = vld [vmem:[#allocation40_spill] sm:$0xff]  ;;  %v17389_v8 = vld [vmem:[#allocation267_spill] sm:$0xff] }
 0xd4d   : > { %v4607_v21 = vadd.f32 %v17383_v26, %v17382_v0  ;;  %v14407_v15 = vpop.eup %8605  ;;  %8625 = vrcp.f32 %v4646_v16  ;;  %v4648_v53 = vadd.f32 1e-06, %v4212_v3  ;;  %v14409_v18 = vpop.f32.mrf.mxu0  ;;  %v5529_v56 = vadd.f32 %v14147_v62, %v17386_v50  ;;  %v17390_v3 = vld [vmem:[#allocation465_spill] sm:$0xff]  ;;  %v17391_v26 = vld [vmem:[#allocation136_spill] sm:$0xff] }
 0xd4e   : > { %6380 = vrot.lane.b32.xlu0 %v4709_v22, %s8917_s27  ;;  %17384 = vst [vmem:[#allocation372_spill] sm:$0xff] %v14407_v15  ;;  %17385 = vst [vmem:[#allocation361_spill] sm:$0xff] %v14409_v18  ;;  %v4702_v54 = vmul.f32 %v8602_v60, %v4572_v23  ;;  %v8608_v14 = vpop.eup %8607  ;;  %8627 = vrcp.f32 %v5970_v19  ;;  %v5538_v4 = vadd.f32 %v14173_v27, %v17387_v35  ;;  %v5972_v33 = vadd.f32 1e-06, %v5536_v39  ;;  %v17388_v22 = vld [vmem:[#allocation264_spill] sm:$0xff]  ;;  %v17392_v39 = vld [vmem:[#allocation125_spill] sm:$0xff] }
 0xd4f   : > { %v4711_v42 = vmul.f32 %v8604_v20, %v4607_v21  ;;  %v8610_v29 = vpop.eup %8609  ;;  %8629 = vrcp.f32 %v1877_v48  ;;  %v7351_v0 = vadd.f32 %v17389_v8, %v17388_v22  ;;  %v1881_v16 = vadd.f32 1e-06, %v1493_v49  ;;  %v17393_v20 = vld [vmem:[#allocation338_spill] sm:$0xff]  ;;  %v17394_v23 = vld [vmem:[#allocation52_spill] sm:$0xff]  ;;  %v17395_v21 = vld [vmem:[#allocation93_spill] sm:$0xff]  ;;  %v14432_v50 = vpop.f32.mrf.mxu0 }
 0xd50   : > { %v4580_v15 = vadd.f32 %v17391_v26, %v17390_v3  ;;  %6366 = vrot.lane.b32.xlu1 %v4702_v54, %s8917_s27  ;;  %v14420_v62 = vpop.xlane.xlu0 %5527  ;;  %v14422_v60 = vpop.xlane.xlu1 %5506  ;;  %v14425_v27 = vmul.f32 %v14055_v41, %v1790_v43  ;;  %8631 = vrcp.f32 %v1879_v17  ;;  %v4615_v48 = vadd.f32 %v17393_v20, %v17392_v39  ;;  %17396 = vst [vmem:[#allocation311_spill] sm:$0xff] %v14432_v50  ;;  %v17397_v35 = vld [vmem:[#allocation57_spill] sm:$0xff]  ;;  %v17398_v43 = vld [vmem:[#allocation44_spill] sm:$0xff] }
 0xd51   : > { %v8612_v19 = vpop.eup %8611  ;;  %v7927_v49 = vadd.f32 %v17395_v21, %v17394_v23  ;;  %8633 = vrcp.f32 %v4648_v53  ;;  %v5965_v54 = vadd.f32 1e-06, %v5529_v56  ;;  %v5531_v22 = vadd.f32 %v14062_v32, %v17397_v35  ;;  %v17399_v23 = vld [vmem:[#allocation199_spill] sm:$0xff]  ;;  %v17400_v53 = vld [vmem:[#allocation160_spill] sm:$0xff]  ;;  %v17401_v21 = vld [vmem:[#allocation470_spill] sm:$0xff]  ;;  %v14458_v35 = vpop.f32.mrf.mxu0 }
 0xd52   : > { %6384 = vrot.lane.b32.xlu0 %v4711_v42, %s8917_s27  ;;  %v4704_v8 = vmul.f32 %v8608_v14, %v4580_v15  ;;  %v8614_v3 = vpop.eup %8613  ;;  %v5974_v41 = vadd.f32 1e-06, %v5538_v4  ;;  %8635 = vrcp.f32 %v5972_v33  ;;  %v5540_v17 = vadd.f32 %v14248_v36, %v17398_v43  ;;  %v17402_v14 = vld [vmem:[#allocation271_spill] sm:$0xff]  ;;  %v17403_v4 = vld [vmem:[#allocation106_spill] sm:$0xff]  ;;  %v17404_v36 = vld [vmem:[#allocation133_spill] sm:$0xff] }
 0xd53   : > { %v4713_v26 = vmul.f32 %v8610_v29, %v4615_v48  ;;  %v8616_v39 = vpop.eup %8615  ;;  %v14438_v20 = vmul.f32 %v8612_v19, %v1785_v52  ;;  %v1793_v42 = vadd.f32 %v17399_v23, %v7351_v0  ;;  %8637 = vrcp.f32 %v1881_v16  ;;  %v17405_v48 = vld [vmem:[#allocation27_spill] sm:$0xff]  ;;  %v17406_v52 = vld [vmem:[#allocation28_spill] sm:$0xff]  ;;  %v17410_v43 = vld [vmem:[#allocation62_spill] sm:$0xff] }
 0xd54   : > { %v4588_v56 = vadd.f32 %v17401_v21, %v17400_v53  ;;  %v6201_v50 = vpop.permute.xlu0 %6200  ;;  %6370 = vrot.lane.b32.xlu1 %v4704_v8, %s8917_s27  ;;  %v14444_v32 = vpop.xlane.xlu1 %5512  ;;  %v1497_v33 = vadd.f32 %v17403_v4, %v17402_v14  ;;  %v5842_v29 = vadd.f32 %v7927_v49, %v17404_v36  ;;  %v7933_v19 = vadd.f32 %v17406_v52, %v17405_v48  ;;  %v17411_v21 = vld [vmem:[#allocation46_spill] sm:$0xff]  ;;  %v17412_v14 = vld [vmem:[#allocation369_spill] sm:$0xff]  ;;  %v17417_v18 = vld [vmem:[#allocation20_spill] sm:$0xff] }
 0xd55   : > { %v8618_v15 = vpop.eup %8617  ;;  %v14453_v0 = vsel %vm17407_vm3, %v14080_v45, %v6201_v50  ;;  %8639 = vrcp.f32 %v5965_v54  ;;  %v5967_v8 = vadd.f32 1e-06, %v5531_v22  ;;  %v5533_v23 = vadd.f32 %v14102_v40, %v17410_v43  ;;  %v17414_v52 = vld [vmem:[#allocation270_spill] sm:$0xff]  ;;  %v17416_v54 = vld [vmem:[#allocation273_spill] sm:$0xff]  ;;  %vm17527_vm3 = vmmov %vm16985_vm0 }
 0xd56   : > { %17408 = vst [vmem:[#allocation412_spill] sm:$0xff] %v14453_v0  ;;  %6388 = vrot.lane.b32.xlu0 %v4713_v26, %s8917_s27  ;;  %v14456_v16 = vpop.eup %8619  ;;  %v4706_v53 = vmul.f32 %v8614_v3, %v4588_v56  ;;  %8641 = vrcp.f32 %v5974_v41  ;;  %v5542_v4 = vadd.f32 %v17412_v14, %v17411_v21  ;;  %v5976_v36 = vadd.f32 1e-06, %v5540_v17  ;;  %v17413_v26 = vld [vmem:[#allocation202_spill] sm:$0xff]  ;;  %v17419_v17 = vld [vmem:[#allocation131_spill] sm:$0xff] }
 0xd57   : > { %17409 = vst [vmem:[#allocation122_spill] sm:$0xff] %v14456_v16  ;;  %v8622_v49 = vpop.eup %8621  ;;  %v6030_v45 = vmul.f32 %v8616_v39, %v5842_v29  ;;  %v14464_v48 = vmul.f32 %v8618_v15, %v1793_v42  ;;  %v1798_v0 = vadd.f32 %v17414_v52, %v17413_v26  ;;  %v17415_v16 = vld [vmem:[#allocation272_spill] sm:$0xff]  ;;  %v4596_v40 = vadd.f32 %v17418_v61, %v17417_v18  ;;  %v17420_v29 = vld [vmem:[#allocation37_spill] sm:$0xff]  ;;  %v17421_v42 = vld [vmem:[#allocation38_spill] sm:$0xff] }
 0xd58   : > { %v8624_v50 = vpop.eup %8623  ;;  %v7357_v22 = vadd.f32 %v17416_v54, %v17415_v16  ;;  %v6209_v3 = vpop.permute.xlu0 %6208  ;;  %6374 = vrot.lane.b32.xlu1 %v4706_v53, %s8917_s27  ;;  %v1885_v56 = vadd.f32 1e-06, %v1497_v33  ;;  %v5850_v39 = vadd.f32 %v17419_v17, %v7933_v19  ;;  %v7939_v15 = vadd.f32 %v17421_v42, %v17420_v29  ;;  %v17424_v18 = vld [vmem:[#allocation67_spill] sm:$0xff] }
 0xd59   : > { %v14473_v41 = vpop.xlane.xlu1 %5518  ;;  %v14480_v43 = vsel %vm17422_vm11, %v14268_v11, %v6209_v3  ;;  %v14483_v16 = vpop.f32.mrf.mxu0  ;;  %8643 = vrcp.f32 %v5967_v8  ;;  %v5969_v61 = vadd.f32 1e-06, %v5533_v23  ;;  %v17425_v53 = vld [vmem:[#allocation331_spill] sm:$0xff]  ;;  %v4708_v14 = vmul.f32 %v8622_v49, %v4596_v40  ;;  %v17427_v11 = vld [vmem:[#allocation408_spill] sm:$0xff]  ;;  %v17434_v40 = vld [vmem:[#allocation342_spill] sm:$0xff] }
 0xd5a   : > { %17423 = vst [vmem:[#allocation316_spill] sm:$0xff] %v14480_v43  ;;  %6456 = vrot.lane.b32.xlu0 %v6030_v45, %s8915_s20  ;;  %v5535_v21 = vadd.f32 %v17425_v53, %v17424_v18  ;;  %v8626_v33 = vpop.eup %8625  ;;  %v5978_v26 = vadd.f32 1e-06, %v5542_v4  ;;  %v17426_v19 = vld [vmem:[#allocation47_spill] sm:$0xff]  ;;  %8645 = vrcp.f32 %v5976_v36  ;;  %v6032_v54 = vmul.f32 %v8624_v50, %v5850_v39  ;;  %v17428_v45 = vld [vmem:[#allocation204_spill] sm:$0xff]  ;;  %v17433_v36 = vld [vmem:[#allocation142_spill] sm:$0xff] }
 0xd5b   : > { %v5544_v52 = vadd.f32 %v14225_v44, %v17426_v19  ;;  %v8628_v17 = vpop.eup %8627  ;;  %v14490_v3 = vmul.f32 %v17427_v11, %v1798_v0  ;;  %v1801_v29 = vadd.f32 %v7357_v22, %v17428_v45  ;;  %v17429_v42 = vld [vmem:[#allocation275_spill] sm:$0xff]  ;;  %v17431_v43 = vld [vmem:[#allocation68_spill] sm:$0xff]  ;;  %8647 = vrcp.f32 %v1885_v56  ;;  %v17439_v56 = vld [vmem:[#allocation410_spill] sm:$0xff] }
 0xd5c   : > { %v17430_v8 = vld [vmem:[#allocation107_spill] sm:$0xff]  ;;  %v4604_v18 = vadd.f32 %v17432_v34, %v17431_v43  ;;  %v6213_v49 = vpop.permute.xlu0 %6212  ;;  %6378 = vrot.lane.b32.xlu1 %v4708_v14, %s8917_s27  ;;  %v8630_v44 = vpop.eup %8629  ;;  %v5858_v50 = vadd.f32 %v7939_v15, %v17433_v36  ;;  %8649 = vrcp.f32 %v5969_v61  ;;  %v5971_v14 = vadd.f32 1e-06, %v5535_v21  ;;  %v17438_v19 = vld [vmem:[#allocation76_spill] sm:$0xff]  ;;  %v17444_v61 = vld [vmem:[#allocation173_spill] sm:$0xff] }
 0xd5d   : > { %v1499_v23 = vadd.f32 %v17430_v8, %v17429_v42  ;;  %v14498_v4 = vpop.xlane.xlu1 %5524  ;;  %v17435_v0 = vld [vmem:[#allocation207_spill] sm:$0xff]  ;;  %v14505_v22 = vsel %vm17436_vm12, %v14294_v30, %v6213_v49  ;;  %v14508_v53 = vpop.eup %8631  ;;  %v5537_v11 = vadd.f32 %v17439_v56, %v17438_v19  ;;  %8651 = vrcp.f32 %v5978_v26  ;;  %v17440_v42 = vld [vmem:[#allocation48_spill] sm:$0xff]  ;;  %vm17536_vm11 = vmmov %vm16985_vm0 }
 0xd5e   : > { %v7945_v39 = vadd.f32 %v17435_v0, %v17434_v40  ;;  %17437 = vst [vmem:[#allocation223_spill] sm:$0xff] %v14505_v22  ;;  %6460 = vrot.lane.b32.xlu0 %v6032_v54, %s8915_s20  ;;  %v4710_v34 = vmul.f32 %v8626_v33, %v4604_v18  ;;  %v14510_v43 = vpop.f32.mrf.mxu0  ;;  %v8634_v15 = vpop.eup %8633  ;;  %v5980_v45 = vadd.f32 1e-06, %v5544_v52  ;;  %v5546_v8 = vadd.f32 %v14246_v58, %v17440_v42  ;;  %v17441_v40 = vld [vmem:[#allocation278_spill] sm:$0xff]  ;;  %v17442_v33 = vld [vmem:[#allocation108_spill] sm:$0xff]  ;;  %v17443_v0 = vld [vmem:[#allocation121_spill] sm:$0xff] }
 0xd5f   : > { %v6034_v30 = vmul.f32 %v8628_v17, %v5858_v50  ;;  %v8636_v49 = vpop.eup %8635  ;;  %v14516_v36 = vmul.f32 %v8630_v44, %v1801_v29  ;;  %v1887_v54 = vadd.f32 1e-06, %v1499_v23  ;;  %v1501_v18 = vadd.f32 %v17442_v33, %v17441_v40  ;;  %v17445_v52 = vld [vmem:[#allocation139_spill] sm:$0xff]  ;;  %v17447_v17 = vld [vmem:[#allocation116_spill] sm:$0xff]  ;;  %v17449_v23 = vld [vmem:[#allocation366_spill] sm:$0xff] }
 0xd60   : > { %v4612_v21 = vadd.f32 %v17444_v61, %v17443_v0  ;;  %v6217_v22 = vpop.permute.xlu0 %6216  ;;  %6382 = vrot.lane.b32.xlu1 %v4710_v34, %s8917_s27  ;;  %v14523_v26 = vpop.eup %8637  ;;  %v5866_v56 = vadd.f32 %v17445_v52, %v7945_v39  ;;  %v17446_v58 = vld [vmem:[#allocation343_spill] sm:$0xff]  ;;  %8653 = vrcp.f32 %v5971_v14  ;;  %v5973_v40 = vadd.f32 1e-06, %v5537_v11  ;;  %v17453_v52 = vld [vmem:[#allocation49_spill] sm:$0xff]  ;;  %vm17537_vm12 = vmmov %vm16985_vm0 }
 0xd61   : > { %v6199_v19 = vpop.permute.xlu1 %6198  ;;  %v7951_v50 = vadd.f32 %v17447_v17, %v17446_v58  ;;  %v14530_v29 = vsel %vm16985_vm0, %v14365_v31, %v6217_v22  ;;  %v14537_v34 = vpop.f32.mrf.mxu0  ;;  %v17452_v33 = vld [vmem:[#allocation83_spill] sm:$0xff]  ;;  %8655 = vrcp.f32 %v5980_v45  ;;  %v5982_v61 = vadd.f32 1e-06, %v5546_v8 }
 0xd62   : > { %17448 = vst [vmem:[#allocation317_spill] sm:$0xff] %v14530_v29  ;;  %v14534_v44 = vsel %vm17450_vm14, %v17449_v23, %v6199_v19  ;;  %6464 = vrot.lane.b32.xlu0 %v6034_v30, %s8915_s20  ;;  %v4712_v42 = vmul.f32 %v8634_v15, %v4612_v21  ;;  %v5539_v39 = vadd.f32 %v14227_v13, %v17452_v33  ;;  %v8640_v0 = vpop.eup %8639  ;;  %8657 = vrcp.f32 %v1887_v54  ;;  %v17454_v17 = vld [vmem:[#allocation279_spill] sm:$0xff]  ;;  %v17455_v30 = vld [vmem:[#allocation280_spill] sm:$0xff]  ;;  %v17456_v21 = vld [vmem:[#allocation129_spill] sm:$0xff] }
 0xd63   : > { %17451 = vst [vmem:[#allocation345_spill] sm:$0xff] %v14534_v44  ;;  %v5548_v31 = vadd.f32 %v14273_v47, %v17453_v52  ;;  %v6036_v22 = vmul.f32 %v8636_v49, %v5866_v56  ;;  %v8642_v58 = vpop.eup %8641  ;;  %v1889_v19 = vadd.f32 1e-06, %v1501_v18  ;;  %v7363_v15 = vadd.f32 %v17455_v30, %v17454_v17  ;;  %v17457_v23 = vld [vmem:[#allocation90_spill] sm:$0xff]  ;;  %v17458_v33 = vld [vmem:[#allocation151_spill] sm:$0xff]  ;;  %v17460_v44 = vld [vmem:[#allocation213_spill] sm:$0xff]  ;;  %v14560_v18 = vpop.f32.mrf.mxu0 }
 0xd64   : > { %v5839_v14 = vadd.f32 %v17457_v23, %v17456_v21  ;;  %v6221_v11 = vpop.permute.xlu0 %6220  ;;  %6386 = vrot.lane.b32.xlu1 %v4712_v42, %s8917_s27  ;;  %v5874_v45 = vadd.f32 %v7951_v50, %v17458_v33  ;;  %v17459_v8 = vld [vmem:[#allocation411_spill] sm:$0xff]  ;;  %v17462_v49 = vld [vmem:[#allocation120_spill] sm:$0xff]  ;;  %8659 = vrcp.f32 %v5973_v40  ;;  %v5975_v56 = vadd.f32 1e-06, %v5539_v39  ;;  %v17466_v30 = vld [vmem:[#allocation477_spill] sm:$0xff] }
 0xd65   : > { %v6203_v13 = vpop.permute.xlu1 %6202  ;;  %v7957_v29 = vadd.f32 %v17460_v44, %v17459_v8  ;;  %v14553_v47 = vsel %vm17461_vm2, %v14400_v38, %v6221_v11  ;;  %v17465_v42 = vld [vmem:[#allocation87_spill] sm:$0xff]  ;;  %8661 = vrcp.f32 %v5982_v61  ;;  %v5984_v44 = vadd.f32 1e-06, %v5548_v31  ;;  %v17469_v33 = vld [vmem:[#allocation109_spill] sm:$0xff]  ;;  %v17470_v40 = vld [vmem:[#allocation24_spill] sm:$0xff] }
 0xd66   : > { %v14557_v54 = vsel %vm17463_vm6, %v17462_v49, %v6203_v13  ;;  %6468 = vrot.lane.b32.xlu0 %v6036_v22, %s8915_s20  ;;  %v5541_v50 = vadd.f32 %v14275_v9, %v17465_v42  ;;  %v6029_v52 = vmul.f32 %v8640_v0, %v5839_v14  ;;  %v8644_v17 = vpop.eup %8643  ;;  %v5550_v38 = vadd.f32 %v14299_v5, %v17466_v30  ;;  %v17467_v11 = vld [vmem:[#allocation203_spill] sm:$0xff]  ;;  %v17468_v22 = vld [vmem:[#allocation282_spill] sm:$0xff]  ;;  %v17472_v0 = vld [vmem:[#allocation148_spill] sm:$0xff]  ;;  %v14586_v42 = vpop.f32.mrf.mxu0 }
 0xd67   : > { %17464 = vst [vmem:[#allocation374_spill] sm:$0xff] %v14557_v54  ;;  %v6038_v21 = vmul.f32 %v8642_v58, %v5874_v45  ;;  %v8646_v23 = vpop.eup %8645  ;;  %8663 = vrcp.f32 %v1889_v19  ;;  %v1809_v13 = vadd.f32 %v17467_v11, %v7363_v15  ;;  %v1503_v8 = vadd.f32 %v17469_v33, %v17468_v22  ;;  %v17471_v39 = vld [vmem:[#allocation126_spill] sm:$0xff]  ;;  %v17473_v31 = vld [vmem:[#allocation405_spill] sm:$0xff]  ;;  %vm17547_vm14 = vmmov %vm16985_vm0 }
 0xd68   : > { %v5847_v49 = vadd.f32 %v17471_v39, %v17470_v40  ;;  %v6225_v54 = vpop.permute.xlu0 %6224  ;;  %6454 = vrot.lane.b32.xlu1 %v6029_v52, %s8915_s20  ;;  %v5882_v61 = vadd.f32 %v17472_v0, %v7957_v29  ;;  %v17474_v14 = vld [vmem:[#allocation118_spill] sm:$0xff]  ;;  %v17477_v19 = vld [vmem:[#allocation313_spill] sm:$0xff]  ;;  %v14584_v45 = vpop.eup %8647  ;;  %8665 = vrcp.f32 %v5975_v56  ;;  %v5977_v52 = vadd.f32 1e-06, %v5541_v50  ;;  %v17484_v50 = vld [vmem:[#allocation35_spill] sm:$0xff] }
 0xd69   : > { %v6205_v9 = vpop.permute.xlu1 %6204  ;;  %v7963_v5 = vadd.f32 %v17474_v14, %v17473_v31  ;;  %v14577_v58 = vsel %vm17475_vm7, %v14438_v20, %v6225_v54  ;;  %v17479_v29 = vld [vmem:[#allocation54_spill] sm:$0xff]  ;;  %v8650_v22 = vpop.eup %8649  ;;  %8667 = vrcp.f32 %v5984_v44  ;;  %v5986_v20 = vadd.f32 1e-06, %v5550_v38  ;;  %v17481_v0 = vld [vmem:[#allocation285_spill] sm:$0xff]  ;;  %vm17559_vm2 = vmmov %vm16985_vm0 }
 0xd6a   : > { %17476 = vst [vmem:[#allocation375_spill] sm:$0xff] %v14577_v58  ;;  %v14581_v15 = vsel %vm17478_vm9, %v17477_v19, %v6205_v9  ;;  %6472 = vrot.lane.b32.xlu0 %v6038_v21, %s8915_s20  ;;  %v5543_v30 = vadd.f32 %v14301_v7, %v17479_v29  ;;  %v6031_v11 = vmul.f32 %v8644_v17, %v5847_v49  ;;  %v17480_v54 = vld [vmem:[#allocation478_spill] sm:$0xff]  ;;  %v8652_v39 = vpop.eup %8651  ;;  %v1891_v9 = vadd.f32 1e-06, %v1503_v8  ;;  %v17485_v17 = vld [vmem:[#allocation163_spill] sm:$0xff]  ;;  %v17486_v38 = vld [vmem:[#allocation413_spill] sm:$0xff]  ;;  %v14610_v8 = vpop.f32.mrf.mxu0 }
 0xd6b   : > { %v5552_v33 = vadd.f32 %v14324_v59, %v17480_v54  ;;  %v6040_v40 = vmul.f32 %v8646_v23, %v5882_v61  ;;  %v1943_v21 = vmul.f32 %v14508_v53, %v1809_v13  ;;  %v17482_v31 = vld [vmem:[#allocation286_spill] sm:$0xff]  ;;  %v5890_v44 = vadd.f32 %v7963_v5, %v17485_v17  ;;  %v17487_v49 = vld [vmem:[#allocation215_spill] sm:$0xff]  ;;  %v17491_v29 = vld [vmem:[#allocation97_spill] sm:$0xff] }
 0xd6c   : > { %v7369_v14 = vadd.f32 %v17482_v31, %v17481_v0  ;;  %v17483_v56 = vld [vmem:[#allocation138_spill] sm:$0xff]  ;;  %v6229_v58 = vpop.permute.xlu0 %6228  ;;  %6458 = vrot.lane.b32.xlu1 %v6031_v11, %s8915_s20  ;;  %v7969_v59 = vadd.f32 %v17487_v49, %v17486_v38  ;;  %v17489_v53 = vld [vmem:[#allocation219_spill] sm:$0xff]  ;;  %8669 = vrcp.f32 %v5977_v52  ;;  %v5979_v61 = vadd.f32 1e-06, %v5543_v30  ;;  %v17497_v30 = vld [vmem:[#allocation209_spill] sm:$0xff] }
 0xd6d   : > { %v5855_v19 = vadd.f32 %v17484_v50, %v17483_v56  ;;  %v6207_v7 = vpop.permute.xlu1 %6206  ;;  %v14603_v23 = vsel %vm17488_vm1, %v14464_v48, %v6229_v58  ;;  %v5545_v5 = vadd.f32 %v14326_v28, %v17491_v29  ;;  %v8654_v54 = vpop.eup %8653  ;;  %8671 = vrcp.f32 %v5986_v20  ;;  %v17492_v31 = vld [vmem:[#allocation479_spill] sm:$0xff]  ;;  %v17493_v50 = vld [vmem:[#allocation208_spill] sm:$0xff]  ;;  %v17498_v20 = vld [vmem:[#allocation158_spill] sm:$0xff] }
 0xd6e   : > { %v14607_v13 = vsel %vm17490_vm13, %v17489_v53, %v6207_v7  ;;  %6476 = vrot.lane.b32.xlu0 %v6040_v40, %s8915_s20  ;;  %v5988_v0 = vadd.f32 1e-06, %v5552_v33  ;;  %v5554_v48 = vadd.f32 %v14345_v10, %v17492_v31  ;;  %v6042_v58 = vmul.f32 %v8652_v39, %v5890_v44  ;;  %v8656_v56 = vpop.eup %8655  ;;  %v17494_v40 = vld [vmem:[#allocation472_spill] sm:$0xff]  ;;  %v17495_v17 = vld [vmem:[#allocation135_spill] sm:$0xff]  ;;  %v17500_v39 = vld [vmem:[#allocation217_spill] sm:$0xff]  ;;  %v14636_v44 = vpop.f32.mrf.mxu0 }
 0xd6f   : > { %v6033_v11 = vmul.f32 %v8650_v22, %v5855_v19  ;;  %8673 = vrcp.f32 %v1891_v9  ;;  %v1817_v7 = vadd.f32 %v7369_v14, %v17493_v50  ;;  %v5863_v38 = vadd.f32 %v17495_v17, %v17494_v40  ;;  %v17496_v52 = vld [vmem:[#allocation407_spill] sm:$0xff]  ;;  %v14622_v22 = vpop.eup %8657  ;;  %v17504_v17 = vld [vmem:[#allocation480_spill] sm:$0xff]  ;;  %vm17560_vm6 = vmmov %vm16985_vm0 }
 0xd70   : > { %v7948_v49 = vadd.f32 %v17497_v30, %v17496_v52  ;;  %v6233_v53 = vpop.permute.xlu0 %6232  ;;  %v5898_v33 = vadd.f32 %v17498_v20, %v7969_v59  ;;  %v17499_v10 = vld [vmem:[#allocation415_spill] sm:$0xff]  ;;  %8675 = vrcp.f32 %v5979_v61  ;;  %v5981_v29 = vadd.f32 1e-06, %v5545_v5  ;;  %v17507_v20 = vld [vmem:[#allocation146_spill] sm:$0xff]  ;;  %v17508_v5 = vld [vmem:[#allocation409_spill] sm:$0xff] }
 0xd71   : > { %6462 = vrot.lane.b32.xlu1 %v6033_v11, %s8915_s20  ;;  %v6211_v28 = vpop.permute.xlu1 %6210  ;;  %v7975_v19 = vadd.f32 %v17500_v39, %v17499_v10  ;;  %v14629_v9 = vsel %vm17501_vm15, %v14516_v36, %v6233_v53  ;;  %v17503_v11 = vld [vmem:[#allocation31_spill] sm:$0xff]  ;;  %v6035_v31 = vmul.f32 %v8654_v54, %v5863_v38  ;;  %v8660_v50 = vpop.eup %8659  ;;  %8677 = vrcp.f32 %v5988_v0  ;;  %v17505_v53 = vld [vmem:[#allocation294_spill] sm:$0xff]  ;;  %v17512_v38 = vld [vmem:[#allocation368_spill] sm:$0xff] }
 0xd72   : > { %v14633_v14 = vsel %vm17502_vm8, %v14230_v25, %v6211_v28  ;;  %6480 = vrot.lane.b32.xlu0 %v6042_v58, %s8915_s20  ;;  %v5547_v59 = vadd.f32 %v14347_v63, %v17503_v11  ;;  %v5990_v40 = vadd.f32 1e-06, %v5554_v48  ;;  %v5556_v36 = vadd.f32 %v14372_v1, %v17504_v17  ;;  %v8662_v30 = vpop.eup %8661  ;;  %v17506_v58 = vld [vmem:[#allocation295_spill] sm:$0xff]  ;;  %vm17571_vm7 = vmmov %vm16985_vm0 }
 0xd73   : > { %v6044_v52 = vmul.f32 %v8656_v56, %v5898_v33  ;;  %v1945_v25 = vmul.f32 %v14523_v26, %v1817_v7  ;;  %v7381_v28 = vadd.f32 %v17506_v58, %v17505_v53  ;;  %v5871_v61 = vadd.f32 %v7948_v49, %v17507_v20  ;;  %v17509_v10 = vld [vmem:[#allocation211_spill] sm:$0xff]  ;;  %v17511_v56 = vld [vmem:[#allocation417_spill] sm:$0xff]  ;;  %v14662_v49 = vpop.f32.mrf.mxu0  ;;  %vm17572_vm9 = vmmov %vm16985_vm0 }
 0xd74   : > { %v7954_v39 = vadd.f32 %v17509_v10, %v17508_v5  ;;  %v6237_v63 = vpop.permute.xlu0 %6236  ;;  %v14649_v0 = vpop.eup %8663  ;;  %v17510_v48 = vld [vmem:[#allocation175_spill] sm:$0xff]  ;;  %v7981_v33 = vadd.f32 %v17512_v38, %v17511_v56  ;;  %8679 = vrcp.f32 %v5981_v29  ;;  %v5983_v11 = vadd.f32 1e-06, %v5547_v59  ;;  %v17517_v20 = vld [vmem:[#allocation481_spill] sm:$0xff]  ;;  %v17522_v59 = vld [vmem:[#allocation404_spill] sm:$0xff] }
 0xd75   : > { %6466 = vrot.lane.b32.xlu1 %v6035_v31, %s8915_s20  ;;  %v6215_v54 = vpop.permute.xlu1 %6214  ;;  %v5906_v1 = vadd.f32 %v7975_v19, %v17510_v48  ;;  %v14655_v26 = vsel %vm17513_vm10, %v1943_v21, %v6237_v63  ;;  %v17516_v31 = vld [vmem:[#allocation32_spill] sm:$0xff]  ;;  %v6037_v19 = vmul.f32 %v8660_v50, %v5871_v61  ;;  %v8666_v53 = vpop.eup %8665  ;;  %8681 = vrcp.f32 %v5990_v40  ;;  %v17521_v56 = vld [vmem:[#allocation143_spill] sm:$0xff]  ;;  %v17524_v40 = vld [vmem:[#allocation170_spill] sm:$0xff] }
 0xd76   : > { %v14659_v7 = vsel %vm17514_vm5, %v14278_v51, %v6215_v54  ;;  %6484 = vrot.lane.b32.xlu0 %v6044_v52, %s8915_s20  ;;  %v5549_v17 = vadd.f32 %v14374_v24, %v17516_v31  ;;  %v5992_v58 = vadd.f32 1e-06, %v5556_v36  ;;  %v5558_v21 = vadd.f32 %v14396_v57, %v17517_v20  ;;  %v8668_v10 = vpop.eup %8667  ;;  %v17518_v51 = vld [vmem:[#allocation216_spill] sm:$0xff]  ;;  %v17519_v54 = vld [vmem:[#allocation298_spill] sm:$0xff]  ;;  %v17520_v52 = vld [vmem:[#allocation299_spill] sm:$0xff] }
 0xd77   : > { %17515 = vst [vmem:[#allocation414_spill] sm:$0xff] %v14659_v7  ;;  %v6046_v5 = vmul.f32 %v8662_v30, %v5906_v1  ;;  %v1833_v63 = vadd.f32 %v7381_v28, %v17518_v51  ;;  %v7387_v48 = vadd.f32 %v17520_v52, %v17519_v54  ;;  %v5879_v29 = vadd.f32 %v17521_v56, %v7954_v39  ;;  %v17523_v38 = vld [vmem:[#allocation111_spill] sm:$0xff]  ;;  %v17525_v57 = vld [vmem:[#allocation221_spill] sm:$0xff]  ;;  %v14686_v39 = vpop.f32.mrf.mxu0  ;;  %v17528_v31 = vld [vmem:[#allocation42_spill] sm:$0xff] }
 0xd78   : > { %v7960_v7 = vadd.f32 %v17523_v38, %v17522_v59  ;;  %v6241_v24 = vpop.permute.xlu0 %6240  ;;  %v5914_v36 = vadd.f32 %v17524_v40, %v7981_v33  ;;  %v7987_v30 = vadd.f32 %v17525_v57, %v14261_v55  ;;  %8683 = vrcp.f32 %v5983_v11  ;;  %v17529_v51 = vld [vmem:[#allocation482_spill] sm:$0xff]  ;;  %v17531_v59 = vld [vmem:[#allocation156_spill] sm:$0xff]  ;;  %v17532_v11 = vld [vmem:[#allocation359_spill] sm:$0xff] }
 0xd79   : > { %6470 = vrot.lane.b32.xlu1 %v6037_v19, %s8915_s20  ;;  %v6219_v50 = vpop.permute.xlu1 %6218  ;;  %v14679_v61 = vsel %vm17526_vm4, %v1945_v25, %v6241_v24  ;;  %v5985_v1 = vadd.f32 1e-06, %v5549_v17  ;;  %v5551_v19 = vadd.f32 %v14398_v2, %v17528_v31  ;;  %v6039_v33 = vmul.f32 %v8666_v53, %v5879_v29  ;;  %v8670_v20 = vpop.eup %8669  ;;  %v17530_v56 = vld [vmem:[#allocation214_spill] sm:$0xff]  ;;  %v17533_v17 = vld [vmem:[#allocation360_spill] sm:$0xff]  ;;  %v17538_v29 = vld [vmem:[#allocation473_spill] sm:$0xff] }
 0xd7a   : > { %v14683_v28 = vsel %vm17527_vm3, %v14341_v12, %v6219_v50  ;;  %6488 = vrot.lane.b32.xlu0 %v6046_v5, %s8915_s20  ;;  %8685 = vrcp.f32 %v5992_v58  ;;  %v5994_v55 = vadd.f32 1e-06, %v5558_v21  ;;  %v5560_v25 = vadd.f32 %v14420_v62, %v17529_v51  ;;  %v8672_v52 = vpop.eup %8671  ;;  %v17534_v58 = vld [vmem:[#allocation188_spill] sm:$0xff]  ;;  %vm17581_vm1 = vmmov %vm16985_vm0 }
 0xd7b   : > { %v6048_v54 = vmul.f32 %v8668_v10, %v5914_v36  ;;  %v1949_v12 = vmul.f32 %v14584_v45, %v1833_v63  ;;  %v1841_v5 = vadd.f32 %v17530_v56, %v7387_v48  ;;  %v5887_v38 = vadd.f32 %v7960_v7, %v17531_v59  ;;  %v17535_v10 = vld [vmem:[#allocation291_spill] sm:$0xff]  ;;  %v14712_v63 = vpop.f32.mrf.mxu0  ;;  %v17542_v56 = vld [vmem:[#allocation201_spill] sm:$0xff]  ;;  %vm17582_vm13 = vmmov %vm16985_vm0 }
 0xd7c   : > { %v7966_v24 = vadd.f32 %v17533_v17, %v17532_v11  ;;  %v6245_v50 = vpop.permute.xlu0 %6244  ;;  %v14698_v53 = vpop.eup %8673  ;;  %v5922_v21 = vadd.f32 %v7987_v30, %v17534_v58  ;;  %v7993_v62 = vadd.f32 %v14386_v6, %v14360_v37  ;;  %8687 = vrcp.f32 %v5985_v1  ;;  %v17539_v37 = vld [vmem:[#allocation301_spill] sm:$0xff]  ;;  %v17540_v6 = vld [vmem:[#allocation302_spill] sm:$0xff]  ;;  %v17543_v11 = vld [vmem:[#allocation152_spill] sm:$0xff] }
 0xd7d   : > { %6474 = vrot.lane.b32.xlu1 %v6039_v33, %s8915_s20  ;;  %v6223_v2 = vpop.permute.xlu1 %6222  ;;  %v14705_v45 = vsel %vm17536_vm11, %v17535_v10, %v6245_v50  ;;  %v5987_v48 = vadd.f32 1e-06, %v5551_v19  ;;  %v5553_v40 = vadd.f32 %v14422_v60, %v17538_v29  ;;  %v6041_v36 = vmul.f32 %v8670_v20, %v5887_v38  ;;  %v8676_v57 = vpop.eup %8675  ;;  %v17544_v19 = vld [vmem:[#allocation319_spill] sm:$0xff]  ;;  %v17545_v17 = vld [vmem:[#allocation365_spill] sm:$0xff]  ;;  %v17549_v10 = vld [vmem:[#allocation224_spill] sm:$0xff] }
 0xd7e   : > { %v14709_v7 = vsel %vm17537_vm12, %v14377_v46, %v6223_v2  ;;  %6492 = vrot.lane.b32.xlu0 %v6048_v54, %s8915_s20  ;;  %v7393_v30 = vadd.f32 %v17540_v6, %v17539_v37  ;;  %8689 = vrcp.f32 %v5994_v55  ;;  %v5996_v31 = vadd.f32 1e-06, %v5560_v25  ;;  %v8678_v51 = vpop.eup %8677  ;;  %v17541_v46 = vld [vmem:[#allocation277_spill] sm:$0xff]  ;;  %v17546_v38 = vld [vmem:[#allocation183_spill] sm:$0xff]  ;;  %vm17590_vm15 = vmmov %vm16985_vm0 }
 0xd7f   : > { %v6050_v33 = vmul.f32 %v8672_v52, %v5922_v21  ;;  %v1806_v59 = vadd.f32 %v17542_v56, %v17541_v46  ;;  %v1951_v54 = vmul.f32 %v14622_v22, %v1841_v5  ;;  %v5895_v1 = vadd.f32 %v17543_v11, %v7966_v24  ;;  %v14736_v52 = vpop.f32.mrf.mxu0  ;;  %v17548_v24 = vld [vmem:[#allocation474_spill] sm:$0xff]  ;;  %v17552_v37 = vld [vmem:[#allocation293_spill] sm:$0xff]  ;;  %v17553_v6 = vld [vmem:[#allocation191_spill] sm:$0xff] }
 0xd80   : > { %v7972_v50 = vadd.f32 %v17545_v17, %v17544_v19  ;;  %v6249_v60 = vpop.permute.xlu0 %6248  ;;  %v5930_v2 = vadd.f32 %v17546_v38, %v7993_v62  ;;  %v7999_v55 = vadd.f32 %v14483_v16, %v14458_v35  ;;  %8691 = vrcp.f32 %v5987_v48  ;;  %v17550_v16 = vld [vmem:[#allocation309_spill] sm:$0xff]  ;;  %v17554_v46 = vld [vmem:[#allocation358_spill] sm:$0xff]  ;;  %v17557_v19 = vld [vmem:[#allocation127_spill] sm:$0xff] }
 0xd81   : > { %6478 = vrot.lane.b32.xlu1 %v6041_v36, %s8915_s20  ;;  %v6227_v20 = vpop.permute.xlu1 %6226  ;;  %v14729_v25 = vsel %vm16985_vm0, %v1949_v12, %v6249_v60  ;;  %v5989_v5 = vadd.f32 1e-06, %v5553_v40  ;;  %v5555_v58 = vadd.f32 %v14444_v32, %v17548_v24  ;;  %v6043_v21 = vmul.f32 %v8676_v57, %v5895_v1  ;;  %v8680_v62 = vpop.eup %8679  ;;  %v17551_v12 = vld [vmem:[#allocation310_spill] sm:$0xff]  ;;  %v17555_v48 = vld [vmem:[#allocation169_spill] sm:$0xff]  ;;  %v17558_v1 = vld [vmem:[#allocation56_spill] sm:$0xff] }
 0xd82   : > { %v14733_v22 = vsel %vm17547_vm14, %v14425_v27, %v6227_v20  ;;  %6496 = vrot.lane.b32.xlu0 %v6050_v33, %s8915_s20  ;;  %v1849_v35 = vadd.f32 %v7393_v30, %v17549_v10  ;;  %v7399_v29 = vadd.f32 %v17551_v12, %v17550_v16  ;;  %8693 = vrcp.f32 %v5996_v31  ;;  %v8682_v27 = vpop.eup %8681  ;;  %v17556_v11 = vld [vmem:[#allocation406_spill] sm:$0xff]  ;;  %v17561_v20 = vld [vmem:[#allocation475_spill] sm:$0xff]  ;;  %vm17595_vm8 = vmmov %vm16985_vm0 }
 0xd83   : > { %v6052_v36 = vmul.f32 %v8678_v51, %v5930_v2  ;;  %v1500_v33 = vadd.f32 %v17553_v6, %v17552_v37  ;;  %v1942_v56 = vmul.f32 %v17554_v46, %v1806_v59  ;;  %v5903_v40 = vadd.f32 %v7972_v50, %v17555_v48  ;;  %v8015_v50 = vpop.f32.mrf.mxu0  ;;  %v17562_v24 = vld [vmem:[#allocation206_spill] sm:$0xff]  ;;  %v17565_v37 = vld [vmem:[#allocation296_spill] sm:$0xff]  ;;  %v17569_v48 = vld [vmem:[#allocation315_spill] sm:$0xff] }
 0xd84   : > { %v7978_v32 = vadd.f32 %v17557_v19, %v17556_v11  ;;  %v6253_v57 = vpop.permute.xlu0 %6252  ;;  %v5938_v17 = vadd.f32 %v7999_v55, %v17558_v1  ;;  %v8005_v31 = vadd.f32 %v14586_v42, %v14560_v18  ;;  %8695 = vrcp.f32 %v5989_v5  ;;  %v17567_v5 = vld [vmem:[#allocation164_spill] sm:$0xff]  ;;  %v17568_v46 = vld [vmem:[#allocation130_spill] sm:$0xff]  ;;  %vm17600_vm10 = vmmov %vm16985_vm0 }
 0xd85   : > { %6482 = vrot.lane.b32.xlu1 %v6043_v21, %s8915_s20  ;;  %v6231_v30 = vpop.permute.xlu1 %6230  ;;  %v14754_v51 = vsel %vm17559_vm2, %v1951_v54, %v6253_v57  ;;  %v5991_v60 = vadd.f32 1e-06, %v5555_v58  ;;  %v5557_v38 = vadd.f32 %v14473_v41, %v17561_v20  ;;  %v6045_v2 = vmul.f32 %v8680_v62, %v5903_v40  ;;  %v8684_v55 = vpop.eup %8683  ;;  %v17563_v21 = vld [vmem:[#allocation283_spill] sm:$0xff]  ;;  %v17564_v54 = vld [vmem:[#allocation222_spill] sm:$0xff]  ;;  %v17570_v11 = vld [vmem:[#allocation196_spill] sm:$0xff] }
 0xd86   : > { %v14758_v59 = vsel %vm17560_vm6, %v14490_v3, %v6231_v30  ;;  %6500 = vrot.lane.b32.xlu0 %v6052_v36, %s8915_s20  ;;  %v1814_v18 = vadd.f32 %v17563_v21, %v17562_v24  ;;  %v1953_v42 = vmul.f32 %v14649_v0, %v1849_v35  ;;  %v1857_v10 = vadd.f32 %v17564_v54, %v7399_v29  ;;  %v17566_v36 = vld [vmem:[#allocation195_spill] sm:$0xff]  ;;  %v17575_v20 = vld [vmem:[#allocation288_spill] sm:$0xff]  ;;  %vm17604_vm5 = vmmov %vm16985_vm0 }
 0xd87   : > { %v6054_v16 = vmul.f32 %v8682_v27, %v5938_v17  ;;  %v8686_v3 = vpop.eup %8685  ;;  %v1888_v12 = vadd.f32 1e-06, %v1500_v33  ;;  %v1502_v6 = vadd.f32 %v17566_v36, %v17565_v37  ;;  %v5911_v58 = vadd.f32 %v17567_v5, %v7978_v32  ;;  %v8016_v27 = vpop.f32.mrf.mxu0  ;;  %v17573_v32 = vld [vmem:[#allocation476_spill] sm:$0xff]  ;;  %v17574_v17 = vld [vmem:[#allocation362_spill] sm:$0xff]  ;;  %vm17606_vm4 = vmmov %vm16985_vm0 }
 0xd88   : > { %v7984_v41 = vadd.f32 %v17569_v48, %v17568_v46  ;;  %v6257_v62 = vpop.permute.xlu0 %6256  ;;  %v5946_v19 = vadd.f32 %v17570_v11, %v8005_v31  ;;  %v8011_v0 = vadd.f32 %v14686_v39, %v14662_v49  ;;  %8697 = vrcp.f32 %v5991_v60  ;;  %v17576_v49 = vld [vmem:[#allocation205_spill] sm:$0xff]  ;;  %v17578_v60 = vld [vmem:[#allocation363_spill] sm:$0xff]  ;;  %v17584_v46 = vld [vmem:[#allocation212_spill] sm:$0xff] }
 0xd89   : > { %6486 = vrot.lane.b32.xlu1 %v6045_v2, %s8915_s20  ;;  %v6235_v40 = vpop.permute.xlu1 %6234  ;;  %v14777_v35 = vsel %vm17571_vm7, %v1953_v42, %v6257_v62  ;;  %v5993_v33 = vadd.f32 1e-06, %v5557_v38  ;;  %v5559_v57 = vadd.f32 %v14498_v4, %v17573_v32  ;;  %v6047_v30 = vmul.f32 %v8684_v55, %v5911_v58  ;;  %v8688_v1 = vpop.eup %8687  ;;  %v17577_v42 = vld [vmem:[#allocation182_spill] sm:$0xff]  ;;  %v17579_v38 = vld [vmem:[#allocation329_spill] sm:$0xff]  ;;  %v17580_v55 = vld [vmem:[#allocation80_spill] sm:$0xff] }
 0xd8a   : > { %v14780_v29 = vsel %vm17572_vm9, %v1942_v56, %v6235_v40  ;;  %6504 = vrot.lane.b32.xlu0 %v6054_v16, %s8915_s20  ;;  %v1944_v31 = vmul.f32 %v17574_v17, %v1814_v18  ;;  %v1822_v39 = vadd.f32 %v17576_v49, %v17575_v20  ;;  %v1955_v2 = vmul.f32 %v14698_v53, %v1857_v10  ;;  %v17585_v48 = vld [vmem:[#allocation292_spill] sm:$0xff] }
 0xd8b   : > { %v6056_v24 = vmul.f32 %v8686_v3, %v5946_v19  ;;  %v8690_v56 = vpop.eup %8689  ;;  %8699 = vrcp.f32 %v1888_v12  ;;  %v1890_v21 = vadd.f32 1e-06, %v1502_v6  ;;  %v5919_v54 = vadd.f32 %v7984_v41, %v17577_v42  ;;  %v17583_v6 = vld [vmem:[#allocation371_spill] sm:$0xff]  ;;  %v17587_v19 = vld [vmem:[#allocation361_spill] sm:$0xff]  ;;  %v17591_v20 = vld [vmem:[#allocation372_spill] sm:$0xff] }
 0xd8c   : > { %v7990_v16 = vadd.f32 %v17579_v38, %v17578_v60  ;;  %v6261_v37 = vpop.permute.xlu0 %6260  ;;  %v5954_v18 = vadd.f32 %v8011_v0, %v17580_v55  ;;  %v8017_v36 = vadd.f32 %v8016_v27, %v8015_v50  ;;  %8701 = vrcp.f32 %v5993_v33  ;;  %v17586_v50 = vld [vmem:[#allocation177_spill] sm:$0xff]  ;;  %v17588_v0 = vld [vmem:[#allocation311_spill] sm:$0xff]  ;;  %v17594_v42 = vld [vmem:[#allocation194_spill] sm:$0xff] }
 0xd8d   : > { %6490 = vrot.lane.b32.xlu1 %v6047_v30, %s8915_s20  ;;  %v6239_v4 = vpop.permute.xlu1 %6238  ;;  %v14795_v5 = vsel %vm17581_vm1, %v1955_v2, %v6261_v37  ;;  %v5995_v10 = vadd.f32 1e-06, %v5559_v57  ;;  %v6049_v3 = vmul.f32 %v8688_v1, %v5919_v54  ;;  %v8692_v12 = vpop.eup %8691  ;;  %v1946_v58 = vmul.f32 %v17583_v6, %v1822_v39  ;;  %v17589_v57 = vld [vmem:[#allocation72_spill] sm:$0xff]  ;;  %v17592_v39 = vld [vmem:[#allocation297_spill] sm:$0xff]  ;;  %v17593_v2 = vld [vmem:[#allocation210_spill] sm:$0xff] }
 0xd8e   : > { %v14798_v53 = vsel %vm17582_vm13, %v1944_v31, %v6239_v4  ;;  %6508 = vrot.lane.b32.xlu0 %v6056_v24, %s8915_s20  ;;  %v1830_v41 = vadd.f32 %v17585_v48, %v17584_v46  ;;  %v6058_v62 = vmul.f32 %v8690_v56, %v5954_v18  ;;  %v5927_v11 = vadd.f32 %v17586_v50, %v7990_v16  ;;  %v17596_v55 = vld [vmem:[#allocation122_spill] sm:$0xff] }
 0xd8f   : > { %v8694_v40 = vpop.eup %8693  ;;  %v7996_v27 = vadd.f32 %v17588_v0, %v17587_v19  ;;  %8703 = vrcp.f32 %v1890_v21  ;;  %v5962_v30 = vadd.f32 %v17589_v57, %v8017_v36  ;;  %v1838_v24 = vadd.f32 %v17593_v2, %v17592_v39  ;;  %v17597_v36 = vld [vmem:[#allocation220_spill] sm:$0xff]  ;;  %v17601_v50 = vld [vmem:[#allocation110_spill] sm:$0xff]  ;;  %v17603_v0 = vld [vmem:[#allocation65_spill] sm:$0xff] }
 0xd90   : > { %v14807_v32 = vpop.permute.xlu0 %6328  ;;  %8705 = vrcp.f32 %v5995_v10  ;;  %v6051_v17 = vmul.f32 %v8692_v12, %v5927_v11  ;;  %v1948_v49 = vmul.f32 %v17591_v20, %v1830_v41  ;;  %v8002_v21 = vadd.f32 %v14537_v34, %v14510_v43  ;;  %v17598_v10 = vld [vmem:[#allocation300_spill] sm:$0xff]  ;;  %v17599_v12 = vld [vmem:[#allocation189_spill] sm:$0xff]  ;;  %v17602_v11 = vld [vmem:[#allocation218_spill] sm:$0xff] }
 0xd91   : > { %6494 = vrot.lane.b32.xlu1 %v6049_v3, %s8915_s20  ;;  %v6243_v33 = vpop.permute.xlu1 %6242  ;;  %v8696_v31 = vpop.eup %8695  ;;  %v6060_v56 = vmul.f32 %v8694_v40, %v5962_v30  ;;  %v5935_v54 = vadd.f32 %v7996_v27, %v17594_v42  ;;  %v1950_v18 = vmul.f32 %v17596_v55, %v1838_v24  ;;  %v1846_v3 = vadd.f32 %v17598_v10, %v17597_v36 }
 0xd92   : > { %v14812_v1 = vsel %vm17590_vm15, %v1946_v58, %v6243_v33  ;;  %6512 = vrot.lane.b32.xlu0 %v6058_v62, %s8915_s20  ;;  %v5943_v6 = vadd.f32 %v17599_v12, %v8002_v21  ;;  %v8008_v43 = vadd.f32 %v14636_v44, %v14610_v8  ;;  %v1854_v19 = vadd.f32 %v17602_v11, %v17601_v50 }
 0xd93   : > { %v6053_v37 = vmul.f32 %v8696_v31, %v5935_v54  ;;  %v8014_v33 = vadd.f32 %v14736_v52, %v14712_v63  ;;  %vm6582_vm3 = vcmask 523264   ;;  %vm6615_vm11 = vcmask 785408  }
 0xd94   : > { %v14821_v60 = vpop.permute.xlu0 %6332  ;;  %v5951_v27 = vadd.f32 %v8008_v43, %v17603_v0 }
 0xd95   : > { %6498 = vrot.lane.b32.xlu1 %v6051_v17, %s8915_s20  ;;  %v6247_v38 = vpop.permute.xlu1 %6246  ;;  %v8698_v4 = vpop.eup %8697 }
 0xd96   : > { %v14825_v16 = vsel %vm17595_vm8, %v1948_v49, %v6247_v38  ;;  %6516 = vrot.lane.b32.xlu0 %v6060_v56, %s8915_s20  ;;  %v6055_v41 = vmul.f32 %v8698_v4, %v5943_v6  ;;  %v17605_v49 = vld [vmem:[#allocation60_spill] sm:$0xff] }
 0xd97   : > { %v5959_v39 = vadd.f32 %v17605_v49, %v8014_v33  ;;  %v17608_v49 = vld [vmem:[#allocation316_spill] sm:$0xff] }
 0xd98   : > { %v6337_v34 = vpop.permute.xlu0 %6336  ;;  %v8700_v46 = vpop.eup %8699 }
 0xd99   : > { %6502 = vrot.lane.b32.xlu1 %v6053_v37, %s8915_s20  ;;  %v6251_v58 = vpop.permute.xlu1 %6250  ;;  %v8702_v62 = vpop.eup %8701  ;;  %v1952_v40 = vmul.f32 %v8700_v46, %v1846_v3 }
 0xd9a   : > { %v14836_v48 = vsel %vm17600_vm10, %v1950_v18, %v6251_v58  ;;  %v6057_v17 = vmul.f32 %v8702_v62, %v5951_v27 }
 0xd9c   : > { %v6341_v8 = vpop.permute.xlu0 %6340  ;;  %v8704_v30 = vpop.eup %8703 }
 0xd9d   : > { %6506 = vrot.lane.b32.xlu1 %v6055_v41, %s8915_s20  ;;  %v6255_v44 = vpop.permute.xlu1 %6254  ;;  %v8706_v31 = vpop.eup %8705  ;;  %v1954_v20 = vmul.f32 %v8704_v30, %v1854_v19  ;;  %v17607_v19 = vld [vmem:[#allocation412_spill] sm:$0xff]  ;;  %v6586_v30 = vsel %vm6582_vm3, %v14581_v15, %v14821_v60 }
 0xd9e   : > { %v14845_v57 = vsel %vm17604_vm5, %v1952_v40, %v6255_v44  ;;  %v6059_v63 = vmul.f32 %v8706_v31, %v5959_v39  ;;  %v6584_v0 = vsel %vm6582_vm3, %v17607_v19, %v14807_v32  ;;  %v6588_v32 = vsel %vm6582_vm3, %v17608_v49, %v6337_v34  ;;  %v17609_v19 = vld [vmem:[#allocation223_spill] sm:$0xff]  ;;  %v17611_v49 = vld [vmem:[#allocation345_spill] sm:$0xff] }
 0xda0   : > { %v6345_v2 = vpop.permute.xlu0 %6344 }
 0xda1   : > { %6510 = vrot.lane.b32.xlu1 %v6057_v17, %s8915_s20  ;;  %v6259_v24 = vpop.permute.xlu1 %6258 }
 0xda2   : > { %v14850_v56 = vsel %vm17606_vm4, %v1954_v20, %v6259_v24 }
 0xda4   : > { %v6349_v52 = vpop.permute.xlu0 %6348 }
 0xda5   : > { %6514 = vrot.lane.b32.xlu1 %v6059_v63, %s8915_s20  ;;  %v6327_v42 = vpop.permute.xlu1 %6326 }
 0xda8   : > { %v6353_v54 = vpop.permute.xlu0 %6352 }
 0xda9   : > { %v6331_v21 = vpop.permute.xlu1 %6330 }
 0xdac   : > { %v6357_v38 = vpop.permute.xlu0 %6356 }
 0xdad   : > { %v6335_v37 = vpop.permute.xlu1 %6334 }
 0xdb0   : > { %v14853_v4 = vpop.permute.xlu0 %6360 }
 0xdb1   : > { %v14855_v55 = vpop.permute.xlu1 %6338 }
 0xdb4   : > { %v14857_v18 = vpop.permute.xlu0 %6364 }
 0xdb5   : > { %v14859_v36 = vpop.permute.xlu1 %6342 }
 0xdb8   : > { %v14861_v10 = vpop.permute.xlu0 %6368 }
 0xdb9   : > { %v14863_v3 = vpop.permute.xlu1 %6346 }
 0xdbc   : > { %v14865_v12 = vpop.permute.xlu0 %6372 }
 0xdbd   : > { %v14867_v6 = vpop.permute.xlu1 %6350 }
 0xdc0   : > { %v14869_v43 = vpop.permute.xlu0 %6376 }
 0xdc1   : > { %v14871_v58 = vpop.permute.xlu1 %6354 }
 0xdc4   : > { %v14873_v46 = vpop.permute.xlu0 %6380 }
 0xdc5   : > { %v14875_v41 = vpop.permute.xlu1 %6358 }
 0xdc8   : > { %v14877_v62 = vpop.permute.xlu0 %6384 }
 0xdc9   : > { %v14879_v40 = vpop.permute.xlu1 %6362 }
 0xdcc   : > { %v14881_v50 = vpop.permute.xlu0 %6388 }
 0xdcd   : > { %v14883_v11 = vpop.permute.xlu1 %6366 }
 0xdd0   : > { %v6457_v27 = vpop.permute.xlu0 %6456 }
 0xdd1   : > { %v14888_v33 = vpop.permute.xlu1 %6370  ;;  %v6617_v44 = vsel %vm6615_vm11, %v6584_v0, %v6457_v27  ;;  %v6590_v0 = vsel %vm6582_vm3, %v17609_v19, %v6341_v8  ;;  %v6594_v8 = vsel %vm6582_vm3, %v14553_v47, %v6349_v52 }
 0xdd2   : > { %6649 = vst [vmem:[%s9118_s22 + $0x8] sm:$0xff] %v6617_v44  ;;  %v17610_v44 = vld [vmem:[#allocation317_spill] sm:$0xff] }
 0xdd3   : > { %v6592_v34 = vsel %vm6582_vm3, %v17610_v44, %v6345_v2 }
 0xdd4   : > { %v6461_v17 = vpop.permute.xlu0 %6460 }
 0xdd5   : > { %v14895_v31 = vpop.permute.xlu1 %6374  ;;  %v6619_v20 = vsel %vm6615_vm11, %v6586_v30, %v6461_v17 }
 0xdd6   : > { %6651 = vst [vmem:[%s9118_s22 + $0x18] sm:$0xff] %v6619_v20 }
 0xdd8   : > { %v6465_v39 = vpop.permute.xlu0 %6464 }
 0xdd9   : > { %v14901_v24 = vpop.permute.xlu1 %6378  ;;  %v6621_v63 = vsel %vm6615_vm11, %v6588_v32, %v6465_v39  ;;  %v6583_v32 = vsel %vm6582_vm3, %v17611_v49, %v6327_v42 }
 0xdda   : > { %6653 = vst [vmem:[%s9118_s22 + $0x28] sm:$0xff] %v6621_v63 }
 0xddc   : > { %v6469_v15 = vpop.permute.xlu0 %6468 }
 0xddd   : > { %v14907_v60 = vpop.permute.xlu1 %6382  ;;  %v6623_v27 = vsel %vm6615_vm11, %v6590_v0, %v6469_v15  ;;  %v17612_v0 = vld [vmem:[#allocation375_spill] sm:$0xff] }
 0xdde   : > { %6655 = vst [vmem:[%s9118_s22 + $0x38] sm:$0xff] %v6623_v27  ;;  %v6596_v15 = vsel %vm6582_vm3, %v17612_v0, %v6353_v54  ;;  %v17613_v27 = vld [vmem:[#allocation374_spill] sm:$0xff]  ;;  %v6604_v0 = vsel %vm6582_vm3, %v14679_v61, %v14861_v10  ;;  %v6595_v61 = vsel %vm6582_vm3, %v14709_v7, %v14867_v6 }
 0xddf   : > { %v6585_v44 = vsel %vm6582_vm3, %v17613_v27, %v6331_v21 }
 0xde0   : > { %v6473_v30 = vpop.permute.xlu0 %6472 }
 0xde1   : > { %v14913_v17 = vpop.permute.xlu1 %6386  ;;  %v6625_v20 = vsel %vm6615_vm11, %v6592_v34, %v6473_v30  ;;  %v6598_v30 = vsel %vm6582_vm3, %v14603_v23, %v6357_v38  ;;  %v6589_v23 = vsel %vm6582_vm3, %v14633_v14, %v14855_v55 }
 0xde2   : > { %6657 = vst [vmem:[%s9118_s22 + $0x48] sm:$0xff] %v6625_v20  ;;  %v6587_v20 = vsel %vm6582_vm3, %v14607_v13, %v6335_v37 }
 0xde4   : > { %v6477_v39 = vpop.permute.xlu0 %6476 }
 0xde5   : > { %v6455_v63 = vpop.permute.xlu1 %6454  ;;  %v6627_v19 = vsel %vm6615_vm11, %v6594_v8, %v6477_v39 }
 0xde6   : > { %v6616_v2 = vsel %vm6615_vm11, %v6583_v32, %v6455_v63  ;;  %6659 = vst [vmem:[%s9118_s22 + $0x58] sm:$0xff] %v6627_v19  ;;  %v6600_v32 = vsel %vm6582_vm3, %v14629_v9, %v14853_v4  ;;  %v6602_v63 = vsel %vm6582_vm3, %v14655_v26, %v14857_v18  ;;  %v17614_v9 = vld [vmem:[#allocation414_spill] sm:$0xff]  ;;  %v6593_v26 = vsel %vm6582_vm3, %v14683_v28, %v14863_v3 }
 0xde7   : > { %6648 = vst [vmem:[%s9118_s22] sm:$0xff] %v6616_v2  ;;  %v6591_v4 = vsel %vm6582_vm3, %v17614_v9, %v14859_v36 }
 0xde8   : > { %v6481_v47 = vpop.permute.xlu0 %6480 }
 0xde9   : > { %v6459_v52 = vpop.permute.xlu1 %6458  ;;  %v6629_v42 = vsel %vm6615_vm11, %v6596_v15, %v6481_v47 }
 0xdea   : > { %v6618_v34 = vsel %vm6615_vm11, %v6585_v44, %v6459_v52  ;;  %6661 = vst [vmem:[%s9118_s22 + $0x68] sm:$0xff] %v6629_v42  ;;  %v6606_v44 = vsel %vm6582_vm3, %v14705_v45, %v14865_v12  ;;  %v6608_v52 = vsel %vm6582_vm3, %v14729_v25, %v14869_v43  ;;  %v6597_v45 = vsel %vm6582_vm3, %v14733_v22, %v14871_v58 }
 0xdeb   : > { %6650 = vst [vmem:[%s9118_s22 + $0x10] sm:$0xff] %v6618_v34  ;;  %v6610_v34 = vsel %vm6582_vm3, %v14754_v51, %v14873_v46  ;;  %v6599_v25 = vsel %vm6582_vm3, %v14758_v59, %v14875_v41  ;;  %v6601_v51 = vsel %vm6582_vm3, %v14780_v29, %v14879_v40 }
 0xdec   : > { %v6485_v54 = vpop.permute.xlu0 %6484 }
 0xded   : > { %v6463_v8 = vpop.permute.xlu1 %6462  ;;  %v6631_v21 = vsel %vm6615_vm11, %v6598_v30, %v6485_v54 }
 0xdee   : > { %v6620_v49 = vsel %vm6615_vm11, %v6587_v20, %v6463_v8  ;;  %6663 = vst [vmem:[%s9118_s22 + $0x78] sm:$0xff] %v6631_v21  ;;  %v6612_v20 = vsel %vm6582_vm3, %v14777_v35, %v14877_v62  ;;  %v6614_v8 = vsel %vm6582_vm3, %v14795_v5, %v14881_v50  ;;  %v6603_v35 = vsel %vm6582_vm3, %v14798_v53, %v14883_v11 }
 0xdef   : > { %6652 = vst [vmem:[%s9118_s22 + $0x20] sm:$0xff] %v6620_v49  ;;  %v6605_v49 = vsel %vm6582_vm3, %v14812_v1, %v14888_v33  ;;  %v6607_v53 = vsel %vm6582_vm3, %v14825_v16, %v14895_v31  ;;  %v6609_v1 = vsel %vm6582_vm3, %v14836_v48, %v14901_v24  ;;  %v6611_v16 = vsel %vm6582_vm3, %v14845_v57, %v14907_v60 }
 0xdf0   : > { %v6489_v38 = vpop.permute.xlu0 %6488  ;;  %v6613_v48 = vsel %vm6582_vm3, %v14850_v56, %v14913_v17 }
 0xdf1   : > { %v6467_v13 = vpop.permute.xlu1 %6466  ;;  %v6633_v37 = vsel %vm6615_vm11, %v6600_v32, %v6489_v38 }
 0xdf2   : > { %v6622_v39 = vsel %vm6615_vm11, %v6589_v23, %v6467_v13  ;;  %6665 = vst [vmem:[%s9118_s22 + $0x88] sm:$0xff] %v6633_v37 }
 0xdf3   : > { %6654 = vst [vmem:[%s9118_s22 + $0x30] sm:$0xff] %v6622_v39 }
 0xdf4   : > { %v6493_v19 = vpop.permute.xlu0 %6492 }
 0xdf5   : > { %v6471_v14 = vpop.permute.xlu1 %6470  ;;  %v6635_v55 = vsel %vm6615_vm11, %v6602_v63, %v6493_v19 }
 0xdf6   : > { %v6624_v2 = vsel %vm6615_vm11, %v6591_v4, %v6471_v14  ;;  %6667 = vst [vmem:[%s9118_s22 + $0x98] sm:$0xff] %v6635_v55 }
 0xdf7   : > { %6656 = vst [vmem:[%s9118_s22 + $0x40] sm:$0xff] %v6624_v2 }
 0xdf8   : > { %v6497_v18 = vpop.permute.xlu0 %6496 }
 0xdf9   : > { %v6475_v36 = vpop.permute.xlu1 %6474  ;;  %v6637_v15 = vsel %vm6615_vm11, %v6604_v0, %v6497_v18 }
 0xdfa   : > { %v6626_v27 = vsel %vm6615_vm11, %v6593_v26, %v6475_v36  ;;  %6669 = vst [vmem:[%s9118_s22 + $0xa8] sm:$0xff] %v6637_v15 }
 0xdfb   : > { %6658 = vst [vmem:[%s9118_s22 + $0x50] sm:$0xff] %v6626_v27 }
 0xdfc   : > { %v6501_v10 = vpop.permute.xlu0 %6500 }
 0xdfd   : > { %v6479_v28 = vpop.permute.xlu1 %6478  ;;  %v6639_v3 = vsel %vm6615_vm11, %v6606_v44, %v6501_v10 }
 0xdfe   : > { %v6628_v47 = vsel %vm6615_vm11, %v6595_v61, %v6479_v28  ;;  %6671 = vst [vmem:[%s9118_s22 + $0xb8] sm:$0xff] %v6639_v3 }
 0xdff   : > { %6660 = vst [vmem:[%s9118_s22 + $0x60] sm:$0xff] %v6628_v47 }
 0xe00   : > { %v6505_v12 = vpop.permute.xlu0 %6504 }
 0xe01   : > { %v6483_v7 = vpop.permute.xlu1 %6482  ;;  %v6641_v6 = vsel %vm6615_vm11, %v6608_v52, %v6505_v12 }
 0xe02   : > { %v6630_v42 = vsel %vm6615_vm11, %v6597_v45, %v6483_v7  ;;  %6673 = vst [vmem:[%s9118_s22 + $0xc8] sm:$0xff] %v6641_v6 }
 0xe03   : > { %6662 = vst [vmem:[%s9118_s22 + $0x70] sm:$0xff] %v6630_v42 }
 0xe04   : > { %v6509_v43 = vpop.permute.xlu0 %6508 }
 0xe05   : > { %v6487_v22 = vpop.permute.xlu1 %6486  ;;  %v6643_v58 = vsel %vm6615_vm11, %v6610_v34, %v6509_v43 }
 0xe06   : > { %v6632_v30 = vsel %vm6615_vm11, %v6599_v25, %v6487_v22  ;;  %6675 = vst [vmem:[%s9118_s22 + $0xd8] sm:$0xff] %v6643_v58 }
 0xe07   : > { %6664 = vst [vmem:[%s9118_s22 + $0x80] sm:$0xff] %v6632_v30 }
 0xe08   : > { %v6513_v46 = vpop.permute.xlu0 %6512 }
 0xe09   : > { %v6491_v59 = vpop.permute.xlu1 %6490  ;;  %v6645_v41 = vsel %vm6615_vm11, %v6612_v20, %v6513_v46 }
 0xe0a   : > { %v6634_v54 = vsel %vm6615_vm11, %v6601_v51, %v6491_v59  ;;  %6677 = vst [vmem:[%s9118_s22 + $0xe8] sm:$0xff] %v6645_v41 }
 0xe0b   : > { %6666 = vst [vmem:[%s9118_s22 + $0x90] sm:$0xff] %v6634_v54 }
 0xe0c   : > { %v6517_v29 = vpop.permute.xlu0 %6516 }
 0xe0d   : > { %v6495_v62 = vpop.permute.xlu1 %6494  ;;  %v6647_v40 = vsel %vm6615_vm11, %v6614_v8, %v6517_v29 }
 0xe0e   : > { %v6636_v21 = vsel %vm6615_vm11, %v6603_v35, %v6495_v62  ;;  %6679 = vst [vmem:[%s9118_s22 + $0xf8] sm:$0xff] %v6647_v40 }
 0xe0f   : > { %6668 = vst [vmem:[%s9118_s22 + $0xa0] sm:$0xff] %v6636_v21 }
 0xe11   : > { %v6499_v5 = vpop.permute.xlu1 %6498 }
 0xe12   : > { %v6638_v50 = vsel %vm6615_vm11, %v6605_v49, %v6499_v5 }
 0xe13   : > { %6670 = vst [vmem:[%s9118_s22 + $0xb0] sm:$0xff] %v6638_v50 }
 0xe15   : > { %v6503_v11 = vpop.permute.xlu1 %6502 }
 0xe16   : > { %v6640_v32 = vsel %vm6615_vm11, %v6607_v53, %v6503_v11 }
 0xe17   : > { %6672 = vst [vmem:[%s9118_s22 + $0xc0] sm:$0xff] %v6640_v32 }
 0xe19   : > { %v6507_v33 = vpop.permute.xlu1 %6506 }
 0xe1a   : > { %v6642_v23 = vsel %vm6615_vm11, %v6609_v1, %v6507_v33 }
 0xe1b   : > { %6674 = vst [vmem:[%s9118_s22 + $0xd0] sm:$0xff] %v6642_v23 }
 0xe1d   : > { %v6511_v31 = vpop.permute.xlu1 %6510 }
 0xe1e   : > { %v6644_v38 = vsel %vm6615_vm11, %v6611_v16, %v6511_v31 }
 0xe1f   : > { %6676 = vst [vmem:[%s9118_s22 + $0xe0] sm:$0xff] %v6644_v38 }
 0xe21   : > { %v6515_v57 = vpop.permute.xlu1 %6514 }
 0xe22   : > { %v6646_v24 = vsel %vm6615_vm11, %v6613_v48, %v6515_v57 }
 0xe23   : > { %6678 = vst [vmem:[%s9118_s22 + $0xf0] sm:$0xff] %v6646_v24 }
 0xe24   : > { %8820 = shalt.err (!%p8817_p5)
}
 0xe25   : > { %s8821_s21 = scalar_lea.hbm %s15047_s23, 4096  ;;  %s8825_s26 = scalar_lea.hbm %s15110_s3, 16384 }
 0xe26   : > { %p8822_p6 = scmp.ne.s32.totalorder %s15047_s23, %s8821_s21  ;;  %p8826_p10 = scmp.lt.s32.totalorder %s15047_s23, %s15110_s3 }
 0xe27   : > { %p8827_p0 = scmp.lt.s32.totalorder %s8825_s26, %s8821_s21 }
 0xe28   : > { %p8823_p1 = pnand %p8822_p6, %p9011_p9 }
 0xe29   : > { %p8828_p8 = por %p8827_p0, %p8826_p10 }
 0xe2a   : > { %p8824_p7 = pneg %p8823_p1 }
 0xe2c   : > { %p8829_p2 = pnand %p8828_p8, %p8824_p7 }
 0xe2e   : > { %8832 = shalt.err (!%p8829_p2)
}
 0xe2f   : > { %s8920_s20 = smov 128   ;;  %s8921_s27 = smov 8  }
 0xe30   : > { %8232 = dma.vmem_to_hbm [thread:$0]  (%p9011_p9), %s15049_s15, 4096, %s15047_s23, %s6720_s17, %s8920_s20, %s8920_s20, %s8921_s27  }
 0xe31 PF: > { %p8249_p3 = scmp.ge.s32.totalorder %s8907_s19, 2  ;;  %s6750_s8 = sand.u32 1, %s8879_s12  }
 0xe32   : > { %s6751_s11 = scalar_lea.sflag [#allocation6], %s6750_s8 }
 0xe33   : > { %p8245_p11 = pnand %p8249_p3, %p9017_p12 }
 0xe35   : > { %p8246_p13 = pneg %p8245_p11 }
 0xe37   : > { %8874 = dma.done.wait (%p8246_p13), %s6751_s11, 4096  }
 0xe38   : > { %8876 = vsyncadd (%p8246_p13), %s6751_s11, 4294963200  ;;  %s22_s19 = sadd.s32 1, %s8907_s19   ;;  %s17615_s28 = sld [smem:[#allocation18_spill]] }
 0xe39   : > { %p19_p4 = scmp.ge.s32.totalorder %s22_s19, 6   ;;  %s17616_s15 = sld [smem:[#allocation14_spill]] }
 0xe3a   : > { %s17617_s16 = sld [smem:[#allocation15_spill]]  ;;  %s17620_s12 = smov %s8883_s13 }
 0xe3b   : > { %s17618_s17 = sld [smem:[#allocation16_spill]]  ;;  %s17621_s13 = smov %s8887_s14 }
 0xe3c   : > { %s17619_s18 = sld [smem:[#allocation17_spill]]  ;;  %21 = sbr.rel (!%p19_p4) target bundleno = 12 (0xc), region = 108 }
 0xe3e   : > { %s17622_s14 = smov %s17615_s28 }
 0xe41   :  { %6756 = vsyncpa [#allocation5], 1 }
 0xe42   :  { %6758 = vsyncpa [#allocation5 + $0x1], 1 }
 0xe43   :  { %6759 = vsyncpa [#allocation8], 1 }
 0xe44   :  { %6761 = vsyncpa [#allocation8 + $0x1], 1 }
 0xe45   :  { %6762 = vsyncpa [#allocation6], 1 }
 0xe46   :  { %6764 = vsyncpa [#allocation6 + $0x1], 1 }

</bundles_post_ra>
